<compile_context>
chip_gen: v6e
topology: v6e:2x2x1
jax: 0.10.0
libtpu: 0.0.40
codegen_flags: <defaults>
</compile_context>

<pallas_src>
import functools

import jax
import jax.numpy as jnp
from jax.experimental import pallas as pl
from jax.experimental.pallas import tpu as pltpu

_LN_EPS = 1e-5
_C_PAD = 128                        # lane-dense class padding
_VMEM_LIMIT = 48 * 1024 * 1024      # fits v5e/v6e (128 MiB) and v7x (64 MiB/TC)
_K1_X_BUF_BYTES = 8 * 1024 * 1024   # per-buffer budget for kernel-1's f32 X block


def _round_up(v, m):
    return (v + m - 1) // m * m


def _choose_tiles(n, tm_target, tk_target):
    """Pad N *up* to the tile targets; never shrink tk below the target."""
    assert tm_target % 128 == 0 and tk_target % tm_target == 0, \
        "tm_target must be a multiple of 128 and divide tk_target"
    n_pad = _round_up(max(n, 1), tm_target)      # at most tm_target-1 extra rows
    if n_pad > tk_target:
        n_pad = _round_up(n, tk_target)          # at most tk_target-1 extra rows
        tk = tk_target
    else:
        tk = n_pad                               # single K tile
    tm = min(tm_target, n_pad)
    return n_pad, tm, tk


def _kernel1_row_tile(n_pad, tm, nfeat):
    """Row tile for kernel 1: bound the double-buffered (tm1, nfeat) f32 X block."""
    tm1 = tm
    while tm1 > 128 and tm1 * nfeat * 4 > _K1_X_BUF_BYTES:
        tm1 -= 128
    while n_pad % tm1:
        tm1 -= 128
    return tm1


def _layer_norm(v, g, b):
    mu = jnp.mean(v, axis=-1, keepdims=True)
    var = jnp.mean((v - mu) ** 2, axis=-1, keepdims=True)
    return (v - mu) * jax.lax.rsqrt(var + _LN_EPS) * g + b


# ---------------------------------------------------------------------------
# Kernel 1: Y = LN0(X) @ W1   (computed once; kept nhid-wide / bf16 in HBM)
# ---------------------------------------------------------------------------
def _feat_xform_kernel(x_ref, g_ref, b_ref, w1_ref, y_ref):
    xn = _layer_norm(x_ref[...], g_ref[...], b_ref[...])           # f32
    y = jnp.dot(xn.astype(jnp.bfloat16), w1_ref[...],
                preferred_element_type=jnp.float32)
    y_ref[...] = y.astype(y_ref.dtype)


# ---------------------------------------------------------------------------
# Kernel 2: Z2 = LN1(ReLU(A @ Y + b1)) @ W2pad   (streams A row/K tiles)
# ---------------------------------------------------------------------------
def _agg1_kernel(a_ref, y_ref, b1_ref, g_ref, be_ref, w2_ref, z2_ref, acc_ref):
    k = pl.program_id(1)

    @pl.when(k == 0)
    def _():
        acc_ref[...] = jnp.zeros_like(acc_ref)

    acc_ref[...] += jnp.dot(a_ref[...], y_ref[...],
                            preferred_element_type=jnp.float32)

    @pl.when(k == pl.num_programs(1) - 1)
    def _():
        h = jnp.maximum(acc_ref[...] + b1_ref[...], 0.0)           # bias + ReLU (f32)
        h = _layer_norm(h, g_ref[...], be_ref[...])                # LN over nhid (f32)
        # Dropout: identity in eval mode.
        z2 = jnp.dot(h.astype(jnp.bfloat16), w2_ref[...],
                     preferred_element_type=jnp.float32)
        z2_ref[...] = z2.astype(z2_ref.dtype)


# ---------------------------------------------------------------------------
# Kernel 3: out = log_softmax(A @ Z2 + b2pad)    (streams A row/K tiles)
# The f32 output block itself is the accumulator (block index (i,0) for all k).
# ---------------------------------------------------------------------------
def _agg2_kernel(a_ref, z2_ref, b2_ref, out_ref, *, nclass):
    k = pl.program_id(1)

    @pl.when(k == 0)
    def _():
        out_ref[...] = jnp.zeros_like(out_ref)

    out_ref[...] += jnp.dot(a_ref[...], z2_ref[...],
                            preferred_element_type=jnp.float32)

    @pl.when(k == pl.num_programs(1) - 1)
    def _():
        z = out_ref[...] + b2_ref[...]
        # Masked log_softmax over the first `nclass` lanes (rest is zero padding).
        col = jax.lax.broadcasted_iota(jnp.int32, z.shape, 1)
        valid = col < nclass
        zm = jnp.where(valid, z, jnp.finfo(jnp.float32).min)
        m = jnp.max(zm, axis=-1, keepdims=True)
        e = jnp.where(valid, jnp.exp(z - m), 0.0)
        lse = jnp.log(jnp.sum(e, axis=-1, keepdims=True))
        out_ref[...] = z - m - lse


# ---------------------------------------------------------------------------
# Adjacency preparation (hoisted out of the per-call forward: graph is static)
# ---------------------------------------------------------------------------
def prepare_adjacency(a_hat, *, tm=512, tk=2048):
    """Pad + bf16-cast the dense normalized adjacency ONCE; reuse across calls."""
    n = a_hat.shape[0]
    n_pad, _, _ = _choose_tiles(n, tm, tk)
    a_pad = jnp.zeros((n_pad, n_pad), jnp.bfloat16)
    return a_pad.at[:n, :n].set(a_hat.astype(jnp.bfloat16))


# ---------------------------------------------------------------------------
# Forward wrapper
# ---------------------------------------------------------------------------
@functools.partial(jax.jit, static_argnames=("tm", "tk"))
def gcn_forward_pallas(a_pad, x, params, *, tm=512, tk=2048):
    """Fused GCN forward.

    a_pad : [n_pad, n_pad] bf16 padded normalized adjacency (prepare_adjacency,
            built with the SAME tm/tk targets).
    x     : [N, F] f32 node features.
    """
    n, f = x.shape
    hdim = params["w1"].shape[1]
    c = params["w2"].shape[1]

    n_pad, tm, tk = _choose_tiles(n, tm, tk)
    assert a_pad.shape == (n_pad, n_pad) and a_pad.dtype == jnp.bfloat16, \
        "a_pad must come from prepare_adjacency with the same tile targets"
    grid_m = n_pad // tm
    grid_k = n_pad // tk
    tm1 = _kernel1_row_tile(n_pad, tm, f)

    # Small per-call pads (O(N*F) / O(H*C) only; the O(N^2) A pad is hoisted).
    x_pad = jnp.zeros((n_pad, f), jnp.float32).at[:n, :].set(x)
    w1_bf = params["w1"].astype(jnp.bfloat16)
    w2_pad = jnp.zeros((hdim, _C_PAD), jnp.float32).at[:, :c].set(params["w2"])
    w2_bf = w2_pad.astype(jnp.bfloat16)
    b2_pad = jnp.zeros((1, _C_PAD), jnp.float32).at[:, :c].set(params["b2"])

    cparams_1d = pltpu.CompilerParams(
        dimension_semantics=("parallel",), vmem_limit_bytes=_VMEM_LIMIT)
    cparams_2d = pltpu.CompilerParams(
        dimension_semantics=("parallel", "arbitrary"),
        vmem_limit_bytes=_VMEM_LIMIT)

    # ---- Kernel 1: Y = LN0(X) @ W1 ----
    y = pl.pallas_call(
        _feat_xform_kernel,
        out_shape=jax.ShapeDtypeStruct((n_pad, hdim), jnp.bfloat16),
        grid=(n_pad // tm1,),
        in_specs=[
            pl.BlockSpec((tm1, f), lambda i: (i, 0)),          # X rows
            pl.BlockSpec((1, f), lambda i: (0, 0)),            # ln0 gamma
            pl.BlockSpec((1, f), lambda i: (0, 0)),            # ln0 beta
            pl.BlockSpec((f, hdim), lambda i: (0, 0)),         # W1
        ],
        out_specs=pl.BlockSpec((tm1, hdim), lambda i: (i, 0)),
        compiler_params=cparams_1d,
    )(x_pad, params["ln0_g"], params["ln0_b"], w1_bf)

    # ---- Kernel 2: Z2 = LN1(ReLU(A @ Y + b1)) @ W2pad ----
    z2 = pl.pallas_call(
        _agg1_kernel,
        out_shape=jax.ShapeDtypeStruct((n_pad, _C_PAD), jnp.bfloat16),
        grid=(grid_m, grid_k),
        in_specs=[
            pl.BlockSpec((tm, tk), lambda i, k: (i, k)),        # A tile
            pl.BlockSpec((tk, hdim), lambda i, k: (k, 0)),      # Y K-slab
            pl.BlockSpec((1, hdim), lambda i, k: (0, 0)),       # b1
            pl.BlockSpec((1, hdim), lambda i, k: (0, 0)),       # ln1 gamma
            pl.BlockSpec((1, hdim), lambda i, k: (0, 0)),       # ln1 beta
            pl.BlockSpec((hdim, _C_PAD), lambda i, k: (0, 0)),  # W2 (padded)
        ],
        out_specs=pl.BlockSpec((tm, _C_PAD), lambda i, k: (i, 0)),
        scratch_shapes=[pltpu.VMEM((tm, hdim), jnp.float32)],
        compiler_params=cparams_2d,
    )(a_pad, y, params["b1"], params["ln1_g"], params["ln1_b"], w2_bf)

    # ---- Kernel 3: out = log_softmax(A @ Z2 + b2pad) (output-resident acc) ----
    out_pad = pl.pallas_call(
        functools.partial(_agg2_kernel, nclass=c),
        out_shape=jax.ShapeDtypeStruct((n_pad, _C_PAD), jnp.float32),
        grid=(grid_m, grid_k),
        in_specs=[
            pl.BlockSpec((tm, tk), lambda i, k: (i, k)),        # A tile
            pl.BlockSpec((tk, _C_PAD), lambda i, k: (k, 0)),    # Z2 K-slab
            pl.BlockSpec((1, _C_PAD), lambda i, k: (0, 0)),     # b2 (padded)
        ],
        out_specs=pl.BlockSpec((tm, _C_PAD), lambda i, k: (i, 0)),
        compiler_params=cparams_2d,
    )(a_pad, z2, b2_pad)

    return out_pad[:n, :c]


# ---------------------------------------------------------------------------
# Glue (plain JAX): dense normalized adjacency + deterministic parameter init
# ---------------------------------------------------------------------------
def build_normalized_adjacency(edge_index, edge_weight, num_nodes):
    """A_hat = D^-1/2 (A + I) D^-1/2 with A[dst, src] = w (PyG gcn_norm)."""
    src = edge_index[0]
    dst = edge_index[1]
    if edge_weight is None:
        edge_weight = jnp.ones(src.shape, dtype=jnp.float32)
    adj = jnp.zeros((num_nodes, num_nodes), dtype=jnp.float32)
    adj = adj.at[dst, src].add(edge_weight)
    adj = adj + jnp.eye(num_nodes, dtype=jnp.float32)  # self loops, weight 1
    deg = jnp.sum(adj, axis=1)
    d_inv_sqrt = jnp.where(deg > 0, jax.lax.rsqrt(deg), 0.0)
    return adj * d_inv_sqrt[:, None] * d_inv_sqrt[None, :]


def _kaiming_normal(key, fan_in, fan_out):
    # kaiming_normal_ (fan_in mode, ReLU gain): std = sqrt(2 / fan_in)
    std = jnp.sqrt(2.0 / fan_in)
    return jax.random.normal(key, (fan_in, fan_out), dtype=jnp.float32) * std


def _init_params(key, nfeat, nhid, nclass):
    k1, k2 = jax.random.split(key)
    return {
        # LayerNorm defaults: weight=1, bias=0
        "ln0_g": jnp.ones((1, nfeat), jnp.float32),
        "ln0_b": jnp.zeros((1, nfeat), jnp.float32),
        "ln1_g": jnp.ones((1, nhid), jnp.float32),
        "ln1_b": jnp.zeros((1, nhid), jnp.float32),
        # GCNConv lin weights: kaiming_normal (stored transposed), biases: 0
        "w1": _kaiming_normal(k1, nfeat, nhid),
        "b1": jnp.zeros((1, nhid), jnp.float32),
        "w2": _kaiming_normal(k2, nhid, nclass),
        "b2": jnp.zeros((1, nclass), jnp.float32),
    }


# ---------------------------------------------------------------------------
# Pure-JAX reference (same bf16 MXU operands / f32 accumulation as the kernels)
# ---------------------------------------------------------------------------
def gcn_forward_ref(a_hat, x, p):
    bf = jnp.bfloat16
    a = a_hat.astype(bf)
    xn = _layer_norm(x, p["ln0_g"], p["ln0_b"])
    y = jnp.dot(xn.astype(bf), p["w1"].astype(bf),
                preferred_element_type=jnp.float32).astype(bf)
    h = jnp.dot(a, y, preferred_element_type=jnp.float32) + p["b1"]
    h = jnp.maximum(h, 0.0)
    h = _layer_norm(h, p["ln1_g"], p["ln1_b"])
    z2 = jnp.dot(h.astype(bf), p["w2"].astype(bf),
                 preferred_element_type=jnp.float32).astype(bf)
    z = jnp.dot(a, z2, preferred_element_type=jnp.float32) + p["b2"]
    return jax.nn.log_softmax(z, axis=1)


if __name__ == "__main__":
    key = jax.random.PRNGKey(0)
    k_feat, k_edge, k_param = jax.random.split(key, 3)

    # Small graph consistent with the module: N nodes, nfeat -> nhid -> nclass
    num_nodes = 8
    nfeat, nhid, nclass = 16, 32, 4
    num_edges = 16

    x = jax.random.normal(k_feat, (num_nodes, nfeat), dtype=jnp.float32)
    edge_index = jax.random.randint(k_edge, (2, num_edges), 0, num_nodes,
                                    dtype=jnp.int32)
    edge_weight = None  # default: unit weights

    params = _init_params(k_param, nfeat, nhid, nclass)
    a_hat = build_normalized_adjacency(edge_index, edge_weight, num_nodes)

    # A pad/cast hoisted: built once, reused across every forward call.
    a_pad = jax.block_until_ready(prepare_adjacency(a_hat))

    out = gcn_forward_pallas(a_pad, x, params)
    out = jax.block_until_ready(out)

    assert out.shape == (num_nodes, nclass)
    assert bool(jnp.all(jnp.isfinite(out))), "non-finite output"

    ref = gcn_forward_ref(a_hat, x, params)
    assert jnp.allclose(out, ref, atol=1e-2, rtol=1e-2), \
        "mismatch vs bf16-operand reference"

    print("KERNEL_OK")
</pallas_src>

<mosaic_0001>
module attributes {stable_mosaic.version = 11 : i64} {
  func.func @_feat_xform_kernel(%arg0: i32, %arg1: memref<512x16xf32, #tpu.memory_space<vmem>>, %arg2: memref<1x16xf32, #tpu.memory_space<vmem>>, %arg3: memref<1x16xf32, #tpu.memory_space<vmem>>, %arg4: memref<16x32xbf16, #tpu.memory_space<vmem>>, %arg5: memref<512x32xbf16, #tpu.memory_space<vmem>>) attributes {dimension_semantics = [#tpu.dimension_semantics<parallel>], iteration_bounds = array<i64: 1>, scalar_prefetch = 0 : i64, scratch_operands = 0 : i64, tpu.core_type = #tpu.core_type<tc>, window_params = [{transform_indices = @transform_0, window_bounds = array<i64: 512, 16>}, {pipeline_mode = #tpu.pipeline_mode<synchronous>, transform_indices = @transform_1, window_bounds = array<i64: 1, 16>}, {pipeline_mode = #tpu.pipeline_mode<synchronous>, transform_indices = @transform_2, window_bounds = array<i64: 1, 16>}, {pipeline_mode = #tpu.pipeline_mode<synchronous>, transform_indices = @transform_3, window_bounds = array<i64: 16, 32>}, {transform_indices = @transform_4, window_bounds = array<i64: 512, 32>}]} {
    %c0 = arith.constant 0 : index
    %c0_0 = arith.constant 0 : index
    %0 = vector.load %arg1[%c0, %c0_0] : memref<512x16xf32, #tpu.memory_space<vmem>>, vector<512x16xf32>
    %c0_1 = arith.constant 0 : index
    %c0_2 = arith.constant 0 : index
    %1 = vector.load %arg2[%c0_1, %c0_2] : memref<1x16xf32, #tpu.memory_space<vmem>>, vector<1x16xf32>
    %c0_3 = arith.constant 0 : index
    %c0_4 = arith.constant 0 : index
    %2 = vector.load %arg3[%c0_3, %c0_4] : memref<1x16xf32, #tpu.memory_space<vmem>>, vector<1x16xf32>
    %cst = arith.constant dense<0.000000e+00> : vector<512xf32>
    %3 = vector.multi_reduction <add>, %0, %cst [1] : vector<512x16xf32> to vector<512xf32>
    %4 = vector.shape_cast %3 : vector<512xf32> to vector<512x1xf32>
    %cst_5 = arith.constant 1.600000e+01 : f32
    %5 = vector.broadcast %cst_5 : f32 to vector<512x1xf32>
    %6 = arith.divf %4, %5 : vector<512x1xf32>
    %7 = vector.broadcast %6 : vector<512x1xf32> to vector<512x16xf32>
    %8 = arith.subf %0, %7 : vector<512x16xf32>
    %9 = arith.mulf %8, %8 : vector<512x16xf32>
    %cst_6 = arith.constant dense<0.000000e+00> : vector<512xf32>
    %10 = vector.multi_reduction <add>, %9, %cst_6 [1] : vector<512x16xf32> to vector<512xf32>
    %11 = vector.shape_cast %10 : vector<512xf32> to vector<512x1xf32>
    %cst_7 = arith.constant 1.600000e+01 : f32
    %12 = vector.broadcast %cst_7 : f32 to vector<512x1xf32>
    %13 = arith.divf %11, %12 : vector<512x1xf32>
    %14 = vector.broadcast %6 : vector<512x1xf32> to vector<512x16xf32>
    %15 = arith.subf %0, %14 : vector<512x16xf32>
    %cst_8 = arith.constant 9.99999974E-6 : f32
    %16 = vector.broadcast %cst_8 : f32 to vector<512x1xf32>
    %17 = arith.addf %13, %16 : vector<512x1xf32>
    %18 = math.rsqrt %17 : vector<512x1xf32>
    %19 = vector.broadcast %18 : vector<512x1xf32> to vector<512x16xf32>
    %20 = arith.mulf %15, %19 : vector<512x16xf32>
    %21 = vector.broadcast %1 : vector<1x16xf32> to vector<512x16xf32>
    %22 = arith.mulf %20, %21 : vector<512x16xf32>
    %23 = vector.broadcast %2 : vector<1x16xf32> to vector<512x16xf32>
    %24 = arith.addf %22, %23 : vector<512x16xf32>
    %25 = arith.truncf %24 : vector<512x16xf32> to vector<512x16xbf16>
    %c0_9 = arith.constant 0 : index
    %c0_10 = arith.constant 0 : index
    %26 = vector.load %arg4[%c0_9, %c0_10] : memref<16x32xbf16, #tpu.memory_space<vmem>>, vector<16x32xbf16>
    %cst_11 = arith.constant dense<0.000000e+00> : vector<512x32xf32>
    %27 = tpu.matmul %25, %26, %cst_11 {dimension_numbers = #tpu.dot_dimension_numbers<[1], [0], [0], [1], [0, 0, 1, 1], [], []>} : vector<512x16xbf16>, vector<16x32xbf16>, vector<512x32xf32> -> vector<512x32xf32>
    %28 = arith.truncf %27 : vector<512x32xf32> to vector<512x32xbf16>
    %c0_12 = arith.constant 0 : index
    %c0_13 = arith.constant 0 : index
    %29 = vector.load %arg5[%c0_12, %c0_13] : memref<512x32xbf16, #tpu.memory_space<vmem>>, vector<512x32xbf16>
    tpu.vector_store %arg5[%c0_12, %c0_13], %28 {strides = array<i32>} : memref<512x32xbf16, #tpu.memory_space<vmem>>, vector<512x32xbf16>,
    return
  }
  func.func @transform_0(%arg0: i32) -> (i32, i32) {
    %c0_i32 = arith.constant 0 : i32
    %c0_i32_0 = arith.constant 0 : i32
    return %arg0, %c0_i32 : i32, i32
  }
  func.func @transform_1(%arg0: i32) -> (i32, i32) {
    %c0_i32 = arith.constant 0 : i32
    %c0_i32_0 = arith.constant 0 : i32
    %c0_i32_1 = arith.constant 0 : i32
    return %c0_i32, %c0_i32_0 : i32, i32
  }
  func.func @transform_2(%arg0: i32) -> (i32, i32) {
    %c0_i32 = arith.constant 0 : i32
    %c0_i32_0 = arith.constant 0 : i32
    %c0_i32_1 = arith.constant 0 : i32
    return %c0_i32, %c0_i32_0 : i32, i32
  }
  func.func @transform_3(%arg0: i32) -> (i32, i32) {
    %c0_i32 = arith.constant 0 : i32
    %c0_i32_0 = arith.constant 0 : i32
    %c0_i32_1 = arith.constant 0 : i32
    return %c0_i32, %c0_i32_0 : i32, i32
  }
  func.func @transform_4(%arg0: i32) -> (i32, i32) {
    %c0_i32 = arith.constant 0 : i32
    %c0_i32_0 = arith.constant 0 : i32
    return %arg0, %c0_i32 : i32, i32
  }
}

module attributes {stable_mosaic.version = 11 : i64} {
  func.func @_agg1_kernel(%arg0: i32, %arg1: i32, %arg2: memref<512x512xbf16, #tpu.memory_space<vmem>>, %arg3: memref<512x32xbf16, #tpu.memory_space<vmem>>, %arg4: memref<1x32xf32, #tpu.memory_space<vmem>>, %arg5: memref<1x32xf32, #tpu.memory_space<vmem>>, %arg6: memref<1x32xf32, #tpu.memory_space<vmem>>, %arg7: memref<32x128xbf16, #tpu.memory_space<vmem>>, %arg8: memref<512x128xbf16, #tpu.memory_space<vmem>>, %arg9: memref<512x32xf32, #tpu.memory_space<vmem>>) attributes {dimension_semantics = [#tpu.dimension_semantics<parallel>, #tpu.dimension_semantics<arbitrary>], iteration_bounds = array<i64: 1, 1>, scalar_prefetch = 0 : i64, scratch_operands = 1 : i64, tpu.core_type = #tpu.core_type<tc>, window_params = [{transform_indices = @transform_0, window_bounds = array<i64: 512, 512>}, {transform_indices = @transform_1, window_bounds = array<i64: 512, 32>}, {pipeline_mode = #tpu.pipeline_mode<synchronous>, transform_indices = @transform_2, window_bounds = array<i64: 1, 32>}, {pipeline_mode = #tpu.pipeline_mode<synchronous>, transform_indices = @transform_3, window_bounds = array<i64: 1, 32>}, {pipeline_mode = #tpu.pipeline_mode<synchronous>, transform_indices = @transform_4, window_bounds = array<i64: 1, 32>}, {pipeline_mode = #tpu.pipeline_mode<synchronous>, transform_indices = @transform_5, window_bounds = array<i64: 32, 128>}, {transform_indices = @transform_6, window_bounds = array<i64: 512, 128>}]} {
    %c0_i32 = arith.constant 0 : i32
    %0 = arith.cmpi eq, %arg1, %c0_i32 : i32
    %1 = arith.extui %0 : i1 to i32
    %c0_i32_0 = arith.constant 0 : i32
    %2 = arith.cmpi ne, %1, %c0_i32_0 : i32
    scf.if %2 {
      %cst_10 = arith.constant 0.000000e+00 : f32
      %12 = vector.broadcast %cst_10 : f32 to vector<512x32xf32>
      %c0_11 = arith.constant 0 : index
      %c0_12 = arith.constant 0 : index
      %13 = vector.load %arg9[%c0_11, %c0_12] : memref<512x32xf32, #tpu.memory_space<vmem>>, vector<512x32xf32>
      tpu.vector_store %arg9[%c0_11, %c0_12], %12 {strides = array<i32>} : memref<512x32xf32, #tpu.memory_space<vmem>>, vector<512x32xf32>,
    } else {
    }
    %c0 = arith.constant 0 : index
    %c0_1 = arith.constant 0 : index
    %3 = vector.load %arg9[%c0, %c0_1] : memref<512x32xf32, #tpu.memory_space<vmem>>, vector<512x32xf32>
    %c0_2 = arith.constant 0 : index
    %c0_3 = arith.constant 0 : index
    %4 = vector.load %arg2[%c0_2, %c0_3] : memref<512x512xbf16, #tpu.memory_space<vmem>>, vector<512x512xbf16>
    %c0_4 = arith.constant 0 : index
    %c0_5 = arith.constant 0 : index
    %5 = vector.load %arg3[%c0_4, %c0_5] : memref<512x32xbf16, #tpu.memory_space<vmem>>, vector<512x32xbf16>
    %cst = arith.constant dense<0.000000e+00> : vector<512x32xf32>
    %6 = tpu.matmul %4, %5, %cst {dimension_numbers = #tpu.dot_dimension_numbers<[1], [0], [0], [1], [0, 0, 1, 1], [], []>} : vector<512x512xbf16>, vector<512x32xbf16>, vector<512x32xf32> -> vector<512x32xf32>
    %7 = arith.addf %3, %6 : vector<512x32xf32>
    %c0_6 = arith.constant 0 : index
    %c0_7 = arith.constant 0 : index
    %8 = vector.load %arg9[%c0_6, %c0_7] : memref<512x32xf32, #tpu.memory_space<vmem>>, vector<512x32xf32>
    tpu.vector_store %arg9[%c0_6, %c0_7], %7 {strides = array<i32>} : memref<512x32xf32, #tpu.memory_space<vmem>>, vector<512x32xf32>,
    %c0_i32_8 = arith.constant 0 : i32
    %9 = arith.cmpi eq, %arg1, %c0_i32_8 : i32
    %10 = arith.extui %9 : i1 to i32
    %c0_i32_9 = arith.constant 0 : i32
    %11 = arith.cmpi ne, %10, %c0_i32_9 : i32
    scf.if %11 {
      %c0_10 = arith.constant 0 : index
      %c0_11 = arith.constant 0 : index
      %12 = vector.load %arg9[%c0_10, %c0_11] : memref<512x32xf32, #tpu.memory_space<vmem>>, vector<512x32xf32>
      %c0_12 = arith.constant 0 : index
      %c0_13 = arith.constant 0 : index
      %13 = vector.load %arg4[%c0_12, %c0_13] : memref<1x32xf32, #tpu.memory_space<vmem>>, vector<1x32xf32>
      %14 = vector.broadcast %13 : vector<1x32xf32> to vector<512x32xf32>
      %15 = arith.addf %12, %14 : vector<512x32xf32>
      %cst_14 = arith.constant 0.000000e+00 : f32
      %16 = vector.broadcast %cst_14 : f32 to vector<512x32xf32>
      %17 = arith.maximumf %15, %16 : vector<512x32xf32>
      %c0_15 = arith.constant 0 : index
      %c0_16 = arith.constant 0 : index
      %18 = vector.load %arg5[%c0_15, %c0_16] : memref<1x32xf32, #tpu.memory_space<vmem>>, vector<1x32xf32>
      %c0_17 = arith.constant 0 : index
      %c0_18 = arith.constant 0 : index
      %19 = vector.load %arg6[%c0_17, %c0_18] : memref<1x32xf32, #tpu.memory_space<vmem>>, vector<1x32xf32>
      %cst_19 = arith.constant dense<0.000000e+00> : vector<512xf32>
      %20 = vector.multi_reduction <add>, %17, %cst_19 [1] : vector<512x32xf32> to vector<512xf32>
      %21 = vector.shape_cast %20 : vector<512xf32> to vector<512x1xf32>
      %cst_20 = arith.constant 3.200000e+01 : f32
      %22 = vector.broadcast %cst_20 : f32 to vector<512x1xf32>
      %23 = arith.divf %21, %22 : vector<512x1xf32>
      %24 = vector.broadcast %23 : vector<512x1xf32> to vector<512x32xf32>
      %25 = arith.subf %17, %24 : vector<512x32xf32>
      %26 = arith.mulf %25, %25 : vector<512x32xf32>
      %cst_21 = arith.constant dense<0.000000e+00> : vector<512xf32>
      %27 = vector.multi_reduction <add>, %26, %cst_21 [1] : vector<512x32xf32> to vector<512xf32>
      %28 = vector.shape_cast %27 : vector<512xf32> to vector<512x1xf32>
      %cst_22 = arith.constant 3.200000e+01 : f32
      %29 = vector.broadcast %cst_22 : f32 to vector<512x1xf32>
      %30 = arith.divf %28, %29 : vector<512x1xf32>
      %31 = vector.broadcast %23 : vector<512x1xf32> to vector<512x32xf32>
      %32 = arith.subf %17, %31 : vector<512x32xf32>
      %cst_23 = arith.constant 9.99999974E-6 : f32
      %33 = vector.broadcast %cst_23 : f32 to vector<512x1xf32>
      %34 = arith.addf %30, %33 : vector<512x1xf32>
      %35 = math.rsqrt %34 : vector<512x1xf32>
      %36 = vector.broadcast %35 : vector<512x1xf32> to vector<512x32xf32>
      %37 = arith.mulf %32, %36 : vector<512x32xf32>
      %38 = vector.broadcast %18 : vector<1x32xf32> to vector<512x32xf32>
      %39 = arith.mulf %37, %38 : vector<512x32xf32>
      %40 = vector.broadcast %19 : vector<1x32xf32> to vector<512x32xf32>
      %41 = arith.addf %39, %40 : vector<512x32xf32>
      %42 = arith.truncf %41 : vector<512x32xf32> to vector<512x32xbf16>
      %c0_24 = arith.constant 0 : index
      %c0_25 = arith.constant 0 : index
      %43 = vector.load %arg7[%c0_24, %c0_25] : memref<32x128xbf16, #tpu.memory_space<vmem>>, vector<32x128xbf16>
      %cst_26 = arith.constant dense<0.000000e+00> : vector<512x128xf32>
      %44 = tpu.matmul %42, %43, %cst_26 {dimension_numbers = #tpu.dot_dimension_numbers<[1], [0], [0], [1], [0, 0, 1, 1], [], []>} : vector<512x32xbf16>, vector<32x128xbf16>, vector<512x128xf32> -> vector<512x128xf32>
      %45 = arith.truncf %44 : vector<512x128xf32> to vector<512x128xbf16>
      %c0_27 = arith.constant 0 : index
      %c0_28 = arith.constant 0 : index
      %46 = vector.load %arg8[%c0_27, %c0_28] : memref<512x128xbf16, #tpu.memory_space<vmem>>, vector<512x128xbf16>
      tpu.vector_store %arg8[%c0_27, %c0_28], %45 {strides = array<i32>} : memref<512x128xbf16, #tpu.memory_space<vmem>>, vector<512x128xbf16>,
    } else {
    }
    return
  }
  func.func @transform_0(%arg0: i32, %arg1: i32) -> (i32, i32) {
    %c0_i32 = arith.constant 0 : i32
    return %arg0, %arg1 : i32, i32
  }
  func.func @transform_1(%arg0: i32, %arg1: i32) -> (i32, i32) {
    %c0_i32 = arith.constant 0 : i32
    %c0_i32_0 = arith.constant 0 : i32
    return %arg1, %c0_i32 : i32, i32
  }
  func.func @transform_2(%arg0: i32, %arg1: i32) -> (i32, i32) {
    %c0_i32 = arith.constant 0 : i32
    %c0_i32_0 = arith.constant 0 : i32
    %c0_i32_1 = arith.constant 0 : i32
    return %c0_i32, %c0_i32_0 : i32, i32
  }
  func.func @transform_3(%arg0: i32, %arg1: i32) -> (i32, i32) {
    %c0_i32 = arith.constant 0 : i32
    %c0_i32_0 = arith.constant 0 : i32
    %c0_i32_1 = arith.constant 0 : i32
    return %c0_i32, %c0_i32_0 : i32, i32
  }
  func.func @transform_4(%arg0: i32, %arg1: i32) -> (i32, i32) {
    %c0_i32 = arith.constant 0 : i32
    %c0_i32_0 = arith.constant 0 : i32
    %c0_i32_1 = arith.constant 0 : i32
    return %c0_i32, %c0_i32_0 : i32, i32
  }
  func.func @transform_5(%arg0: i32, %arg1: i32) -> (i32, i32) {
    %c0_i32 = arith.constant 0 : i32
    %c0_i32_0 = arith.constant 0 : i32
    %c0_i32_1 = arith.constant 0 : i32
    return %c0_i32, %c0_i32_0 : i32, i32
  }
  func.func @transform_6(%arg0: i32, %arg1: i32) -> (i32, i32) {
    %c0_i32 = arith.constant 0 : i32
    %c0_i32_0 = arith.constant 0 : i32
    return %arg0, %c0_i32 : i32, i32
  }
}

module attributes {stable_mosaic.version = 11 : i64} {
  func.func @_agg2_kernel(%arg0: i32, %arg1: i32, %arg2: memref<512x512xbf16, #tpu.memory_space<vmem>>, %arg3: memref<512x128xbf16, #tpu.memory_space<vmem>>, %arg4: memref<1x128xf32, #tpu.memory_space<vmem>>, %arg5: memref<512x128xf32, #tpu.memory_space<vmem>>) attributes {dimension_semantics = [#tpu.dimension_semantics<parallel>, #tpu.dimension_semantics<arbitrary>], iteration_bounds = array<i64: 1, 1>, scalar_prefetch = 0 : i64, scratch_operands = 0 : i64, tpu.core_type = #tpu.core_type<tc>, window_params = [{transform_indices = @transform_0, window_bounds = array<i64: 512, 512>}, {transform_indices = @transform_1, window_bounds = array<i64: 512, 128>}, {pipeline_mode = #tpu.pipeline_mode<synchronous>, transform_indices = @transform_2, window_bounds = array<i64: 1, 128>}, {transform_indices = @transform_3, window_bounds = array<i64: 512, 128>}]} {
    %c0_i32 = arith.constant 0 : i32
    %0 = arith.cmpi eq, %arg1, %c0_i32 : i32
    %1 = arith.extui %0 : i1 to i32
    %c0_i32_0 = arith.constant 0 : i32
    %2 = arith.cmpi ne, %1, %c0_i32_0 : i32
    scf.if %2 {
      %cst_10 = arith.constant 0.000000e+00 : f32
      %12 = vector.broadcast %cst_10 : f32 to vector<512x128xf32>
      %c0_11 = arith.constant 0 : index
      %c0_12 = arith.constant 0 : index
      %13 = vector.load %arg5[%c0_11, %c0_12] : memref<512x128xf32, #tpu.memory_space<vmem>>, vector<512x128xf32>
      tpu.vector_store %arg5[%c0_11, %c0_12], %12 {strides = array<i32>} : memref<512x128xf32, #tpu.memory_space<vmem>>, vector<512x128xf32>,
    } else {
    }
    %c0 = arith.constant 0 : index
    %c0_1 = arith.constant 0 : index
    %3 = vector.load %arg5[%c0, %c0_1] : memref<512x128xf32, #tpu.memory_space<vmem>>, vector<512x128xf32>
    %c0_2 = arith.constant 0 : index
    %c0_3 = arith.constant 0 : index
    %4 = vector.load %arg2[%c0_2, %c0_3] : memref<512x512xbf16, #tpu.memory_space<vmem>>, vector<512x512xbf16>
    %c0_4 = arith.constant 0 : index
    %c0_5 = arith.constant 0 : index
    %5 = vector.load %arg3[%c0_4, %c0_5] : memref<512x128xbf16, #tpu.memory_space<vmem>>, vector<512x128xbf16>
    %cst = arith.constant dense<0.000000e+00> : vector<512x128xf32>
    %6 = tpu.matmul %4, %5, %cst {dimension_numbers = #tpu.dot_dimension_numbers<[1], [0], [0], [1], [0, 0, 1, 1], [], []>} : vector<512x512xbf16>, vector<512x128xbf16>, vector<512x128xf32> -> vector<512x128xf32>
    %7 = arith.addf %3, %6 : vector<512x128xf32>
    %c0_6 = arith.constant 0 : index
    %c0_7 = arith.constant 0 : index
    %8 = vector.load %arg5[%c0_6, %c0_7] : memref<512x128xf32, #tpu.memory_space<vmem>>, vector<512x128xf32>
    tpu.vector_store %arg5[%c0_6, %c0_7], %7 {strides = array<i32>} : memref<512x128xf32, #tpu.memory_space<vmem>>, vector<512x128xf32>,
    %c0_i32_8 = arith.constant 0 : i32
    %9 = arith.cmpi eq, %arg1, %c0_i32_8 : i32
    %10 = arith.extui %9 : i1 to i32
    %c0_i32_9 = arith.constant 0 : i32
    %11 = arith.cmpi ne, %10, %c0_i32_9 : i32
    scf.if %11 {
      %c0_10 = arith.constant 0 : index
      %c0_11 = arith.constant 0 : index
      %12 = vector.load %arg5[%c0_10, %c0_11] : memref<512x128xf32, #tpu.memory_space<vmem>>, vector<512x128xf32>
      %c0_12 = arith.constant 0 : index
      %c0_13 = arith.constant 0 : index
      %13 = vector.load %arg4[%c0_12, %c0_13] : memref<1x128xf32, #tpu.memory_space<vmem>>, vector<1x128xf32>
      %14 = vector.broadcast %13 : vector<1x128xf32> to vector<512x128xf32>
      %15 = arith.addf %12, %14 : vector<512x128xf32>
      %16 = tpu.iota {dimensions = array<i32: 1>} : vector<512x128xi32>
      %c4_i32 = arith.constant 4 : i32
      %17 = vector.broadcast %c4_i32 : i32 to vector<512x128xi32>
      %18 = arith.cmpi slt, %16, %17 : vector<512x128xi32>
      %cst_14 = arith.constant -3.40282347E+38 : f32
      %19 = vector.broadcast %cst_14 : f32 to vector<512x128xf32>
      %20 = arith.select %18, %15, %19 : vector<512x128xi1>, vector<512x128xf32>
      %cst_15 = arith.constant dense<0xFF800000> : vector<512xf32>
      %21 = vector.multi_reduction <maximumf>, %20, %cst_15 [1] : vector<512x128xf32> to vector<512xf32>
      %22 = vector.shape_cast %21 : vector<512xf32> to vector<512x1xf32>
      %23 = vector.broadcast %22 : vector<512x1xf32> to vector<512x128xf32>
      %24 = arith.subf %15, %23 : vector<512x128xf32>
      %25 = math.exp %24 : vector<512x128xf32>
      %cst_16 = arith.constant 0.000000e+00 : f32
      %26 = vector.broadcast %cst_16 : f32 to vector<512x128xf32>
      %27 = arith.select %18, %25, %26 : vector<512x128xi1>, vector<512x128xf32>
      %cst_17 = arith.constant dense<0.000000e+00> : vector<512xf32>
      %28 = vector.multi_reduction <add>, %27, %cst_17 [1] : vector<512x128xf32> to vector<512xf32>
      %29 = vector.shape_cast %28 : vector<512xf32> to vector<512x1xf32>
      %30 = math.log %29 : vector<512x1xf32>
      %31 = vector.broadcast %22 : vector<512x1xf32> to vector<512x128xf32>
      %32 = arith.subf %15, %31 : vector<512x128xf32>
      %33 = vector.broadcast %30 : vector<512x1xf32> to vector<512x128xf32>
      %34 = arith.subf %32, %33 : vector<512x128xf32>
      %c0_18 = arith.constant 0 : index
      %c0_19 = arith.constant 0 : index
      %35 = vector.load %arg5[%c0_18, %c0_19] : memref<512x128xf32, #tpu.memory_space<vmem>>, vector<512x128xf32>
      tpu.vector_store %arg5[%c0_18, %c0_19], %34 {strides = array<i32>} : memref<512x128xf32, #tpu.memory_space<vmem>>, vector<512x128xf32>,
    } else {
    }
    return
  }
  func.func @transform_0(%arg0: i32, %arg1: i32) -> (i32, i32) {
    %c0_i32 = arith.constant 0 : i32
    return %arg0, %arg1 : i32, i32
  }
  func.func @transform_1(%arg0: i32, %arg1: i32) -> (i32, i32) {
    %c0_i32 = arith.constant 0 : i32
    %c0_i32_0 = arith.constant 0 : i32
    return %arg1, %c0_i32 : i32, i32
  }
  func.func @transform_2(%arg0: i32, %arg1: i32) -> (i32, i32) {
    %c0_i32 = arith.constant 0 : i32
    %c0_i32_0 = arith.constant 0 : i32
    %c0_i32_1 = arith.constant 0 : i32
    return %c0_i32, %c0_i32_0 : i32, i32
  }
  func.func @transform_3(%arg0: i32, %arg1: i32) -> (i32, i32) {
    %c0_i32 = arith.constant 0 : i32
    %c0_i32_0 = arith.constant 0 : i32
    return %arg0, %c0_i32 : i32, i32
  }
}

</mosaic_0001>

<bundles_post_ra>
// kernel: gcn_forward_pallas.3
= control target key start
LH: loop header
LB: loop body
LE: loop exit
PB: predicated region body
PF: predicated region fallthrough
CT: control target
= control target key end

     0   :  { %9 = vsyncpa [#allocation3], 0  ;;  %s3617_s0 = inlined_call_operand.vmem [shape: f32[512,16], index: 0, kind: input, shape index: {}]   ;;  %s3618_s1 = inlined_call_operand.hbm [shape: f32[1,16], index: 1, kind: input, shape index: {}]   ;;  %s3619_s2 = inlined_call_operand.hbm [shape: f32[1,16], index: 2, kind: input, shape index: {}]   ;;  %s3620_s3 = inlined_call_operand.vmem [shape: bf16[16,32], index: 3, kind: input, shape index: {}]   ;;  %s3621_s4 = inlined_call_operand.vmem [shape: bf16[512,32], index: 4, kind: output, shape index: {}]  }
   0x1   :  { %10 = vsyncpa [#allocation5], 0  ;;  %s2275_s15 = smov [#allocation2]   ;;  %s2276_s17 = smov [#allocation4]  }
   0x2   :  { %s19_s16 = sshll.u32 %s2275_s15, 4  ;;  %s29_s18 = sshll.u32 %s2276_s17, 4  ;;  %s20_s16 = int_to_ptr.vmem [resolvable:$true] %s19_s16  ;;  %s30_s18 = int_to_ptr.vmem [resolvable:$true] %s29_s18 }
   0x3   :  { %s2239_s19 = scalar_lea.vmem %s20_s16, 16  ;;  %s2243_s20 = scalar_lea.vmem %s20_s16, 32 }
   0x4   :  { %p2240_p0 = scmp.ne.s32.totalorder %s20_s16, %s2239_s19  ;;  %p2244_p1 = scmp.lt.s32.totalorder %s20_s16, %s20_s16 }
   0x5   :  { %p2245_p2 = scmp.lt.s32.totalorder %s2243_s20, %s2239_s19 }
   0x7   :  { %p2246_p3 = por %p2245_p2, %p2244_p1 }
   0x9   :  { %p2247_p4 = pnand %p2246_p3, %p2240_p0 }
   0xb   :  { %2250 = shalt.err (!%p2247_p4)
}
   0xc   :  { %22 = dma.hbm_to_vmem [thread:$0]  %s3618_s1, 16, %s20_s16, [#allocation3]  }
   0xd   :  { %s2259_s23 = scalar_lea.vmem %s30_s18, 16  ;;  %s2263_s24 = scalar_lea.vmem %s30_s18, 32 }
   0xe   :  { %p2260_p5 = scmp.ne.s32.totalorder %s30_s18, %s2259_s23  ;;  %p2264_p6 = scmp.lt.s32.totalorder %s30_s18, %s30_s18 }
   0xf   :  { %p2265_p7 = scmp.lt.s32.totalorder %s2263_s24, %s2259_s23 }
  0x11   :  { %p2266_p8 = por %p2265_p7, %p2264_p6 }
  0x13   :  { %p2267_p9 = pnand %p2266_p8, %p2260_p5 }
  0x15   :  { %2270 = shalt.err (!%p2267_p9)
}
  0x16   :  { %32 = dma.hbm_to_vmem [thread:$0]  %s3619_s2, 16, %s30_s18, [#allocation5]  }
  0x17   :  { %2271 = dma.done.wait [#allocation3], 16  }
  0x18   :  { %2272 = vsyncadd [#allocation3], 4294967280 }
  0x19   :  { %2273 = dma.done.wait [#allocation5], 16  }
  0x1a   :  { %2274 = vsyncadd [#allocation5], 4294967280  ;;  %vm108_vm0 = vcmask 130048   ;;  %v2311_v0 = vld [vmem:[%s3617_s0] sm:$0xff]  ;;  %v2321_v2 = vld [vmem:[%s3617_s0 + $0x8] sm:$0xff]  ;;  %vm1763_vm1 = vcmask 257024  }
  0x1b   :  { %v2316_v1 = vld [vmem:[%s3617_s0 + $0x100] sm:$0xff]  ;;  %v109_v3 = vsel %vm108_vm0, %v2311_v0, 0.0  ;;  %v2330_v5 = vld [vmem:[%s3617_s0 + $0x108] sm:$0xff]  ;;  %v112_v6 = vsel %vm108_vm0, %v2321_v2, 0.0  ;;  %v2339_v8 = vld [vmem:[%s3617_s0 + $0x10] sm:$0xff] }
  0x1c   :  { %v205_v4 = vsel %vm108_vm0, %v2316_v1, 0.0  ;;  %110 = vadd.xlane.f32.xlu0 %v109_v3  ;;  %v208_v7 = vsel %vm108_vm0, %v2330_v5, 0.0  ;;  %v2344_v9 = vld [vmem:[%s3617_s0 + $0x18] sm:$0xff]  ;;  %v115_v10 = vsel %vm108_vm0, %v2339_v8, 0.0  ;;  %v2353_v12 = vld [vmem:[%s3617_s0 + $0x110] sm:$0xff]  ;;  %v2367_v16 = vld [vmem:[%s3617_s0 + $0x20] sm:$0xff] }
  0x1d   :  { %206 = vadd.xlane.f32.xlu1 %v205_v4  ;;  %v118_v11 = vsel %vm108_vm0, %v2344_v9, 0.0  ;;  %v2358_v13 = vld [vmem:[%s3617_s0 + $0x118] sm:$0xff]  ;;  %v211_v14 = vsel %vm108_vm0, %v2353_v12, 0.0  ;;  %v2372_v17 = vld [vmem:[%s3617_s0 + $0x28] sm:$0xff]  ;;  %v121_v18 = vsel %vm108_vm0, %v2367_v16, 0.0  ;;  %v2381_v20 = vld [vmem:[%s3617_s0 + $0x120] sm:$0xff] }
  0x1e   :  { %v214_v15 = vsel %vm108_vm0, %v2358_v13, 0.0  ;;  %v124_v19 = vsel %vm108_vm0, %v2372_v17, 0.0  ;;  %v2386_v21 = vld [vmem:[%s3617_s0 + $0x128] sm:$0xff]  ;;  %v217_v22 = vsel %vm108_vm0, %v2381_v20, 0.0  ;;  %v2395_v24 = vld [vmem:[%s3617_s0 + $0x30] sm:$0xff]  ;;  %v2400_v25 = vld [vmem:[%s3617_s0 + $0x38] sm:$0xff] }
  0x1f   :  { %v220_v23 = vsel %vm108_vm0, %v2386_v21, 0.0  ;;  %v127_v26 = vsel %vm108_vm0, %v2395_v24, 0.0  ;;  %v130_v27 = vsel %vm108_vm0, %v2400_v25, 0.0  ;;  %v2409_v28 = vld [vmem:[%s3617_s0 + $0x130] sm:$0xff]  ;;  %v2414_v29 = vld [vmem:[%s3617_s0 + $0x138] sm:$0xff]  ;;  %v2423_v32 = vld [vmem:[%s3617_s0 + $0x40] sm:$0xff] }
  0x20   :  { %113 = vadd.xlane.f32.xlu0 %v112_v6  ;;  %v223_v30 = vsel %vm108_vm0, %v2409_v28, 0.0  ;;  %v226_v31 = vsel %vm108_vm0, %v2414_v29, 0.0  ;;  %v2428_v33 = vld [vmem:[%s3617_s0 + $0x48] sm:$0xff]  ;;  %v133_v34 = vsel %vm108_vm0, %v2423_v32, 0.0  ;;  %v2437_v36 = vld [vmem:[%s3617_s0 + $0x140] sm:$0xff]  ;;  %v2451_v40 = vld [vmem:[%s3617_s0 + $0x50] sm:$0xff] }
  0x21   :  { %209 = vadd.xlane.f32.xlu1 %v208_v7  ;;  %v136_v35 = vsel %vm108_vm0, %v2428_v33, 0.0  ;;  %v2442_v37 = vld [vmem:[%s3617_s0 + $0x148] sm:$0xff]  ;;  %v229_v38 = vsel %vm108_vm0, %v2437_v36, 0.0  ;;  %v2456_v41 = vld [vmem:[%s3617_s0 + $0x58] sm:$0xff]  ;;  %v139_v42 = vsel %vm108_vm0, %v2451_v40, 0.0  ;;  %v2465_v44 = vld [vmem:[%s3617_s0 + $0x150] sm:$0xff] }
  0x22   :  { %v232_v39 = vsel %vm108_vm0, %v2442_v37, 0.0  ;;  %v142_v43 = vsel %vm108_vm0, %v2456_v41, 0.0  ;;  %v2470_v45 = vld [vmem:[%s3617_s0 + $0x158] sm:$0xff]  ;;  %v235_v46 = vsel %vm108_vm0, %v2465_v44, 0.0  ;;  %v2479_v48 = vld [vmem:[%s3617_s0 + $0x60] sm:$0xff]  ;;  %v2484_v49 = vld [vmem:[%s3617_s0 + $0x68] sm:$0xff] }
  0x23   :  { %v238_v47 = vsel %vm108_vm0, %v2470_v45, 0.0  ;;  %v145_v50 = vsel %vm108_vm0, %v2479_v48, 0.0  ;;  %v148_v51 = vsel %vm108_vm0, %v2484_v49, 0.0  ;;  %v2493_v52 = vld [vmem:[%s3617_s0 + $0x160] sm:$0xff]  ;;  %v2498_v53 = vld [vmem:[%s3617_s0 + $0x168] sm:$0xff]  ;;  %v2507_v56 = vld [vmem:[%s3617_s0 + $0x70] sm:$0xff] }
  0x24   :  { %116 = vadd.xlane.f32.xlu0 %v115_v10  ;;  %v241_v54 = vsel %vm108_vm0, %v2493_v52, 0.0  ;;  %v244_v55 = vsel %vm108_vm0, %v2498_v53, 0.0  ;;  %v2512_v57 = vld [vmem:[%s3617_s0 + $0x78] sm:$0xff]  ;;  %v151_v58 = vsel %vm108_vm0, %v2507_v56, 0.0  ;;  %v2521_v60 = vld [vmem:[%s3617_s0 + $0x170] sm:$0xff]  ;;  %v2535_v3 = vld [vmem:[%s3617_s0 + $0x80] sm:$0xff] }
  0x25   :  { %119 = vadd.xlane.f32.xlu1 %v118_v11  ;;  %v154_v59 = vsel %vm108_vm0, %v2512_v57, 0.0  ;;  %v2526_v61 = vld [vmem:[%s3617_s0 + $0x178] sm:$0xff]  ;;  %v247_v62 = vsel %vm108_vm0, %v2521_v60, 0.0  ;;  %v2540_v4 = vld [vmem:[%s3617_s0 + $0x88] sm:$0xff]  ;;  %v157_v6 = vsel %vm108_vm0, %v2535_v3, 0.0  ;;  %v2549_v10 = vld [vmem:[%s3617_s0 + $0x180] sm:$0xff] }
  0x26   :  { %v250_v63 = vsel %vm108_vm0, %v2526_v61, 0.0  ;;  %v160_v7 = vsel %vm108_vm0, %v2540_v4, 0.0  ;;  %v2554_v11 = vld [vmem:[%s3617_s0 + $0x188] sm:$0xff] }
  0x28   :  { %212 = vadd.xlane.f32.xlu0 %v211_v14  ;;  %v253_v14 = vsel %vm108_vm0, %v2549_v10, 0.0 }
  0x29   :  { %215 = vadd.xlane.f32.xlu1 %v214_v15  ;;  %v256_v15 = vsel %vm108_vm0, %v2554_v11, 0.0 }
  0x2c   :  { %122 = vadd.xlane.f32.xlu0 %v121_v18  ;;  %v2563_v18 = vld [vmem:[%s3617_s0 + $0x90] sm:$0xff] }
  0x2d   :  { %125 = vadd.xlane.f32.xlu1 %v124_v19  ;;  %v2568_v19 = vld [vmem:[%s3617_s0 + $0x98] sm:$0xff] }
  0x30   :  { %218 = vadd.xlane.f32.xlu0 %v217_v22  ;;  %v163_v22 = vsel %vm108_vm0, %v2563_v18, 0.0 }
  0x31   :  { %221 = vadd.xlane.f32.xlu1 %v220_v23  ;;  %v166_v23 = vsel %vm108_vm0, %v2568_v19, 0.0 }
  0x34   :  { %128 = vadd.xlane.f32.xlu0 %v127_v26  ;;  %v2577_v26 = vld [vmem:[%s3617_s0 + $0x190] sm:$0xff] }
  0x35   :  { %131 = vadd.xlane.f32.xlu1 %v130_v27  ;;  %v2582_v27 = vld [vmem:[%s3617_s0 + $0x198] sm:$0xff] }
  0x38   :  { %224 = vadd.xlane.f32.xlu0 %v223_v30  ;;  %v259_v30 = vsel %vm108_vm0, %v2577_v26, 0.0 }
  0x39   :  { %227 = vadd.xlane.f32.xlu1 %v226_v31  ;;  %v262_v31 = vsel %vm108_vm0, %v2582_v27, 0.0 }
  0x3c   :  { %134 = vadd.xlane.f32.xlu0 %v133_v34  ;;  %v2591_v34 = vld [vmem:[%s3617_s0 + $0xa0] sm:$0xff] }
  0x3d   :  { %137 = vadd.xlane.f32.xlu1 %v136_v35  ;;  %v2596_v35 = vld [vmem:[%s3617_s0 + $0xa8] sm:$0xff] }
  0x40   :  { %230 = vadd.xlane.f32.xlu0 %v229_v38  ;;  %v169_v38 = vsel %vm108_vm0, %v2591_v34, 0.0 }
  0x41   :  { %233 = vadd.xlane.f32.xlu1 %v232_v39  ;;  %v172_v39 = vsel %vm108_vm0, %v2596_v35, 0.0 }
  0x44   :  { %140 = vadd.xlane.f32.xlu0 %v139_v42  ;;  %v2605_v42 = vld [vmem:[%s3617_s0 + $0x1a0] sm:$0xff] }
  0x45   :  { %143 = vadd.xlane.f32.xlu1 %v142_v43  ;;  %v2610_v43 = vld [vmem:[%s3617_s0 + $0x1a8] sm:$0xff] }
  0x48   :  { %236 = vadd.xlane.f32.xlu0 %v235_v46  ;;  %v265_v46 = vsel %vm108_vm0, %v2605_v42, 0.0 }
  0x49   :  { %239 = vadd.xlane.f32.xlu1 %v238_v47  ;;  %v268_v47 = vsel %vm108_vm0, %v2610_v43, 0.0 }
  0x4c   :  { %146 = vadd.xlane.f32.xlu0 %v145_v50  ;;  %v2619_v50 = vld [vmem:[%s3617_s0 + $0xb0] sm:$0xff] }
  0x4d   :  { %149 = vadd.xlane.f32.xlu1 %v148_v51  ;;  %v2624_v51 = vld [vmem:[%s3617_s0 + $0xb8] sm:$0xff] }
  0x50   :  { %242 = vadd.xlane.f32.xlu0 %v241_v54  ;;  %v175_v54 = vsel %vm108_vm0, %v2619_v50, 0.0 }
  0x51   :  { %245 = vadd.xlane.f32.xlu1 %v244_v55  ;;  %v178_v55 = vsel %vm108_vm0, %v2624_v51, 0.0 }
  0x54   :  { %152 = vadd.xlane.f32.xlu0 %v151_v58  ;;  %v2633_v58 = vld [vmem:[%s3617_s0 + $0x1b0] sm:$0xff] }
  0x55   :  { %155 = vadd.xlane.f32.xlu1 %v154_v59  ;;  %v2638_v59 = vld [vmem:[%s3617_s0 + $0x1b8] sm:$0xff] }
  0x58   :  { %248 = vadd.xlane.f32.xlu0 %v247_v62  ;;  %v271_v62 = vsel %vm108_vm0, %v2633_v58, 0.0 }
  0x59   :  { %251 = vadd.xlane.f32.xlu1 %v250_v63  ;;  %v274_v63 = vsel %vm108_vm0, %v2638_v59, 0.0 }
  0x5c   :  { %158 = vadd.xlane.f32.xlu0 %v157_v6  ;;  %v2647_v6 = vld [vmem:[%s3617_s0 + $0xc0] sm:$0xff] }
  0x5d   :  { %161 = vadd.xlane.f32.xlu1 %v160_v7  ;;  %v2652_v7 = vld [vmem:[%s3617_s0 + $0xc8] sm:$0xff] }
  0x60   :  { %254 = vadd.xlane.f32.xlu0 %v253_v14  ;;  %v181_v14 = vsel %vm108_vm0, %v2647_v6, 0.0 }
  0x61   :  { %257 = vadd.xlane.f32.xlu1 %v256_v15  ;;  %v184_v15 = vsel %vm108_vm0, %v2652_v7, 0.0 }
  0x64   :  { %164 = vadd.xlane.f32.xlu0 %v163_v22  ;;  %v2661_v22 = vld [vmem:[%s3617_s0 + $0x1c0] sm:$0xff] }
  0x65   :  { %167 = vadd.xlane.f32.xlu1 %v166_v23  ;;  %3656 = vst [vmem:[#allocation8_spill] sm:$0xff] %v2661_v22  ;;  %v2666_v23 = vld [vmem:[%s3617_s0 + $0x1c8] sm:$0xff] }
  0x66   :  { %3657 = vst [vmem:[#allocation9_spill] sm:$0xff] %v2666_v23 }
  0x68   :  { %260 = vadd.xlane.f32.xlu0 %v259_v30  ;;  %v277_v30 = vsel %vm108_vm0, %v2661_v22, 0.0 }
  0x69   :  { %263 = vadd.xlane.f32.xlu1 %v262_v31  ;;  %v280_v31 = vsel %vm108_vm0, %v2666_v23, 0.0 }
  0x6c   :  { %170 = vadd.xlane.f32.xlu0 %v169_v38  ;;  %v2675_v38 = vld [vmem:[%s3617_s0 + $0xd0] sm:$0xff] }
  0x6d   :  { %173 = vadd.xlane.f32.xlu1 %v172_v39  ;;  %3658 = vst [vmem:[#allocation10_spill] sm:$0xff] %v2675_v38  ;;  %v2680_v39 = vld [vmem:[%s3617_s0 + $0xd8] sm:$0xff] }
  0x6e   :  { %3659 = vst [vmem:[#allocation11_spill] sm:$0xff] %v2680_v39 }
  0x70   :  { %266 = vadd.xlane.f32.xlu0 %v265_v46  ;;  %v187_v46 = vsel %vm108_vm0, %v2675_v38, 0.0 }
  0x71   :  { %269 = vadd.xlane.f32.xlu1 %v268_v47  ;;  %v190_v47 = vsel %vm108_vm0, %v2680_v39, 0.0 }
  0x74   :  { %176 = vadd.xlane.f32.xlu0 %v175_v54  ;;  %v2689_v54 = vld [vmem:[%s3617_s0 + $0x1d0] sm:$0xff] }
  0x75   :  { %179 = vadd.xlane.f32.xlu1 %v178_v55  ;;  %3660 = vst [vmem:[#allocation12_spill] sm:$0xff] %v2689_v54  ;;  %v2694_v55 = vld [vmem:[%s3617_s0 + $0x1d8] sm:$0xff] }
  0x76   :  { %3661 = vst [vmem:[#allocation13_spill] sm:$0xff] %v2694_v55 }
  0x78   :  { %272 = vadd.xlane.f32.xlu0 %v271_v62  ;;  %v283_v62 = vsel %vm108_vm0, %v2689_v54, 0.0 }
  0x79   :  { %275 = vadd.xlane.f32.xlu1 %v274_v63  ;;  %v286_v63 = vsel %vm108_vm0, %v2694_v55, 0.0 }
  0x7c   :  { %182 = vadd.xlane.f32.xlu0 %v181_v14  ;;  %v2703_v14 = vld [vmem:[%s3617_s0 + $0xe0] sm:$0xff] }
  0x7d   :  { %185 = vadd.xlane.f32.xlu1 %v184_v15  ;;  %3662 = vst [vmem:[#allocation14_spill] sm:$0xff] %v2703_v14  ;;  %v2708_v15 = vld [vmem:[%s3617_s0 + $0xe8] sm:$0xff] }
  0x7e   :  { %3663 = vst [vmem:[#allocation15_spill] sm:$0xff] %v2708_v15 }
  0x80   :  { %278 = vadd.xlane.f32.xlu0 %v277_v30  ;;  %v193_v30 = vsel %vm108_vm0, %v2703_v14, 0.0  ;;  %v2736_v14 = vld [vmem:[%s3617_s0 + $0xf8] sm:$0xff] }
  0x81   :  { %281 = vadd.xlane.f32.xlu1 %v280_v31  ;;  %v196_v31 = vsel %vm108_vm0, %v2708_v15, 0.0  ;;  %v2731_v15 = vld [vmem:[%s3617_s0 + $0xf0] sm:$0xff]  ;;  %3667 = vst [vmem:[#allocation19_spill] sm:$0xff] %v2736_v14 }
  0x82   :  { %3666 = vst [vmem:[#allocation18_spill] sm:$0xff] %v2731_v15 }
  0x84   :  { %188 = vadd.xlane.f32.xlu0 %v187_v46  ;;  %v2717_v46 = vld [vmem:[%s3617_s0 + $0x1e0] sm:$0xff] }
  0x85   :  { %191 = vadd.xlane.f32.xlu1 %v190_v47  ;;  %3664 = vst [vmem:[#allocation16_spill] sm:$0xff] %v2717_v46  ;;  %v2722_v47 = vld [vmem:[%s3617_s0 + $0x1e8] sm:$0xff] }
  0x86   :  { %3665 = vst [vmem:[#allocation17_spill] sm:$0xff] %v2722_v47 }
  0x88   :  { %284 = vadd.xlane.f32.xlu0 %v283_v62  ;;  %v289_v62 = vsel %vm108_vm0, %v2717_v46, 0.0  ;;  %v2750_v46 = vld [vmem:[%s3617_s0 + $0x1f8] sm:$0xff] }
  0x89   :  { %287 = vadd.xlane.f32.xlu1 %v286_v63  ;;  %v292_v63 = vsel %vm108_vm0, %v2722_v47, 0.0  ;;  %v2745_v47 = vld [vmem:[%s3617_s0 + $0x1f0] sm:$0xff] }
  0x8a   :  { %3668 = vst [vmem:[#allocation20_spill] sm:$0xff] %v2745_v47 }
  0x8c   :  { %194 = vadd.xlane.f32.xlu0 %v193_v30  ;;  %v199_v30 = vsel %vm108_vm0, %v2731_v15, 0.0 }
  0x8d   :  { %197 = vadd.xlane.f32.xlu1 %v196_v31  ;;  %v202_v31 = vsel %vm108_vm0, %v2736_v14, 0.0 }
  0x90   :  { %290 = vadd.xlane.f32.xlu0 %v289_v62  ;;  %v295_v62 = vsel %vm108_vm0, %v2745_v47, 0.0 }
  0x91   :  { %293 = vadd.xlane.f32.xlu1 %v292_v63  ;;  %v298_v63 = vsel %vm108_vm0, %v2750_v46, 0.0 }
  0x94   :  { %200 = vadd.xlane.f32.xlu0 %v199_v30 }
  0x95   :  { %203 = vadd.xlane.f32.xlu1 %v202_v31 }
  0x98   :  { %296 = vadd.xlane.f32.xlu0 %v295_v62 }
  0x99   :  { %299 = vadd.xlane.f32.xlu1 %v298_v63 }
  0xa5   :  { %v111_v14 = vpop.xlane.xlu0 %110 }
  0xa6   :  { %v207_v15 = vpop.xlane.xlu1 %206  ;;  %v302_v55 = vmul.f32 0.0625, %v111_v14 }
  0xa7   :  { %v334_v54 = vmul.f32 0.0625, %v207_v15 }
  0xa8   :  { %v2757_v39 = vsub.f32 %v2311_v0, %v302_v55 }
  0xa9   :  { %v2760_v38 = vsub.f32 %v2316_v1, %v334_v54  ;;  %v114_v30 = vpop.xlane.xlu0 %113 }
  0xaa   :  { %v210_v31 = vpop.xlane.xlu1 %209  ;;  %v303_v23 = vmul.f32 0.0625, %v114_v30  ;;  %v430_v47 = vmul.f32 %v2757_v39, %v2757_v39 }
  0xab   :  { %3669 = vst [vmem:[#allocation21_spill] sm:$0xff] %v2760_v38  ;;  %v335_v22 = vmul.f32 0.0625, %v210_v31  ;;  %v462_v62 = vmul.f32 %v2760_v38, %v2760_v38 }
  0xac   :  { %v2767_v63 = vsub.f32 %v2321_v2, %v303_v23  ;;  %v494_v0 = vsel %vm108_vm0, %v430_v47, 0.0 }
  0xad   :  { %v2770_v14 = vsub.f32 %v2330_v5, %v335_v22  ;;  %495 = vadd.xlane.f32.xlu0 %v494_v0  ;;  %v117_v1 = vpop.xlane.xlu0 %116  ;;  %v590_v55 = vsel %vm108_vm0, %v462_v62, 0.0 }
  0xae   :  { %v120_v54 = vpop.xlane.xlu1 %119  ;;  %v304_v15 = vmul.f32 0.0625, %v117_v1  ;;  %v431_v31 = vmul.f32 %v2767_v63, %v2767_v63 }
  0xaf   :  { %v305_v30 = vmul.f32 0.0625, %v120_v54  ;;  %v463_v38 = vmul.f32 %v2770_v14, %v2770_v14 }
  0xb0   :  { %v2779_v2 = vsub.f32 %v2339_v8, %v304_v15  ;;  %v497_v22 = vsel %vm108_vm0, %v431_v31, 0.0 }
  0xb1   :  { %v2782_v5 = vsub.f32 %v2344_v9, %v305_v30  ;;  %591 = vadd.xlane.f32.xlu0 %v590_v55  ;;  %498 = vadd.xlane.f32.xlu1 %v497_v22  ;;  %v213_v23 = vpop.xlane.xlu0 %212  ;;  %v593_v62 = vsel %vm108_vm0, %v463_v38, 0.0 }
  0xb2   :  { %v216_v47 = vpop.xlane.xlu1 %215  ;;  %v336_v0 = vmul.f32 0.0625, %v213_v23  ;;  %v432_v54 = vmul.f32 %v2779_v2, %v2779_v2 }
  0xb3   :  { %v337_v1 = vmul.f32 0.0625, %v216_v47  ;;  %v433_v8 = vmul.f32 %v2782_v5, %v2782_v5 }
  0xb4   :  { %v2791_v15 = vsub.f32 %v2353_v12, %v336_v0  ;;  %v500_v55 = vsel %vm108_vm0, %v432_v54, 0.0 }
  0xb5   :  { %v2794_v9 = vsub.f32 %v2358_v13, %v337_v1  ;;  %594 = vadd.xlane.f32.xlu1 %v593_v62  ;;  %501 = vadd.xlane.f32.xlu0 %v500_v55  ;;  %v123_v30 = vpop.xlane.xlu0 %122  ;;  %v503_v31 = vsel %vm108_vm0, %v433_v8, 0.0 }
  0xb6   :  { %v126_v38 = vpop.xlane.xlu1 %125  ;;  %v306_v22 = vmul.f32 0.0625, %v123_v30  ;;  %v464_v47 = vmul.f32 %v2791_v15, %v2791_v15 }
  0xb7   :  { %v307_v23 = vmul.f32 0.0625, %v126_v38  ;;  %v465_v12 = vmul.f32 %v2794_v9, %v2794_v9 }
  0xb8   :  { %v2803_v0 = vsub.f32 %v2367_v16, %v306_v22  ;;  %v596_v62 = vsel %vm108_vm0, %v464_v47, 0.0 }
  0xb9   :  { %v2806_v13 = vsub.f32 %v2372_v17, %v307_v23  ;;  %504 = vadd.xlane.f32.xlu1 %v503_v31  ;;  %597 = vadd.xlane.f32.xlu0 %v596_v62  ;;  %v219_v1 = vpop.xlane.xlu0 %218  ;;  %v599_v8 = vsel %vm108_vm0, %v465_v12, 0.0 }
  0xba   :  { %v222_v54 = vpop.xlane.xlu1 %221  ;;  %v338_v55 = vmul.f32 0.0625, %v219_v1  ;;  %v434_v38 = vmul.f32 %v2803_v0, %v2803_v0 }
  0xbb   :  { %v339_v30 = vmul.f32 0.0625, %v222_v54  ;;  %v435_v16 = vmul.f32 %v2806_v13, %v2806_v13 }
  0xbc   :  { %v2815_v22 = vsub.f32 %v2381_v20, %v338_v55  ;;  %v506_v31 = vsel %vm108_vm0, %v434_v38, 0.0 }
  0xbd   :  { %v2818_v17 = vsub.f32 %v2386_v21, %v339_v30  ;;  %600 = vadd.xlane.f32.xlu1 %v599_v8  ;;  %507 = vadd.xlane.f32.xlu0 %v506_v31  ;;  %v129_v23 = vpop.xlane.xlu0 %128  ;;  %v509_v12 = vsel %vm108_vm0, %v435_v16, 0.0 }
  0xbe   :  { %v132_v47 = vpop.xlane.xlu1 %131  ;;  %v308_v62 = vmul.f32 0.0625, %v129_v23  ;;  %v466_v54 = vmul.f32 %v2815_v22, %v2815_v22 }
  0xbf   :  { %v309_v1 = vmul.f32 0.0625, %v132_v47  ;;  %v467_v20 = vmul.f32 %v2818_v17, %v2818_v17 }
  0xc0   :  { %v2827_v55 = vsub.f32 %v2395_v24, %v308_v62  ;;  %v602_v8 = vsel %vm108_vm0, %v466_v54, 0.0 }
  0xc1   :  { %v2830_v21 = vsub.f32 %v2400_v25, %v309_v1  ;;  %510 = vadd.xlane.f32.xlu1 %v509_v12  ;;  %603 = vadd.xlane.f32.xlu0 %v602_v8  ;;  %v225_v30 = vpop.xlane.xlu0 %224  ;;  %v605_v16 = vsel %vm108_vm0, %v467_v20, 0.0 }
  0xc2   :  { %v228_v38 = vpop.xlane.xlu1 %227  ;;  %v340_v31 = vmul.f32 0.0625, %v225_v30  ;;  %v436_v47 = vmul.f32 %v2827_v55, %v2827_v55 }
  0xc3   :  { %v341_v23 = vmul.f32 0.0625, %v228_v38  ;;  %v437_v24 = vmul.f32 %v2830_v21, %v2830_v21 }
  0xc4   :  { %v2839_v62 = vsub.f32 %v2409_v28, %v340_v31  ;;  %v512_v12 = vsel %vm108_vm0, %v436_v47, 0.0 }
  0xc5   :  { %v2842_v25 = vsub.f32 %v2414_v29, %v341_v23  ;;  %606 = vadd.xlane.f32.xlu1 %v605_v16  ;;  %513 = vadd.xlane.f32.xlu0 %v512_v12  ;;  %v135_v1 = vpop.xlane.xlu0 %134  ;;  %v515_v20 = vsel %vm108_vm0, %v437_v24, 0.0 }
  0xc6   :  { %v138_v54 = vpop.xlane.xlu1 %137  ;;  %v310_v8 = vmul.f32 0.0625, %v135_v1  ;;  %v468_v38 = vmul.f32 %v2839_v62, %v2839_v62 }
  0xc7   :  { %v311_v30 = vmul.f32 0.0625, %v138_v54  ;;  %v469_v28 = vmul.f32 %v2842_v25, %v2842_v25 }
  0xc8   :  { %v2851_v31 = vsub.f32 %v2423_v32, %v310_v8  ;;  %v608_v16 = vsel %vm108_vm0, %v468_v38, 0.0 }
  0xc9   :  { %v2854_v29 = vsub.f32 %v2428_v33, %v311_v30  ;;  %516 = vadd.xlane.f32.xlu1 %v515_v20  ;;  %609 = vadd.xlane.f32.xlu0 %v608_v16  ;;  %v231_v23 = vpop.xlane.xlu0 %230  ;;  %v611_v24 = vsel %vm108_vm0, %v469_v28, 0.0 }
  0xca   :  { %v234_v47 = vpop.xlane.xlu1 %233  ;;  %v342_v12 = vmul.f32 0.0625, %v231_v23  ;;  %v438_v54 = vmul.f32 %v2851_v31, %v2851_v31 }
  0xcb   :  { %v343_v1 = vmul.f32 0.0625, %v234_v47  ;;  %v439_v32 = vmul.f32 %v2854_v29, %v2854_v29 }
  0xcc   :  { %v2863_v8 = vsub.f32 %v2437_v36, %v342_v12  ;;  %v518_v20 = vsel %vm108_vm0, %v438_v54, 0.0 }
  0xcd   :  { %v2866_v33 = vsub.f32 %v2442_v37, %v343_v1  ;;  %612 = vadd.xlane.f32.xlu1 %v611_v24  ;;  %519 = vadd.xlane.f32.xlu0 %v518_v20  ;;  %v141_v30 = vpop.xlane.xlu0 %140  ;;  %v521_v28 = vsel %vm108_vm0, %v439_v32, 0.0 }
  0xce   :  { %v144_v38 = vpop.xlane.xlu1 %143  ;;  %v312_v16 = vmul.f32 0.0625, %v141_v30  ;;  %v470_v47 = vmul.f32 %v2863_v8, %v2863_v8 }
  0xcf   :  { %v313_v23 = vmul.f32 0.0625, %v144_v38  ;;  %v471_v36 = vmul.f32 %v2866_v33, %v2866_v33 }
  0xd0   :  { %v2875_v12 = vsub.f32 %v2451_v40, %v312_v16  ;;  %v614_v24 = vsel %vm108_vm0, %v470_v47, 0.0 }
  0xd1   :  { %v2878_v37 = vsub.f32 %v2456_v41, %v313_v23  ;;  %522 = vadd.xlane.f32.xlu1 %v521_v28  ;;  %615 = vadd.xlane.f32.xlu0 %v614_v24  ;;  %v237_v1 = vpop.xlane.xlu0 %236  ;;  %v617_v32 = vsel %vm108_vm0, %v471_v36, 0.0 }
  0xd2   :  { %v240_v54 = vpop.xlane.xlu1 %239  ;;  %v344_v20 = vmul.f32 0.0625, %v237_v1  ;;  %v440_v38 = vmul.f32 %v2875_v12, %v2875_v12 }
  0xd3   :  { %v345_v30 = vmul.f32 0.0625, %v240_v54  ;;  %v441_v40 = vmul.f32 %v2878_v37, %v2878_v37 }
  0xd4   :  { %v2887_v16 = vsub.f32 %v2465_v44, %v344_v20  ;;  %v524_v28 = vsel %vm108_vm0, %v440_v38, 0.0 }
  0xd5   :  { %v2890_v41 = vsub.f32 %v2470_v45, %v345_v30  ;;  %618 = vadd.xlane.f32.xlu1 %v617_v32  ;;  %525 = vadd.xlane.f32.xlu0 %v524_v28  ;;  %v147_v23 = vpop.xlane.xlu0 %146  ;;  %v527_v36 = vsel %vm108_vm0, %v441_v40, 0.0  ;;  %v2100_v30 = vld [vmem:[%s3620_s3] sm:$0xff]  }
  0xd6   :  { %v150_v47 = vpop.xlane.xlu1 %149  ;;  %v314_v24 = vmul.f32 0.0625, %v147_v23  ;;  %v472_v54 = vmul.f32 %v2887_v16, %v2887_v16  ;;  %2030 = vmatprep.subr.bf16.mxu0 %v2100_v30  ;;  %2096 = vmatprep.subr.bf16.mxu1 %v2100_v30 }
  0xd7   :  { %v315_v1 = vmul.f32 0.0625, %v150_v47  ;;  %v473_v44 = vmul.f32 %v2890_v41, %v2890_v41  ;;  %2031 = vmatpush3.bf16.msra.mxu0 %v2100_v30  ;;  %2097 = vmatpush3.bf16.msra.mxu1 %v2100_v30 }
  0xd8   :  { %v2899_v20 = vsub.f32 %v2479_v48, %v314_v24  ;;  %v620_v32 = vsel %vm108_vm0, %v472_v54, 0.0 }
  0xd9   :  { %v2902_v45 = vsub.f32 %v2484_v49, %v315_v1  ;;  %528 = vadd.xlane.f32.xlu1 %v527_v36  ;;  %621 = vadd.xlane.f32.xlu0 %v620_v32  ;;  %v243_v38 = vpop.xlane.xlu0 %242  ;;  %v623_v28 = vsel %vm108_vm0, %v473_v44, 0.0 }
  0xda   :  { %v246_v40 = vpop.xlane.xlu1 %245  ;;  %v346_v23 = vmul.f32 0.0625, %v243_v38  ;;  %v442_v48 = vmul.f32 %v2899_v20, %v2899_v20 }
  0xdb   :  { %3670 = vst [vmem:[#allocation22_spill] sm:$0xff] %v2902_v45  ;;  %v347_v47 = vmul.f32 0.0625, %v246_v40  ;;  %v443_v49 = vmul.f32 %v2902_v45, %v2902_v45 }
  0xdc   :  { %v2914_v24 = vsub.f32 %v2493_v52, %v346_v23  ;;  %v530_v1 = vsel %vm108_vm0, %v442_v48, 0.0 }
  0xdd   :  { %v2917_v36 = vsub.f32 %v2498_v53, %v347_v47  ;;  %624 = vadd.xlane.f32.xlu1 %v623_v28  ;;  %531 = vadd.xlane.f32.xlu0 %v530_v1  ;;  %v153_v54 = vpop.xlane.xlu0 %152  ;;  %v533_v32 = vsel %vm108_vm0, %v443_v49, 0.0 }
  0xde   :  { %v156_v44 = vpop.xlane.xlu1 %155  ;;  %v316_v38 = vmul.f32 0.0625, %v153_v54  ;;  %v474_v45 = vmul.f32 %v2914_v24, %v2914_v24 }
  0xdf   :  { %v317_v40 = vmul.f32 0.0625, %v156_v44  ;;  %v475_v52 = vmul.f32 %v2917_v36, %v2917_v36 }
  0xe0   :  { %v2926_v30 = vsub.f32 %v2507_v56, %v316_v38  ;;  %v626_v28 = vsel %vm108_vm0, %v474_v45, 0.0 }
  0xe1   :  { %v2929_v53 = vsub.f32 %v2512_v57, %v317_v40  ;;  %534 = vadd.xlane.f32.xlu1 %v533_v32  ;;  %627 = vadd.xlane.f32.xlu0 %v626_v28  ;;  %v249_v23 = vpop.xlane.xlu0 %248  ;;  %v629_v48 = vsel %vm108_vm0, %v475_v52, 0.0 }
  0xe2   :  { %v252_v47 = vpop.xlane.xlu1 %251  ;;  %v348_v49 = vmul.f32 0.0625, %v249_v23  ;;  %v444_v54 = vmul.f32 %v2926_v30, %v2926_v30 }
  0xe3   :  { %v349_v1 = vmul.f32 0.0625, %v252_v47  ;;  %v445_v56 = vmul.f32 %v2929_v53, %v2929_v53 }
  0xe4   :  { %v2938_v44 = vsub.f32 %v2521_v60, %v348_v49  ;;  %v536_v45 = vsel %vm108_vm0, %v444_v54, 0.0 }
  0xe5   :  { %v2941_v57 = vsub.f32 %v2526_v61, %v349_v1  ;;  %630 = vadd.xlane.f32.xlu1 %v629_v48  ;;  %537 = vadd.xlane.f32.xlu0 %v536_v45  ;;  %v159_v32 = vpop.xlane.xlu0 %158  ;;  %v539_v40 = vsel %vm108_vm0, %v445_v56, 0.0 }
  0xe6   :  { %v162_v38 = vpop.xlane.xlu1 %161  ;;  %v318_v52 = vmul.f32 0.0625, %v159_v32  ;;  %v476_v23 = vmul.f32 %v2938_v44, %v2938_v44 }
  0xe7   :  { %v319_v28 = vmul.f32 0.0625, %v162_v38  ;;  %v477_v60 = vmul.f32 %v2941_v57, %v2941_v57 }
  0xe8   :  { %v2950_v47 = vsub.f32 %v2535_v3, %v318_v52  ;;  %v632_v48 = vsel %vm108_vm0, %v476_v23, 0.0 }
  0xe9   :  { %v2953_v61 = vsub.f32 %v2540_v4, %v319_v28  ;;  %540 = vadd.xlane.f32.xlu1 %v539_v40  ;;  %633 = vadd.xlane.f32.xlu0 %v632_v48  ;;  %v255_v49 = vpop.xlane.xlu0 %254  ;;  %v635_v54 = vsel %vm108_vm0, %v477_v60, 0.0 }
  0xea   :  { %v258_v1 = vpop.xlane.xlu1 %257  ;;  %v350_v56 = vmul.f32 0.0625, %v255_v49  ;;  %v446_v32 = vmul.f32 %v2950_v47, %v2950_v47 }
  0xeb   :  { %v351_v45 = vmul.f32 0.0625, %v258_v1  ;;  %v447_v3 = vmul.f32 %v2953_v61, %v2953_v61 }
  0xec   :  { %v2962_v38 = vsub.f32 %v2549_v10, %v350_v56  ;;  %v542_v40 = vsel %vm108_vm0, %v446_v32, 0.0 }
  0xed   :  { %v2965_v4 = vsub.f32 %v2554_v11, %v351_v45  ;;  %636 = vadd.xlane.f32.xlu1 %v635_v54  ;;  %543 = vadd.xlane.f32.xlu0 %v542_v40  ;;  %v165_v52 = vpop.xlane.xlu0 %164  ;;  %v545_v23 = vsel %vm108_vm0, %v447_v3, 0.0 }
  0xee   :  { %v168_v28 = vpop.xlane.xlu1 %167  ;;  %v320_v60 = vmul.f32 0.0625, %v165_v52  ;;  %v478_v49 = vmul.f32 %v2962_v38, %v2962_v38 }
  0xef   :  { %v321_v48 = vmul.f32 0.0625, %v168_v28  ;;  %v479_v10 = vmul.f32 %v2965_v4, %v2965_v4 }
  0xf0   :  { %v2974_v1 = vsub.f32 %v2563_v18, %v320_v60  ;;  %v638_v54 = vsel %vm108_vm0, %v478_v49, 0.0 }
  0xf1   :  { %v2977_v11 = vsub.f32 %v2568_v19, %v321_v48  ;;  %546 = vadd.xlane.f32.xlu1 %v545_v23  ;;  %639 = vadd.xlane.f32.xlu0 %v638_v54  ;;  %v261_v56 = vpop.xlane.xlu0 %260  ;;  %v641_v32 = vsel %vm108_vm0, %v479_v10, 0.0 }
  0xf2   :  { %v264_v45 = vpop.xlane.xlu1 %263  ;;  %v352_v3 = vmul.f32 0.0625, %v261_v56  ;;  %v448_v52 = vmul.f32 %v2974_v1, %v2974_v1 }
  0xf3   :  { %v353_v40 = vmul.f32 0.0625, %v264_v45  ;;  %v449_v18 = vmul.f32 %v2977_v11, %v2977_v11 }
  0xf4   :  { %v2986_v28 = vsub.f32 %v2577_v26, %v352_v3  ;;  %v548_v23 = vsel %vm108_vm0, %v448_v52, 0.0 }
  0xf5   :  { %v2989_v19 = vsub.f32 %v2582_v27, %v353_v40  ;;  %642 = vadd.xlane.f32.xlu1 %v641_v32  ;;  %549 = vadd.xlane.f32.xlu0 %v548_v23  ;;  %v171_v60 = vpop.xlane.xlu0 %170  ;;  %v551_v49 = vsel %vm108_vm0, %v449_v18, 0.0 }
  0xf6   :  { %v174_v48 = vpop.xlane.xlu1 %173  ;;  %v322_v10 = vmul.f32 0.0625, %v171_v60  ;;  %v480_v56 = vmul.f32 %v2986_v28, %v2986_v28 }
  0xf7   :  { %v323_v54 = vmul.f32 0.0625, %v174_v48  ;;  %v481_v26 = vmul.f32 %v2989_v19, %v2989_v19 }
  0xf8   :  { %v2998_v45 = vsub.f32 %v2591_v34, %v322_v10  ;;  %v644_v32 = vsel %vm108_vm0, %v480_v56, 0.0 }
  0xf9   :  { %v3001_v27 = vsub.f32 %v2596_v35, %v323_v54  ;;  %552 = vadd.xlane.f32.xlu1 %v551_v49  ;;  %645 = vadd.xlane.f32.xlu0 %v644_v32  ;;  %v267_v3 = vpop.xlane.xlu0 %266  ;;  %v647_v52 = vsel %vm108_vm0, %v481_v26, 0.0 }
  0xfa   :  { %v270_v40 = vpop.xlane.xlu1 %269  ;;  %v354_v18 = vmul.f32 0.0625, %v267_v3  ;;  %v450_v60 = vmul.f32 %v2998_v45, %v2998_v45 }
  0xfb   :  { %v355_v23 = vmul.f32 0.0625, %v270_v40  ;;  %v451_v34 = vmul.f32 %v3001_v27, %v3001_v27 }
  0xfc   :  { %v3010_v48 = vsub.f32 %v2605_v42, %v354_v18  ;;  %v554_v49 = vsel %vm108_vm0, %v450_v60, 0.0 }
  0xfd   :  { %v3013_v35 = vsub.f32 %v2610_v43, %v355_v23  ;;  %648 = vadd.xlane.f32.xlu1 %v647_v52  ;;  %555 = vadd.xlane.f32.xlu0 %v554_v49  ;;  %v177_v10 = vpop.xlane.xlu0 %176  ;;  %v557_v56 = vsel %vm108_vm0, %v451_v34, 0.0 }
  0xfe   :  { %v180_v54 = vpop.xlane.xlu1 %179  ;;  %v324_v26 = vmul.f32 0.0625, %v177_v10  ;;  %v482_v3 = vmul.f32 %v3010_v48, %v3010_v48 }
  0xff   :  { %v325_v32 = vmul.f32 0.0625, %v180_v54  ;;  %v483_v42 = vmul.f32 %v3013_v35, %v3013_v35 }
 0x100   :  { %v3022_v40 = vsub.f32 %v2619_v50, %v324_v26  ;;  %v650_v52 = vsel %vm108_vm0, %v482_v3, 0.0 }
 0x101   :  { %v3025_v43 = vsub.f32 %v2624_v51, %v325_v32  ;;  %558 = vadd.xlane.f32.xlu1 %v557_v56  ;;  %651 = vadd.xlane.f32.xlu0 %v650_v52  ;;  %v273_v18 = vpop.xlane.xlu0 %272  ;;  %v653_v60 = vsel %vm108_vm0, %v483_v42, 0.0 }
 0x102   :  { %v276_v23 = vpop.xlane.xlu1 %275  ;;  %v356_v34 = vmul.f32 0.0625, %v273_v18  ;;  %v452_v10 = vmul.f32 %v3022_v40, %v3022_v40 }
 0x103   :  { %3671 = vst [vmem:[#allocation23_spill] sm:$0xff] %v3025_v43  ;;  %v357_v49 = vmul.f32 0.0625, %v276_v23  ;;  %v453_v50 = vmul.f32 %v3025_v43, %v3025_v43 }
 0x104   :  { %v3034_v54 = vsub.f32 %v2633_v58, %v356_v34  ;;  %v560_v56 = vsel %vm108_vm0, %v452_v10, 0.0 }
 0x105   :  { %v3037_v51 = vsub.f32 %v2638_v59, %v357_v49  ;;  %654 = vadd.xlane.f32.xlu1 %v653_v60  ;;  %561 = vadd.xlane.f32.xlu0 %v560_v56  ;;  %v183_v26 = vpop.xlane.xlu0 %182  ;;  %v563_v3 = vsel %vm108_vm0, %v453_v50, 0.0 }
 0x106   :  { %3672 = vst [vmem:[#allocation24_spill] sm:$0xff] %v3034_v54  ;;  %v186_v32 = vpop.xlane.xlu1 %185  ;;  %v326_v42 = vmul.f32 0.0625, %v183_v26  ;;  %v484_v18 = vmul.f32 %v3034_v54, %v3034_v54 }
 0x107   :  { %3673 = vst [vmem:[#allocation25_spill] sm:$0xff] %v3037_v51  ;;  %v327_v52 = vmul.f32 0.0625, %v186_v32  ;;  %v485_v58 = vmul.f32 %v3037_v51, %v3037_v51  ;;  %v3676_v32 = vld [vmem:[#allocation8_spill] sm:$0xff] }
 0x108   :  { %v3046_v23 = vsub.f32 %v2647_v6, %v326_v42  ;;  %v656_v60 = vsel %vm108_vm0, %v484_v18, 0.0 }
 0x109   :  { %v3049_v59 = vsub.f32 %v2652_v7, %v327_v52  ;;  %564 = vadd.xlane.f32.xlu1 %v563_v3  ;;  %657 = vadd.xlane.f32.xlu0 %v656_v60  ;;  %v279_v34 = vpop.xlane.xlu0 %278  ;;  %v659_v10 = vsel %vm108_vm0, %v485_v58, 0.0  ;;  %v3678_v7 = vld [vmem:[#allocation9_spill] sm:$0xff] }
 0x10a   :  { %3674 = vst [vmem:[#allocation26_spill] sm:$0xff] %v3046_v23  ;;  %v282_v49 = vpop.xlane.xlu1 %281  ;;  %v358_v50 = vmul.f32 0.0625, %v279_v34  ;;  %v454_v26 = vmul.f32 %v3046_v23, %v3046_v23 }
 0x10b   :  { %3675 = vst [vmem:[#allocation27_spill] sm:$0xff] %v3049_v59  ;;  %v359_v56 = vmul.f32 0.0625, %v282_v49  ;;  %v455_v6 = vmul.f32 %v3049_v59, %v3049_v59 }
 0x10c   :  { %v3058_v42 = vsub.f32 %v3676_v32, %v358_v50  ;;  %v566_v3 = vsel %vm108_vm0, %v454_v26, 0.0  ;;  %v3680_v32 = vld [vmem:[#allocation10_spill] sm:$0xff] }
 0x10d   :  { %v3061_v52 = vsub.f32 %v3678_v7, %v359_v56  ;;  %660 = vadd.xlane.f32.xlu1 %v659_v10  ;;  %567 = vadd.xlane.f32.xlu0 %v566_v3  ;;  %v189_v18 = vpop.xlane.xlu0 %188  ;;  %v569_v60 = vsel %vm108_vm0, %v455_v6, 0.0  ;;  %v3682_v56 = vld [vmem:[#allocation11_spill] sm:$0xff] }
 0x10e   :  { %3677 = vst [vmem:[#allocation8_spill] sm:$0xff] %v3058_v42  ;;  %v192_v58 = vpop.xlane.xlu1 %191  ;;  %v328_v34 = vmul.f32 0.0625, %v189_v18  ;;  %v486_v23 = vmul.f32 %v3058_v42, %v3058_v42 }
 0x10f   :  { %3679 = vst [vmem:[#allocation9_spill] sm:$0xff] %v3061_v52  ;;  %v329_v49 = vmul.f32 0.0625, %v192_v58  ;;  %v487_v50 = vmul.f32 %v3061_v52, %v3061_v52 }
 0x110   :  { %v3070_v59 = vsub.f32 %v3680_v32, %v328_v34  ;;  %v662_v10 = vsel %vm108_vm0, %v486_v23, 0.0  ;;  %v3684_v32 = vld [vmem:[#allocation12_spill] sm:$0xff] }
 0x111   :  { %v3073_v7 = vsub.f32 %v3682_v56, %v329_v49  ;;  %570 = vadd.xlane.f32.xlu1 %v569_v60  ;;  %663 = vadd.xlane.f32.xlu0 %v662_v10  ;;  %v285_v26 = vpop.xlane.xlu0 %284  ;;  %v665_v3 = vsel %vm108_vm0, %v487_v50, 0.0  ;;  %v3686_v49 = vld [vmem:[#allocation13_spill] sm:$0xff] }
 0x112   :  { %3681 = vst [vmem:[#allocation10_spill] sm:$0xff] %v3070_v59  ;;  %v288_v6 = vpop.xlane.xlu1 %287  ;;  %v360_v18 = vmul.f32 0.0625, %v285_v26  ;;  %v456_v42 = vmul.f32 %v3070_v59, %v3070_v59 }
 0x113   :  { %3683 = vst [vmem:[#allocation11_spill] sm:$0xff] %v3073_v7  ;;  %v361_v58 = vmul.f32 0.0625, %v288_v6  ;;  %v457_v34 = vmul.f32 %v3073_v7, %v3073_v7 }
 0x114   :  { %v3082_v52 = vsub.f32 %v3684_v32, %v360_v18  ;;  %v572_v23 = vsel %vm108_vm0, %v456_v42, 0.0  ;;  %v3688_v32 = vld [vmem:[#allocation14_spill] sm:$0xff] }
 0x115   :  { %v3085_v56 = vsub.f32 %v3686_v49, %v361_v58  ;;  %666 = vadd.xlane.f32.xlu1 %v665_v3  ;;  %573 = vadd.xlane.f32.xlu0 %v572_v23  ;;  %v195_v60 = vpop.xlane.xlu0 %194  ;;  %v575_v10 = vsel %vm108_vm0, %v457_v34, 0.0  ;;  %v3690_v58 = vld [vmem:[#allocation15_spill] sm:$0xff] }
 0x116   :  { %3685 = vst [vmem:[#allocation12_spill] sm:$0xff] %v3082_v52  ;;  %v198_v50 = vpop.xlane.xlu1 %197  ;;  %v330_v26 = vmul.f32 0.0625, %v195_v60  ;;  %v488_v59 = vmul.f32 %v3082_v52, %v3082_v52 }
 0x117   :  { %3687 = vst [vmem:[#allocation13_spill] sm:$0xff] %v3085_v56  ;;  %v331_v6 = vmul.f32 0.0625, %v198_v50  ;;  %v489_v18 = vmul.f32 %v3085_v56, %v3085_v56 }
 0x118   :  { %v3094_v7 = vsub.f32 %v3688_v32, %v330_v26  ;;  %v668_v42 = vsel %vm108_vm0, %v488_v59, 0.0  ;;  %v3692_v32 = vld [vmem:[#allocation16_spill] sm:$0xff] }
 0x119   :  { %v3097_v49 = vsub.f32 %v3690_v58, %v331_v6  ;;  %576 = vadd.xlane.f32.xlu1 %v575_v10  ;;  %669 = vadd.xlane.f32.xlu0 %v668_v42  ;;  %v291_v3 = vpop.xlane.xlu0 %290  ;;  %v671_v23 = vsel %vm108_vm0, %v489_v18, 0.0  ;;  %v3694_v6 = vld [vmem:[#allocation17_spill] sm:$0xff] }
 0x11a   :  { %3689 = vst [vmem:[#allocation14_spill] sm:$0xff] %v3094_v7  ;;  %v294_v34 = vpop.xlane.xlu1 %293  ;;  %v362_v60 = vmul.f32 0.0625, %v291_v3  ;;  %v458_v52 = vmul.f32 %v3094_v7, %v3094_v7 }
 0x11b   :  { %3691 = vst [vmem:[#allocation15_spill] sm:$0xff] %v3097_v49  ;;  %v363_v50 = vmul.f32 0.0625, %v294_v34  ;;  %v459_v26 = vmul.f32 %v3097_v49, %v3097_v49 }
 0x11c   :  { %v3106_v56 = vsub.f32 %v3692_v32, %v362_v60  ;;  %v578_v59 = vsel %vm108_vm0, %v458_v52, 0.0  ;;  %v3696_v32 = vld [vmem:[#allocation18_spill] sm:$0xff] }
 0x11d   :  { %v3109_v58 = vsub.f32 %v3694_v6, %v363_v50  ;;  %672 = vadd.xlane.f32.xlu1 %v671_v23  ;;  %579 = vadd.xlane.f32.xlu0 %v578_v59  ;;  %v201_v10 = vpop.xlane.xlu0 %200  ;;  %v581_v42 = vsel %vm108_vm0, %v459_v26, 0.0  ;;  %v3698_v50 = vld [vmem:[#allocation19_spill] sm:$0xff] }
 0x11e   :  { %3693 = vst [vmem:[#allocation16_spill] sm:$0xff] %v3106_v56  ;;  %v204_v18 = vpop.xlane.xlu1 %203  ;;  %v332_v3 = vmul.f32 0.0625, %v201_v10  ;;  %v490_v7 = vmul.f32 %v3106_v56, %v3106_v56 }
 0x11f   :  { %3695 = vst [vmem:[#allocation17_spill] sm:$0xff] %v3109_v58  ;;  %v333_v34 = vmul.f32 0.0625, %v204_v18  ;;  %v491_v60 = vmul.f32 %v3109_v58, %v3109_v58 }
 0x120   :  { %v3118_v49 = vsub.f32 %v3696_v32, %v332_v3  ;;  %v674_v52 = vsel %vm108_vm0, %v490_v7, 0.0  ;;  %v3700_v32 = vld [vmem:[#allocation20_spill] sm:$0xff] }
 0x121   :  { %v3121_v6 = vsub.f32 %v3698_v50, %v333_v34  ;;  %582 = vadd.xlane.f32.xlu1 %v581_v42  ;;  %675 = vadd.xlane.f32.xlu0 %v674_v52  ;;  %v297_v23 = vpop.xlane.xlu0 %296  ;;  %v677_v59 = vsel %vm108_vm0, %v491_v60, 0.0 }
 0x122   :  { %3697 = vst [vmem:[#allocation18_spill] sm:$0xff] %v3118_v49  ;;  %v300_v26 = vpop.xlane.xlu1 %299  ;;  %v364_v10 = vmul.f32 0.0625, %v297_v23  ;;  %v460_v56 = vmul.f32 %v3118_v49, %v3118_v49 }
 0x123   :  { %3699 = vst [vmem:[#allocation19_spill] sm:$0xff] %v3121_v6  ;;  %v365_v18 = vmul.f32 0.0625, %v300_v26  ;;  %v461_v3 = vmul.f32 %v3121_v6, %v3121_v6 }
 0x124   :  { %v3130_v58 = vsub.f32 %v3700_v32, %v364_v10  ;;  %v584_v7 = vsel %vm108_vm0, %v460_v56, 0.0 }
 0x125   :  { %v3133_v34 = vsub.f32 %v2750_v46, %v365_v18  ;;  %678 = vadd.xlane.f32.xlu1 %v677_v59  ;;  %585 = vadd.xlane.f32.xlu0 %v584_v7  ;;  %v587_v42 = vsel %vm108_vm0, %v461_v3, 0.0 }
 0x126   :  { %3701 = vst [vmem:[#allocation20_spill] sm:$0xff] %v3130_v58  ;;  %v492_v60 = vmul.f32 %v3130_v58, %v3130_v58 }
 0x127   :  { %3702 = vst [vmem:[#allocation28_spill] sm:$0xff] %v3133_v34  ;;  %v493_v50 = vmul.f32 %v3133_v34, %v3133_v34 }
 0x128   :  { %v680_v52 = vsel %vm108_vm0, %v492_v60, 0.0 }
 0x129   :  { %588 = vadd.xlane.f32.xlu1 %v587_v42  ;;  %681 = vadd.xlane.f32.xlu0 %v680_v52  ;;  %v683_v23 = vsel %vm108_vm0, %v493_v50, 0.0 }
 0x12d   :  { %684 = vadd.xlane.f32.xlu1 %v683_v23 }
 0x136   :  { %v496_v46 = vpop.xlane.xlu0 %495 }
 0x137   :  { %v686_v26 = vmul.f32 0.0625, %v496_v46 }
 0x139   :  { %v750_v56 = vadd.f32 1e-05, %v686_v26 }
 0x13a   :  { %v499_v59 = vpop.xlane.xlu1 %498  ;;  %v592_v10 = vpop.xlane.xlu0 %591 }
 0x13b   :  { %2101 = vrsqrt.f32 %v750_v56  ;;  %v687_v18 = vmul.f32 0.0625, %v499_v59  ;;  %v718_v3 = vmul.f32 0.0625, %v592_v10 }
 0x13d   :  { %v751_v32 = vadd.f32 1e-05, %v687_v18  ;;  %v782_v7 = vadd.f32 1e-05, %v718_v3 }
 0x13e   :  { %v595_v58 = vpop.xlane.xlu1 %594  ;;  %v502_v6 = vpop.xlane.xlu0 %501 }
 0x13f   :  { %2103 = vrsqrt.f32 %v751_v32  ;;  %v719_v34 = vmul.f32 0.0625, %v595_v58  ;;  %v688_v60 = vmul.f32 0.0625, %v502_v6  ;;  %v3143_v32 = vld [vmem:[#allocation2] ss:$0 sm:$0xff] }
 0x140   :  { %2105 = vrsqrt.f32 %v782_v7 }
 0x141   :  { %v783_v42 = vadd.f32 1e-05, %v719_v34  ;;  %v752_v52 = vadd.f32 1e-05, %v688_v60 }
 0x142   :  { %v505_v50 = vpop.xlane.xlu1 %504  ;;  %v598_v23 = vpop.xlane.xlu0 %597 }
 0x143   :  { %2107 = vrsqrt.f32 %v783_v42  ;;  %v689_v46 = vmul.f32 0.0625, %v505_v50  ;;  %v720_v26 = vmul.f32 0.0625, %v598_v23 }
 0x144   :  { %2109 = vrsqrt.f32 %v752_v52 }
 0x145   :  { %v753_v49 = vadd.f32 1e-05, %v689_v46  ;;  %v784_v56 = vadd.f32 1e-05, %v720_v26 }
 0x146   :  { %v601_v59 = vpop.xlane.xlu1 %600  ;;  %v508_v10 = vpop.xlane.xlu0 %507 }
 0x147   :  { %2111 = vrsqrt.f32 %v753_v49  ;;  %v721_v18 = vmul.f32 0.0625, %v601_v59  ;;  %v690_v3 = vmul.f32 0.0625, %v508_v10  ;;  %v3147_v59 = vld [vmem:[#allocation4] ss:$0 sm:$0xff] }
 0x148   :  { %v2102_v51 = vpop.eup %2101  ;;  %2113 = vrsqrt.f32 %v784_v56 }
 0x149   :  { %v785_v58 = vadd.f32 1e-05, %v721_v18  ;;  %v754_v6 = vadd.f32 1e-05, %v690_v3  ;;  %v878_v34 = vmul.f32 %v2102_v51, %v2757_v39  ;;  %v3703_v3 = vld [vmem:[#allocation21_spill] sm:$0xff] }
 0x14a   :  { %v511_v7 = vpop.xlane.xlu1 %510  ;;  %v604_v60 = vpop.xlane.xlu0 %603 }
 0x14b   :  { %2115 = vrsqrt.f32 %v785_v58  ;;  %v691_v42 = vmul.f32 0.0625, %v511_v7  ;;  %v722_v52 = vmul.f32 0.0625, %v604_v60  ;;  %v948_v23 = vmul.f32 %v3143_v32, %v878_v34 }
 0x14c   :  { %v2104_v50 = vpop.eup %2103  ;;  %2117 = vrsqrt.f32 %v754_v6 }
 0x14d   :  { %v2106_v49 = vpop.eup %2105  ;;  %v755_v46 = vadd.f32 1e-05, %v691_v42  ;;  %v786_v26 = vadd.f32 1e-05, %v722_v52  ;;  %v879_v56 = vmul.f32 %v2104_v50, %v2767_v63  ;;  %v1018_v6 = vadd.f32 %v3147_v59, %v948_v23 }
 0x14e   :  { %v607_v10 = vpop.xlane.xlu1 %606  ;;  %v514_v18 = vpop.xlane.xlu0 %513  ;;  %v910_v39 = vmul.f32 %v2106_v49, %v3703_v3 }
 0x14f   :  { %2119 = vrsqrt.f32 %v755_v46  ;;  %v723_v51 = vmul.f32 0.0625, %v607_v10  ;;  %v692_v58 = vmul.f32 0.0625, %v514_v18  ;;  %v949_v7 = vmul.f32 %v3143_v32, %v879_v56 }
 0x150   :  { %v2108_v60 = vpop.eup %2107  ;;  %2121 = vrsqrt.f32 %v786_v26  ;;  %v980_v49 = vmul.f32 %v3143_v32, %v910_v39 }
 0x151   :  { %v2110_v34 = vpop.eup %2109  ;;  %v787_v42 = vadd.f32 1e-05, %v723_v51  ;;  %v756_v52 = vadd.f32 1e-05, %v692_v58  ;;  %v1019_v54 = vadd.f32 %v3147_v59, %v949_v7  ;;  %v911_v63 = vmul.f32 %v2108_v60, %v2770_v14 }
 0x152   :  { %v517_v50 = vpop.xlane.xlu1 %516  ;;  %v610_v43 = vpop.xlane.xlu0 %609  ;;  %v880_v46 = vmul.f32 %v2110_v34, %v2779_v2  ;;  %v1050_v2 = vadd.f32 %v3147_v59, %v980_v49 }
 0x153   :  { %2123 = vrsqrt.f32 %v787_v42  ;;  %v693_v10 = vmul.f32 0.0625, %v517_v50  ;;  %v724_v56 = vmul.f32 0.0625, %v610_v43  ;;  %v1082_v18 = vpack.c.bf16 %v1019_v54, %v1018_v6 }
 0x154   :  { %v2112_v26 = vpop.eup %2111  ;;  %2125 = vrsqrt.f32 %v756_v52  ;;  %v981_v23 = vmul.f32 %v3143_v32, %v911_v63  ;;  %v950_v3 = vmul.f32 %v3143_v32, %v880_v46 }
 0x155   :  { %v2114_v51 = vpop.eup %2113  ;;  %v757_v58 = vadd.f32 1e-05, %v693_v10  ;;  %v788_v7 = vadd.f32 1e-05, %v724_v56  ;;  %2032 = vmatprep.mubr.msk.bf16.mxu0 %vm108_vm0, %v1082_v18  ;;  %v881_v14 = vmul.f32 %v2112_v26, %v2782_v5 }
 0x156   :  { %v613_v39 = vpop.xlane.xlu1 %612  ;;  %v520_v60 = vpop.xlane.xlu0 %519  ;;  %v1051_v43 = vadd.f32 %v3147_v59, %v981_v23  ;;  %v912_v54 = vmul.f32 %v2114_v51, %v2791_v15  ;;  %v1020_v50 = vadd.f32 %v3147_v59, %v950_v3 }
 0x157   :  { %2127 = vrsqrt.f32 %v757_v58  ;;  %v725_v6 = vmul.f32 0.0625, %v613_v39  ;;  %v694_v34 = vmul.f32 0.0625, %v520_v60  ;;  %v951_v42 = vmul.f32 %v3143_v32, %v881_v14 }
 0x158   :  { %v2116_v52 = vpop.eup %2115  ;;  %2129 = vrsqrt.f32 %v788_v7  ;;  %v1098_v63 = vpack.c.bf16 %v1051_v43, %v1050_v2  ;;  %v982_v26 = vmul.f32 %v3143_v32, %v912_v54 }
 0x159   :  { %v2118_v46 = vpop.eup %2117  ;;  %v789_v5 = vadd.f32 1e-05, %v725_v6  ;;  %v758_v10 = vadd.f32 1e-05, %v694_v34  ;;  %v1021_v56 = vadd.f32 %v3147_v59, %v951_v42  ;;  %v913_v49 = vmul.f32 %v2116_v52, %v2794_v9 }
 0x15a   :  { %2064 = vmatprep.mubr.msk.bf16.mxu1 %vm108_vm0, %v1098_v63  ;;  %v523_v15 = vpop.xlane.xlu1 %522  ;;  %v616_v18 = vpop.xlane.xlu0 %615  ;;  %v882_v23 = vmul.f32 %v2118_v46, %v2803_v0  ;;  %v1052_v0 = vadd.f32 %v3147_v59, %v982_v26 }
 0x15b   :  { %2131 = vrsqrt.f32 %v789_v5  ;;  %v695_v51 = vmul.f32 0.0625, %v523_v15  ;;  %v726_v58 = vmul.f32 0.0625, %v616_v18  ;;  %v1083_v7 = vpack.c.bf16 %v1021_v56, %v1020_v50 }
 0x15c   :  { %v2120_v3 = vpop.eup %2119  ;;  %2133 = vrsqrt.f32 %v758_v10  ;;  %v983_v14 = vmul.f32 %v3143_v32, %v913_v49  ;;  %v952_v39 = vmul.f32 %v3143_v32, %v882_v23 }
 0x15d   :  { %v2122_v60 = vpop.eup %2121  ;;  %v759_v9 = vadd.f32 1e-05, %v695_v51  ;;  %v790_v2 = vadd.f32 1e-05, %v726_v58  ;;  %2033 = vmatmul.mubr.msk.bf16.vlgmr.msra.gmra.mxu0 %vm108_vm0, %v1083_v7  ;;  %v883_v43 = vmul.f32 %v2120_v3, %v2806_v13 }
 0x15e   :  { %v619_v54 = vpop.xlane.xlu1 %618  ;;  %v526_v6 = vpop.xlane.xlu0 %525  ;;  %v1053_v34 = vadd.f32 %v3147_v59, %v983_v14  ;;  %v914_v42 = vmul.f32 %v2122_v60, %v2815_v22  ;;  %v1022_v10 = vadd.f32 %v3147_v59, %v952_v39 }
 0x15f   :  { %2135 = vrsqrt.f32 %v759_v9  ;;  %v727_v52 = vmul.f32 0.0625, %v619_v54  ;;  %v696_v63 = vmul.f32 0.0625, %v526_v6  ;;  %v953_v50 = vmul.f32 %v3143_v32, %v883_v43 }
 0x160   :  { %v2124_v46 = vpop.eup %2123  ;;  %2137 = vrsqrt.f32 %v790_v2  ;;  %v1099_v5 = vpack.c.bf16 %v1053_v34, %v1052_v0  ;;  %v984_v23 = vmul.f32 %v3143_v32, %v914_v42 }
 0x161   :  { %v2126_v56 = vpop.eup %2125  ;;  %v791_v13 = vadd.f32 1e-05, %v727_v52  ;;  %v760_v49 = vadd.f32 1e-05, %v696_v63  ;;  %v1023_v15 = vadd.f32 %v3147_v59, %v953_v50  ;;  %v915_v18 = vmul.f32 %v2124_v46, %v2818_v17 }
 0x162   :  { %2065 = vmatmul.mubr.msk.bf16.vlgmr.msra.gmra.mxu1 %vm108_vm0, %v1099_v5  ;;  %v529_v22 = vpop.xlane.xlu1 %528  ;;  %v622_v26 = vpop.xlane.xlu0 %621  ;;  %v884_v51 = vmul.f32 %v2126_v56, %v2827_v55  ;;  %v1054_v55 = vadd.f32 %v3147_v59, %v984_v23 }
 0x163   :  { %2139 = vrsqrt.f32 %v791_v13  ;;  %v697_v58 = vmul.f32 0.0625, %v529_v22  ;;  %v728_v7 = vmul.f32 0.0625, %v622_v26  ;;  %v1084_v3 = vpack.c.bf16 %v1023_v15, %v1022_v10 }
 0x164   :  { %v2128_v14 = vpop.eup %2127  ;;  %2141 = vrsqrt.f32 %v760_v49  ;;  %v985_v39 = vmul.f32 %v3143_v32, %v915_v18  ;;  %v954_v60 = vmul.f32 %v3143_v32, %v884_v51 }
 0x165   :  { %v2130_v9 = vpop.eup %2129  ;;  %v761_v17 = vadd.f32 1e-05, %v697_v58  ;;  %v792_v2 = vadd.f32 1e-05, %v728_v7  ;;  %2036 = vmatprep.mubr.msk.bf16.mxu0 %vm108_vm0, %v1084_v3  ;;  %v885_v43 = vmul.f32 %v2128_v14, %v2830_v21 }
 0x166   :  { %v625_v54 = vpop.xlane.xlu1 %624  ;;  %v532_v6 = vpop.xlane.xlu0 %531  ;;  %v1055_v0 = vadd.f32 %v3147_v59, %v985_v39  ;;  %v916_v34 = vmul.f32 %v2130_v9, %v2839_v62  ;;  %v1024_v5 = vadd.f32 %v3147_v59, %v954_v60 }
 0x167   :  { %2143 = vrsqrt.f32 %v761_v17  ;;  %v729_v42 = vmul.f32 0.0625, %v625_v54  ;;  %v698_v52 = vmul.f32 0.0625, %v532_v6  ;;  %v955_v63 = vmul.f32 %v3143_v32, %v885_v43 }
 0x168   :  { %v2132_v50 = vpop.eup %2131  ;;  %2145 = vrsqrt.f32 %v792_v2  ;;  %v1100_v46 = vpack.c.bf16 %v1055_v0, %v1054_v55  ;;  %v986_v18 = vmul.f32 %v3143_v32, %v916_v34 }
 0x169   :  { %v2134_v10 = vpop.eup %2133  ;;  %v793_v21 = vadd.f32 1e-05, %v729_v42  ;;  %v762_v56 = vadd.f32 1e-05, %v698_v52  ;;  %v1025_v13 = vadd.f32 %v3147_v59, %v955_v63  ;;  %v917_v49 = vmul.f32 %v2132_v50, %v2842_v25 }
 0x16a   :  { %2068 = vmatprep.mubr.msk.bf16.mxu1 %vm108_vm0, %v1100_v46  ;;  %v535_v62 = vpop.xlane.xlu1 %534  ;;  %v628_v15 = vpop.xlane.xlu0 %627  ;;  %v886_v22 = vmul.f32 %v2134_v10, %v2851_v31  ;;  %v1056_v31 = vadd.f32 %v3147_v59, %v986_v18 }
 0x16b   :  { %2147 = vrsqrt.f32 %v793_v21  ;;  %v699_v26 = vmul.f32 0.0625, %v535_v62  ;;  %v730_v23 = vmul.f32 0.0625, %v628_v15  ;;  %v1085_v51 = vpack.c.bf16 %v1025_v13, %v1024_v5 }
 0x16c   :  { %v2136_v58 = vpop.eup %2135  ;;  %2149 = vrsqrt.f32 %v762_v56  ;;  %v987_v7 = vmul.f32 %v3143_v32, %v917_v49  ;;  %v956_v3 = vmul.f32 %v3143_v32, %v886_v22 }
 0x16d   :  { %v2138_v14 = vpop.eup %2137  ;;  %v763_v25 = vadd.f32 1e-05, %v699_v26  ;;  %v794_v39 = vadd.f32 1e-05, %v730_v23  ;;  %2037 = vmatmul.mubr.msk.bf16.gmra.mxu0 %vm108_vm0, %v1085_v51  ;;  %v887_v60 = vmul.f32 %v2136_v58, %v2854_v29 }
 0x16e   :  { %v631_v9 = vpop.xlane.xlu1 %630  ;;  %v538_v17 = vpop.xlane.xlu0 %537  ;;  %v1057_v2 = vadd.f32 %v3147_v59, %v987_v7  ;;  %v918_v43 = vmul.f32 %v2138_v14, %v2863_v8  ;;  %v1026_v42 = vadd.f32 %v3147_v59, %v956_v3 }
 0x16f   :  { %2151 = vrsqrt.f32 %v763_v25  ;;  %v731_v54 = vmul.f32 0.0625, %v631_v9  ;;  %v700_v6 = vmul.f32 0.0625, %v538_v17  ;;  %v957_v55 = vmul.f32 %v3143_v32, %v887_v60 }
 0x170   :  { %v2140_v0 = vpop.eup %2139  ;;  %2153 = vrsqrt.f32 %v794_v39  ;;  %v1101_v34 = vpack.c.bf16 %v1057_v2, %v1056_v31  ;;  %v988_v10 = vmul.f32 %v3143_v32, %v918_v43 }
 0x171   :  { %v2142_v52 = vpop.eup %2141  ;;  %v795_v29 = vadd.f32 1e-05, %v731_v54  ;;  %v764_v63 = vadd.f32 1e-05, %v700_v6  ;;  %v1027_v50 = vadd.f32 %v3147_v59, %v957_v55  ;;  %v919_v46 = vmul.f32 %v2140_v0, %v2866_v33 }
 0x172   :  { %2069 = vmatmul.mubr.msk.bf16.gmra.mxu1 %vm108_vm0, %v1101_v34  ;;  %v541_v8 = vpop.xlane.xlu1 %540  ;;  %v634_v5 = vpop.xlane.xlu0 %633  ;;  %v888_v21 = vmul.f32 %v2142_v52, %v2875_v12  ;;  %v1058_v12 = vadd.f32 %v3147_v59, %v988_v10 }
 0x173   :  { %2155 = vrsqrt.f32 %v795_v29  ;;  %v701_v56 = vmul.f32 0.0625, %v541_v8  ;;  %v732_v13 = vmul.f32 0.0625, %v634_v5  ;;  %v1086_v49 = vpack.c.bf16 %v1027_v50, %v1026_v42  ;;  %v3704_v5 = vld [vmem:[#allocation22_spill] sm:$0xff] }
 0x174   :  { %v2144_v62 = vpop.eup %2143  ;;  %2157 = vrsqrt.f32 %v764_v63  ;;  %v989_v15 = vmul.f32 %v3143_v32, %v919_v46  ;;  %v958_v18 = vmul.f32 %v3143_v32, %v888_v21 }
 0x175   :  { %v2146_v22 = vpop.eup %2145  ;;  %v765_v33 = vadd.f32 1e-05, %v701_v56  ;;  %v796_v26 = vadd.f32 1e-05, %v732_v13  ;;  %2040 = vmatprep.mubr.msk.bf16.mxu0 %vm108_vm0, %v1086_v49  ;;  %v889_v23 = vmul.f32 %v2144_v62, %v2878_v37 }
 0x176   :  { %v637_v51 = vpop.xlane.xlu1 %636  ;;  %v544_v58 = vpop.xlane.xlu0 %543  ;;  %v1059_v7 = vadd.f32 %v3147_v59, %v989_v15  ;;  %v920_v3 = vmul.f32 %v2146_v22, %v2887_v16  ;;  %v1028_v17 = vadd.f32 %v3147_v59, %v958_v18 }
 0x177   :  { %2159 = vrsqrt.f32 %v765_v33  ;;  %v733_v14 = vmul.f32 0.0625, %v637_v51  ;;  %v702_v25 = vmul.f32 0.0625, %v544_v58  ;;  %v959_v39 = vmul.f32 %v3143_v32, %v889_v23 }
 0x178   :  { %v2148_v60 = vpop.eup %2147  ;;  %2161 = vrsqrt.f32 %v796_v26  ;;  %v1102_v9 = vpack.c.bf16 %v1059_v7, %v1058_v12  ;;  %v990_v55 = vmul.f32 %v3143_v32, %v920_v3 }
 0x179   :  { %v2150_v31 = vpop.eup %2149  ;;  %v797_v37 = vadd.f32 1e-05, %v733_v14  ;;  %v766_v2 = vadd.f32 1e-05, %v702_v25  ;;  %v1029_v43 = vadd.f32 %v3147_v59, %v959_v39  ;;  %v921_v54 = vmul.f32 %v2148_v60, %v2890_v41 }
 0x17a   :  { %2072 = vmatprep.mubr.msk.bf16.mxu1 %vm108_vm0, %v1102_v9  ;;  %v547_v16 = vpop.xlane.xlu1 %546  ;;  %v640_v6 = vpop.xlane.xlu0 %639  ;;  %v890_v0 = vmul.f32 %v2150_v31, %v2899_v20  ;;  %v1060_v20 = vadd.f32 %v3147_v59, %v990_v55 }
 0x17b   :  { %2163 = vrsqrt.f32 %v797_v37  ;;  %v703_v34 = vmul.f32 0.0625, %v547_v16  ;;  %v734_v42 = vmul.f32 0.0625, %v640_v6  ;;  %v1087_v52 = vpack.c.bf16 %v1029_v43, %v1028_v17 }
 0x17c   :  { %v2152_v29 = vpop.eup %2151  ;;  %2165 = vrsqrt.f32 %v766_v2  ;;  %v991_v63 = vmul.f32 %v3143_v32, %v921_v54  ;;  %v960_v50 = vmul.f32 %v3143_v32, %v890_v0 }
 0x17d   :  { %v2154_v46 = vpop.eup %2153  ;;  %v767_v41 = vadd.f32 1e-05, %v703_v34  ;;  %v798_v8 = vadd.f32 1e-05, %v734_v42  ;;  %2041 = vmatmul.mubr.msk.bf16.gmra.mxu0 %vm108_vm0, %v1087_v52  ;;  %v891_v10 = vmul.f32 %v2152_v29, %v3704_v5 }
 0x17e   :  { %v643_v21 = vpop.xlane.xlu1 %642  ;;  %v550_v56 = vpop.xlane.xlu0 %549  ;;  %v1061_v13 = vadd.f32 %v3147_v59, %v991_v63  ;;  %v922_v49 = vmul.f32 %v2154_v46, %v2914_v24  ;;  %v1030_v26 = vadd.f32 %v3147_v59, %v960_v50 }
 0x17f   :  { %2167 = vrsqrt.f32 %v767_v41  ;;  %v735_v62 = vmul.f32 0.0625, %v643_v21  ;;  %v704_v15 = vmul.f32 0.0625, %v550_v56  ;;  %v961_v18 = vmul.f32 %v3143_v32, %v891_v10 }
 0x180   :  { %v2156_v22 = vpop.eup %2155  ;;  %2169 = vrsqrt.f32 %v798_v8  ;;  %v1103_v33 = vpack.c.bf16 %v1061_v13, %v1060_v20  ;;  %v992_v14 = vmul.f32 %v3143_v32, %v922_v49 }
 0x181   :  { %v2158_v23 = vpop.eup %2157  ;;  %v799_v51 = vadd.f32 1e-05, %v735_v62  ;;  %v768_v58 = vadd.f32 1e-05, %v704_v15  ;;  %v1031_v12 = vadd.f32 %v3147_v59, %v961_v18  ;;  %v923_v7 = vmul.f32 %v2156_v22, %v2917_v36 }
 0x182   :  { %2073 = vmatmul.mubr.msk.bf16.gmra.mxu1 %vm108_vm0, %v1103_v33  ;;  %v553_v24 = vpop.xlane.xlu1 %552  ;;  %v646_v3 = vpop.xlane.xlu0 %645  ;;  %v892_v25 = vmul.f32 %v2158_v23, %v2926_v30  ;;  %v1062_v30 = vadd.f32 %v3147_v59, %v992_v14 }
 0x183   :  { %2171 = vrsqrt.f32 %v799_v51  ;;  %v705_v39 = vmul.f32 0.0625, %v553_v24  ;;  %v736_v60 = vmul.f32 0.0625, %v646_v3  ;;  %v1088_v9 = vpack.c.bf16 %v1031_v12, %v1030_v26 }
 0x184   :  { %v2160_v17 = vpop.eup %2159  ;;  %2173 = vrsqrt.f32 %v768_v58  ;;  %v993_v31 = vmul.f32 %v3143_v32, %v923_v7  ;;  %v962_v37 = vmul.f32 %v3143_v32, %v892_v25 }
 0x185   :  { %v2162_v2 = vpop.eup %2161  ;;  %v769_v36 = vadd.f32 1e-05, %v705_v39  ;;  %v800_v43 = vadd.f32 1e-05, %v736_v60  ;;  %2044 = vmatprep.mubr.msk.bf16.mxu0 %vm108_vm0, %v1088_v9  ;;  %v893_v54 = vmul.f32 %v2160_v17, %v2929_v53 }
 0x186   :  { %v649_v16 = vpop.xlane.xlu1 %648  ;;  %v556_v6 = vpop.xlane.xlu0 %555  ;;  %v1063_v55 = vadd.f32 %v3147_v59, %v993_v31  ;;  %v924_v0 = vmul.f32 %v2162_v2, %v2938_v44  ;;  %v1032_v50 = vadd.f32 %v3147_v59, %v962_v37 }
 0x187   :  { %2175 = vrsqrt.f32 %v769_v36  ;;  %v737_v34 = vmul.f32 0.0625, %v649_v16  ;;  %v706_v42 = vmul.f32 0.0625, %v556_v6  ;;  %v963_v52 = vmul.f32 %v3143_v32, %v893_v54 }
 0x188   :  { %v2164_v29 = vpop.eup %2163  ;;  %2177 = vrsqrt.f32 %v800_v43  ;;  %v1104_v63 = vpack.c.bf16 %v1063_v55, %v1062_v30  ;;  %v994_v21 = vmul.f32 %v3143_v32, %v924_v0 }
 0x189   :  { %v2166_v46 = vpop.eup %2165  ;;  %v801_v53 = vadd.f32 1e-05, %v737_v34  ;;  %v770_v41 = vadd.f32 1e-05, %v706_v42  ;;  %v1033_v8 = vadd.f32 %v3147_v59, %v963_v52  ;;  %v925_v5 = vmul.f32 %v2164_v29, %v2941_v57 }
 0x18a   :  { %2076 = vmatprep.mubr.msk.bf16.mxu1 %vm108_vm0, %v1104_v63  ;;  %v559_v44 = vpop.xlane.xlu1 %558  ;;  %v652_v10 = vpop.xlane.xlu0 %651  ;;  %v894_v56 = vmul.f32 %v2166_v46, %v2950_v47  ;;  %v1064_v47 = vadd.f32 %v3147_v59, %v994_v21 }
 0x18b   :  { %2179 = vrsqrt.f32 %v801_v53  ;;  %v707_v20 = vmul.f32 0.0625, %v559_v44  ;;  %v738_v13 = vmul.f32 0.0625, %v652_v10  ;;  %v1089_v49 = vpack.c.bf16 %v1033_v8, %v1032_v50 }
 0x18c   :  { %v2168_v62 = vpop.eup %2167  ;;  %2181 = vrsqrt.f32 %v770_v41  ;;  %v995_v15 = vmul.f32 %v3143_v32, %v925_v5  ;;  %v964_v18 = vmul.f32 %v3143_v32, %v894_v56 }
 0x18d   :  { %v2170_v22 = vpop.eup %2169  ;;  %v771_v57 = vadd.f32 1e-05, %v707_v20  ;;  %v802_v33 = vadd.f32 1e-05, %v738_v13  ;;  %2045 = vmatmul.mubr.msk.bf16.gmra.mxu0 %vm108_vm0, %v1089_v49  ;;  %v895_v26 = vmul.f32 %v2168_v62, %v2953_v61 }
 0x18e   :  { %v655_v23 = vpop.xlane.xlu1 %654  ;;  %v562_v51 = vpop.xlane.xlu0 %561  ;;  %v1065_v58 = vadd.f32 %v3147_v59, %v995_v15  ;;  %v926_v12 = vmul.f32 %v2170_v22, %v2962_v38  ;;  %v1034_v39 = vadd.f32 %v3147_v59, %v964_v18 }
 0x18f   :  { %2183 = vrsqrt.f32 %v771_v57  ;;  %v739_v7 = vmul.f32 0.0625, %v655_v23  ;;  %v708_v24 = vmul.f32 0.0625, %v562_v51  ;;  %v965_v3 = vmul.f32 %v3143_v32, %v895_v26 }
 0x190   :  { %v2172_v14 = vpop.eup %2171  ;;  %2185 = vrsqrt.f32 %v802_v33  ;;  %v1105_v25 = vpack.c.bf16 %v1065_v58, %v1064_v47  ;;  %v996_v2 = vmul.f32 %v3143_v32, %v926_v12 }
 0x191   :  { %v2174_v60 = vpop.eup %2173  ;;  %v803_v61 = vadd.f32 1e-05, %v739_v7  ;;  %v772_v9 = vadd.f32 1e-05, %v708_v24  ;;  %v1035_v17 = vadd.f32 %v3147_v59, %v965_v3  ;;  %v927_v31 = vmul.f32 %v2172_v14, %v2965_v4 }
 0x192   :  { %2077 = vmatmul.mubr.msk.bf16.gmra.mxu1 %vm108_vm0, %v1105_v25  ;;  %v565_v38 = vpop.xlane.xlu1 %564  ;;  %v658_v37 = vpop.xlane.xlu0 %657  ;;  %v896_v36 = vmul.f32 %v2174_v60, %v2974_v1  ;;  %v1066_v1 = vadd.f32 %v3147_v59, %v996_v2 }
 0x193   :  { %2187 = vrsqrt.f32 %v803_v61  ;;  %v709_v43 = vmul.f32 0.0625, %v565_v38  ;;  %v740_v54 = vmul.f32 0.0625, %v658_v37  ;;  %v1090_v16 = vpack.c.bf16 %v1035_v17, %v1034_v39 }
 0x194   :  { %v2176_v6 = vpop.eup %2175  ;;  %2189 = vrsqrt.f32 %v772_v9  ;;  %v997_v30 = vmul.f32 %v3143_v32, %v927_v31  ;;  %v966_v55 = vmul.f32 %v3143_v32, %v896_v36 }
 0x195   :  { %v2178_v0 = vpop.eup %2177  ;;  %v773_v4 = vadd.f32 1e-05, %v709_v43  ;;  %v804_v34 = vadd.f32 1e-05, %v740_v54  ;;  %2048 = vmatprep.mubr.msk.bf16.mxu0 %vm108_vm0, %v1090_v16  ;;  %v897_v42 = vmul.f32 %v2176_v6, %v2977_v11 }
 0x196   :  { %v661_v52 = vpop.xlane.xlu1 %660  ;;  %v568_v29 = vpop.xlane.xlu0 %567  ;;  %v1067_v63 = vadd.f32 %v3147_v59, %v997_v30  ;;  %v928_v50 = vmul.f32 %v2178_v0, %v2986_v28  ;;  %v1036_v44 = vadd.f32 %v3147_v59, %v966_v55 }
 0x197   :  { %2191 = vrsqrt.f32 %v773_v4  ;;  %v741_v46 = vmul.f32 0.0625, %v661_v52  ;;  %v710_v53 = vmul.f32 0.0625, %v568_v29  ;;  %v967_v41 = vmul.f32 %v3143_v32, %v897_v42 }
 0x198   :  { %v2180_v8 = vpop.eup %2179  ;;  %2193 = vrsqrt.f32 %v804_v34  ;;  %v1106_v5 = vpack.c.bf16 %v1067_v63, %v1066_v1  ;;  %v998_v49 = vmul.f32 %v3143_v32, %v928_v50  ;;  %v3705_v34 = vld [vmem:[#allocation23_spill] sm:$0xff]  ;;  %v3706_v63 = vld [vmem:[#allocation24_spill] sm:$0xff] }
 0x199   :  { %v2182_v10 = vpop.eup %2181  ;;  %v805_v11 = vadd.f32 1e-05, %v741_v46  ;;  %v774_v21 = vadd.f32 1e-05, %v710_v53  ;;  %v1037_v56 = vadd.f32 %v3147_v59, %v967_v41  ;;  %v929_v20 = vmul.f32 %v2180_v8, %v2989_v19 }
 0x19a   :  { %2080 = vmatprep.mubr.msk.bf16.mxu1 %vm108_vm0, %v1106_v5  ;;  %v571_v28 = vpop.xlane.xlu1 %570  ;;  %v664_v13 = vpop.xlane.xlu0 %663  ;;  %v898_v62 = vmul.f32 %v2182_v10, %v2998_v45  ;;  %v1068_v45 = vadd.f32 %v3147_v59, %v998_v49 }
 0x19b   :  { %2195 = vrsqrt.f32 %v805_v11  ;;  %v711_v15 = vmul.f32 0.0625, %v571_v28  ;;  %v742_v18 = vmul.f32 0.0625, %v664_v13  ;;  %v1091_v22 = vpack.c.bf16 %v1037_v56, %v1036_v44 }
 0x19c   :  { %v2184_v57 = vpop.eup %2183  ;;  %2197 = vrsqrt.f32 %v774_v21  ;;  %v999_v33 = vmul.f32 %v3143_v32, %v929_v20  ;;  %v968_v26 = vmul.f32 %v3143_v32, %v898_v62  ;;  %v3707_v20 = vld [vmem:[#allocation25_spill] sm:$0xff] }
 0x19d   :  { %v2186_v23 = vpop.eup %2185  ;;  %v775_v19 = vadd.f32 1e-05, %v711_v15  ;;  %v806_v51 = vadd.f32 1e-05, %v742_v18  ;;  %2049 = vmatmul.mubr.msk.bf16.gmra.mxu0 %vm108_vm0, %v1091_v22  ;;  %v899_v47 = vmul.f32 %v2184_v57, %v3001_v27  ;;  %v3708_v15 = vld [vmem:[#allocation26_spill] sm:$0xff] }
 0x19e   :  { %v667_v58 = vpop.xlane.xlu1 %666  ;;  %v574_v12 = vpop.xlane.xlu0 %573  ;;  %v1069_v7 = vadd.f32 %v3147_v59, %v999_v33  ;;  %v930_v24 = vmul.f32 %v2186_v23, %v3010_v48  ;;  %v1038_v61 = vadd.f32 %v3147_v59, %v968_v26 }
 0x19f   :  { %2199 = vrsqrt.f32 %v775_v19  ;;  %v743_v3 = vmul.f32 0.0625, %v667_v58  ;;  %v712_v14 = vmul.f32 0.0625, %v574_v12  ;;  %v969_v25 = vmul.f32 %v3143_v32, %v899_v47  ;;  %v3709_v12 = vld [vmem:[#allocation27_spill] sm:$0xff] }
 0x1a0   :  { %v2188_v39 = vpop.eup %2187  ;;  %2201 = vrsqrt.f32 %v806_v51  ;;  %v1107_v60 = vpack.c.bf16 %v1069_v7, %v1068_v45  ;;  %v1000_v2 = vmul.f32 %v3143_v32, %v930_v24 }
 0x1a1   :  { %v2190_v9 = vpop.eup %2189  ;;  %v807_v27 = vadd.f32 1e-05, %v743_v3  ;;  %v776_v17 = vadd.f32 1e-05, %v712_v14  ;;  %v1039_v31 = vadd.f32 %v3147_v59, %v969_v25  ;;  %v931_v38 = vmul.f32 %v2188_v39, %v3013_v35  ;;  %v3710_v25 = vld [vmem:[#allocation8_spill] sm:$0xff] }
 0x1a2   :  { %2081 = vmatmul.mubr.msk.bf16.gmra.mxu1 %vm108_vm0, %v1107_v60  ;;  %v577_v48 = vpop.xlane.xlu1 %576  ;;  %v670_v37 = vpop.xlane.xlu0 %669  ;;  %v900_v36 = vmul.f32 %v2190_v9, %v3022_v40  ;;  %v1070_v40 = vadd.f32 %v3147_v59, %v1000_v2 }
 0x1a3   :  { %2203 = vrsqrt.f32 %v807_v27  ;;  %v713_v43 = vmul.f32 0.0625, %v577_v48  ;;  %v744_v54 = vmul.f32 0.0625, %v670_v37  ;;  %v1092_v16 = vpack.c.bf16 %v1039_v31, %v1038_v61 }
 0x1a4   :  { %v2192_v6 = vpop.eup %2191  ;;  %2205 = vrsqrt.f32 %v776_v17  ;;  %v1001_v30 = vmul.f32 %v3143_v32, %v931_v38  ;;  %v970_v55 = vmul.f32 %v3143_v32, %v900_v36  ;;  %v3711_v36 = vld [vmem:[#allocation9_spill] sm:$0xff] }
 0x1a5   :  { %v2194_v0 = vpop.eup %2193  ;;  %v777_v35 = vadd.f32 1e-05, %v713_v43  ;;  %v808_v4 = vadd.f32 1e-05, %v744_v54  ;;  %2052 = vmatprep.mubr.msk.bf16.mxu0 %vm108_vm0, %v1092_v16  ;;  %v901_v42 = vmul.f32 %v2192_v6, %v3705_v34 }
 0x1a6   :  { %v673_v52 = vpop.xlane.xlu1 %672  ;;  %v580_v29 = vpop.xlane.xlu0 %579  ;;  %v1071_v1 = vadd.f32 %v3147_v59, %v1001_v30  ;;  %v932_v50 = vmul.f32 %v2194_v0, %v3706_v63  ;;  %v1040_v44 = vadd.f32 %v3147_v59, %v970_v55  ;;  %v3712_v30 = vld [vmem:[#allocation10_spill] sm:$0xff]  ;;  %v3713_v63 = vld [vmem:[#allocation11_spill] sm:$0xff] }
 0x1a7   :  { %2207 = vrsqrt.f32 %v777_v35  ;;  %v745_v46 = vmul.f32 0.0625, %v673_v52  ;;  %v714_v53 = vmul.f32 0.0625, %v580_v29  ;;  %v971_v41 = vmul.f32 %v3143_v32, %v901_v42 }
 0x1a8   :  { %v2196_v8 = vpop.eup %2195  ;;  %2209 = vrsqrt.f32 %v808_v4  ;;  %v1108_v5 = vpack.c.bf16 %v1071_v1, %v1070_v40  ;;  %v1002_v62 = vmul.f32 %v3143_v32, %v932_v50 }
 0x1a9   :  { %v2198_v10 = vpop.eup %2197  ;;  %v809_v11 = vadd.f32 1e-05, %v745_v46  ;;  %v778_v21 = vadd.f32 1e-05, %v714_v53  ;;  %v1041_v56 = vadd.f32 %v3147_v59, %v971_v41  ;;  %v933_v28 = vmul.f32 %v2196_v8, %v3707_v20  ;;  %v3714_v8 = vld [vmem:[#allocation12_spill] sm:$0xff] }
 0x1aa   :  { %2084 = vmatprep.mubr.msk.bf16.mxu1 %vm108_vm0, %v1108_v5  ;;  %v583_v13 = vpop.xlane.xlu1 %582  ;;  %v676_v49 = vpop.xlane.xlu0 %675  ;;  %v902_v18 = vmul.f32 %v2198_v10, %v3708_v15  ;;  %v1072_v3 = vadd.f32 %v3147_v59, %v1002_v62 }
 0x1ab   :  { %2211 = vrsqrt.f32 %v809_v11  ;;  %v715_v22 = vmul.f32 0.0625, %v583_v13  ;;  %v746_v57 = vmul.f32 0.0625, %v676_v49  ;;  %v1093_v33 = vpack.c.bf16 %v1041_v56, %v1040_v44  ;;  %v3715_v49 = vld [vmem:[#allocation13_spill] sm:$0xff] }
 0x1ac   :  { %v2200_v26 = vpop.eup %2199  ;;  %2213 = vrsqrt.f32 %v778_v21  ;;  %v1003_v23 = vmul.f32 %v3143_v32, %v933_v28  ;;  %v972_v19 = vmul.f32 %v3143_v32, %v902_v18  ;;  %v3716_v18 = vld [vmem:[#allocation14_spill] sm:$0xff] }
 0x1ad   :  { %v2202_v51 = vpop.eup %2201  ;;  %v779_v47 = vadd.f32 1e-05, %v715_v22  ;;  %v810_v58 = vadd.f32 1e-05, %v746_v57  ;;  %2053 = vmatmul.mubr.msk.bf16.gmra.mxu0 %vm108_vm0, %v1093_v33  ;;  %v903_v45 = vmul.f32 %v2200_v26, %v3709_v12 }
 0x1ae   :  { %v679_v7 = vpop.xlane.xlu1 %678  ;;  %v586_v24 = vpop.xlane.xlu0 %585  ;;  %v1073_v14 = vadd.f32 %v3147_v59, %v1003_v23  ;;  %v934_v39 = vmul.f32 %v2202_v51, %v3710_v25  ;;  %v1042_v31 = vadd.f32 %v3147_v59, %v972_v19 }
 0x1af   :  { %2215 = vrsqrt.f32 %v779_v47  ;;  %v747_v60 = vmul.f32 0.0625, %v679_v7  ;;  %v716_v61 = vmul.f32 0.0625, %v586_v24  ;;  %v973_v9 = vmul.f32 %v3143_v32, %v903_v45  ;;  %v3717_v47 = vld [vmem:[#allocation15_spill] sm:$0xff]  ;;  %v3718_v45 = vld [vmem:[#allocation16_spill] sm:$0xff] }
 0x1b0   :  { %v2204_v27 = vpop.eup %2203  ;;  %2217 = vrsqrt.f32 %v810_v58  ;;  %v1109_v17 = vpack.c.bf16 %v1073_v14, %v1072_v3  ;;  %v1004_v6 = vmul.f32 %v3143_v32, %v934_v39 }
 0x1b1   :  { %v2206_v38 = vpop.eup %2205  ;;  %v811_v48 = vadd.f32 1e-05, %v747_v60  ;;  %v780_v37 = vadd.f32 1e-05, %v716_v61  ;;  %v1043_v2 = vadd.f32 %v3147_v59, %v973_v9  ;;  %v935_v43 = vmul.f32 %v2204_v27, %v3711_v36  ;;  %v3719_v61 = vld [vmem:[#allocation17_spill] sm:$0xff] }
 0x1b2   :  { %2085 = vmatmul.mubr.msk.bf16.gmra.mxu1 %vm108_vm0, %v1109_v17  ;;  %v589_v54 = vpop.xlane.xlu1 %588  ;;  %v682_v16 = vpop.xlane.xlu0 %681  ;;  %v904_v55 = vmul.f32 %v2206_v38, %v3712_v30  ;;  %v1074_v53 = vadd.f32 %v3147_v59, %v1004_v6  ;;  %v2229_v27 = vld [vmem:[#allocation2] ss:$0 sm:$0xff]  ;;  %v3722_v30 = vld [vmem:[#allocation20_spill] sm:$0xff] }
 0x1b3   :  { %2219 = vrsqrt.f32 %v811_v48  ;;  %v717_v0 = vmul.f32 0.0625, %v589_v54  ;;  %v748_v35 = vmul.f32 0.0625, %v682_v16  ;;  %v1094_v4 = vpack.c.bf16 %v1043_v2, %v1042_v31  ;;  %v3720_v31 = vld [vmem:[#allocation18_spill] sm:$0xff]  ;;  %v3721_v54 = vld [vmem:[#allocation19_spill] sm:$0xff] }
 0x1b4   :  { %v2208_v34 = vpop.eup %2207  ;;  %2221 = vrsqrt.f32 %v780_v37  ;;  %v1005_v42 = vmul.f32 %v3143_v32, %v935_v43  ;;  %v974_v52 = vmul.f32 %v3143_v32, %v904_v55 }
 0x1b5   :  { %v2210_v29 = vpop.eup %2209  ;;  %v781_v40 = vadd.f32 1e-05, %v717_v0  ;;  %v812_v1 = vadd.f32 1e-05, %v748_v35  ;;  %2056 = vmatprep.mubr.msk.bf16.mxu0 %vm108_vm0, %v1094_v4  ;;  %v905_v50 = vmul.f32 %v2208_v34, %v3713_v63  ;;  %v2230_v34 = vld [vmem:[#allocation4] ss:$0 sm:$0xff] }
 0x1b6   :  { %v685_v46 = vpop.xlane.xlu1 %684  ;;  %v1075_v41 = vadd.f32 %v3147_v59, %v1005_v42  ;;  %v936_v5 = vmul.f32 %v2210_v29, %v3714_v8  ;;  %v1044_v56 = vadd.f32 %v3147_v59, %v974_v52  ;;  %v3723_v29 = vld [vmem:[#allocation28_spill] sm:$0xff] }
 0x1b7   :  { %2223 = vrsqrt.f32 %v781_v40  ;;  %v749_v44 = vmul.f32 0.0625, %v685_v46  ;;  %v975_v10 = vmul.f32 %v3143_v32, %v905_v50 }
 0x1b8   :  { %v2212_v11 = vpop.eup %2211  ;;  %2225 = vrsqrt.f32 %v812_v1  ;;  %v1110_v21 = vpack.c.bf16 %v1075_v41, %v1074_v53  ;;  %v1006_v15 = vmul.f32 %v3143_v32, %v936_v5 }
 0x1b9   :  { %v2214_v20 = vpop.eup %2213  ;;  %v813_v28 = vadd.f32 1e-05, %v749_v44  ;;  %v1045_v13 = vadd.f32 %v3147_v59, %v975_v10  ;;  %v937_v62 = vmul.f32 %v2212_v11, %v3715_v49 }
 0x1ba   :  { %2088 = vmatprep.mubr.msk.bf16.mxu1 %vm108_vm0, %v1110_v21  ;;  %v906_v22 = vmul.f32 %v2214_v20, %v3716_v18  ;;  %v1076_v19 = vadd.f32 %v3147_v59, %v1006_v15 }
 0x1bb   :  { %2227 = vrsqrt.f32 %v813_v28  ;;  %v1095_v57 = vpack.c.bf16 %v1045_v13, %v1044_v56  ;;  %v1007_v33 = vmul.f32 %v3143_v32, %v937_v62 }
 0x1bc   :  { %v2216_v26 = vpop.eup %2215  ;;  %v976_v12 = vmul.f32 %v3143_v32, %v906_v22 }
 0x1bd   :  { %v2218_v23 = vpop.eup %2217  ;;  %2057 = vmatmul.mubr.msk.bf16.gmra.mxu0 %vm108_vm0, %v1095_v57  ;;  %v1077_v51 = vadd.f32 %v3147_v59, %v1007_v33  ;;  %v907_v58 = vmul.f32 %v2216_v26, %v3717_v47 }
 0x1be   :  { %v938_v7 = vmul.f32 %v2218_v23, %v3718_v45  ;;  %v1046_v39 = vadd.f32 %v3147_v59, %v976_v12 }
 0x1bf   :  { %v1111_v24 = vpack.c.bf16 %v1077_v51, %v1076_v19  ;;  %v977_v3 = vmul.f32 %v3143_v32, %v907_v58 }
 0x1c0   :  { %v2220_v14 = vpop.eup %2219  ;;  %v1008_v17 = vmul.f32 %v2229_v27, %v938_v7 }
 0x1c1   :  { %v2222_v25 = vpop.eup %2221  ;;  %2089 = vmatmul.mubr.msk.bf16.gmra.mxu1 %vm108_vm0, %v1111_v24  ;;  %v1047_v60 = vadd.f32 %v3147_v59, %v977_v3  ;;  %v939_v9 = vmul.f32 %v2220_v14, %v3719_v61 }
 0x1c2   :  { %v908_v38 = vmul.f32 %v2222_v25, %v3720_v31  ;;  %v1078_v32 = vadd.f32 %v3147_v59, %v1008_v17 }
 0x1c3   :  { %v1096_v48 = vpack.c.bf16 %v1047_v60, %v1046_v39  ;;  %v1009_v37 = vmul.f32 %v2229_v27, %v939_v9 }
 0x1c4   :  { %v2224_v2 = vpop.eup %2223  ;;  %v978_v6 = vmul.f32 %v2229_v27, %v908_v38 }
 0x1c5   :  { %v2226_v36 = vpop.eup %2225  ;;  %2060 = vmatprep.mubr.msk.bf16.mxu0 %vm108_vm0, %v1096_v48  ;;  %v1079_v43 = vadd.f32 %v3147_v59, %v1009_v37  ;;  %v909_v16 = vmul.f32 %v2224_v2, %v3721_v54 }
 0x1c6   :  { %v940_v55 = vmul.f32 %v2226_v36, %v3722_v30  ;;  %v1048_v42 = vadd.f32 %v2230_v34, %v978_v6 }
 0x1c7   :  { %v1112_v0 = vpack.c.bf16 %v1079_v43, %v1078_v32  ;;  %v979_v35 = vmul.f32 %v2229_v27, %v909_v16 }
 0x1c8   :  { %v2228_v4 = vpop.eup %2227  ;;  %v1010_v1 = vmul.f32 %v2229_v27, %v940_v55 }
 0x1c9   :  { %2092 = vmatprep.mubr.msk.bf16.mxu1 %vm108_vm0, %v1112_v0  ;;  %v1049_v52 = vadd.f32 %v2230_v34, %v979_v35  ;;  %v941_v40 = vmul.f32 %v2228_v4, %v3723_v29 }
 0x1ca   :  { %v1080_v59 = vadd.f32 %v2230_v34, %v1010_v1 }
 0x1cb   :  { %v1097_v63 = vpack.c.bf16 %v1049_v52, %v1048_v42  ;;  %v1011_v50 = vmul.f32 %v2229_v27, %v941_v40 }
 0x1cd   :  { %2061 = vmatmul.mubr.msk.bf16.gmra.mxu0 %vm108_vm0, %v1097_v63  ;;  %v1081_v46 = vadd.f32 %v2230_v34, %v1011_v50 }
 0x1cf   :  { %v1113_v53 = vpack.c.bf16 %v1081_v46, %v1080_v59 }
 0x1d1   :  { %2093 = vmatmul.mubr.msk.bf16.gmra.mxu1 %vm108_vm0, %v1113_v53 }
 0x21d   :  { %v2034_v41 = vpop.f32.mrf.mxu0 }
 0x21e   :  { %v1935_v8 = vpack.c.bf16 %v2034_v41, %v2034_v41 }
 0x21f   :  { %v1252_v5 = vpop.f32.mrf.mxu0 }
 0x220   :  { %1766 = vst.msk [vmem:[%s3621_s4 + $0x8] sm:$0xf] %vm1763_vm1, %v1935_v8  ;;  %v1933_v44 = vpack.c.bf16 %v1252_v5, %v1252_v5 }
 0x221   :  { %v2035_v10 = vpop.f32.mrf.mxu0 }
 0x222   :  { %1764 = vst.msk [vmem:[%s3621_s4] sm:$0xf] %vm1763_vm1, %v1933_v44  ;;  %v1936_v11 = vpack.c.bf16 %v2035_v10, %v2035_v10  ;;  %v2066_v21 = vpop.f32.mrf.mxu1 }
 0x223   :  { %v1967_v56 = vpack.c.bf16 %v2066_v21, %v2066_v21  ;;  %v1255_v20 = vpop.f32.mrf.mxu0 }
 0x224   :  { %1767 = vst.msk [vmem:[%s3621_s4 + $0xc] sm:$0xf] %vm1763_vm1, %v1936_v11  ;;  %v1934_v28 = vpack.c.bf16 %v1255_v20, %v1255_v20  ;;  %v1380_v13 = vpop.f32.mrf.mxu1 }
 0x225   :  { %1798 = vst.msk [vmem:[%s3621_s4 + $0x88] sm:$0xf] %vm1763_vm1, %v1967_v56  ;;  %v1965_v49 = vpack.c.bf16 %v1380_v13, %v1380_v13 }
 0x226   :  { %1765 = vst.msk [vmem:[%s3621_s4 + $0x4] sm:$0xf] %vm1763_vm1, %v1934_v28  ;;  %v2067_v62 = vpop.f32.mrf.mxu1 }
 0x227   :  { %1796 = vst.msk [vmem:[%s3621_s4 + $0x80] sm:$0xf] %vm1763_vm1, %v1965_v49  ;;  %v1968_v15 = vpack.c.bf16 %v2067_v62, %v2067_v62 }
 0x228   :  { %v1383_v18 = vpop.f32.mrf.mxu1 }
 0x229   :  { %1799 = vst.msk [vmem:[%s3621_s4 + $0x8c] sm:$0xf] %vm1763_vm1, %v1968_v15  ;;  %v1966_v22 = vpack.c.bf16 %v1383_v18, %v1383_v18 }
 0x22b   :  { %1797 = vst.msk [vmem:[%s3621_s4 + $0x84] sm:$0xf] %vm1763_vm1, %v1966_v22 }
 0x22d   :  { %v2038_v57 = vpop.f32.mrf.mxu0 }
 0x22e   :  { %v1939_v33 = vpack.c.bf16 %v2038_v57, %v2038_v57 }
 0x22f   :  { %v1268_v26 = vpop.f32.mrf.mxu0 }
 0x230   :  { %1770 = vst.msk [vmem:[%s3621_s4 + $0x18] sm:$0xf] %vm1763_vm1, %v1939_v33  ;;  %v1937_v23 = vpack.c.bf16 %v1268_v26, %v1268_v26 }
 0x231   :  { %v2039_v19 = vpop.f32.mrf.mxu0 }
 0x232   :  { %1768 = vst.msk [vmem:[%s3621_s4 + $0x10] sm:$0xf] %vm1763_vm1, %v1937_v23  ;;  %v1940_v51 = vpack.c.bf16 %v2039_v19, %v2039_v19  ;;  %v2070_v47 = vpop.f32.mrf.mxu1 }
 0x233   :  { %v1971_v58 = vpack.c.bf16 %v2070_v47, %v2070_v47  ;;  %v1271_v12 = vpop.f32.mrf.mxu0 }
 0x234   :  { %1771 = vst.msk [vmem:[%s3621_s4 + $0x1c] sm:$0xf] %vm1763_vm1, %v1940_v51  ;;  %v1938_v45 = vpack.c.bf16 %v1271_v12, %v1271_v12  ;;  %v1396_v7 = vpop.f32.mrf.mxu1 }
 0x235   :  { %1802 = vst.msk [vmem:[%s3621_s4 + $0x98] sm:$0xf] %vm1763_vm1, %v1971_v58  ;;  %v1969_v24 = vpack.c.bf16 %v1396_v7, %v1396_v7 }
 0x236   :  { %1769 = vst.msk [vmem:[%s3621_s4 + $0x14] sm:$0xf] %vm1763_vm1, %v1938_v45  ;;  %v2071_v3 = vpop.f32.mrf.mxu1 }
 0x237   :  { %1800 = vst.msk [vmem:[%s3621_s4 + $0x90] sm:$0xf] %vm1763_vm1, %v1969_v24  ;;  %v1972_v14 = vpack.c.bf16 %v2071_v3, %v2071_v3 }
 0x238   :  { %v1399_v25 = vpop.f32.mrf.mxu1 }
 0x239   :  { %1803 = vst.msk [vmem:[%s3621_s4 + $0x9c] sm:$0xf] %vm1763_vm1, %v1972_v14  ;;  %v1970_v39 = vpack.c.bf16 %v1399_v25, %v1399_v25 }
 0x23b   :  { %1801 = vst.msk [vmem:[%s3621_s4 + $0x94] sm:$0xf] %vm1763_vm1, %v1970_v39 }
 0x23d   :  { %v2042_v60 = vpop.f32.mrf.mxu0 }
 0x23e   :  { %v1943_v61 = vpack.c.bf16 %v2042_v60, %v2042_v60 }
 0x23f   :  { %v1284_v9 = vpop.f32.mrf.mxu0 }
 0x240   :  { %1774 = vst.msk [vmem:[%s3621_s4 + $0x28] sm:$0xf] %vm1763_vm1, %v1943_v61  ;;  %v1941_v27 = vpack.c.bf16 %v1284_v9, %v1284_v9 }
 0x241   :  { %v2043_v17 = vpop.f32.mrf.mxu0 }
 0x242   :  { %1772 = vst.msk [vmem:[%s3621_s4 + $0x20] sm:$0xf] %vm1763_vm1, %v1941_v27  ;;  %v1944_v31 = vpack.c.bf16 %v2043_v17, %v2043_v17  ;;  %v2074_v38 = vpop.f32.mrf.mxu1 }
 0x243   :  { %v1975_v48 = vpack.c.bf16 %v2074_v38, %v2074_v38  ;;  %v1287_v37 = vpop.f32.mrf.mxu0 }
 0x244   :  { %1775 = vst.msk [vmem:[%s3621_s4 + $0x2c] sm:$0xf] %vm1763_vm1, %v1944_v31  ;;  %v1942_v2 = vpack.c.bf16 %v1287_v37, %v1287_v37  ;;  %v1412_v36 = vpop.f32.mrf.mxu1 }
 0x245   :  { %1806 = vst.msk [vmem:[%s3621_s4 + $0xa8] sm:$0xf] %vm1763_vm1, %v1975_v48  ;;  %v1973_v32 = vpack.c.bf16 %v1412_v36, %v1412_v36 }
 0x246   :  { %1773 = vst.msk [vmem:[%s3621_s4 + $0x24] sm:$0xf] %vm1763_vm1, %v1942_v2  ;;  %v2075_v43 = vpop.f32.mrf.mxu1 }
 0x247   :  { %1804 = vst.msk [vmem:[%s3621_s4 + $0xa0] sm:$0xf] %vm1763_vm1, %v1973_v32  ;;  %v1976_v54 = vpack.c.bf16 %v2075_v43, %v2075_v43 }
 0x248   :  { %v1415_v16 = vpop.f32.mrf.mxu1 }
 0x249   :  { %1807 = vst.msk [vmem:[%s3621_s4 + $0xac] sm:$0xf] %vm1763_vm1, %v1976_v54  ;;  %v1974_v6 = vpack.c.bf16 %v1415_v16, %v1415_v16 }
 0x24b   :  { %1805 = vst.msk [vmem:[%s3621_s4 + $0xa4] sm:$0xf] %vm1763_vm1, %v1974_v6 }
 0x24d   :  { %v2046_v30 = vpop.f32.mrf.mxu0 }
 0x24e   :  { %v1947_v55 = vpack.c.bf16 %v2046_v30, %v2046_v30 }
 0x24f   :  { %v1300_v0 = vpop.f32.mrf.mxu0 }
 0x250   :  { %1778 = vst.msk [vmem:[%s3621_s4 + $0x38] sm:$0xf] %vm1763_vm1, %v1947_v55  ;;  %v1945_v35 = vpack.c.bf16 %v1300_v0, %v1300_v0 }
 0x251   :  { %v2047_v4 = vpop.f32.mrf.mxu0 }
 0x252   :  { %1776 = vst.msk [vmem:[%s3621_s4 + $0x30] sm:$0xf] %vm1763_vm1, %v1945_v35  ;;  %v1948_v34 = vpack.c.bf16 %v2047_v4, %v2047_v4  ;;  %v2078_v42 = vpop.f32.mrf.mxu1 }
 0x253   :  { %v1979_v52 = vpack.c.bf16 %v2078_v42, %v2078_v42  ;;  %v1303_v29 = vpop.f32.mrf.mxu0 }
 0x254   :  { %1779 = vst.msk [vmem:[%s3621_s4 + $0x3c] sm:$0xf] %vm1763_vm1, %v1948_v34  ;;  %v1946_v40 = vpack.c.bf16 %v1303_v29, %v1303_v29  ;;  %v1428_v1 = vpop.f32.mrf.mxu1 }
 0x255   :  { %1810 = vst.msk [vmem:[%s3621_s4 + $0xb8] sm:$0xf] %vm1763_vm1, %v1979_v52  ;;  %v1977_v63 = vpack.c.bf16 %v1428_v1, %v1428_v1 }
 0x256   :  { %1777 = vst.msk [vmem:[%s3621_s4 + $0x34] sm:$0xf] %vm1763_vm1, %v1946_v40  ;;  %v2079_v50 = vpop.f32.mrf.mxu1 }
 0x257   :  { %1808 = vst.msk [vmem:[%s3621_s4 + $0xb0] sm:$0xf] %vm1763_vm1, %v1977_v63  ;;  %v1980_v59 = vpack.c.bf16 %v2079_v50, %v2079_v50 }
 0x258   :  { %v1431_v46 = vpop.f32.mrf.mxu1 }
 0x259   :  { %1811 = vst.msk [vmem:[%s3621_s4 + $0xbc] sm:$0xf] %vm1763_vm1, %v1980_v59  ;;  %v1978_v53 = vpack.c.bf16 %v1431_v46, %v1431_v46 }
 0x25b   :  { %1809 = vst.msk [vmem:[%s3621_s4 + $0xb4] sm:$0xf] %vm1763_vm1, %v1978_v53 }
 0x25d   :  { %v2050_v41 = vpop.f32.mrf.mxu0 }
 0x25e   :  { %v1951_v8 = vpack.c.bf16 %v2050_v41, %v2050_v41 }
 0x25f   :  { %v1316_v5 = vpop.f32.mrf.mxu0 }
 0x260   :  { %1782 = vst.msk [vmem:[%s3621_s4 + $0x48] sm:$0xf] %vm1763_vm1, %v1951_v8  ;;  %v1949_v44 = vpack.c.bf16 %v1316_v5, %v1316_v5 }
 0x261   :  { %v2051_v10 = vpop.f32.mrf.mxu0 }
 0x262   :  { %1780 = vst.msk [vmem:[%s3621_s4 + $0x40] sm:$0xf] %vm1763_vm1, %v1949_v44  ;;  %v1952_v11 = vpack.c.bf16 %v2051_v10, %v2051_v10  ;;  %v2082_v21 = vpop.f32.mrf.mxu1 }
 0x263   :  { %v1983_v56 = vpack.c.bf16 %v2082_v21, %v2082_v21  ;;  %v1319_v20 = vpop.f32.mrf.mxu0 }
 0x264   :  { %1783 = vst.msk [vmem:[%s3621_s4 + $0x4c] sm:$0xf] %vm1763_vm1, %v1952_v11  ;;  %v1950_v28 = vpack.c.bf16 %v1319_v20, %v1319_v20  ;;  %v1444_v13 = vpop.f32.mrf.mxu1 }
 0x265   :  { %1814 = vst.msk [vmem:[%s3621_s4 + $0xc8] sm:$0xf] %vm1763_vm1, %v1983_v56  ;;  %v1981_v49 = vpack.c.bf16 %v1444_v13, %v1444_v13 }
 0x266   :  { %1781 = vst.msk [vmem:[%s3621_s4 + $0x44] sm:$0xf] %vm1763_vm1, %v1950_v28  ;;  %v2083_v62 = vpop.f32.mrf.mxu1 }
 0x267   :  { %1812 = vst.msk [vmem:[%s3621_s4 + $0xc0] sm:$0xf] %vm1763_vm1, %v1981_v49  ;;  %v1984_v15 = vpack.c.bf16 %v2083_v62, %v2083_v62 }
 0x268   :  { %v1447_v18 = vpop.f32.mrf.mxu1 }
 0x269   :  { %1815 = vst.msk [vmem:[%s3621_s4 + $0xcc] sm:$0xf] %vm1763_vm1, %v1984_v15  ;;  %v1982_v22 = vpack.c.bf16 %v1447_v18, %v1447_v18 }
 0x26b   :  { %1813 = vst.msk [vmem:[%s3621_s4 + $0xc4] sm:$0xf] %vm1763_vm1, %v1982_v22 }
 0x26d   :  { %v2054_v57 = vpop.f32.mrf.mxu0 }
 0x26e   :  { %v1955_v33 = vpack.c.bf16 %v2054_v57, %v2054_v57 }
 0x26f   :  { %v1332_v26 = vpop.f32.mrf.mxu0 }
 0x270   :  { %1786 = vst.msk [vmem:[%s3621_s4 + $0x58] sm:$0xf] %vm1763_vm1, %v1955_v33  ;;  %v1953_v23 = vpack.c.bf16 %v1332_v26, %v1332_v26 }
 0x271   :  { %v2055_v19 = vpop.f32.mrf.mxu0 }
 0x272   :  { %1784 = vst.msk [vmem:[%s3621_s4 + $0x50] sm:$0xf] %vm1763_vm1, %v1953_v23  ;;  %v1956_v51 = vpack.c.bf16 %v2055_v19, %v2055_v19  ;;  %v2086_v47 = vpop.f32.mrf.mxu1 }
 0x273   :  { %v1987_v58 = vpack.c.bf16 %v2086_v47, %v2086_v47  ;;  %v1335_v12 = vpop.f32.mrf.mxu0 }
 0x274   :  { %1787 = vst.msk [vmem:[%s3621_s4 + $0x5c] sm:$0xf] %vm1763_vm1, %v1956_v51  ;;  %v1954_v45 = vpack.c.bf16 %v1335_v12, %v1335_v12  ;;  %v1460_v7 = vpop.f32.mrf.mxu1 }
 0x275   :  { %1818 = vst.msk [vmem:[%s3621_s4 + $0xd8] sm:$0xf] %vm1763_vm1, %v1987_v58  ;;  %v1985_v24 = vpack.c.bf16 %v1460_v7, %v1460_v7 }
 0x276   :  { %1785 = vst.msk [vmem:[%s3621_s4 + $0x54] sm:$0xf] %vm1763_vm1, %v1954_v45  ;;  %v2087_v3 = vpop.f32.mrf.mxu1 }
 0x277   :  { %1816 = vst.msk [vmem:[%s3621_s4 + $0xd0] sm:$0xf] %vm1763_vm1, %v1985_v24  ;;  %v1988_v14 = vpack.c.bf16 %v2087_v3, %v2087_v3 }
 0x278   :  { %v1463_v25 = vpop.f32.mrf.mxu1 }
 0x279   :  { %1819 = vst.msk [vmem:[%s3621_s4 + $0xdc] sm:$0xf] %vm1763_vm1, %v1988_v14  ;;  %v1986_v39 = vpack.c.bf16 %v1463_v25, %v1463_v25 }
 0x27b   :  { %1817 = vst.msk [vmem:[%s3621_s4 + $0xd4] sm:$0xf] %vm1763_vm1, %v1986_v39 }
 0x27d   :  { %v2058_v60 = vpop.f32.mrf.mxu0 }
 0x27e   :  { %v1959_v61 = vpack.c.bf16 %v2058_v60, %v2058_v60 }
 0x27f   :  { %v1348_v9 = vpop.f32.mrf.mxu0 }
 0x280   :  { %1790 = vst.msk [vmem:[%s3621_s4 + $0x68] sm:$0xf] %vm1763_vm1, %v1959_v61  ;;  %v1957_v27 = vpack.c.bf16 %v1348_v9, %v1348_v9 }
 0x281   :  { %v2059_v17 = vpop.f32.mrf.mxu0  ;;  %v2090_v31 = vpop.f32.mrf.mxu1 }
 0x282   :  { %1788 = vst.msk [vmem:[%s3621_s4 + $0x60] sm:$0xf] %vm1763_vm1, %v1957_v27  ;;  %v1960_v38 = vpack.c.bf16 %v2059_v17, %v2059_v17  ;;  %v1991_v48 = vpack.c.bf16 %v2090_v31, %v2090_v31 }
 0x283   :  { %v1351_v37 = vpop.f32.mrf.mxu0  ;;  %v1476_v2 = vpop.f32.mrf.mxu1 }
 0x284   :  { %1791 = vst.msk [vmem:[%s3621_s4 + $0x6c] sm:$0xf] %vm1763_vm1, %v1960_v38  ;;  %1822 = vst.msk [vmem:[%s3621_s4 + $0xe8] sm:$0xf] %vm1763_vm1, %v1991_v48  ;;  %v1958_v36 = vpack.c.bf16 %v1351_v37, %v1351_v37  ;;  %v1989_v32 = vpack.c.bf16 %v1476_v2, %v1476_v2 }
 0x285   :  { %v2091_v43 = vpop.f32.mrf.mxu1 }
 0x286   :  { %1789 = vst.msk [vmem:[%s3621_s4 + $0x64] sm:$0xf] %vm1763_vm1, %v1958_v36  ;;  %1820 = vst.msk [vmem:[%s3621_s4 + $0xe0] sm:$0xf] %vm1763_vm1, %v1989_v32  ;;  %v1992_v54 = vpack.c.bf16 %v2091_v43, %v2091_v43 }
 0x287   :  { %v1479_v16 = vpop.f32.mrf.mxu1 }
 0x288   :  { %1823 = vst.msk [vmem:[%s3621_s4 + $0xec] sm:$0xf] %vm1763_vm1, %v1992_v54  ;;  %v1990_v6 = vpack.c.bf16 %v1479_v16, %v1479_v16 }
 0x28a   :  { %1821 = vst.msk [vmem:[%s3621_s4 + $0xe4] sm:$0xf] %vm1763_vm1, %v1990_v6 }
 0x28d   :  { %v2062_v30 = vpop.f32.mrf.mxu0 }
 0x28e   :  { %v1963_v55 = vpack.c.bf16 %v2062_v30, %v2062_v30 }
 0x28f   :  { %v1364_v0 = vpop.f32.mrf.mxu0 }
 0x290   :  { %1794 = vst.msk [vmem:[%s3621_s4 + $0x78] sm:$0xf] %vm1763_vm1, %v1963_v55  ;;  %v1961_v35 = vpack.c.bf16 %v1364_v0, %v1364_v0 }
 0x291   :  { %v2063_v4 = vpop.f32.mrf.mxu0  ;;  %v2094_v34 = vpop.f32.mrf.mxu1 }
 0x292   :  { %1792 = vst.msk [vmem:[%s3621_s4 + $0x70] sm:$0xf] %vm1763_vm1, %v1961_v35  ;;  %v1964_v42 = vpack.c.bf16 %v2063_v4, %v2063_v4  ;;  %v1995_v52 = vpack.c.bf16 %v2094_v34, %v2094_v34 }
 0x293   :  { %v1367_v29 = vpop.f32.mrf.mxu0  ;;  %v1492_v40 = vpop.f32.mrf.mxu1 }
 0x294   :  { %1795 = vst.msk [vmem:[%s3621_s4 + $0x7c] sm:$0xf] %vm1763_vm1, %v1964_v42  ;;  %1826 = vst.msk [vmem:[%s3621_s4 + $0xf8] sm:$0xf] %vm1763_vm1, %v1995_v52  ;;  %v1962_v1 = vpack.c.bf16 %v1367_v29, %v1367_v29  ;;  %v1993_v63 = vpack.c.bf16 %v1492_v40, %v1492_v40 }
 0x295   :  { %v2095_v50 = vpop.f32.mrf.mxu1 }
 0x296   :  { %1793 = vst.msk [vmem:[%s3621_s4 + $0x74] sm:$0xf] %vm1763_vm1, %v1962_v1  ;;  %1824 = vst.msk [vmem:[%s3621_s4 + $0xf0] sm:$0xf] %vm1763_vm1, %v1993_v63  ;;  %v1996_v59 = vpack.c.bf16 %v2095_v50, %v2095_v50 }
 0x297   :  { %v1495_v46 = vpop.f32.mrf.mxu1 }
 0x298   :  { %1827 = vst.msk [vmem:[%s3621_s4 + $0xfc] sm:$0xf] %vm1763_vm1, %v1996_v59  ;;  %v1994_v53 = vpack.c.bf16 %v1495_v46, %v1495_v46 }
 0x29a   :  { %1825 = vst.msk [vmem:[%s3621_s4 + $0xf4] sm:$0xf] %vm1763_vm1, %v1994_v53 }
 0x29b   :  { %1832 = vsyncpa [#allocation3], 1 }
 0x29c   :  { %1833 = vsyncpa [#allocation5], 1 }

// kernel: gcn_forward_pallas.5
= control target key start
LH: loop header
LB: loop body
LE: loop exit
PB: predicated region body
PF: predicated region fallthrough
CT: control target
= control target key end

     0   :  { %v3498_v0 = vmov 0   ;;  %s5068_s1 = inlined_call_operand.vmem [shape: bf16[512,128], index: 1, kind: input, shape index: {}]   ;;  %s5069_s0 = inlined_call_operand.vmem [shape: bf16[512,512], index: 0, kind: input, shape index: {}]   ;;  %s5070_s2 = inlined_call_operand.vmem [shape: f32[1,128], index: 2, kind: input, shape index: {}]   ;;  %s5071_s3 = inlined_call_operand.vmem [shape: f32[512,128], index: 3, kind: output, shape index: {}]  }
   0x1   :  { %1171 = vmatprep.subr.bf16.mxu0 %v3498_v0  ;;  %1460 = vmatprep.subr.bf16.mxu1 %v3498_v0  ;;  %v3017_v1 = vld [vmem:[%s5068_s1 + $0x38] sm:$0xff]   ;;  %v3019_v3 = vld [vmem:[%s5068_s1 + $0x30] sm:$0xff]   ;;  %v3021_v5 = vld [vmem:[%s5068_s1 + $0x28] sm:$0xff]  }
   0x2   :  { %v3018_v2 = vld [vmem:[%s5068_s1 + $0xb8] sm:$0xff]   ;;  %1172 = vmatpush1.bf16.msra.mxu0 %v3017_v1  ;;  %v3020_v4 = vld [vmem:[%s5068_s1 + $0xb0] sm:$0xff]   ;;  %v3022_v6 = vld [vmem:[%s5068_s1 + $0xa8] sm:$0xff]  }
   0x3   :  { %1461 = vmatpush1.bf16.msra.mxu1 %v3018_v2  ;;  %1173 = vmatprep.subr.bf16.mxu0 %v3498_v0  ;;  %v3023_v7 = vld [vmem:[%s5068_s1 + $0x20] sm:$0xff]   ;;  %v3025_v9 = vld [vmem:[%s5068_s1 + $0x18] sm:$0xff]   ;;  %v3027_v11 = vld [vmem:[%s5068_s1 + $0x10] sm:$0xff]  }
   0x4   :  { %1462 = vmatprep.subr.bf16.mxu1 %v3498_v0  ;;  %v3024_v8 = vld [vmem:[%s5068_s1 + $0xa0] sm:$0xff]   ;;  %v3026_v10 = vld [vmem:[%s5068_s1 + $0x98] sm:$0xff]   ;;  %v3028_v12 = vld [vmem:[%s5068_s1 + $0x90] sm:$0xff]  }
   0x5   :  { %v3029_v13 = vld [vmem:[%s5068_s1 + $0x8] sm:$0xff]   ;;  %v3031_v15 = vld [vmem:[%s5068_s1] sm:$0xff]   ;;  %v3033_v17 = vld [vmem:[%s5068_s1 + $0x78] sm:$0xff]  }
   0x6   :  { %1174 = vmatpush1.bf16.msra.mxu0 %v3019_v3  ;;  %v3030_v14 = vld [vmem:[%s5068_s1 + $0x88] sm:$0xff]   ;;  %v3032_v16 = vld [vmem:[%s5068_s1 + $0x80] sm:$0xff]   ;;  %v3034_v18 = vld [vmem:[%s5068_s1 + $0xf8] sm:$0xff]  }
   0x7   :  { %1463 = vmatpush1.bf16.msra.mxu1 %v3020_v4  ;;  %1175 = vmatprep.subr.bf16.mxu0 %v3498_v0  ;;  %v3051_v19 = vld [vmem:[%s5069_s0 + $0x4] ss:$16 sps:$4 sm:$0xff]   ;;  %v3054_v21 = vld [vmem:[%s5069_s0 + $0xc] ss:$16 sps:$4 sm:$0xff]   ;;  %v3049_v35 = vld [vmem:[%s5069_s0] ss:$16 sps:$4 sm:$0xff]  }
   0x8   :  { %1464 = vmatprep.subr.bf16.mxu1 %v3498_v0  ;;  %v3035_v20 = vld [vmem:[%s5068_s1 + $0x70] sm:$0xff]   ;;  %1203 = vmatprep.mubr.bf16.mxu0 %v3051_v19  ;;  %v3037_v23 = vld [vmem:[%s5068_s1 + $0x68] sm:$0xff]   ;;  %v3039_v25 = vld [vmem:[%s5068_s1 + $0x60] sm:$0xff]  }
   0x9   :  { %v3036_v22 = vld [vmem:[%s5068_s1 + $0xf0] sm:$0xff]   ;;  %1492 = vmatprep.mubr.bf16.mxu1 %v3054_v21  ;;  %v3038_v24 = vld [vmem:[%s5068_s1 + $0xe8] sm:$0xff]   ;;  %v3040_v26 = vld [vmem:[%s5068_s1 + $0xe0] sm:$0xff]  }
   0xa   :  { %1176 = vmatpush1.bf16.msra.mxu0 %v3021_v5  ;;  %v3041_v27 = vld [vmem:[%s5068_s1 + $0x58] sm:$0xff]   ;;  %v3043_v29 = vld [vmem:[%s5068_s1 + $0x50] sm:$0xff]   ;;  %v3045_v31 = vld [vmem:[%s5068_s1 + $0x48] sm:$0xff]  }
   0xb   :  { %1465 = vmatpush1.bf16.msra.mxu1 %v3022_v6  ;;  %1177 = vmatprep.subr.bf16.mxu0 %v3498_v0  ;;  %v3042_v28 = vld [vmem:[%s5068_s1 + $0xd8] sm:$0xff]   ;;  %v3044_v30 = vld [vmem:[%s5068_s1 + $0xd0] sm:$0xff]   ;;  %v3046_v32 = vld [vmem:[%s5068_s1 + $0xc8] sm:$0xff]  }
   0xc   :  { %1466 = vmatprep.subr.bf16.mxu1 %v3498_v0  ;;  %v3047_v33 = vld [vmem:[%s5068_s1 + $0x40] sm:$0xff]   ;;  %v3052_v36 = vld [vmem:[%s5069_s0 + $0x8] ss:$16 sps:$4 sm:$0xff]   ;;  %v3057_v38 = vld [vmem:[%s5069_s0 + $0x2c] ss:$16 sps:$4 sm:$0xff]  }
   0xd   :  { %v3048_v34 = vld [vmem:[%s5068_s1 + $0xc0] sm:$0xff]   ;;  %v3060_v40 = vld [vmem:[%s5069_s0 + $0x28] ss:$16 sps:$4 sm:$0xff]   ;;  %v3063_v42 = vld [vmem:[%s5069_s0 + $0x4c] ss:$16 sps:$4 sm:$0xff]  }
   0xe   :  { %1178 = vmatpush1.bf16.msra.mxu0 %v3023_v7  ;;  %v3055_v37 = vld [vmem:[%s5069_s0 + $0x24] ss:$16 sps:$4 sm:$0xff]   ;;  %v3059_v39 = vld [vmem:[%s5069_s0 + $0x20] ss:$16 sps:$4 sm:$0xff]   ;;  %v3066_v44 = vld [vmem:[%s5069_s0 + $0x48] ss:$16 sps:$4 sm:$0xff]  }
   0xf   :  { %1467 = vmatpush1.bf16.msra.mxu1 %v3024_v8  ;;  %1179 = vmatprep.subr.bf16.mxu0 %v3498_v0  ;;  %v3061_v41 = vld [vmem:[%s5069_s0 + $0x44] ss:$16 sps:$4 sm:$0xff]   ;;  %v3065_v43 = vld [vmem:[%s5069_s0 + $0x40] ss:$16 sps:$4 sm:$0xff]   ;;  %v3069_v46 = vld [vmem:[%s5069_s0 + $0x6c] ss:$16 sps:$4 sm:$0xff]  }
  0x10   :  { %1468 = vmatprep.subr.bf16.mxu1 %v3498_v0  ;;  %v3067_v45 = vld [vmem:[%s5069_s0 + $0x64] ss:$16 sps:$4 sm:$0xff]   ;;  %v3071_v47 = vld [vmem:[%s5069_s0 + $0x60] ss:$16 sps:$4 sm:$0xff]   ;;  %v3072_v48 = vld [vmem:[%s5069_s0 + $0x68] ss:$16 sps:$4 sm:$0xff]  }
  0x11   :  { %v3073_v49 = vld [vmem:[%s5069_s0 + $0x84] ss:$16 sps:$4 sm:$0xff]   ;;  %v3075_v50 = vld [vmem:[%s5069_s0 + $0x8c] ss:$16 sps:$4 sm:$0xff]   ;;  %v3077_v51 = vld [vmem:[%s5069_s0 + $0x80] ss:$16 sps:$4 sm:$0xff]  }
  0x12   :  { %1180 = vmatpush1.bf16.msra.mxu0 %v3025_v9  ;;  %v3078_v52 = vld [vmem:[%s5069_s0 + $0x88] ss:$16 sps:$4 sm:$0xff]   ;;  %v3079_v53 = vld [vmem:[%s5069_s0 + $0xa4] ss:$16 sps:$4 sm:$0xff]   ;;  %v3081_v54 = vld [vmem:[%s5069_s0 + $0xac] ss:$16 sps:$4 sm:$0xff]  }
  0x13   :  { %1469 = vmatpush1.bf16.msra.mxu1 %v3026_v10  ;;  %1181 = vmatprep.subr.bf16.mxu0 %v3498_v0  ;;  %v3083_v55 = vld [vmem:[%s5069_s0 + $0xa0] ss:$16 sps:$4 sm:$0xff]   ;;  %v3084_v56 = vld [vmem:[%s5069_s0 + $0xa8] ss:$16 sps:$4 sm:$0xff]   ;;  %v3085_v57 = vld [vmem:[%s5069_s0 + $0xc4] ss:$16 sps:$4 sm:$0xff]  }
  0x14   :  { %1470 = vmatprep.subr.bf16.mxu1 %v3498_v0  ;;  %v3087_v58 = vld [vmem:[%s5069_s0 + $0xcc] ss:$16 sps:$4 sm:$0xff]   ;;  %v3089_v59 = vld [vmem:[%s5069_s0 + $0xc0] ss:$16 sps:$4 sm:$0xff]   ;;  %v3090_v60 = vld [vmem:[%s5069_s0 + $0xc8] ss:$16 sps:$4 sm:$0xff]  }
  0x15   :  { %v3091_v61 = vld [vmem:[%s5069_s0 + $0xe4] ss:$16 sps:$4 sm:$0xff]   ;;  %v3093_v62 = vld [vmem:[%s5069_s0 + $0xec] ss:$16 sps:$4 sm:$0xff]   ;;  %v3095_v63 = vld [vmem:[%s5069_s0 + $0xe0] ss:$16 sps:$4 sm:$0xff]  }
  0x16   :  { %1182 = vmatpush1.bf16.msra.mxu0 %v3027_v11  ;;  %v3097_v1 = vld [vmem:[%s5069_s0 + $0x104] ss:$16 sps:$4 sm:$0xff]   ;;  %v3099_v2 = vld [vmem:[%s5069_s0 + $0x10c] ss:$16 sps:$4 sm:$0xff]   ;;  %v3101_v3 = vld [vmem:[%s5069_s0 + $0x100] ss:$16 sps:$4 sm:$0xff]  }
  0x17   :  { %1471 = vmatpush1.bf16.msra.mxu1 %v3028_v12  ;;  %1183 = vmatprep.subr.bf16.mxu0 %v3498_v0  ;;  %v3102_v4 = vld [vmem:[%s5069_s0 + $0x108] ss:$16 sps:$4 sm:$0xff]   ;;  %v3103_v5 = vld [vmem:[%s5069_s0 + $0x124] ss:$16 sps:$4 sm:$0xff]   ;;  %v3105_v6 = vld [vmem:[%s5069_s0 + $0x12c] ss:$16 sps:$4 sm:$0xff]  }
  0x18   :  { %1472 = vmatprep.subr.bf16.mxu1 %v3498_v0  ;;  %v3107_v7 = vld [vmem:[%s5069_s0 + $0x120] ss:$16 sps:$4 sm:$0xff]   ;;  %v3108_v8 = vld [vmem:[%s5069_s0 + $0x128] ss:$16 sps:$4 sm:$0xff]   ;;  %v3109_v9 = vld [vmem:[%s5069_s0 + $0x144] ss:$16 sps:$4 sm:$0xff]  }
  0x19   :  { %v3111_v10 = vld [vmem:[%s5069_s0 + $0x14c] ss:$16 sps:$4 sm:$0xff]   ;;  %v3113_v11 = vld [vmem:[%s5069_s0 + $0x140] ss:$16 sps:$4 sm:$0xff]   ;;  %v3114_v12 = vld [vmem:[%s5069_s0 + $0x148] ss:$16 sps:$4 sm:$0xff]  }
  0x1a   :  { %1184 = vmatpush1.bf16.msra.mxu0 %v3029_v13  ;;  %v3115_v13 = vld [vmem:[%s5069_s0 + $0x164] ss:$16 sps:$4 sm:$0xff]   ;;  %v3125_v19 = vld [vmem:[%s5069_s0 + $0x180] ss:$16 sps:$4 sm:$0xff]  }
  0x1b   :  { %1473 = vmatpush1.bf16.msra.mxu1 %v3030_v14  ;;  %1185 = vmatprep.subr.bf16.mxu0 %v3498_v0  ;;  %v3117_v14 = vld [vmem:[%s5069_s0 + $0x16c] ss:$16 sps:$4 sm:$0xff]   ;;  %v3127_v21 = vld [vmem:[%s5069_s0 + $0x1a4] ss:$16 sps:$4 sm:$0xff]  }
  0x1c   :  { %1474 = vmatprep.subr.bf16.mxu1 %v3498_v0 }
  0x1e   :  { %1186 = vmatpush1.bf16.msra.mxu0 %v3031_v15  ;;  %v3119_v15 = vld [vmem:[%s5069_s0 + $0x160] ss:$16 sps:$4 sm:$0xff]  }
  0x1f   :  { %1475 = vmatpush1.bf16.msra.mxu1 %v3032_v16  ;;  %1187 = vmatprep.subr.bf16.mxu0 %v3498_v0  ;;  %v3120_v16 = vld [vmem:[%s5069_s0 + $0x168] ss:$16 sps:$4 sm:$0xff]  }
  0x20   :  { %1476 = vmatprep.subr.bf16.mxu1 %v3498_v0 }
  0x22   :  { %1188 = vmatpush2.bf16.msra.mxu0 %v3033_v17  ;;  %v3121_v17 = vld [vmem:[%s5069_s0 + $0x184] ss:$16 sps:$4 sm:$0xff]  }
  0x23   :  { %1477 = vmatpush2.bf16.msra.mxu1 %v3034_v18  ;;  %1189 = vmatprep.subr.bf16.mxu0 %v3498_v0  ;;  %v3123_v18 = vld [vmem:[%s5069_s0 + $0x18c] ss:$16 sps:$4 sm:$0xff]  }
  0x24   :  { %1478 = vmatprep.subr.bf16.mxu1 %v3498_v0 }
  0x26   :  { %1190 = vmatpush2.bf16.msra.mxu0 %v3035_v20  ;;  %v3126_v20 = vld [vmem:[%s5069_s0 + $0x188] ss:$16 sps:$4 sm:$0xff]  }
  0x27   :  { %1479 = vmatpush2.bf16.msra.mxu1 %v3036_v22  ;;  %1191 = vmatprep.subr.bf16.mxu0 %v3498_v0  ;;  %v3129_v22 = vld [vmem:[%s5069_s0 + $0x1ac] ss:$16 sps:$4 sm:$0xff]  }
  0x28   :  { %1480 = vmatprep.subr.bf16.mxu1 %v3498_v0 }
  0x2a   :  { %1192 = vmatpush2.bf16.msra.mxu0 %v3037_v23  ;;  %v3131_v23 = vld [vmem:[%s5069_s0 + $0x1a0] ss:$16 sps:$4 sm:$0xff]  }
  0x2b   :  { %1481 = vmatpush2.bf16.msra.mxu1 %v3038_v24  ;;  %1193 = vmatprep.subr.bf16.mxu0 %v3498_v0  ;;  %v3132_v24 = vld [vmem:[%s5069_s0 + $0x1a8] ss:$16 sps:$4 sm:$0xff]  }
  0x2c   :  { %1482 = vmatprep.subr.bf16.mxu1 %v3498_v0 }
  0x2e   :  { %1194 = vmatpush2.bf16.msra.mxu0 %v3039_v25  ;;  %v3133_v25 = vld [vmem:[%s5069_s0 + $0x1c4] ss:$16 sps:$4 sm:$0xff]  }
  0x2f   :  { %1483 = vmatpush2.bf16.msra.mxu1 %v3040_v26  ;;  %1195 = vmatprep.subr.bf16.mxu0 %v3498_v0  ;;  %v3135_v26 = vld [vmem:[%s5069_s0 + $0x1cc] ss:$16 sps:$4 sm:$0xff]  }
  0x30   :  { %1484 = vmatprep.subr.bf16.mxu1 %v3498_v0 }
  0x32   :  { %1196 = vmatpush2.bf16.msra.mxu0 %v3041_v27  ;;  %v3137_v27 = vld [vmem:[%s5069_s0 + $0x1c0] ss:$16 sps:$4 sm:$0xff]  }
  0x33   :  { %1485 = vmatpush2.bf16.msra.mxu1 %v3042_v28  ;;  %1197 = vmatprep.subr.bf16.mxu0 %v3498_v0  ;;  %v3138_v28 = vld [vmem:[%s5069_s0 + $0x1c8] ss:$16 sps:$4 sm:$0xff]  }
  0x34   :  { %1486 = vmatprep.subr.bf16.mxu1 %v3498_v0 }
  0x36   :  { %1198 = vmatpush2.bf16.msra.mxu0 %v3043_v29  ;;  %v3139_v29 = vld [vmem:[%s5069_s0 + $0x1e4] ss:$16 sps:$4 sm:$0xff]  }
  0x37   :  { %1487 = vmatpush2.bf16.msra.mxu1 %v3044_v30  ;;  %1199 = vmatprep.subr.bf16.mxu0 %v3498_v0  ;;  %v3141_v30 = vld [vmem:[%s5069_s0 + $0x1ec] ss:$16 sps:$4 sm:$0xff]  }
  0x38   :  { %1488 = vmatprep.subr.bf16.mxu1 %v3498_v0 }
  0x3a   :  { %1200 = vmatpush2.bf16.msra.mxu0 %v3045_v31  ;;  %v3143_v31 = vld [vmem:[%s5069_s0 + $0x1e0] ss:$16 sps:$4 sm:$0xff]  }
  0x3b   :  { %1489 = vmatpush2.bf16.msra.mxu1 %v3046_v32  ;;  %1201 = vmatprep.subr.bf16.mxu0 %v3498_v0  ;;  %v3144_v32 = vld [vmem:[%s5069_s0 + $0x1e8] ss:$16 sps:$4 sm:$0xff]  }
  0x3c   :  { %1490 = vmatprep.subr.bf16.mxu1 %v3498_v0  ;;  %v3096_v0 = vld [vmem:[%s5069_s0 + $0xe8] ss:$16 sps:$4 sm:$0xff]  }
  0x3e   :  { %1202 = vmatpush2.bf16.msra.mxu0 %v3047_v33  ;;  %v3145_v33 = vld [vmem:[%s5069_s0 + $0x204] ss:$16 sps:$4 sm:$0xff]  }
  0x3f   :  { %1491 = vmatpush2.bf16.msra.mxu1 %v3048_v34  ;;  %v3147_v34 = vld [vmem:[%s5069_s0 + $0x20c] ss:$16 sps:$4 sm:$0xff]  }
  0x41   :  { %1204 = vmatmul.mubr.bf16.vlgmr.msra.gmra.mxu0 %v3049_v35  ;;  %v3149_v35 = vld [vmem:[%s5069_s0 + $0x200] ss:$16 sps:$4 sm:$0xff]  }
  0x42   :  { %1493 = vmatmul.mubr.bf16.vlgmr.msra.gmra.mxu1 %v3052_v36  ;;  %1211 = vmatprep.mubr.bf16.mxu0 %v3055_v37  ;;  %v3150_v36 = vld [vmem:[%s5069_s0 + $0x208] ss:$16 sps:$4 sm:$0xff]   ;;  %v3151_v37 = vld [vmem:[%s5069_s0 + $0x224] ss:$16 sps:$4 sm:$0xff]  }
  0x43   :  { %1500 = vmatprep.mubr.bf16.mxu1 %v3057_v38  ;;  %v3153_v38 = vld [vmem:[%s5069_s0 + $0x22c] ss:$16 sps:$4 sm:$0xff]  }
  0x49   :  { %1212 = vmatmul.mubr.bf16.gmra.mxu0 %v3059_v39  ;;  %v3155_v39 = vld [vmem:[%s5069_s0 + $0x220] ss:$16 sps:$4 sm:$0xff]  }
  0x4a   :  { %1501 = vmatmul.mubr.bf16.gmra.mxu1 %v3060_v40  ;;  %1219 = vmatprep.mubr.bf16.mxu0 %v3061_v41  ;;  %v3156_v40 = vld [vmem:[%s5069_s0 + $0x228] ss:$16 sps:$4 sm:$0xff]   ;;  %v3157_v41 = vld [vmem:[%s5069_s0 + $0x244] ss:$16 sps:$4 sm:$0xff]  }
  0x4b   :  { %1508 = vmatprep.mubr.bf16.mxu1 %v3063_v42  ;;  %v3159_v42 = vld [vmem:[%s5069_s0 + $0x24c] ss:$16 sps:$4 sm:$0xff]  }
  0x51   :  { %1220 = vmatmul.mubr.bf16.gmra.mxu0 %v3065_v43  ;;  %v3161_v43 = vld [vmem:[%s5069_s0 + $0x240] ss:$16 sps:$4 sm:$0xff]  }
  0x52   :  { %1509 = vmatmul.mubr.bf16.gmra.mxu1 %v3066_v44  ;;  %1227 = vmatprep.mubr.bf16.mxu0 %v3067_v45  ;;  %v3162_v44 = vld [vmem:[%s5069_s0 + $0x248] ss:$16 sps:$4 sm:$0xff]   ;;  %v3163_v45 = vld [vmem:[%s5069_s0 + $0x264] ss:$16 sps:$4 sm:$0xff]  }
  0x53   :  { %1516 = vmatprep.mubr.bf16.mxu1 %v3069_v46  ;;  %v3165_v46 = vld [vmem:[%s5069_s0 + $0x26c] ss:$16 sps:$4 sm:$0xff]  }
  0x59   :  { %1228 = vmatmul.mubr.bf16.gmra.mxu0 %v3071_v47  ;;  %v3167_v47 = vld [vmem:[%s5069_s0 + $0x260] ss:$16 sps:$4 sm:$0xff]  }
  0x5a   :  { %1517 = vmatmul.mubr.bf16.gmra.mxu1 %v3072_v48  ;;  %1235 = vmatprep.mubr.bf16.mxu0 %v3073_v49  ;;  %v3168_v48 = vld [vmem:[%s5069_s0 + $0x268] ss:$16 sps:$4 sm:$0xff]   ;;  %v3169_v49 = vld [vmem:[%s5069_s0 + $0x284] ss:$16 sps:$4 sm:$0xff]  }
  0x5b   :  { %1524 = vmatprep.mubr.bf16.mxu1 %v3075_v50  ;;  %v3171_v50 = vld [vmem:[%s5069_s0 + $0x28c] ss:$16 sps:$4 sm:$0xff]  }
  0x61   :  { %1236 = vmatmul.mubr.bf16.gmra.mxu0 %v3077_v51  ;;  %v3173_v51 = vld [vmem:[%s5069_s0 + $0x280] ss:$16 sps:$4 sm:$0xff]  }
  0x62   :  { %1525 = vmatmul.mubr.bf16.gmra.mxu1 %v3078_v52  ;;  %1243 = vmatprep.mubr.bf16.mxu0 %v3079_v53  ;;  %v3174_v52 = vld [vmem:[%s5069_s0 + $0x288] ss:$16 sps:$4 sm:$0xff]   ;;  %v3175_v53 = vld [vmem:[%s5069_s0 + $0x2a4] ss:$16 sps:$4 sm:$0xff]  }
  0x63   :  { %1532 = vmatprep.mubr.bf16.mxu1 %v3081_v54  ;;  %v3177_v54 = vld [vmem:[%s5069_s0 + $0x2ac] ss:$16 sps:$4 sm:$0xff]  }
  0x69   :  { %1244 = vmatmul.mubr.bf16.gmra.mxu0 %v3083_v55  ;;  %v3179_v55 = vld [vmem:[%s5069_s0 + $0x2a0] ss:$16 sps:$4 sm:$0xff]  }
  0x6a   :  { %1533 = vmatmul.mubr.bf16.gmra.mxu1 %v3084_v56  ;;  %1251 = vmatprep.mubr.bf16.mxu0 %v3085_v57  ;;  %v3180_v56 = vld [vmem:[%s5069_s0 + $0x2a8] ss:$16 sps:$4 sm:$0xff]   ;;  %v3181_v57 = vld [vmem:[%s5069_s0 + $0x2c4] ss:$16 sps:$4 sm:$0xff]  }
  0x6b   :  { %1540 = vmatprep.mubr.bf16.mxu1 %v3087_v58  ;;  %v3183_v58 = vld [vmem:[%s5069_s0 + $0x2cc] ss:$16 sps:$4 sm:$0xff]  }
  0x71   :  { %1252 = vmatmul.mubr.bf16.gmra.mxu0 %v3089_v59  ;;  %v3185_v59 = vld [vmem:[%s5069_s0 + $0x2c0] ss:$16 sps:$4 sm:$0xff]  }
  0x72   :  { %1541 = vmatmul.mubr.bf16.gmra.mxu1 %v3090_v60  ;;  %1259 = vmatprep.mubr.bf16.mxu0 %v3091_v61  ;;  %v3186_v60 = vld [vmem:[%s5069_s0 + $0x2c8] ss:$16 sps:$4 sm:$0xff]   ;;  %v3187_v61 = vld [vmem:[%s5069_s0 + $0x2e4] ss:$16 sps:$4 sm:$0xff]  }
  0x73   :  { %1548 = vmatprep.mubr.bf16.mxu1 %v3093_v62  ;;  %v3189_v62 = vld [vmem:[%s5069_s0 + $0x2ec] ss:$16 sps:$4 sm:$0xff]  }
  0x79   :  { %1260 = vmatmul.mubr.bf16.gmra.mxu0 %v3095_v63  ;;  %v3191_v63 = vld [vmem:[%s5069_s0 + $0x2e0] ss:$16 sps:$4 sm:$0xff]  }
  0x7a   :  { %1549 = vmatmul.mubr.bf16.gmra.mxu1 %v3096_v0  ;;  %1267 = vmatprep.mubr.bf16.mxu0 %v3097_v1  ;;  %v3192_v0 = vld [vmem:[%s5069_s0 + $0x2e8] ss:$16 sps:$4 sm:$0xff]   ;;  %v3193_v1 = vld [vmem:[%s5069_s0 + $0x304] ss:$16 sps:$4 sm:$0xff]  }
  0x7b   :  { %1556 = vmatprep.mubr.bf16.mxu1 %v3099_v2  ;;  %v3195_v2 = vld [vmem:[%s5069_s0 + $0x30c] ss:$16 sps:$4 sm:$0xff]  }
  0x81   :  { %1268 = vmatmul.mubr.bf16.gmra.mxu0 %v3101_v3  ;;  %v3197_v3 = vld [vmem:[%s5069_s0 + $0x300] ss:$16 sps:$4 sm:$0xff]  }
  0x82   :  { %1557 = vmatmul.mubr.bf16.gmra.mxu1 %v3102_v4  ;;  %1275 = vmatprep.mubr.bf16.mxu0 %v3103_v5  ;;  %v3198_v4 = vld [vmem:[%s5069_s0 + $0x308] ss:$16 sps:$4 sm:$0xff]   ;;  %v3199_v5 = vld [vmem:[%s5069_s0 + $0x324] ss:$16 sps:$4 sm:$0xff]  }
  0x83   :  { %1564 = vmatprep.mubr.bf16.mxu1 %v3105_v6  ;;  %v2015_v6 = vlaneseq }
  0x89   :  { %1276 = vmatmul.mubr.bf16.gmra.mxu0 %v3107_v7  ;;  %v3201_v7 = vld [vmem:[%s5069_s0 + $0x32c] ss:$16 sps:$4 sm:$0xff]  }
  0x8a   :  { %1565 = vmatmul.mubr.bf16.gmra.mxu1 %v3108_v8  ;;  %1283 = vmatprep.mubr.bf16.mxu0 %v3109_v9 }
  0x8b   :  { %1572 = vmatprep.mubr.bf16.mxu1 %v3111_v10  ;;  %v3953_v10 = vand.u32 127, %v2015_v6 }
  0x8d   :  { %vm2017_vm0 = vcmp.lt.s32.totalorder %v3953_v10, 4 }
  0x91   :  { %1284 = vmatmul.mubr.bf16.gmra.mxu0 %v3113_v11 }
  0x92   :  { %1573 = vmatmul.mubr.bf16.gmra.mxu1 %v3114_v12  ;;  %1291 = vmatprep.mubr.bf16.mxu0 %v3115_v13 }
  0x93   :  { %1580 = vmatprep.mubr.bf16.mxu1 %v3117_v14  ;;  %v3958_v14 = vld [vmem:[%s5070_s2] ss:$0 sm:$0xff] }
  0x99   :  { %1292 = vmatmul.mubr.bf16.gmra.mxu0 %v3119_v15 }
  0x9a   :  { %1581 = vmatmul.mubr.bf16.gmra.mxu1 %v3120_v16  ;;  %1299 = vmatprep.mubr.bf16.mxu0 %v3121_v17  ;;  %v3203_v16 = vld [vmem:[%s5069_s0 + $0x320] ss:$16 sps:$4 sm:$0xff]  }
  0x9b   :  { %1588 = vmatprep.mubr.bf16.mxu1 %v3123_v18  ;;  %v3204_v18 = vld [vmem:[%s5069_s0 + $0x328] ss:$16 sps:$4 sm:$0xff]  }
  0xa1   :  { %1300 = vmatmul.mubr.bf16.gmra.mxu0 %v3125_v19  ;;  %v3205_v19 = vld [vmem:[%s5069_s0 + $0x344] ss:$16 sps:$4 sm:$0xff]  }
  0xa2   :  { %1589 = vmatmul.mubr.bf16.gmra.mxu1 %v3126_v20  ;;  %1307 = vmatprep.mubr.bf16.mxu0 %v3127_v21 }
  0xa3   :  { %1596 = vmatprep.mubr.bf16.mxu1 %v3129_v22  ;;  %v3207_v22 = vld [vmem:[%s5069_s0 + $0x34c] ss:$16 sps:$4 sm:$0xff]  }
  0xa9   :  { %1308 = vmatmul.mubr.bf16.gmra.mxu0 %v3131_v23 }
  0xaa   :  { %1597 = vmatmul.mubr.bf16.gmra.mxu1 %v3132_v24  ;;  %1315 = vmatprep.mubr.bf16.mxu0 %v3133_v25 }
  0xab   :  { %1604 = vmatprep.mubr.bf16.mxu1 %v3135_v26 }
  0xb1   :  { %1316 = vmatmul.mubr.bf16.gmra.mxu0 %v3137_v27 }
  0xb2   :  { %1605 = vmatmul.mubr.bf16.gmra.mxu1 %v3138_v28  ;;  %1323 = vmatprep.mubr.bf16.mxu0 %v3139_v29 }
  0xb3   :  { %1612 = vmatprep.mubr.bf16.mxu1 %v3141_v30 }
  0xb9   :  { %1324 = vmatmul.mubr.bf16.gmra.mxu0 %v3143_v31 }
  0xba   :  { %1613 = vmatmul.mubr.bf16.gmra.mxu1 %v3144_v32  ;;  %1331 = vmatprep.mubr.bf16.mxu0 %v3145_v33  ;;  %v3209_v33 = vld [vmem:[%s5069_s0 + $0x340] ss:$16 sps:$4 sm:$0xff]  }
  0xbb   :  { %1620 = vmatprep.mubr.bf16.mxu1 %v3147_v34 }
  0xc1   :  { %1332 = vmatmul.mubr.bf16.gmra.mxu0 %v3149_v35 }
  0xc2   :  { %1621 = vmatmul.mubr.bf16.gmra.mxu1 %v3150_v36  ;;  %1339 = vmatprep.mubr.bf16.mxu0 %v3151_v37  ;;  %v3210_v36 = vld [vmem:[%s5069_s0 + $0x348] ss:$16 sps:$4 sm:$0xff]   ;;  %v3211_v37 = vld [vmem:[%s5069_s0 + $0x364] ss:$16 sps:$4 sm:$0xff]  }
  0xc3   :  { %1628 = vmatprep.mubr.bf16.mxu1 %v3153_v38 }
  0xc9   :  { %1340 = vmatmul.mubr.bf16.gmra.mxu0 %v3155_v39 }
  0xca   :  { %1629 = vmatmul.mubr.bf16.gmra.mxu1 %v3156_v40  ;;  %1347 = vmatprep.mubr.bf16.mxu0 %v3157_v41  ;;  %v3213_v40 = vld [vmem:[%s5069_s0 + $0x36c] ss:$16 sps:$4 sm:$0xff]  }
  0xcb   :  { %1636 = vmatprep.mubr.bf16.mxu1 %v3159_v42 }
  0xd1   :  { %1348 = vmatmul.mubr.bf16.gmra.mxu0 %v3161_v43 }
  0xd2   :  { %1637 = vmatmul.mubr.bf16.gmra.mxu1 %v3162_v44  ;;  %1355 = vmatprep.mubr.bf16.mxu0 %v3163_v45 }
  0xd3   :  { %1644 = vmatprep.mubr.bf16.mxu1 %v3165_v46 }
  0xd9   :  { %1356 = vmatmul.mubr.bf16.gmra.mxu0 %v3167_v47 }
  0xda   :  { %1645 = vmatmul.mubr.bf16.gmra.mxu1 %v3168_v48  ;;  %1363 = vmatprep.mubr.bf16.mxu0 %v3169_v49 }
  0xdb   :  { %1652 = vmatprep.mubr.bf16.mxu1 %v3171_v50 }
  0xe1   :  { %1364 = vmatmul.mubr.bf16.gmra.mxu0 %v3173_v51  ;;  %v3215_v51 = vld [vmem:[%s5069_s0 + $0x360] ss:$16 sps:$4 sm:$0xff]  }
  0xe2   :  { %1653 = vmatmul.mubr.bf16.gmra.mxu1 %v3174_v52  ;;  %1371 = vmatprep.mubr.bf16.mxu0 %v3175_v53 }
  0xe3   :  { %1660 = vmatprep.mubr.bf16.mxu1 %v3177_v54  ;;  %v3216_v54 = vld [vmem:[%s5069_s0 + $0x368] ss:$16 sps:$4 sm:$0xff]  }
  0xe9   :  { %1372 = vmatmul.mubr.bf16.gmra.mxu0 %v3179_v55  ;;  %v3219_v55 = vld [vmem:[%s5069_s0 + $0x384] ss:$16 sps:$4 sm:$0xff]  }
  0xea   :  { %1661 = vmatmul.mubr.bf16.gmra.mxu1 %v3180_v56  ;;  %1379 = vmatprep.mubr.bf16.mxu0 %v3181_v57 }
  0xeb   :  { %1668 = vmatprep.mubr.bf16.mxu1 %v3183_v58  ;;  %v3222_v58 = vld [vmem:[%s5069_s0 + $0x38c] ss:$16 sps:$4 sm:$0xff]  }
  0xf1   :  { %1380 = vmatmul.mubr.bf16.gmra.mxu0 %v3185_v59 }
  0xf2   :  { %1669 = vmatmul.mubr.bf16.gmra.mxu1 %v3186_v60  ;;  %1387 = vmatprep.mubr.bf16.mxu0 %v3187_v61 }
  0xf3   :  { %1676 = vmatprep.mubr.bf16.mxu1 %v3189_v62 }
  0xf9   :  { %1388 = vmatmul.mubr.bf16.gmra.mxu0 %v3191_v63 }
  0xfa   :  { %1677 = vmatmul.mubr.bf16.gmra.mxu1 %v3192_v0  ;;  %1395 = vmatprep.mubr.bf16.mxu0 %v3193_v1 }
  0xfb   :  { %1684 = vmatprep.mubr.bf16.mxu1 %v3195_v2 }
 0x101   :  { %v1205_v8 = vpop.f32.mrf.mxu0  ;;  %1396 = vmatmul.mubr.bf16.gmra.mxu0 %v3197_v3 }
 0x102   :  { %v1494_v9 = vpop.f32.mrf.mxu1  ;;  %1685 = vmatmul.mubr.bf16.gmra.mxu1 %v3198_v4  ;;  %1403 = vmatprep.mubr.bf16.mxu0 %v3199_v5  ;;  %v3217_v5 = vld [vmem:[%s5069_s0 + $0x380] ss:$16 sps:$4 sm:$0xff]  }
 0x103   :  { %v1495_v11 = vadd.f32 %v1494_v9, %v1205_v8  ;;  %v1207_v12 = vpop.f32.mrf.mxu0  ;;  %1692 = vmatprep.mubr.bf16.mxu1 %v3201_v7  ;;  %v3220_v8 = vld [vmem:[%s5069_s0 + $0x388] ss:$16 sps:$4 sm:$0xff]   ;;  %v3225_v9 = vld [vmem:[%s5069_s0 + $0x3a4] ss:$16 sps:$4 sm:$0xff]  }
 0x104   :  { %v1496_v13 = vpop.f32.mrf.mxu1 }
 0x105   :  { %v1208_v15 = vpop.f32.mrf.mxu0  ;;  %v3974_v23 = vadd.f32 %v3958_v14, %v1495_v11  ;;  %v3228_v13 = vld [vmem:[%s5069_s0 + $0x3ac] ss:$16 sps:$4 sm:$0xff]  }
 0x106   :  { %v1497_v17 = vpop.f32.mrf.mxu1 }
 0x107   :  { %v1498_v20 = vadd.f32 %v1497_v17, %v1208_v15  ;;  %v1210_v21 = vpop.f32.mrf.mxu0  ;;  %v2018_v26 = vsel %vm2017_vm0, %v3974_v23, -3.4028235e+38 }
 0x108   :  { %v1499_v24 = vpop.f32.mrf.mxu1  ;;  %2082 = vmax.xlane.f32.xlu0 %v2018_v26  ;;  %v3223_v26 = vld [vmem:[%s5069_s0 + $0x3a0] ss:$16 sps:$4 sm:$0xff]  }
 0x109   :  { %v1213_v25 = vpop.f32.mrf.mxu0  ;;  %1404 = vmatmul.mubr.bf16.gmra.mxu0 %v3203_v16  ;;  %v3980_v30 = vadd.f32 %v3958_v14, %v1498_v20 }
 0x10a   :  { %v1502_v27 = vpop.f32.mrf.mxu1  ;;  %1693 = vmatmul.mubr.bf16.gmra.mxu1 %v3204_v18  ;;  %1411 = vmatprep.mubr.bf16.mxu0 %v3205_v19 }
 0x10b   :  { %v1503_v28 = vadd.f32 %v1502_v27, %v1213_v25  ;;  %v1215_v29 = vpop.f32.mrf.mxu0  ;;  %1700 = vmatprep.mubr.bf16.mxu1 %v3207_v22  ;;  %v2019_v34 = vsel %vm2017_vm0, %v3980_v30, -3.4028235e+38 }
 0x10c   :  { %v1504_v31 = vpop.f32.mrf.mxu1  ;;  %2084 = vmax.xlane.f32.xlu0 %v2019_v34  ;;  %v3226_v29 = vld [vmem:[%s5069_s0 + $0x3a8] ss:$16 sps:$4 sm:$0xff]   ;;  %v3234_v34 = vld [vmem:[%s5069_s0 + $0x3cc] ss:$16 sps:$4 sm:$0xff]  }
 0x10d   :  { %v1216_v32 = vpop.f32.mrf.mxu0  ;;  %v3998_v41 = vadd.f32 %v3958_v14, %v1503_v28  ;;  %v3231_v31 = vld [vmem:[%s5069_s0 + $0x3c4] ss:$16 sps:$4 sm:$0xff]  }
 0x10e   :  { %v1505_v35 = vpop.f32.mrf.mxu1 }
 0x10f   :  { %v1506_v38 = vadd.f32 %v1505_v35, %v1216_v32  ;;  %v1218_v39 = vpop.f32.mrf.mxu0  ;;  %v2020_v44 = vsel %vm2017_vm0, %v3998_v41, -3.4028235e+38 }
 0x110   :  { %v1507_v42 = vpop.f32.mrf.mxu1  ;;  %2086 = vmax.xlane.f32.xlu1 %v2020_v44 }
 0x111   :  { %1412 = vmatmul.mubr.bf16.gmra.mxu0 %v3209_v33  ;;  %v1221_v43 = vpop.f32.mrf.mxu0  ;;  %v4004_v48 = vadd.f32 %v3958_v14, %v1506_v38 }
 0x112   :  { %v1510_v45 = vpop.f32.mrf.mxu1  ;;  %1701 = vmatmul.mubr.bf16.gmra.mxu1 %v3210_v36  ;;  %1419 = vmatprep.mubr.bf16.mxu0 %v3211_v37 }
 0x113   :  { %v1511_v46 = vadd.f32 %v1510_v45, %v1221_v43  ;;  %v1223_v47 = vpop.f32.mrf.mxu0  ;;  %1708 = vmatprep.mubr.bf16.mxu1 %v3213_v40  ;;  %v2021_v52 = vsel %vm2017_vm0, %v4004_v48, -3.4028235e+38 }
 0x114   :  { %v1512_v49 = vpop.f32.mrf.mxu1  ;;  %2088 = vmax.xlane.f32.xlu1 %v2021_v52 }
 0x115   :  { %v1224_v50 = vpop.f32.mrf.mxu0  ;;  %v4022_v59 = vadd.f32 %v3958_v14, %v1511_v46  ;;  %v3229_v46 = vld [vmem:[%s5069_s0 + $0x3c0] ss:$16 sps:$4 sm:$0xff]  }
 0x116   :  { %v1513_v53 = vpop.f32.mrf.mxu1 }
 0x117   :  { %v1514_v56 = vadd.f32 %v1513_v53, %v1224_v50  ;;  %v1226_v57 = vpop.f32.mrf.mxu0  ;;  %v2022_v62 = vsel %vm2017_vm0, %v4022_v59, -3.4028235e+38  ;;  %v3232_v50 = vld [vmem:[%s5069_s0 + $0x3c8] ss:$16 sps:$4 sm:$0xff]  }
 0x118   :  { %v1515_v60 = vpop.f32.mrf.mxu1  ;;  %2090 = vmax.xlane.f32.xlu0 %v2022_v62 }
 0x119   :  { %1420 = vmatmul.mubr.bf16.gmra.mxu0 %v3215_v51  ;;  %v1229_v61 = vpop.f32.mrf.mxu0  ;;  %v4028_v2 = vadd.f32 %v3958_v14, %v1514_v56  ;;  %v3237_v51 = vld [vmem:[%s5069_s0 + $0x3e4] ss:$16 sps:$4 sm:$0xff]  }
 0x11a   :  { %v1518_v63 = vpop.f32.mrf.mxu1  ;;  %1709 = vmatmul.mubr.bf16.gmra.mxu1 %v3216_v54  ;;  %1427 = vmatprep.mubr.bf16.mxu0 %v3219_v55  ;;  %v3240_v54 = vld [vmem:[%s5069_s0 + $0x3ec] ss:$16 sps:$4 sm:$0xff]  }
 0x11b   :  { %v1519_v0 = vadd.f32 %v1518_v63, %v1229_v61  ;;  %v1231_v1 = vpop.f32.mrf.mxu0  ;;  %1716 = vmatprep.mubr.bf16.mxu1 %v3222_v58  ;;  %v2023_v6 = vsel %vm2017_vm0, %v4028_v2, -3.4028235e+38 }
 0x11c   :  { %v1520_v3 = vpop.f32.mrf.mxu1  ;;  %2092 = vmax.xlane.f32.xlu1 %v2023_v6  ;;  %v3238_v6 = vld [vmem:[%s5069_s0 + $0x3e8] ss:$16 sps:$4 sm:$0xff]  }
 0x11d   :  { %v1232_v4 = vpop.f32.mrf.mxu0  ;;  %v4046_v15 = vadd.f32 %v3958_v14, %v1519_v0  ;;  %v3235_v3 = vld [vmem:[%s5069_s0 + $0x3e0] ss:$16 sps:$4 sm:$0xff]  }
 0x11e   :  { %v1521_v7 = vpop.f32.mrf.mxu1 }
 0x11f   :  { %v1522_v11 = vadd.f32 %v1521_v7, %v1232_v4  ;;  %v1234_v12 = vpop.f32.mrf.mxu0  ;;  %v2024_v18 = vsel %vm2017_vm0, %v4046_v15, -3.4028235e+38 }
 0x120   :  { %v1523_v16 = vpop.f32.mrf.mxu1  ;;  %2094 = vmax.xlane.f32.xlu0 %v2024_v18 }
 0x121   :  { %1428 = vmatmul.mubr.bf16.gmra.mxu0 %v3217_v5  ;;  %v1237_v17 = vpop.f32.mrf.mxu0  ;;  %v4052_v22 = vadd.f32 %v3958_v14, %v1522_v11 }
 0x122   :  { %v1526_v19 = vpop.f32.mrf.mxu1  ;;  %1717 = vmatmul.mubr.bf16.gmra.mxu1 %v3220_v8  ;;  %1435 = vmatprep.mubr.bf16.mxu0 %v3225_v9 }
 0x123   :  { %v1527_v20 = vadd.f32 %v1526_v19, %v1237_v17  ;;  %v1239_v21 = vpop.f32.mrf.mxu0  ;;  %1724 = vmatprep.mubr.bf16.mxu1 %v3228_v13  ;;  %v2025_v27 = vsel %vm2017_vm0, %v4052_v22, -3.4028235e+38 }
 0x124   :  { %v1528_v24 = vpop.f32.mrf.mxu1  ;;  %2096 = vmax.xlane.f32.xlu1 %v2025_v27 }
 0x125   :  { %v1240_v25 = vpop.f32.mrf.mxu0  ;;  %v4070_v35 = vadd.f32 %v3958_v14, %v1527_v20 }
 0x126   :  { %v1529_v28 = vpop.f32.mrf.mxu1 }
 0x127   :  { %v1530_v32 = vadd.f32 %v1529_v28, %v1240_v25  ;;  %v1242_v33 = vpop.f32.mrf.mxu0  ;;  %v2026_v38 = vsel %vm2017_vm0, %v4070_v35, -3.4028235e+38 }
 0x128   :  { %v1531_v36 = vpop.f32.mrf.mxu1  ;;  %2098 = vmax.xlane.f32.xlu0 %v2026_v38 }
 0x129   :  { %1436 = vmatmul.mubr.bf16.gmra.mxu0 %v3223_v26  ;;  %v1245_v37 = vpop.f32.mrf.mxu0  ;;  %v4076_v43 = vadd.f32 %v3958_v14, %v1530_v32 }
 0x12a   :  { %v1534_v39 = vpop.f32.mrf.mxu1  ;;  %1725 = vmatmul.mubr.bf16.gmra.mxu1 %v3226_v29  ;;  %1443 = vmatprep.mubr.bf16.mxu0 %v3231_v31 }
 0x12b   :  { %v1535_v40 = vadd.f32 %v1534_v39, %v1245_v37  ;;  %v1247_v42 = vpop.f32.mrf.mxu0  ;;  %1732 = vmatprep.mubr.bf16.mxu1 %v3234_v34  ;;  %v2027_v47 = vsel %vm2017_vm0, %v4076_v43, -3.4028235e+38 }
 0x12c   :  { %v1536_v44 = vpop.f32.mrf.mxu1  ;;  %2100 = vmax.xlane.f32.xlu1 %v2027_v47 }
 0x12d   :  { %v1248_v45 = vpop.f32.mrf.mxu0  ;;  %v4094_v55 = vadd.f32 %v3958_v14, %v1535_v40 }
 0x12e   :  { %v1537_v49 = vpop.f32.mrf.mxu1 }
 0x12f   :  { %v1538_v52 = vadd.f32 %v1537_v49, %v1248_v45  ;;  %v1250_v53 = vpop.f32.mrf.mxu0  ;;  %v2028_v58 = vsel %vm2017_vm0, %v4094_v55, -3.4028235e+38 }
 0x130   :  { %v1539_v56 = vpop.f32.mrf.mxu1  ;;  %2102 = vmax.xlane.f32.xlu0 %v2028_v58 }
 0x131   :  { %1444 = vmatmul.mubr.bf16.gmra.mxu0 %v3229_v46  ;;  %v1253_v57 = vpop.f32.mrf.mxu0  ;;  %v4100_v63 = vadd.f32 %v3958_v14, %v1538_v52 }
 0x132   :  { %v1542_v60 = vpop.f32.mrf.mxu1  ;;  %1733 = vmatmul.mubr.bf16.gmra.mxu1 %v3232_v50  ;;  %1451 = vmatprep.mubr.bf16.mxu0 %v3237_v51 }
 0x133   :  { %v1543_v61 = vadd.f32 %v1542_v60, %v1253_v57  ;;  %v1255_v62 = vpop.f32.mrf.mxu0  ;;  %1740 = vmatprep.mubr.bf16.mxu1 %v3240_v54  ;;  %v2029_v4 = vsel %vm2017_vm0, %v4100_v63, -3.4028235e+38 }
 0x134   :  { %v1544_v0 = vpop.f32.mrf.mxu1  ;;  %2104 = vmax.xlane.f32.xlu1 %v2029_v4 }
 0x135   :  { %v1256_v1 = vpop.f32.mrf.mxu0  ;;  %v4112_v9 = vadd.f32 %v3958_v14, %v1543_v61 }
 0x136   :  { %v1545_v5 = vpop.f32.mrf.mxu1 }
 0x137   :  { %v1546_v7 = vadd.f32 %v1545_v5, %v1256_v1  ;;  %v1258_v8 = vpop.f32.mrf.mxu0  ;;  %v2030_v13 = vsel %vm2017_vm0, %v4112_v9, -3.4028235e+38 }
 0x138   :  { %v1547_v11 = vpop.f32.mrf.mxu1  ;;  %2106 = vmax.xlane.f32.xlu0 %v2030_v13 }
 0x139   :  { %1452 = vmatmul.mubr.bf16.gmra.mxu0 %v3235_v3  ;;  %v1261_v12 = vpop.f32.mrf.mxu0  ;;  %v4118_v19 = vadd.f32 %v3958_v14, %v1546_v7 }
 0x13a   :  { %v1550_v16 = vpop.f32.mrf.mxu1  ;;  %1741 = vmatmul.mubr.bf16.gmra.mxu1 %v3238_v6 }
 0x13b   :  { %v1551_v17 = vadd.f32 %v1550_v16, %v1261_v12  ;;  %v1263_v18 = vpop.f32.mrf.mxu0  ;;  %v2031_v24 = vsel %vm2017_vm0, %v4118_v19, -3.4028235e+38 }
 0x13c   :  { %v1552_v20 = vpop.f32.mrf.mxu1  ;;  %2108 = vmax.xlane.f32.xlu1 %v2031_v24 }
 0x13d   :  { %v1264_v21 = vpop.f32.mrf.mxu0  ;;  %v4124_v28 = vadd.f32 %v3958_v14, %v1551_v17 }
 0x13e   :  { %v1553_v25 = vpop.f32.mrf.mxu1 }
 0x13f   :  { %v1554_v26 = vadd.f32 %v1553_v25, %v1264_v21  ;;  %v1266_v27 = vpop.f32.mrf.mxu0  ;;  %v2032_v32 = vsel %vm2017_vm0, %v4124_v28, -3.4028235e+38 }
 0x140   :  { %v1555_v29 = vpop.f32.mrf.mxu1  ;;  %2110 = vmax.xlane.f32.xlu0 %v2032_v32 }
 0x141   :  { %v1269_v31 = vpop.f32.mrf.mxu0  ;;  %v4130_v37 = vadd.f32 %v3958_v14, %v1554_v26 }
 0x142   :  { %v1558_v33 = vpop.f32.mrf.mxu1 }
 0x143   :  { %v1559_v34 = vadd.f32 %v1558_v33, %v1269_v31  ;;  %v1271_v36 = vpop.f32.mrf.mxu0  ;;  %v2033_v40 = vsel %vm2017_vm0, %v4130_v37, -3.4028235e+38 }
 0x144   :  { %v1560_v38 = vpop.f32.mrf.mxu1  ;;  %2112 = vmax.xlane.f32.xlu1 %v2033_v40 }
 0x145   :  { %v1272_v39 = vpop.f32.mrf.mxu0  ;;  %v4136_v46 = vadd.f32 %v3958_v14, %v1559_v34 }
 0x146   :  { %v1561_v42 = vpop.f32.mrf.mxu1 }
 0x147   :  { %v1562_v44 = vadd.f32 %v1561_v42, %v1272_v39  ;;  %v1274_v45 = vpop.f32.mrf.mxu0  ;;  %v2034_v50 = vsel %vm2017_vm0, %v4136_v46, -3.4028235e+38 }
 0x148   :  { %v1563_v47 = vpop.f32.mrf.mxu1  ;;  %2114 = vmax.xlane.f32.xlu0 %v2034_v50 }
 0x149   :  { %v1277_v49 = vpop.f32.mrf.mxu0  ;;  %v4142_v54 = vadd.f32 %v3958_v14, %v1562_v44 }
 0x14a   :  { %v1566_v51 = vpop.f32.mrf.mxu1 }
 0x14b   :  { %v1567_v52 = vadd.f32 %v1566_v51, %v1277_v49  ;;  %v1279_v53 = vpop.f32.mrf.mxu0  ;;  %v2035_v58 = vsel %vm2017_vm0, %v4142_v54, -3.4028235e+38 }
 0x14c   :  { %v1568_v56 = vpop.f32.mrf.mxu1  ;;  %2116 = vmax.xlane.f32.xlu1 %v2035_v58 }
 0x14d   :  { %v1280_v57 = vpop.f32.mrf.mxu0  ;;  %v4148_v0 = vadd.f32 %v3958_v14, %v1567_v52 }
 0x14e   :  { %v1569_v60 = vpop.f32.mrf.mxu1 }
 0x14f   :  { %v1570_v61 = vadd.f32 %v1569_v60, %v1280_v57  ;;  %v1282_v62 = vpop.f32.mrf.mxu0  ;;  %v2036_v4 = vsel %vm2017_vm0, %v4148_v0, -3.4028235e+38 }
 0x150   :  { %v1571_v1 = vpop.f32.mrf.mxu1  ;;  %2118 = vmax.xlane.f32.xlu0 %v2036_v4 }
 0x151   :  { %v1285_v3 = vpop.f32.mrf.mxu0  ;;  %v4154_v8 = vadd.f32 %v3958_v14, %v1570_v61 }
 0x152   :  { %v1574_v5 = vpop.f32.mrf.mxu1 }
 0x153   :  { %v1575_v6 = vadd.f32 %v1574_v5, %v1285_v3  ;;  %v1287_v7 = vpop.f32.mrf.mxu0  ;;  %v2037_v13 = vsel %vm2017_vm0, %v4154_v8, -3.4028235e+38 }
 0x154   :  { %v1576_v11 = vpop.f32.mrf.mxu1  ;;  %2120 = vmax.xlane.f32.xlu1 %v2037_v13 }
 0x155   :  { %v1288_v12 = vpop.f32.mrf.mxu0  ;;  %v4160_v20 = vadd.f32 %v3958_v14, %v1575_v6 }
 0x156   :  { %v1577_v16 = vpop.f32.mrf.mxu1 }
 0x157   :  { %v1578_v17 = vadd.f32 %v1577_v16, %v1288_v12  ;;  %v1290_v18 = vpop.f32.mrf.mxu0  ;;  %v2038_v25 = vsel %vm2017_vm0, %v4160_v20, -3.4028235e+38 }
 0x158   :  { %v1579_v21 = vpop.f32.mrf.mxu1  ;;  %2122 = vmax.xlane.f32.xlu0 %v2038_v25 }
 0x159   :  { %v1293_v24 = vpop.f32.mrf.mxu0  ;;  %v4166_v31 = vadd.f32 %v3958_v14, %v1578_v17 }
 0x15a   :  { %v1582_v26 = vpop.f32.mrf.mxu1 }
 0x15b   :  { %v1583_v27 = vadd.f32 %v1582_v26, %v1293_v24  ;;  %v1295_v29 = vpop.f32.mrf.mxu0  ;;  %v2039_v34 = vsel %vm2017_vm0, %v4166_v31, -3.4028235e+38 }
 0x15c   :  { %v1584_v32 = vpop.f32.mrf.mxu1  ;;  %2124 = vmax.xlane.f32.xlu1 %v2039_v34 }
 0x15d   :  { %v1296_v33 = vpop.f32.mrf.mxu0  ;;  %v4172_v40 = vadd.f32 %v3958_v14, %v1583_v27 }
 0x15e   :  { %v1585_v36 = vpop.f32.mrf.mxu1 }
 0x15f   :  { %v1586_v38 = vadd.f32 %v1585_v36, %v1296_v33  ;;  %v1298_v39 = vpop.f32.mrf.mxu0  ;;  %v2040_v45 = vsel %vm2017_vm0, %v4172_v40, -3.4028235e+38 }
 0x160   :  { %v1587_v42 = vpop.f32.mrf.mxu1  ;;  %2126 = vmax.xlane.f32.xlu0 %v2040_v45 }
 0x161   :  { %v1301_v44 = vpop.f32.mrf.mxu0  ;;  %v4178_v51 = vadd.f32 %v3958_v14, %v1586_v38 }
 0x162   :  { %v1590_v47 = vpop.f32.mrf.mxu1 }
 0x163   :  { %v1591_v49 = vadd.f32 %v1590_v47, %v1301_v44  ;;  %v1303_v50 = vpop.f32.mrf.mxu0  ;;  %v2041_v56 = vsel %vm2017_vm0, %v4178_v51, -3.4028235e+38 }
 0x164   :  { %v1592_v52 = vpop.f32.mrf.mxu1  ;;  %2128 = vmax.xlane.f32.xlu1 %v2041_v56 }
 0x165   :  { %v1304_v53 = vpop.f32.mrf.mxu0  ;;  %v4184_v61 = vadd.f32 %v3958_v14, %v1591_v49 }
 0x166   :  { %v1593_v57 = vpop.f32.mrf.mxu1 }
 0x167   :  { %v1594_v58 = vadd.f32 %v1593_v57, %v1304_v53  ;;  %v1306_v60 = vpop.f32.mrf.mxu0  ;;  %v2042_v3 = vsel %vm2017_vm0, %v4184_v61, -3.4028235e+38 }
 0x168   :  { %v1595_v62 = vpop.f32.mrf.mxu1  ;;  %2130 = vmax.xlane.f32.xlu0 %v2042_v3 }
 0x169   :  { %v1309_v1 = vpop.f32.mrf.mxu0  ;;  %v4190_v7 = vadd.f32 %v3958_v14, %v1594_v58 }
 0x16a   :  { %v1598_v4 = vpop.f32.mrf.mxu1 }
 0x16b   :  { %v1599_v5 = vadd.f32 %v1598_v4, %v1309_v1  ;;  %v1311_v6 = vpop.f32.mrf.mxu0  ;;  %v2043_v13 = vsel %vm2017_vm0, %v4190_v7, -3.4028235e+38 }
 0x16c   :  { %v1600_v11 = vpop.f32.mrf.mxu1  ;;  %2132 = vmax.xlane.f32.xlu1 %v2043_v13 }
 0x16d   :  { %v1312_v12 = vpop.f32.mrf.mxu0  ;;  %v4196_v21 = vadd.f32 %v3958_v14, %v1599_v5 }
 0x16e   :  { %v1601_v16 = vpop.f32.mrf.mxu1 }
 0x16f   :  { %v1602_v17 = vadd.f32 %v1601_v16, %v1312_v12  ;;  %v1314_v18 = vpop.f32.mrf.mxu0  ;;  %v2044_v26 = vsel %vm2017_vm0, %v4196_v21, -3.4028235e+38 }
 0x170   :  { %v1603_v24 = vpop.f32.mrf.mxu1  ;;  %2134 = vmax.xlane.f32.xlu0 %v2044_v26 }
 0x171   :  { %v1317_v25 = vpop.f32.mrf.mxu0  ;;  %v4202_v33 = vadd.f32 %v3958_v14, %v1602_v17 }
 0x172   :  { %v1606_v27 = vpop.f32.mrf.mxu1 }
 0x173   :  { %v1607_v29 = vadd.f32 %v1606_v27, %v1317_v25  ;;  %v1319_v32 = vpop.f32.mrf.mxu0  ;;  %v2045_v38 = vsel %vm2017_vm0, %v4202_v33, -3.4028235e+38 }
 0x174   :  { %v1608_v34 = vpop.f32.mrf.mxu1  ;;  %2136 = vmax.xlane.f32.xlu1 %v2045_v38 }
 0x175   :  { %v1320_v36 = vpop.f32.mrf.mxu0  ;;  %v4208_v45 = vadd.f32 %v3958_v14, %v1607_v29 }
 0x176   :  { %v1609_v39 = vpop.f32.mrf.mxu1 }
 0x177   :  { %v1610_v42 = vadd.f32 %v1609_v39, %v1320_v36  ;;  %v1322_v44 = vpop.f32.mrf.mxu0  ;;  %v2046_v50 = vsel %vm2017_vm0, %v4208_v45, -3.4028235e+38 }
 0x178   :  { %v1611_v47 = vpop.f32.mrf.mxu1  ;;  %2138 = vmax.xlane.f32.xlu0 %v2046_v50 }
 0x179   :  { %v1325_v49 = vpop.f32.mrf.mxu0  ;;  %v4214_v57 = vadd.f32 %v3958_v14, %v1610_v42 }
 0x17a   :  { %v1614_v52 = vpop.f32.mrf.mxu1 }
 0x17b   :  { %v1615_v53 = vadd.f32 %v1614_v52, %v1325_v49  ;;  %v1327_v56 = vpop.f32.mrf.mxu0  ;;  %v2047_v62 = vsel %vm2017_vm0, %v4214_v57, -3.4028235e+38 }
 0x17c   :  { %v1616_v58 = vpop.f32.mrf.mxu1  ;;  %2140 = vmax.xlane.f32.xlu1 %v2047_v62 }
 0x17d   :  { %v1328_v60 = vpop.f32.mrf.mxu0  ;;  %v4220_v5 = vadd.f32 %v3958_v14, %v1615_v53 }
 0x17e   :  { %v1617_v1 = vpop.f32.mrf.mxu1 }
 0x17f   :  { %v1618_v3 = vadd.f32 %v1617_v1, %v1328_v60  ;;  %v1330_v4 = vpop.f32.mrf.mxu0  ;;  %v2048_v12 = vsel %vm2017_vm0, %v4220_v5, -3.4028235e+38 }
 0x180   :  { %v1619_v6 = vpop.f32.mrf.mxu1  ;;  %2142 = vmax.xlane.f32.xlu0 %v2048_v12 }
 0x181   :  { %v1333_v11 = vpop.f32.mrf.mxu0  ;;  %v4226_v18 = vadd.f32 %v3958_v14, %v1618_v3 }
 0x182   :  { %v1622_v13 = vpop.f32.mrf.mxu1 }
 0x183   :  { %v1623_v16 = vadd.f32 %v1622_v13, %v1333_v11  ;;  %v1335_v17 = vpop.f32.mrf.mxu0  ;;  %v2049_v26 = vsel %vm2017_vm0, %v4226_v18, -3.4028235e+38 }
 0x184   :  { %v1624_v24 = vpop.f32.mrf.mxu1  ;;  %2144 = vmax.xlane.f32.xlu1 %v2049_v26 }
 0x185   :  { %v1336_v25 = vpop.f32.mrf.mxu0  ;;  %v4232_v34 = vadd.f32 %v3958_v14, %v1623_v16 }
 0x186   :  { %v1625_v27 = vpop.f32.mrf.mxu1 }
 0x187   :  { %v1626_v29 = vadd.f32 %v1625_v27, %v1336_v25  ;;  %v1338_v32 = vpop.f32.mrf.mxu0  ;;  %v2050_v39 = vsel %vm2017_vm0, %v4232_v34, -3.4028235e+38 }
 0x188   :  { %v1627_v36 = vpop.f32.mrf.mxu1  ;;  %2146 = vmax.xlane.f32.xlu0 %v2050_v39 }
 0x189   :  { %v1341_v38 = vpop.f32.mrf.mxu0  ;;  %v4238_v49 = vadd.f32 %v3958_v14, %v1626_v29 }
 0x18a   :  { %v1630_v42 = vpop.f32.mrf.mxu1 }
 0x18b   :  { %v1631_v44 = vadd.f32 %v1630_v42, %v1341_v38  ;;  %v1343_v47 = vpop.f32.mrf.mxu0  ;;  %v2051_v53 = vsel %vm2017_vm0, %v4238_v49, -3.4028235e+38 }
 0x18c   :  { %v1632_v50 = vpop.f32.mrf.mxu1  ;;  %2148 = vmax.xlane.f32.xlu1 %v2051_v53 }
 0x18d   :  { %v1344_v52 = vpop.f32.mrf.mxu0  ;;  %v4244_v62 = vadd.f32 %v3958_v14, %v1631_v44 }
 0x18e   :  { %v1633_v56 = vpop.f32.mrf.mxu1 }
 0x18f   :  { %v1634_v58 = vadd.f32 %v1633_v56, %v1344_v52  ;;  %v1346_v60 = vpop.f32.mrf.mxu0  ;;  %v2052_v4 = vsel %vm2017_vm0, %v4244_v62, -3.4028235e+38 }
 0x190   :  { %v1635_v1 = vpop.f32.mrf.mxu1  ;;  %2150 = vmax.xlane.f32.xlu0 %v2052_v4 }
 0x191   :  { %v1349_v3 = vpop.f32.mrf.mxu0  ;;  %v4250_v13 = vadd.f32 %v3958_v14, %v1634_v58  ;;  %v2083_v17 = vpop.xlane.xlu0 %2082 }
 0x192   :  { %v1638_v6 = vpop.f32.mrf.mxu1  ;;  %v4253_v25 = vsub.f32 %v3974_v23, %v2083_v17 }
 0x193   :  { %v1639_v11 = vadd.f32 %v1638_v6, %v1349_v3  ;;  %v1351_v12 = vpop.f32.mrf.mxu0  ;;  %v2053_v26 = vsel %vm2017_vm0, %v4250_v13, -3.4028235e+38 }
 0x194   :  { %v1640_v16 = vpop.f32.mrf.mxu1  ;;  %2152 = vmax.xlane.f32.xlu1 %v2053_v26  ;;  %v2274_v36 = vmul.f32 1.442695, %v4253_v25 }
 0x195   :  { %v1352_v24 = vpop.f32.mrf.mxu0  ;;  %v4260_v38 = vadd.f32 %v3958_v14, %v1639_v11  ;;  %v2085_v42 = vpop.xlane.xlu0 %2084 }
 0x196   :  { %v1641_v27 = vpop.f32.mrf.mxu1  ;;  %3241 = vpow2.f32 %v2274_v36  ;;  %v4263_v23 = vsub.f32 %v3980_v30, %v2085_v42 }
 0x197   :  { %v1642_v29 = vadd.f32 %v1641_v27, %v1352_v24  ;;  %v1354_v32 = vpop.f32.mrf.mxu0  ;;  %v2054_v47 = vsel %vm2017_vm0, %v4260_v38, -3.4028235e+38 }
 0x198   :  { %v1643_v39 = vpop.f32.mrf.mxu1  ;;  %2154 = vmax.xlane.f32.xlu0 %v2054_v47  ;;  %v2276_v56 = vmul.f32 1.442695, %v4263_v23 }
 0x199   :  { %v1357_v44 = vpop.f32.mrf.mxu0  ;;  %v4270_v58 = vadd.f32 %v3958_v14, %v1642_v29  ;;  %v2087_v1 = vpop.xlane.xlu1 %2086 }
 0x19a   :  { %v1646_v50 = vpop.f32.mrf.mxu1  ;;  %3243 = vpow2.f32 %v2276_v56  ;;  %v4273_v30 = vsub.f32 %v3998_v41, %v2087_v1 }
 0x19b   :  { %v1647_v52 = vadd.f32 %v1646_v50, %v1357_v44  ;;  %v1359_v53 = vpop.f32.mrf.mxu0  ;;  %v2055_v4 = vsel %vm2017_vm0, %v4270_v58, -3.4028235e+38 }
 0x19c   :  { %v1648_v60 = vpop.f32.mrf.mxu1  ;;  %2156 = vmax.xlane.f32.xlu1 %v2055_v4  ;;  %v2278_v16 = vmul.f32 1.442695, %v4273_v30 }
 0x19d   :  { %v1360_v3 = vpop.f32.mrf.mxu0  ;;  %v4280_v17 = vadd.f32 %v3958_v14, %v1647_v52  ;;  %v2089_v26 = vpop.xlane.xlu1 %2088 }
 0x19e   :  { %v1649_v6 = vpop.f32.mrf.mxu1  ;;  %3245 = vpow2.f32 %v2278_v16  ;;  %v4283_v41 = vsub.f32 %v4004_v48, %v2089_v26 }
 0x19f   :  { %v1650_v11 = vadd.f32 %v1649_v6, %v1360_v3  ;;  %v1362_v12 = vpop.f32.mrf.mxu0  ;;  %v2056_v29 = vsel %vm2017_vm0, %v4280_v17, -3.4028235e+38 }
 0x1a0   :  { %v1651_v24 = vpop.f32.mrf.mxu1  ;;  %2158 = vmax.xlane.f32.xlu0 %v2056_v29  ;;  %v2280_v42 = vmul.f32 1.442695, %v4283_v41 }
 0x1a1   :  { %v1365_v27 = vpop.f32.mrf.mxu0  ;;  %v4290_v44 = vadd.f32 %v3958_v14, %v1650_v11  ;;  %v2091_v50 = vpop.xlane.xlu0 %2090 }
 0x1a2   :  { %v1654_v32 = vpop.f32.mrf.mxu1  ;;  %3247 = vpow2.f32 %v2280_v42  ;;  %v4293_v48 = vsub.f32 %v4022_v59, %v2091_v50 }
 0x1a3   :  { %v1655_v36 = vadd.f32 %v1654_v32, %v1365_v27  ;;  %v1367_v39 = vpop.f32.mrf.mxu0  ;;  %v2057_v53 = vsel %vm2017_vm0, %v4290_v44, -3.4028235e+38  ;;  %v3242_v56 = vpop.eup %3241 }
 0x1a4   :  { %v1656_v47 = vpop.f32.mrf.mxu1  ;;  %2160 = vmax.xlane.f32.xlu1 %v2057_v53  ;;  %v2282_v4 = vmul.f32 1.442695, %v4293_v48  ;;  %v2402_v11 = vsel %vm2017_vm0, %v3242_v56, 0.0 }
 0x1a5   :  { %v1368_v52 = vpop.f32.mrf.mxu0  ;;  %v2093_v6 = vpop.xlane.xlu1 %2092  ;;  %v4302_v12 = vadd.f32 %v3958_v14, %v1655_v36  ;;  %2466 = vadd.xlane.f32.xlu0 %v2402_v11 }
 0x1a6   :  { %v1657_v60 = vpop.f32.mrf.mxu1  ;;  %v4305_v16 = vsub.f32 %v4028_v2, %v2093_v6  ;;  %3249 = vpow2.f32 %v2282_v4 }
 0x1a7   :  { %v1658_v1 = vadd.f32 %v1657_v60, %v1368_v52  ;;  %v1370_v3 = vpop.f32.mrf.mxu0  ;;  %v2058_v26 = vsel %vm2017_vm0, %v4302_v12, -3.4028235e+38  ;;  %v3244_v27 = vpop.eup %3243 }
 0x1a8   :  { %v1659_v59 = vpop.f32.mrf.mxu1  ;;  %v2284_v32 = vmul.f32 1.442695, %v4305_v16  ;;  %v2403_v36 = vsel %vm2017_vm0, %v3244_v27, 0.0 }
 0x1a9   :  { %v1373_v24 = vpop.f32.mrf.mxu0  ;;  %v4314_v47 = vadd.f32 %v3958_v14, %v1658_v1  ;;  %v2095_v50 = vpop.xlane.xlu0 %2094  ;;  %2468 = vadd.xlane.f32.xlu1 %v2403_v36  ;;  %2162 = vmax.xlane.f32.xlu0 %v2058_v26 }
 0x1aa   :  { %v1662_v29 = vpop.f32.mrf.mxu1  ;;  %3251 = vpow2.f32 %v2284_v32  ;;  %v4317_v53 = vsub.f32 %v4046_v15, %v2095_v50 }
 0x1ab   :  { %v1663_v39 = vadd.f32 %v1662_v29, %v1373_v24  ;;  %v1375_v42 = vpop.f32.mrf.mxu0  ;;  %v2059_v56 = vsel %vm2017_vm0, %v4314_v47, -3.4028235e+38  ;;  %v3246_v60 = vpop.eup %3245 }
 0x1ac   :  { %v1664_v2 = vpop.f32.mrf.mxu1  ;;  %v2286_v1 = vmul.f32 1.442695, %v4317_v53  ;;  %v2404_v59 = vsel %vm2017_vm0, %v3246_v60, 0.0 }
 0x1ad   :  { %v1376_v52 = vpop.f32.mrf.mxu0  ;;  %v2097_v11 = vpop.xlane.xlu1 %2096  ;;  %v4326_v24 = vadd.f32 %v3958_v14, %v1663_v39  ;;  %2470 = vadd.xlane.f32.xlu0 %v2404_v59  ;;  %2164 = vmax.xlane.f32.xlu1 %v2059_v56 }
 0x1ae   :  { %v1665_v3 = vpop.f32.mrf.mxu1  ;;  %v4329_v15 = vsub.f32 %v4052_v22, %v2097_v11  ;;  %3253 = vpow2.f32 %v2286_v1 }
 0x1af   :  { %v1666_v4 = vadd.f32 %v1665_v3, %v1376_v52  ;;  %v1378_v6 = vpop.f32.mrf.mxu0  ;;  %v2060_v29 = vsel %vm2017_vm0, %v4326_v24, -3.4028235e+38  ;;  %v3248_v32 = vpop.eup %3247 }
 0x1b0   :  { %v1667_v26 = vpop.f32.mrf.mxu1  ;;  %v2288_v36 = vmul.f32 1.442695, %v4329_v15  ;;  %v2405_v39 = vsel %vm2017_vm0, %v3248_v32, 0.0 }
 0x1b1   :  { %v1381_v27 = vpop.f32.mrf.mxu0  ;;  %v4338_v22 = vadd.f32 %v3958_v14, %v1666_v4  ;;  %v2099_v56 = vpop.xlane.xlu0 %2098  ;;  %2472 = vadd.xlane.f32.xlu1 %v2405_v39  ;;  %2166 = vmax.xlane.f32.xlu0 %v2060_v29 }
 0x1b2   :  { %v1670_v42 = vpop.f32.mrf.mxu1  ;;  %3255 = vpow2.f32 %v2288_v36  ;;  %v4341_v3 = vsub.f32 %v4070_v35, %v2099_v56 }
 0x1b3   :  { %v1671_v2 = vadd.f32 %v1670_v42, %v1381_v27  ;;  %v1383_v50 = vpop.f32.mrf.mxu0  ;;  %v2061_v6 = vsel %vm2017_vm0, %v4338_v22, -3.4028235e+38  ;;  %v3250_v1 = vpop.eup %3249 }
 0x1b4   :  { %v1672_v52 = vpop.f32.mrf.mxu1  ;;  %v2290_v4 = vmul.f32 1.442695, %v4341_v3  ;;  %v2406_v32 = vsel %vm2017_vm0, %v3250_v1, 0.0 }
 0x1b5   :  { %v1384_v60 = vpop.f32.mrf.mxu0  ;;  %v2101_v27 = vpop.xlane.xlu1 %2100  ;;  %v4350_v29 = vadd.f32 %v3958_v14, %v1671_v2  ;;  %2474 = vadd.xlane.f32.xlu0 %v2406_v32  ;;  %2168 = vmax.xlane.f32.xlu1 %v2061_v6 }
 0x1b6   :  { %v1673_v11 = vpop.f32.mrf.mxu1  ;;  %v4353_v35 = vsub.f32 %v4076_v43, %v2101_v27  ;;  %3257 = vpow2.f32 %v2290_v4  ;;  %v4364_v43 = vld [vmem:[%s5070_s2] ss:$0 sm:$0xff] }
 0x1b7   :  { %v1674_v59 = vadd.f32 %v1673_v11, %v1384_v60  ;;  %v1386_v26 = vpop.f32.mrf.mxu0  ;;  %v3252_v36 = vpop.eup %3251  ;;  %v2062_v39 = vsel %vm2017_vm0, %v4350_v29, -3.4028235e+38 }
 0x1b8   :  { %v1675_v42 = vpop.f32.mrf.mxu1  ;;  %v2292_v56 = vmul.f32 1.442695, %v4353_v35  ;;  %v2407_v14 = vsel %vm2017_vm0, %v3252_v36, 0.0 }
 0x1b9   :  { %v1389_v50 = vpop.f32.mrf.mxu0  ;;  %v4367_v6 = vadd.f32 %v4364_v43, %v1674_v59  ;;  %v2103_v11 = vpop.xlane.xlu0 %2102  ;;  %2476 = vadd.xlane.f32.xlu1 %v2407_v14  ;;  %2170 = vmax.xlane.f32.xlu0 %v2062_v39 }
 0x1ba   :  { %v1678_v52 = vpop.f32.mrf.mxu1  ;;  %3259 = vpow2.f32 %v2292_v56  ;;  %v4370_v4 = vsub.f32 %v4094_v55, %v2103_v11 }
 0x1bb   :  { %v1679_v2 = vadd.f32 %v1678_v52, %v1389_v50  ;;  %v1391_v60 = vpop.f32.mrf.mxu0  ;;  %v2063_v27 = vsel %vm2017_vm0, %v4367_v6, -3.4028235e+38  ;;  %v3254_v32 = vpop.eup %3253 }
 0x1bc   :  { %v1680_v1 = vpop.f32.mrf.mxu1  ;;  %5088 = vst [vmem:[#allocation2_spill] sm:$0xff] %v4370_v4  ;;  %v2294_v59 = vmul.f32 1.442695, %v4370_v4  ;;  %v2408_v56 = vsel %vm2017_vm0, %v3254_v32, 0.0 }
 0x1bd   :  { %v1392_v26 = vpop.f32.mrf.mxu0  ;;  %v2105_v52 = vpop.xlane.xlu1 %2104  ;;  %v4379_v39 = vadd.f32 %v4364_v43, %v1679_v2  ;;  %2478 = vadd.xlane.f32.xlu0 %v2408_v56  ;;  %2172 = vmax.xlane.f32.xlu1 %v2063_v27 }
 0x1be   :  { %v1681_v42 = vpop.f32.mrf.mxu1  ;;  %v4382_v55 = vsub.f32 %v4100_v63, %v2105_v52  ;;  %3261 = vpow2.f32 %v2294_v59 }
 0x1bf   :  { %v1682_v36 = vadd.f32 %v1681_v42, %v1392_v26  ;;  %v1394_v50 = vpop.f32.mrf.mxu0  ;;  %v3256_v60 = vpop.eup %3255  ;;  %v2064_v11 = vsel %vm2017_vm0, %v4379_v39, -3.4028235e+38 }
 0x1c0   :  { %v1683_v14 = vpop.f32.mrf.mxu1  ;;  %5089 = vst [vmem:[#allocation3_spill] sm:$0xff] %v4382_v55  ;;  %v2296_v42 = vmul.f32 1.442695, %v4382_v55  ;;  %v2409_v2 = vsel %vm2017_vm0, %v3256_v60, 0.0 }
 0x1c1   :  { %v1397_v1 = vpop.f32.mrf.mxu0  ;;  %v2107_v14 = vpop.xlane.xlu0 %2106  ;;  %v4391_v63 = vadd.f32 %v4364_v43, %v1682_v36  ;;  %2480 = vadd.xlane.f32.xlu1 %v2409_v2  ;;  %2174 = vmax.xlane.f32.xlu0 %v2064_v11 }
 0x1c2   :  { %v1686_v26 = vpop.f32.mrf.mxu1  ;;  %3263 = vpow2.f32 %v2296_v42  ;;  %v4394_v59 = vsub.f32 %v4112_v9, %v2107_v14 }
 0x1c3   :  { %v1687_v32 = vadd.f32 %v1686_v26, %v1397_v1  ;;  %v1399_v50 = vpop.f32.mrf.mxu0  ;;  %v2065_v56 = vsel %vm2017_vm0, %v4391_v63, -3.4028235e+38  ;;  %v3258_v55 = vpop.eup %3257 }
 0x1c4   :  { %v1688_v27 = vpop.f32.mrf.mxu1  ;;  %5090 = vst [vmem:[#allocation4_spill] sm:$0xff] %v4394_v59  ;;  %v2298_v1 = vmul.f32 1.442695, %v4394_v59  ;;  %v2410_v42 = vsel %vm2017_vm0, %v3258_v55, 0.0 }
 0x1c5   :  { %v1400_v52 = vpop.f32.mrf.mxu0  ;;  %v2109_v36 = vpop.xlane.xlu1 %2108  ;;  %v4403_v9 = vadd.f32 %v4364_v43, %v1687_v32  ;;  %2482 = vadd.xlane.f32.xlu0 %v2410_v42  ;;  %2176 = vmax.xlane.f32.xlu1 %v2065_v56 }
 0x1c6   :  { %v1689_v60 = vpop.f32.mrf.mxu1  ;;  %3265 = vpow2.f32 %v2298_v1  ;;  %v4406_v11 = vsub.f32 %v4118_v19, %v2109_v36 }
 0x1c7   :  { %v1690_v26 = vadd.f32 %v1689_v60, %v1400_v52  ;;  %v1402_v50 = vpop.f32.mrf.mxu0  ;;  %v3260_v14 = vpop.eup %3259  ;;  %v2066_v52 = vsel %vm2017_vm0, %v4403_v9, -3.4028235e+38 }
 0x1c8   :  { %v1691_v2 = vpop.f32.mrf.mxu1  ;;  %5091 = vst [vmem:[#allocation5_spill] sm:$0xff] %v4406_v11  ;;  %v2300_v50 = vmul.f32 1.442695, %v4406_v11  ;;  %v2411_v55 = vsel %vm2017_vm0, %v3260_v14, 0.0 }
 0x1c9   :  { %v1405_v27 = vpop.f32.mrf.mxu0  ;;  %v2111_v1 = vpop.xlane.xlu0 %2110  ;;  %v4415_v19 = vadd.f32 %v4364_v43, %v1690_v26  ;;  %2484 = vadd.xlane.f32.xlu1 %v2411_v55  ;;  %2178 = vmax.xlane.f32.xlu0 %v2066_v52 }
 0x1ca   :  { %v1694_v60 = vpop.f32.mrf.mxu1  ;;  %3267 = vpow2.f32 %v2300_v50  ;;  %v4418_v56 = vsub.f32 %v4124_v28, %v2111_v1 }
 0x1cb   :  { %v1695_v32 = vadd.f32 %v1694_v60, %v1405_v27  ;;  %v1407_v2 = vpop.f32.mrf.mxu0  ;;  %v2067_v11 = vsel %vm2017_vm0, %v4415_v19, -3.4028235e+38  ;;  %v3262_v59 = vpop.eup %3261 }
 0x1cc   :  { %v1696_v36 = vpop.f32.mrf.mxu1  ;;  %5092 = vst [vmem:[#allocation6_spill] sm:$0xff] %v4418_v56  ;;  %v2302_v27 = vmul.f32 1.442695, %v4418_v56  ;;  %v2412_v50 = vsel %vm2017_vm0, %v3262_v59, 0.0 }
 0x1cd   :  { %v1408_v42 = vpop.f32.mrf.mxu0  ;;  %v2113_v26 = vpop.xlane.xlu1 %2112  ;;  %v4427_v28 = vadd.f32 %v4364_v43, %v1695_v32  ;;  %2486 = vadd.xlane.f32.xlu0 %v2412_v50  ;;  %2180 = vmax.xlane.f32.xlu1 %v2067_v11 }
 0x1ce   :  { %v1697_v14 = vpop.f32.mrf.mxu1  ;;  %3269 = vpow2.f32 %v2302_v27  ;;  %v4430_v52 = vsub.f32 %v4130_v37, %v2113_v26 }
 0x1cf   :  { %v1698_v60 = vadd.f32 %v1697_v14, %v1408_v42  ;;  %v1410_v2 = vpop.f32.mrf.mxu0  ;;  %v3264_v1 = vpop.eup %3263  ;;  %v2068_v42 = vsel %vm2017_vm0, %v4427_v28, -3.4028235e+38 }
 0x1d0   :  { %v1699_v55 = vpop.f32.mrf.mxu1  ;;  %5093 = vst [vmem:[#allocation7_spill] sm:$0xff] %v4430_v52  ;;  %v2304_v2 = vmul.f32 1.442695, %v4430_v52  ;;  %v2413_v59 = vsel %vm2017_vm0, %v3264_v1, 0.0 }
 0x1d1   :  { %v1413_v36 = vpop.f32.mrf.mxu0  ;;  %v2115_v27 = vpop.xlane.xlu0 %2114  ;;  %v4439_v37 = vadd.f32 %v4364_v43, %v1698_v60  ;;  %2488 = vadd.xlane.f32.xlu1 %v2413_v59  ;;  %2182 = vmax.xlane.f32.xlu0 %v2068_v42 }
 0x1d2   :  { %v1702_v14 = vpop.f32.mrf.mxu1  ;;  %3271 = vpow2.f32 %v2304_v2  ;;  %v4442_v11 = vsub.f32 %v4136_v46, %v2115_v27 }
 0x1d3   :  { %v1703_v32 = vadd.f32 %v1702_v14, %v1413_v36  ;;  %v1415_v55 = vpop.f32.mrf.mxu0  ;;  %v3266_v50 = vpop.eup %3265  ;;  %v2069_v52 = vsel %vm2017_vm0, %v4439_v37, -3.4028235e+38 }
 0x1d4   :  { %v1704_v26 = vpop.f32.mrf.mxu1  ;;  %5094 = vst [vmem:[#allocation8_spill] sm:$0xff] %v4442_v11  ;;  %v2306_v36 = vmul.f32 1.442695, %v4442_v11  ;;  %v2414_v60 = vsel %vm2017_vm0, %v3266_v50, 0.0 }
 0x1d5   :  { %v1416_v56 = vpop.f32.mrf.mxu0  ;;  %v2117_v2 = vpop.xlane.xlu1 %2116  ;;  %v4451_v46 = vadd.f32 %v4364_v43, %v1703_v32  ;;  %2490 = vadd.xlane.f32.xlu0 %v2414_v60  ;;  %2184 = vmax.xlane.f32.xlu1 %v2069_v52 }
 0x1d6   :  { %v1705_v1 = vpop.f32.mrf.mxu1  ;;  %3273 = vpow2.f32 %v2306_v36  ;;  %v4454_v42 = vsub.f32 %v4142_v54, %v2117_v2 }
 0x1d7   :  { %v1706_v14 = vadd.f32 %v1705_v1, %v1416_v56  ;;  %v1418_v55 = vpop.f32.mrf.mxu0  ;;  %v3268_v27 = vpop.eup %3267  ;;  %v2070_v11 = vsel %vm2017_vm0, %v4451_v46, -3.4028235e+38 }
 0x1d8   :  { %v1707_v59 = vpop.f32.mrf.mxu1  ;;  %5095 = vst [vmem:[#allocation9_spill] sm:$0xff] %v4454_v42  ;;  %v2308_v56 = vmul.f32 1.442695, %v4454_v42  ;;  %v2415_v32 = vsel %vm2017_vm0, %v3268_v27, 0.0 }
 0x1d9   :  { %v1421_v26 = vpop.f32.mrf.mxu0  ;;  %v4463_v36 = vadd.f32 %v4364_v43, %v1706_v14  ;;  %2492 = vadd.xlane.f32.xlu1 %v2415_v32  ;;  %2186 = vmax.xlane.f32.xlu0 %v2070_v11 }
 0x1da   :  { %v1710_v50 = vpop.f32.mrf.mxu1  ;;  %3275 = vpow2.f32 %v2308_v56 }
 0x1db   :  { %v1711_v1 = vadd.f32 %v1710_v50, %v1421_v26  ;;  %v1423_v55 = vpop.f32.mrf.mxu0  ;;  %5096 = vst [vmem:[#allocation10_spill] sm:$0xff] %v4463_v36  ;;  %v3270_v52 = vpop.eup %3269  ;;  %v2071_v2 = vsel %vm2017_vm0, %v4463_v36, -3.4028235e+38 }
 0x1dc   :  { %v1712_v54 = vpop.f32.mrf.mxu1  ;;  %v2416_v42 = vsel %vm2017_vm0, %v3270_v52, 0.0 }
 0x1dd   :  { %v1424_v60 = vpop.f32.mrf.mxu0  ;;  %v4471_v50 = vadd.f32 %v4364_v43, %v1711_v1  ;;  %2494 = vadd.xlane.f32.xlu0 %v2416_v42  ;;  %2188 = vmax.xlane.f32.xlu1 %v2071_v2 }
 0x1de   :  { %v1713_v59 = vpop.f32.mrf.mxu1 }
 0x1df   :  { %v1714_v27 = vadd.f32 %v1713_v59, %v1424_v60  ;;  %v1426_v26 = vpop.f32.mrf.mxu0  ;;  %5097 = vst [vmem:[#allocation11_spill] sm:$0xff] %v4471_v50  ;;  %v3272_v56 = vpop.eup %3271  ;;  %v2072_v32 = vsel %vm2017_vm0, %v4471_v50, -3.4028235e+38 }
 0x1e0   :  { %v1715_v14 = vpop.f32.mrf.mxu1  ;;  %v2417_v54 = vsel %vm2017_vm0, %v3272_v56, 0.0 }
 0x1e1   :  { %v1429_v11 = vpop.f32.mrf.mxu0  ;;  %v4479_v60 = vadd.f32 %v4364_v43, %v1714_v27  ;;  %2496 = vadd.xlane.f32.xlu1 %v2417_v54  ;;  %2190 = vmax.xlane.f32.xlu0 %v2072_v32  ;;  %v2119_v32 = vpop.xlane.xlu0 %2118 }
 0x1e2   :  { %v1718_v55 = vpop.f32.mrf.mxu1 }
 0x1e3   :  { %v1719_v4 = vadd.f32 %v1718_v55, %v1429_v11  ;;  %v1431_v52 = vpop.f32.mrf.mxu0  ;;  %5098 = vst [vmem:[#allocation12_spill] sm:$0xff] %v4479_v60  ;;  %v3274_v42 = vpop.eup %3273  ;;  %v2073_v59 = vsel %vm2017_vm0, %v4479_v60, -3.4028235e+38 }
 0x1e4   :  { %v1720_v1 = vpop.f32.mrf.mxu1  ;;  %v2418_v14 = vsel %vm2017_vm0, %v3274_v42, 0.0 }
 0x1e5   :  { %v1432_v2 = vpop.f32.mrf.mxu0  ;;  %v4487_v11 = vadd.f32 %v4364_v43, %v1719_v4  ;;  %2498 = vadd.xlane.f32.xlu0 %v2418_v14  ;;  %2192 = vmax.xlane.f32.xlu1 %v2073_v59  ;;  %v2121_v4 = vpop.xlane.xlu1 %2120  ;;  %v4498_v59 = vsub.f32 %v4148_v0, %v2119_v32 }
 0x1e6   :  { %v1721_v26 = vpop.f32.mrf.mxu1  ;;  %v2123_v14 = vpop.xlane.xlu0 %2122 }
 0x1e7   :  { %v1722_v50 = vadd.f32 %v1721_v26, %v1432_v2  ;;  %v1434_v56 = vpop.f32.mrf.mxu0  ;;  %5099 = vst [vmem:[#allocation13_spill] sm:$0xff] %v4487_v11  ;;  %v3276_v55 = vpop.eup %3275  ;;  %v2074_v52 = vsel %vm2017_vm0, %v4487_v11, -3.4028235e+38  ;;  %5100 = vst [vmem:[#allocation14_spill] sm:$0xff] %v4498_v59  ;;  %v2310_v0 = vmul.f32 1.442695, %v4498_v59  ;;  %v4511_v32 = vsub.f32 %v4160_v20, %v2123_v14 }
 0x1e8   :  { %v1723_v27 = vpop.f32.mrf.mxu1  ;;  %v2419_v60 = vsel %vm2017_vm0, %v3276_v55, 0.0 }
 0x1e9   :  { %v1437_v54 = vpop.f32.mrf.mxu0  ;;  %v4495_v26 = vadd.f32 %v4364_v43, %v1722_v50  ;;  %2500 = vadd.xlane.f32.xlu1 %v2419_v60  ;;  %2194 = vmax.xlane.f32.xlu0 %v2074_v52  ;;  %v4507_v50 = vsub.f32 %v4154_v8, %v2121_v4  ;;  %v2125_v60 = vpop.xlane.xlu1 %2124  ;;  %3277 = vpow2.f32 %v2310_v0 }
 0x1ea   :  { %v1726_v1 = vpop.f32.mrf.mxu1 }
 0x1eb   :  { %v1727_v42 = vadd.f32 %v1726_v1, %v1437_v54  ;;  %v1439_v2 = vpop.f32.mrf.mxu0  ;;  %v2075_v11 = vsel %vm2017_vm0, %v4495_v26, -3.4028235e+38  ;;  %5102 = vst [vmem:[#allocation16_spill] sm:$0xff] %v4507_v50 }
 0x1ec   :  { %v1728_v56 = vpop.f32.mrf.mxu1 }
 0x1ed   :  { %v1440_v27 = vpop.f32.mrf.mxu0  ;;  %v4504_v1 = vadd.f32 %v4364_v43, %v1727_v42  ;;  %2196 = vmax.xlane.f32.xlu1 %v2075_v11  ;;  %v2127_v56 = vpop.xlane.xlu0 %2126  ;;  %v4517_v42 = vsub.f32 %v4166_v31, %v2125_v60 }
 0x1ee   :  { %v1729_v36 = vpop.f32.mrf.mxu1  ;;  %v4524_v20 = vsub.f32 %v4172_v40, %v2127_v56 }
 0x1ef   :  { %v1730_v55 = vadd.f32 %v1729_v36, %v1440_v27  ;;  %v1442_v54 = vpop.f32.mrf.mxu0  ;;  %5101 = vst [vmem:[#allocation15_spill] sm:$0xff] %v4504_v1  ;;  %v2076_v36 = vsel %vm2017_vm0, %v4504_v1, -3.4028235e+38  ;;  %5103 = vst [vmem:[#allocation17_spill] sm:$0xff] %v4517_v42  ;;  %v2129_v1 = vpop.xlane.xlu1 %2128 }
 0x1f0   :  { %v1731_v52 = vpop.f32.mrf.mxu1  ;;  %2198 = vmax.xlane.f32.xlu0 %v2076_v36  ;;  %v2312_v54 = vmul.f32 1.442695, %v4507_v50  ;;  %v2318_v0 = vmul.f32 1.442695, %v4524_v20  ;;  %v4536_v56 = vsub.f32 %v4178_v51, %v2129_v1 }
 0x1f1   :  { %v1445_v2 = vpop.f32.mrf.mxu0  ;;  %v4520_v11 = vadd.f32 %v4364_v43, %v1730_v55  ;;  %v2314_v52 = vmul.f32 1.442695, %v4511_v32  ;;  %v2316_v55 = vmul.f32 1.442695, %v4517_v42 }
 0x1f2   :  { %v1734_v27 = vpop.f32.mrf.mxu1  ;;  %3279 = vpow2.f32 %v2312_v54  ;;  %v2320_v1 = vmul.f32 1.442695, %v4536_v56 }
 0x1f3   :  { %v1735_v8 = vadd.f32 %v1734_v27, %v1445_v2  ;;  %v1447_v4 = vpop.f32.mrf.mxu0  ;;  %v2077_v31 = vsel %vm2017_vm0, %v4520_v11, -3.4028235e+38  ;;  %v2131_v2 = vpop.xlane.xlu0 %2130  ;;  %3281 = vpow2.f32 %v2314_v52 }
 0x1f4   :  { %v1736_v14 = vpop.f32.mrf.mxu1  ;;  %2200 = vmax.xlane.f32.xlu1 %v2077_v31  ;;  %v4539_v50 = vsub.f32 %v4184_v61, %v2131_v2  ;;  %3283 = vpow2.f32 %v2316_v55 }
 0x1f5   :  { %v1448_v59 = vpop.f32.mrf.mxu0  ;;  %v4532_v40 = vadd.f32 %v4364_v43, %v1735_v8  ;;  %v2133_v31 = vpop.xlane.xlu1 %2132  ;;  %3285 = vpow2.f32 %v2318_v0 }
 0x1f6   :  { %v1737_v60 = vpop.f32.mrf.mxu1  ;;  %v4549_v61 = vsub.f32 %v4190_v7, %v2133_v31  ;;  %v2322_v2 = vmul.f32 1.442695, %v4539_v50  ;;  %3287 = vpow2.f32 %v2320_v1 }
 0x1f7   :  { %v1738_v36 = vadd.f32 %v1737_v60, %v1448_v59  ;;  %v1450_v27 = vpop.f32.mrf.mxu0  ;;  %v2078_v59 = vsel %vm2017_vm0, %v4532_v40, -3.4028235e+38 }
 0x1f8   :  { %v1739_v4 = vpop.f32.mrf.mxu1  ;;  %2202 = vmax.xlane.f32.xlu0 %v2078_v59  ;;  %v2324_v7 = vmul.f32 1.442695, %v4549_v61  ;;  %3289 = vpow2.f32 %v2322_v2 }
 0x1f9   :  { %v1453_v14 = vpop.f32.mrf.mxu0  ;;  %v2135_v27 = vpop.xlane.xlu0 %2134  ;;  %v4545_v51 = vadd.f32 %v4364_v43, %v1738_v36 }
 0x1fa   :  { %v1742_v60 = vpop.f32.mrf.mxu1  ;;  %v4553_v42 = vsub.f32 %v4196_v21, %v2135_v27  ;;  %3291 = vpow2.f32 %v2324_v7 }
 0x1fb   :  { %v1743_v8 = vadd.f32 %v1742_v60, %v1453_v14  ;;  %v1455_v54 = vpop.f32.mrf.mxu0  ;;  %v2079_v55 = vsel %vm2017_vm0, %v4545_v51, -3.4028235e+38 }
 0x1fc   :  { %v1744_v52 = vpop.f32.mrf.mxu1  ;;  %2204 = vmax.xlane.f32.xlu1 %v2079_v55  ;;  %v2326_v21 = vmul.f32 1.442695, %v4553_v42 }
 0x1fd   :  { %v1456_v4 = vpop.f32.mrf.mxu0  ;;  %v2137_v59 = vpop.xlane.xlu1 %2136  ;;  %v4559_v60 = vadd.f32 %v4364_v43, %v1743_v8 }
 0x1fe   :  { %v1745_v14 = vpop.f32.mrf.mxu1  ;;  %v4563_v54 = vsub.f32 %v4202_v33, %v2137_v59  ;;  %v3278_v52 = vpop.eup %3277  ;;  %3293 = vpow2.f32 %v2326_v21 }
 0x1ff   :  { %v1746_v36 = vadd.f32 %v1745_v14, %v1456_v4  ;;  %v1458_v0 = vpop.f32.mrf.mxu0  ;;  %v2080_v27 = vsel %vm2017_vm0, %v4559_v60, -3.4028235e+38  ;;  %v3280_v33 = vpop.eup %3279  ;;  %v2420_v2 = vsel %vm2017_vm0, %v3278_v52, 0.0 }
 0x200   :  { %v1747_v31 = vpop.f32.mrf.mxu1  ;;  %2206 = vmax.xlane.f32.xlu0 %v2080_v27  ;;  %v2328_v1 = vmul.f32 1.442695, %v4563_v54  ;;  %v3282_v0 = vpop.eup %3281  ;;  %v2421_v21 = vsel %vm2017_vm0, %v3280_v33, 0.0 }
 0x201   :  { %v2139_v4 = vpop.xlane.xlu0 %2138  ;;  %v4570_v8 = vadd.f32 %v4364_v43, %v1746_v36  ;;  %v3284_v36 = vpop.eup %3283  ;;  %v2422_v31 = vsel %vm2017_vm0, %v3282_v0, 0.0 }
 0x202   :  { %v4574_v55 = vsub.f32 %v4208_v45, %v2139_v4  ;;  %3295 = vpow2.f32 %v2328_v1  ;;  %v3286_v7 = vpop.eup %3285 }
 0x203   :  { %v2081_v14 = vsel %vm2017_vm0, %v4570_v8, -3.4028235e+38  ;;  %v3288_v1 = vpop.eup %3287 }
 0x204   :  { %v2330_v59 = vmul.f32 1.442695, %v4574_v55  ;;  %2502 = vadd.xlane.f32.xlu0 %v2420_v2  ;;  %2208 = vmax.xlane.f32.xlu1 %v2081_v14  ;;  %v2423_v2 = vsel %vm2017_vm0, %v3284_v36, 0.0 }
 0x205   :  { %v2141_v43 = vpop.xlane.xlu1 %2140  ;;  %v3290_v14 = vpop.eup %3289 }
 0x206   :  { %v4583_v45 = vsub.f32 %v4214_v57, %v2141_v43  ;;  %3297 = vpow2.f32 %v2330_v59  ;;  %v2424_v57 = vsel %vm2017_vm0, %v3286_v7, 0.0  ;;  %v2426_v43 = vsel %vm2017_vm0, %v3290_v14, 0.0 }
 0x207   :  { %v2425_v7 = vsel %vm2017_vm0, %v3288_v1, 0.0 }
 0x208   :  { %v2332_v27 = vmul.f32 1.442695, %v4583_v45  ;;  %2506 = vadd.xlane.f32.xlu0 %v2422_v31  ;;  %2504 = vadd.xlane.f32.xlu1 %v2421_v21 }
 0x209   :  { %v2143_v52 = vpop.xlane.xlu0 %2142 }
 0x20a   :  { %v4591_v4 = vsub.f32 %v4220_v5, %v2143_v52  ;;  %3299 = vpow2.f32 %v2332_v27  ;;  %v3292_v5 = vpop.eup %3291 }
 0x20b   :  { %v3294_v31 = vpop.eup %3293 }
 0x20c   :  { %v2334_v0 = vmul.f32 1.442695, %v4591_v4  ;;  %2510 = vadd.xlane.f32.xlu0 %v2424_v57  ;;  %2508 = vadd.xlane.f32.xlu1 %v2423_v2  ;;  %v2427_v57 = vsel %vm2017_vm0, %v3292_v5, 0.0 }
 0x20d   :  { %v2145_v33 = vpop.xlane.xlu1 %2144 }
 0x20e   :  { %3301 = vpow2.f32 %v2334_v0  ;;  %v4599_v59 = vsub.f32 %v4226_v18, %v2145_v33  ;;  %v2428_v18 = vsel %vm2017_vm0, %v3294_v31, 0.0 }
 0x20f   :  { %v3296_v52 = vpop.eup %3295 }
 0x210   :  { %v2336_v36 = vmul.f32 1.442695, %v4599_v59  ;;  %2514 = vadd.xlane.f32.xlu0 %v2426_v43  ;;  %2512 = vadd.xlane.f32.xlu1 %v2425_v7  ;;  %v2429_v33 = vsel %vm2017_vm0, %v3296_v52, 0.0 }
 0x211   :  { %v2147_v21 = vpop.xlane.xlu0 %2146 }
 0x212   :  { %3303 = vpow2.f32 %v2336_v36  ;;  %v4607_v27 = vsub.f32 %v4232_v34, %v2147_v21 }
 0x213   :  { %v3298_v2 = vpop.eup %3297 }
 0x214   :  { %v2338_v1 = vmul.f32 1.442695, %v4607_v27  ;;  %2518 = vadd.xlane.f32.xlu0 %v2428_v18  ;;  %2516 = vadd.xlane.f32.xlu1 %v2427_v57  ;;  %v2430_v34 = vsel %vm2017_vm0, %v3298_v2, 0.0 }
 0x215   :  { %v2149_v14 = vpop.xlane.xlu1 %2148 }
 0x216   :  { %3305 = vpow2.f32 %v2338_v1  ;;  %v4615_v0 = vsub.f32 %v4238_v49, %v2149_v14 }
 0x217   :  { %v3300_v43 = vpop.eup %3299 }
 0x218   :  { %v2340_v7 = vmul.f32 1.442695, %v4615_v0  ;;  %2522 = vadd.xlane.f32.xlu0 %v2430_v34  ;;  %2520 = vadd.xlane.f32.xlu1 %v2429_v33  ;;  %v2431_v49 = vsel %vm2017_vm0, %v3300_v43, 0.0 }
 0x219   :  { %v2151_v5 = vpop.xlane.xlu0 %2150 }
 0x21a   :  { %3307 = vpow2.f32 %v2340_v7  ;;  %v4623_v31 = vsub.f32 %v4244_v62, %v2151_v5 }
 0x21b   :  { %v3302_v36 = vpop.eup %3301 }
 0x21c   :  { %v2342_v21 = vmul.f32 1.442695, %v4623_v31  ;;  %2524 = vadd.xlane.f32.xlu1 %v2431_v49  ;;  %v2432_v52 = vsel %vm2017_vm0, %v3302_v36, 0.0 }
 0x21d   :  { %v2153_v18 = vpop.xlane.xlu1 %2152  ;;  %2526 = vadd.xlane.f32.xlu0 %v2432_v52 }
 0x21e   :  { %3309 = vpow2.f32 %v2342_v21  ;;  %v4631_v57 = vsub.f32 %v4250_v13, %v2153_v18 }
 0x21f   :  { %v3304_v2 = vpop.eup %3303 }
 0x220   :  { %v2344_v62 = vmul.f32 1.442695, %v4631_v57  ;;  %v2433_v1 = vsel %vm2017_vm0, %v3304_v2, 0.0 }
 0x221   :  { %v2155_v14 = vpop.xlane.xlu0 %2154  ;;  %2528 = vadd.xlane.f32.xlu1 %v2433_v1 }
 0x222   :  { %3311 = vpow2.f32 %v2344_v62  ;;  %v4637_v34 = vsub.f32 %v4260_v38, %v2155_v14 }
 0x223   :  { %v3306_v33 = vpop.eup %3305 }
 0x224   :  { %v2346_v43 = vmul.f32 1.442695, %v4637_v34  ;;  %v2434_v7 = vsel %vm2017_vm0, %v3306_v33, 0.0 }
 0x225   :  { %v2157_v13 = vpop.xlane.xlu1 %2156  ;;  %2530 = vadd.xlane.f32.xlu0 %v2434_v7 }
 0x226   :  { %3313 = vpow2.f32 %v2346_v43  ;;  %v4643_v5 = vsub.f32 %v4270_v58, %v2157_v13 }
 0x227   :  { %v3308_v36 = vpop.eup %3307 }
 0x228   :  { %v2348_v49 = vmul.f32 1.442695, %v4643_v5  ;;  %v2435_v21 = vsel %vm2017_vm0, %v3308_v36, 0.0 }
 0x229   :  { %v2159_v38 = vpop.xlane.xlu0 %2158  ;;  %2532 = vadd.xlane.f32.xlu1 %v2435_v21 }
 0x22a   :  { %3315 = vpow2.f32 %v2348_v49  ;;  %v4649_v52 = vsub.f32 %v4280_v17, %v2159_v38 }
 0x22b   :  { %v3310_v18 = vpop.eup %3309 }
 0x22c   :  { %v2350_v2 = vmul.f32 1.442695, %v4649_v52  ;;  %v2436_v62 = vsel %vm2017_vm0, %v3310_v18, 0.0 }
 0x22d   :  { %v2161_v58 = vpop.xlane.xlu1 %2160  ;;  %2534 = vadd.xlane.f32.xlu0 %v2436_v62 }
 0x22e   :  { %3317 = vpow2.f32 %v2350_v2  ;;  %v4655_v1 = vsub.f32 %v4290_v44, %v2161_v58  ;;  %v2467_v33 = vpop.xlane.xlu0 %2466 }
 0x22f   :  { %v3312_v14 = vpop.eup %3311  ;;  %3319 = vlog2.f32 %v2467_v33 }
 0x230   :  { %v2352_v43 = vmul.f32 1.442695, %v4655_v1  ;;  %v2437_v17 = vsel %vm2017_vm0, %v3312_v14, 0.0 }
 0x231   :  { %2536 = vadd.xlane.f32.xlu1 %v2437_v17 }
 0x232   :  { %3321 = vpow2.f32 %v2352_v43  ;;  %v2469_v13 = vpop.xlane.xlu1 %2468  ;;  %v2163_v36 = vpop.xlane.xlu0 %2162 }
 0x233   :  { %v3314_v7 = vpop.eup %3313  ;;  %3323 = vlog2.f32 %v2469_v13  ;;  %v4661_v49 = vsub.f32 %v4302_v12, %v2163_v36 }
 0x234   :  { %v2438_v44 = vsel %vm2017_vm0, %v3314_v7, 0.0 }
 0x235   :  { %2538 = vadd.xlane.f32.xlu0 %v2438_v44  ;;  %v2354_v21 = vmul.f32 1.442695, %v4661_v49 }
 0x236   :  { %v2471_v18 = vpop.xlane.xlu0 %2470  ;;  %v2165_v2 = vpop.xlane.xlu1 %2164 }
 0x237   :  { %v3316_v38 = vpop.eup %3315  ;;  %3325 = vpow2.f32 %v2354_v21  ;;  %v4667_v62 = vsub.f32 %v4314_v47, %v2165_v2 }
 0x238   :  { %v2439_v58 = vsel %vm2017_vm0, %v3316_v38, 0.0  ;;  %3327 = vlog2.f32 %v2471_v18 }
 0x239   :  { %2540 = vadd.xlane.f32.xlu1 %v2439_v58  ;;  %v2356_v12 = vmul.f32 1.442695, %v4667_v62 }
 0x23a   :  { %v2473_v33 = vpop.xlane.xlu1 %2472  ;;  %v2167_v43 = vpop.xlane.xlu0 %2166 }
 0x23b   :  { %v3318_v14 = vpop.eup %3317  ;;  %3329 = vpow2.f32 %v2356_v12  ;;  %v4673_v17 = vsub.f32 %v4326_v24, %v2167_v43 }
 0x23c   :  { %v2440_v7 = vsel %vm2017_vm0, %v3318_v14, 0.0  ;;  %v3320_v13 = vpop.eup %3319  ;;  %3331 = vlog2.f32 %v2473_v33 }
 0x23d   :  { %2542 = vadd.xlane.f32.xlu0 %v2440_v7  ;;  %v2595_v47 = vmul.f32 0.6931472, %v3320_v13  ;;  %v2358_v36 = vmul.f32 1.442695, %v4673_v17 }
 0x23e   :  { %v2475_v21 = vpop.xlane.xlu0 %2474  ;;  %v2169_v38 = vpop.xlane.xlu1 %2168 }
 0x23f   :  { %v3322_v44 = vpop.eup %3321  ;;  %v2722_v18 = vsub.f32 %v4253_v25, %v2595_v47  ;;  %3333 = vpow2.f32 %v2358_v36  ;;  %v4680_v2 = vsub.f32 %v4338_v22, %v2169_v38 }
 0x240   :  { %v2441_v24 = vsel %vm2017_vm0, %v3322_v44, 0.0  ;;  %v3324_v58 = vpop.eup %3323  ;;  %3335 = vlog2.f32 %v2475_v21 }
 0x241   :  { %2544 = vadd.xlane.f32.xlu1 %v2441_v24  ;;  %2786 = vst [vmem:[%s5071_s3] sm:$0xff] %v2722_v18  ;;  %v2597_v12 = vmul.f32 0.6931472, %v3324_v58  ;;  %v2360_v14 = vmul.f32 1.442695, %v4680_v2 }
 0x242   :  { %v2477_v33 = vpop.xlane.xlu1 %2476  ;;  %v2171_v43 = vpop.xlane.xlu0 %2170 }
 0x243   :  { %v2723_v25 = vsub.f32 %v4263_v23, %v2597_v12  ;;  %3337 = vpow2.f32 %v2360_v14  ;;  %v4690_v22 = vsub.f32 %v4350_v29, %v2171_v43 }
 0x244   :  { %v3326_v7 = vpop.eup %3325  ;;  %3339 = vlog2.f32 %v2477_v33 }
 0x245   :  { %v3328_v13 = vpop.eup %3327  ;;  %2787 = vst [vmem:[%s5071_s3 + $0x8] sm:$0xff] %v2723_v25  ;;  %v2362_v47 = vmul.f32 1.442695, %v4690_v22  ;;  %v2442_v36 = vsel %vm2017_vm0, %v3326_v7, 0.0 }
 0x246   :  { %v2599_v44 = vmul.f32 0.6931472, %v3328_v13  ;;  %v2479_v21 = vpop.xlane.xlu0 %2478  ;;  %v2173_v38 = vpop.xlane.xlu1 %2172  ;;  %2546 = vadd.xlane.f32.xlu0 %v2442_v36 }
 0x247   :  { %3341 = vpow2.f32 %v2362_v47  ;;  %v4699_v23 = vsub.f32 %v4367_v6, %v2173_v38 }
 0x248   :  { %v3330_v29 = vpop.eup %3329  ;;  %v2724_v18 = vsub.f32 %v4273_v30, %v2599_v44  ;;  %3343 = vlog2.f32 %v2479_v21 }
 0x249   :  { %v3332_v24 = vpop.eup %3331  ;;  %v2364_v58 = vmul.f32 1.442695, %v4699_v23  ;;  %v2443_v12 = vsel %vm2017_vm0, %v3330_v29, 0.0 }
 0x24a   :  { %2788 = vst [vmem:[%s5071_s3 + $0x10] sm:$0xff] %v2724_v18  ;;  %v2601_v14 = vmul.f32 0.6931472, %v3332_v24  ;;  %v2481_v33 = vpop.xlane.xlu1 %2480  ;;  %v2175_v43 = vpop.xlane.xlu0 %2174  ;;  %2548 = vadd.xlane.f32.xlu1 %v2443_v12 }
 0x24b   :  { %3345 = vpow2.f32 %v2364_v58  ;;  %v4709_v6 = vsub.f32 %v4379_v39, %v2175_v43 }
 0x24c   :  { %v3334_v30 = vpop.eup %3333  ;;  %v2725_v25 = vsub.f32 %v4283_v41, %v2601_v14  ;;  %3347 = vlog2.f32 %v2481_v33 }
 0x24d   :  { %v3336_v7 = vpop.eup %3335  ;;  %v2366_v13 = vmul.f32 1.442695, %v4709_v6  ;;  %v2444_v47 = vsel %vm2017_vm0, %v3334_v30, 0.0 }
 0x24e   :  { %2789 = vst [vmem:[%s5071_s3 + $0x18] sm:$0xff] %v2725_v25  ;;  %v2603_v36 = vmul.f32 0.6931472, %v3336_v7  ;;  %v2483_v44 = vpop.xlane.xlu0 %2482  ;;  %v2177_v21 = vpop.xlane.xlu1 %2176  ;;  %2550 = vadd.xlane.f32.xlu0 %v2444_v47 }
 0x24f   :  { %3349 = vpow2.f32 %v2366_v13  ;;  %v4719_v39 = vsub.f32 %v4391_v63, %v2177_v21 }
 0x250   :  { %v3338_v41 = vpop.eup %3337  ;;  %v2726_v38 = vsub.f32 %v4293_v48, %v2603_v36  ;;  %3351 = vlog2.f32 %v2483_v44 }
 0x251   :  { %v3340_v29 = vpop.eup %3339  ;;  %v2368_v18 = vmul.f32 1.442695, %v4719_v39  ;;  %v2445_v24 = vsel %vm2017_vm0, %v3338_v41, 0.0 }
 0x252   :  { %2790 = vst [vmem:[%s5071_s3 + $0x20] sm:$0xff] %v2726_v38  ;;  %v2605_v58 = vmul.f32 0.6931472, %v3340_v29  ;;  %v2485_v12 = vpop.xlane.xlu1 %2484  ;;  %v2179_v14 = vpop.xlane.xlu0 %2178  ;;  %2552 = vadd.xlane.f32.xlu1 %v2445_v24 }
 0x253   :  { %3353 = vpow2.f32 %v2368_v18  ;;  %v4729_v63 = vsub.f32 %v4403_v9, %v2179_v14 }
 0x254   :  { %v3342_v48 = vpop.eup %3341  ;;  %v2727_v33 = vsub.f32 %v4305_v16, %v2605_v58  ;;  %3355 = vlog2.f32 %v2485_v12 }
 0x255   :  { %v3344_v43 = vpop.eup %3343  ;;  %v2370_v30 = vmul.f32 1.442695, %v4729_v63  ;;  %v2446_v25 = vsel %vm2017_vm0, %v3342_v48, 0.0 }
 0x256   :  { %2791 = vst [vmem:[%s5071_s3 + $0x28] sm:$0xff] %v2727_v33  ;;  %v2607_v7 = vmul.f32 0.6931472, %v3344_v43  ;;  %v2487_v13 = vpop.xlane.xlu0 %2486  ;;  %v2181_v47 = vpop.xlane.xlu1 %2180  ;;  %2554 = vadd.xlane.f32.xlu0 %v2446_v25 }
 0x257   :  { %3357 = vpow2.f32 %v2370_v30  ;;  %v4739_v9 = vsub.f32 %v4415_v19, %v2181_v47 }
 0x258   :  { %v3346_v16 = vpop.eup %3345  ;;  %v2728_v36 = vsub.f32 %v4317_v53, %v2607_v7  ;;  %3359 = vlog2.f32 %v2487_v13 }
 0x259   :  { %v3348_v44 = vpop.eup %3347  ;;  %v2372_v21 = vmul.f32 1.442695, %v4739_v9  ;;  %v2447_v41 = vsel %vm2017_vm0, %v3346_v16, 0.0 }
 0x25a   :  { %2792 = vst [vmem:[%s5071_s3 + $0x30] sm:$0xff] %v2728_v36  ;;  %v2609_v38 = vmul.f32 0.6931472, %v3348_v44  ;;  %v2489_v29 = vpop.xlane.xlu1 %2488  ;;  %v2183_v18 = vpop.xlane.xlu0 %2182  ;;  %2556 = vadd.xlane.f32.xlu1 %v2447_v41 }
 0x25b   :  { %3361 = vpow2.f32 %v2372_v21  ;;  %v4749_v19 = vsub.f32 %v4427_v28, %v2183_v18 }
 0x25c   :  { %v3350_v53 = vpop.eup %3349  ;;  %v2729_v24 = vsub.f32 %v4329_v15, %v2609_v38  ;;  %3363 = vlog2.f32 %v2489_v29 }
 0x25d   :  { %v3352_v58 = vpop.eup %3351  ;;  %v2374_v12 = vmul.f32 1.442695, %v4749_v19  ;;  %v2448_v14 = vsel %vm2017_vm0, %v3350_v53, 0.0 }
 0x25e   :  { %2793 = vst [vmem:[%s5071_s3 + $0x38] sm:$0xff] %v2729_v24  ;;  %v2611_v48 = vmul.f32 0.6931472, %v3352_v58  ;;  %v2491_v33 = vpop.xlane.xlu0 %2490  ;;  %v2185_v43 = vpop.xlane.xlu1 %2184  ;;  %2558 = vadd.xlane.f32.xlu0 %v2448_v14  ;;  %v5105_v58 = vld [vmem:[#allocation2_spill] sm:$0xff] }
 0x25f   :  { %3365 = vpow2.f32 %v2374_v12  ;;  %v4759_v28 = vsub.f32 %v4439_v37, %v2185_v43 }
 0x260   :  { %v3354_v15 = vpop.eup %3353  ;;  %v2730_v30 = vsub.f32 %v4341_v3, %v2611_v48  ;;  %3367 = vlog2.f32 %v2491_v33 }
 0x261   :  { %v3356_v25 = vpop.eup %3355  ;;  %v2376_v7 = vmul.f32 1.442695, %v4759_v28  ;;  %v2449_v13 = vsel %vm2017_vm0, %v3354_v15, 0.0 }
 0x262   :  { %2794 = vst [vmem:[%s5071_s3 + $0x40] sm:$0xff] %v2730_v30  ;;  %v2613_v47 = vmul.f32 0.6931472, %v3356_v25  ;;  %v2493_v16 = vpop.xlane.xlu1 %2492  ;;  %v2187_v36 = vpop.xlane.xlu0 %2186  ;;  %2560 = vadd.xlane.f32.xlu1 %v2449_v13  ;;  %v5106_v25 = vld [vmem:[#allocation11_spill] sm:$0xff] }
 0x263   :  { %3369 = vpow2.f32 %v2376_v7  ;;  %v4769_v37 = vsub.f32 %v4451_v46, %v2187_v36  ;;  %v5104_v46 = vld [vmem:[#allocation10_spill] sm:$0xff] }
 0x264   :  { %v3358_v3 = vpop.eup %3357  ;;  %v2731_v44 = vsub.f32 %v4353_v35, %v2613_v47  ;;  %3371 = vlog2.f32 %v2493_v16  ;;  %v5107_v47 = vld [vmem:[#allocation3_spill] sm:$0xff] }
 0x265   :  { %v3360_v21 = vpop.eup %3359  ;;  %v2378_v41 = vmul.f32 1.442695, %v4769_v37  ;;  %v2450_v38 = vsel %vm2017_vm0, %v3358_v3, 0.0 }
 0x266   :  { %2795 = vst [vmem:[%s5071_s3 + $0x48] sm:$0xff] %v2731_v44  ;;  %v2615_v29 = vmul.f32 0.6931472, %v3360_v21  ;;  %v2495_v18 = vpop.xlane.xlu0 %2494  ;;  %v2189_v53 = vpop.xlane.xlu1 %2188  ;;  %2562 = vadd.xlane.f32.xlu0 %v2450_v38 }
 0x267   :  { %3373 = vpow2.f32 %v2378_v41  ;;  %v4779_v24 = vsub.f32 %v5104_v46, %v2189_v53  ;;  %v5109_v46 = vld [vmem:[#allocation4_spill] sm:$0xff] }
 0x268   :  { %v3362_v35 = vpop.eup %3361  ;;  %v2732_v12 = vsub.f32 %v5105_v58, %v2615_v29  ;;  %3375 = vlog2.f32 %v2495_v18  ;;  %v5108_v29 = vld [vmem:[#allocation12_spill] sm:$0xff] }
 0x269   :  { %v3364_v14 = vpop.eup %3363  ;;  %v2380_v48 = vmul.f32 1.442695, %v4779_v24  ;;  %v2451_v33 = vsel %vm2017_vm0, %v3362_v35, 0.0 }
 0x26a   :  { %2796 = vst [vmem:[%s5071_s3 + $0x50] sm:$0xff] %v2732_v12  ;;  %v2617_v43 = vmul.f32 0.6931472, %v3364_v14  ;;  %v2497_v15 = vpop.xlane.xlu1 %2496  ;;  %v2191_v30 = vpop.xlane.xlu0 %2190  ;;  %2564 = vadd.xlane.f32.xlu1 %v2451_v33 }
 0x26b   :  { %3377 = vpow2.f32 %v2380_v48  ;;  %v4789_v7 = vsub.f32 %v5106_v25, %v2191_v30 }
 0x26c   :  { %v3366_v13 = vpop.eup %3365  ;;  %v2733_v16 = vsub.f32 %v5107_v47, %v2617_v43  ;;  %3379 = vlog2.f32 %v2497_v15  ;;  %v5110_v15 = vld [vmem:[#allocation13_spill] sm:$0xff] }
 0x26d   :  { %v3368_v36 = vpop.eup %3367  ;;  %v2382_v3 = vmul.f32 1.442695, %v4789_v7  ;;  %v2452_v44 = vsel %vm2017_vm0, %v3366_v13, 0.0  ;;  %v5111_v13 = vld [vmem:[#allocation5_spill] sm:$0xff] }
 0x26e   :  { %2797 = vst [vmem:[%s5071_s3 + $0x58] sm:$0xff] %v2733_v16  ;;  %v2619_v21 = vmul.f32 0.6931472, %v3368_v36  ;;  %v2499_v41 = vpop.xlane.xlu0 %2498  ;;  %v2193_v38 = vpop.xlane.xlu1 %2192  ;;  %2566 = vadd.xlane.f32.xlu0 %v2452_v44 }
 0x26f   :  { %3381 = vpow2.f32 %v2382_v3  ;;  %v4799_v18 = vsub.f32 %v5108_v29, %v2193_v38  ;;  %v5112_v29 = vld [vmem:[#allocation6_spill] sm:$0xff] }
 0x270   :  { %v3370_v53 = vpop.eup %3369  ;;  %v2734_v35 = vsub.f32 %v5109_v46, %v2619_v21  ;;  %3383 = vlog2.f32 %v2499_v41 }
 0x271   :  { %v3372_v58 = vpop.eup %3371  ;;  %v2384_v12 = vmul.f32 1.442695, %v4799_v18  ;;  %v2453_v14 = vsel %vm2017_vm0, %v3370_v53, 0.0 }
 0x272   :  { %2798 = vst [vmem:[%s5071_s3 + $0x60] sm:$0xff] %v2734_v35  ;;  %v2621_v48 = vmul.f32 0.6931472, %v3372_v58  ;;  %v2501_v33 = vpop.xlane.xlu1 %2500  ;;  %v2195_v43 = vpop.xlane.xlu0 %2194  ;;  %2568 = vadd.xlane.f32.xlu1 %v2453_v14 }
 0x273   :  { %3385 = vpow2.f32 %v2384_v12  ;;  %v4809_v30 = vsub.f32 %v5110_v15, %v2195_v43  ;;  %v5113_v12 = vld [vmem:[#allocation15_spill] sm:$0xff] }
 0x274   :  { %v3374_v25 = vpop.eup %3373  ;;  %v2735_v47 = vsub.f32 %v5111_v13, %v2621_v48  ;;  %3387 = vlog2.f32 %v2501_v33  ;;  %v5114_v15 = vld [vmem:[#allocation7_spill] sm:$0xff] }
 0x275   :  { %v3376_v16 = vpop.eup %3375  ;;  %v2386_v36 = vmul.f32 1.442695, %v4809_v30  ;;  %v2454_v3 = vsel %vm2017_vm0, %v3374_v25, 0.0 }
 0x276   :  { %2799 = vst [vmem:[%s5071_s3 + $0x68] sm:$0xff] %v2735_v47  ;;  %v2623_v44 = vmul.f32 0.6931472, %v3376_v16  ;;  %v2197_v21 = vpop.xlane.xlu1 %2196  ;;  %2570 = vadd.xlane.f32.xlu0 %v2454_v3 }
 0x277   :  { %3389 = vpow2.f32 %v2386_v36  ;;  %v4819_v41 = vsub.f32 %v4495_v26, %v2197_v21 }
 0x278   :  { %v3378_v38 = vpop.eup %3377  ;;  %v2736_v53 = vsub.f32 %v5112_v29, %v2623_v44 }
 0x279   :  { %v2199_v46 = vpop.xlane.xlu0 %2198  ;;  %v3380_v35 = vpop.eup %3379  ;;  %v2388_v58 = vmul.f32 1.442695, %v4819_v41  ;;  %v2455_v48 = vsel %vm2017_vm0, %v3378_v38, 0.0  ;;  %v5115_v38 = vld [vmem:[#allocation8_spill] sm:$0xff] }
 0x27a   :  { %v4824_v14 = vsub.f32 %v5113_v12, %v2199_v46  ;;  %2800 = vst [vmem:[%s5071_s3 + $0x70] sm:$0xff] %v2736_v53  ;;  %v2625_v33 = vmul.f32 0.6931472, %v3380_v35  ;;  %2572 = vadd.xlane.f32.xlu1 %v2455_v48 }
 0x27b   :  { %3391 = vpow2.f32 %v2388_v58 }
 0x27c   :  { %v2390_v26 = vmul.f32 1.442695, %v4824_v14  ;;  %v3382_v43 = vpop.eup %3381  ;;  %v2737_v25 = vsub.f32 %v5114_v15, %v2625_v33  ;;  %v5116_v33 = vld [vmem:[#allocation9_spill] sm:$0xff] }
 0x27d   :  { %v2201_v13 = vpop.xlane.xlu1 %2200  ;;  %v3384_v47 = vpop.eup %3383  ;;  %v2456_v36 = vsel %vm2017_vm0, %v3382_v43, 0.0 }
 0x27e   :  { %3393 = vpow2.f32 %v2390_v26  ;;  %v4834_v16 = vsub.f32 %v4520_v11, %v2201_v13  ;;  %2801 = vst [vmem:[%s5071_s3 + $0x78] sm:$0xff] %v2737_v25  ;;  %v2627_v3 = vmul.f32 0.6931472, %v3384_v47  ;;  %2574 = vadd.xlane.f32.xlu0 %v2456_v36 }
 0x280   :  { %v2392_v44 = vmul.f32 1.442695, %v4834_v16  ;;  %v3386_v21 = vpop.eup %3385  ;;  %v2738_v29 = vsub.f32 %v5115_v38, %v2627_v3 }
 0x281   :  { %v2203_v53 = vpop.xlane.xlu0 %2202  ;;  %v3388_v46 = vpop.eup %3387  ;;  %v2457_v35 = vsel %vm2017_vm0, %v3386_v21, 0.0 }
 0x282   :  { %3395 = vpow2.f32 %v2392_v44  ;;  %v4844_v11 = vsub.f32 %v4532_v40, %v2203_v53  ;;  %2802 = vst [vmem:[%s5071_s3 + $0x80] sm:$0xff] %v2738_v29  ;;  %v2629_v58 = vmul.f32 0.6931472, %v3388_v46  ;;  %2576 = vadd.xlane.f32.xlu1 %v2457_v35 }
 0x284   :  { %v2394_v12 = vmul.f32 1.442695, %v4844_v11  ;;  %v3390_v48 = vpop.eup %3389  ;;  %v2739_v26 = vsub.f32 %v5116_v33, %v2629_v58 }
 0x285   :  { %v2205_v43 = vpop.xlane.xlu1 %2204  ;;  %v2458_v40 = vsel %vm2017_vm0, %v3390_v48, 0.0 }
 0x286   :  { %3397 = vpow2.f32 %v2394_v12  ;;  %v4854_v15 = vsub.f32 %v4545_v51, %v2205_v43  ;;  %2803 = vst [vmem:[%s5071_s3 + $0x88] sm:$0xff] %v2739_v26  ;;  %2578 = vadd.xlane.f32.xlu0 %v2458_v40 }
 0x288   :  { %v2396_v25 = vmul.f32 1.442695, %v4854_v15  ;;  %v3392_v13 = vpop.eup %3391 }
 0x289   :  { %v2207_v47 = vpop.xlane.xlu0 %2206  ;;  %v2459_v51 = vsel %vm2017_vm0, %v3392_v13, 0.0 }
 0x28a   :  { %3399 = vpow2.f32 %v2396_v25  ;;  %v4863_v36 = vsub.f32 %v4559_v60, %v2207_v47  ;;  %2580 = vadd.xlane.f32.xlu1 %v2459_v51 }
 0x28b   :  { %v3394_v3 = vpop.eup %3393 }
 0x28c   :  { %v2398_v44 = vmul.f32 1.442695, %v4863_v36  ;;  %v2460_v21 = vsel %vm2017_vm0, %v3394_v3, 0.0 }
 0x28d   :  { %2582 = vadd.xlane.f32.xlu0 %v2460_v21  ;;  %v2503_v38 = vpop.xlane.xlu0 %2502  ;;  %v2209_v29 = vpop.xlane.xlu1 %2208 }
 0x28e   :  { %3401 = vpow2.f32 %v2398_v44  ;;  %v4871_v53 = vsub.f32 %v4570_v8, %v2209_v29 }
 0x28f   :  { %v3396_v46 = vpop.eup %3395  ;;  %3403 = vlog2.f32 %v2503_v38 }
 0x290   :  { %v2400_v60 = vmul.f32 1.442695, %v4871_v53  ;;  %v2461_v35 = vsel %vm2017_vm0, %v3396_v46, 0.0  ;;  %v5117_v46 = vld [vmem:[#allocation14_spill] sm:$0xff] }
 0x291   :  { %v2507_v58 = vpop.xlane.xlu0 %2506  ;;  %2584 = vadd.xlane.f32.xlu1 %v2461_v35  ;;  %v2505_v12 = vpop.xlane.xlu1 %2504 }
 0x292   :  { %3405 = vpow2.f32 %v2400_v60 }
 0x293   :  { %v3398_v48 = vpop.eup %3397  ;;  %3407 = vlog2.f32 %v2507_v58 }
 0x294   :  { %3409 = vlog2.f32 %v2505_v12  ;;  %v2462_v33 = vsel %vm2017_vm0, %v3398_v48, 0.0 }
 0x295   :  { %2586 = vadd.xlane.f32.xlu0 %v2462_v33  ;;  %v2511_v8 = vpop.xlane.xlu0 %2510  ;;  %v2509_v26 = vpop.xlane.xlu1 %2508 }
 0x296   :  { %3411 = vlog2.f32 %v2511_v8 }
 0x297   :  { %v3400_v43 = vpop.eup %3399  ;;  %3413 = vlog2.f32 %v2509_v26 }
 0x298   :  { %v2463_v40 = vsel %vm2017_vm0, %v3400_v43, 0.0 }
 0x299   :  { %v2515_v25 = vpop.xlane.xlu0 %2514  ;;  %2588 = vadd.xlane.f32.xlu1 %v2463_v40  ;;  %v2513_v13 = vpop.xlane.xlu1 %2512 }
 0x29a   :  { %3415 = vlog2.f32 %v2515_v25 }
 0x29b   :  { %v3402_v47 = vpop.eup %3401  ;;  %3417 = vlog2.f32 %v2513_v13  ;;  %v5118_v13 = vld [vmem:[#allocation16_spill] sm:$0xff] }
 0x29c   :  { %v3404_v51 = vpop.eup %3403  ;;  %v2464_v3 = vsel %vm2017_vm0, %v3402_v47, 0.0 }
 0x29d   :  { %v2631_v44 = vmul.f32 0.6931472, %v3404_v51  ;;  %2590 = vadd.xlane.f32.xlu0 %v2464_v3  ;;  %v2519_v21 = vpop.xlane.xlu0 %2518  ;;  %v2517_v38 = vpop.xlane.xlu1 %2516 }
 0x29e   :  { %3419 = vlog2.f32 %v2519_v21 }
 0x29f   :  { %v3406_v29 = vpop.eup %3405  ;;  %v2740_v60 = vsub.f32 %v5117_v46, %v2631_v44  ;;  %3421 = vlog2.f32 %v2517_v38  ;;  %v5119_v38 = vld [vmem:[#allocation17_spill] sm:$0xff] }
 0x2a0   :  { %v3408_v35 = vpop.eup %3407  ;;  %v2465_v58 = vsel %vm2017_vm0, %v3406_v29, 0.0 }
 0x2a1   :  { %v3410_v12 = vpop.eup %3409  ;;  %2804 = vst [vmem:[%s5071_s3 + $0x90] sm:$0xff] %v2740_v60  ;;  %v2635_v48 = vmul.f32 0.6931472, %v3408_v35  ;;  %v2523_v33 = vpop.xlane.xlu0 %2522  ;;  %2592 = vadd.xlane.f32.xlu1 %v2465_v58 }
 0x2a2   :  { %v2521_v8 = vpop.xlane.xlu1 %2520  ;;  %v2633_v26 = vmul.f32 0.6931472, %v3410_v12  ;;  %3423 = vlog2.f32 %v2523_v33 }
 0x2a3   :  { %v3412_v43 = vpop.eup %3411  ;;  %v2742_v40 = vsub.f32 %v4511_v32, %v2635_v48  ;;  %3425 = vlog2.f32 %v2521_v8 }
 0x2a4   :  { %v3414_v25 = vpop.eup %3413  ;;  %v2741_v47 = vsub.f32 %v5118_v13, %v2633_v26  ;;  %v2639_v10 = vmul.f32 0.6931472, %v3412_v43 }
 0x2a5   :  { %2806 = vst [vmem:[%s5071_s3 + $0xa0] sm:$0xff] %v2742_v40  ;;  %v2637_v51 = vmul.f32 0.6931472, %v3414_v25 }
 0x2a6   :  { %v2525_v3 = vpop.xlane.xlu1 %2524  ;;  %2805 = vst [vmem:[%s5071_s3 + $0x98] sm:$0xff] %v2741_v47  ;;  %v2744_v44 = vsub.f32 %v4524_v20, %v2639_v10  ;;  %v2527_v21 = vpop.xlane.xlu0 %2526 }
 0x2a7   :  { %3427 = vlog2.f32 %v2525_v3  ;;  %v3416_v32 = vpop.eup %3415  ;;  %v2743_v29 = vsub.f32 %v5119_v38, %v2637_v51 }
 0x2a8   :  { %3429 = vlog2.f32 %v2527_v21  ;;  %v3418_v46 = vpop.eup %3417  ;;  %2808 = vst [vmem:[%s5071_s3 + $0xb0] sm:$0xff] %v2744_v44  ;;  %v2643_v60 = vmul.f32 0.6931472, %v3416_v32 }
 0x2a9   :  { %2807 = vst [vmem:[%s5071_s3 + $0xa8] sm:$0xff] %v2743_v29  ;;  %v2641_v35 = vmul.f32 0.6931472, %v3418_v46 }
 0x2aa   :  { %v2746_v58 = vsub.f32 %v4539_v50, %v2643_v60  ;;  %v2529_v20 = vpop.xlane.xlu1 %2528 }
 0x2ab   :  { %v3420_v12 = vpop.eup %3419  ;;  %v2745_v48 = vsub.f32 %v4536_v56, %v2641_v35  ;;  %3431 = vlog2.f32 %v2529_v20 }
 0x2ac   :  { %v3422_v33 = vpop.eup %3421  ;;  %2810 = vst [vmem:[%s5071_s3 + $0xc0] sm:$0xff] %v2746_v58  ;;  %v2647_v8 = vmul.f32 0.6931472, %v3420_v12 }
 0x2ad   :  { %2809 = vst [vmem:[%s5071_s3 + $0xb8] sm:$0xff] %v2745_v48  ;;  %v2645_v26 = vmul.f32 0.6931472, %v3422_v33 }
 0x2ae   :  { %v2748_v43 = vsub.f32 %v4553_v42, %v2647_v8  ;;  %v2531_v40 = vpop.xlane.xlu0 %2530 }
 0x2af   :  { %v3424_v50 = vpop.eup %3423  ;;  %v2747_v25 = vsub.f32 %v4549_v61, %v2645_v26  ;;  %3433 = vlog2.f32 %v2531_v40 }
 0x2b0   :  { %v3426_v56 = vpop.eup %3425  ;;  %2812 = vst [vmem:[%s5071_s3 + $0xd0] sm:$0xff] %v2748_v43  ;;  %v2651_v13 = vmul.f32 0.6931472, %v3424_v50 }
 0x2b1   :  { %2811 = vst [vmem:[%s5071_s3 + $0xc8] sm:$0xff] %v2747_v25  ;;  %v2649_v47 = vmul.f32 0.6931472, %v3426_v56 }
 0x2b2   :  { %v2750_v10 = vsub.f32 %v4574_v55, %v2651_v13  ;;  %v2533_v51 = vpop.xlane.xlu1 %2532 }
 0x2b3   :  { %v2749_v3 = vsub.f32 %v4563_v54, %v2649_v47  ;;  %3435 = vlog2.f32 %v2533_v51 }
 0x2b4   :  { %v3428_v42 = vpop.eup %3427  ;;  %2814 = vst [vmem:[%s5071_s3 + $0xe0] sm:$0xff] %v2750_v10 }
 0x2b5   :  { %v3430_v61 = vpop.eup %3429  ;;  %v2653_v44 = vmul.f32 0.6931472, %v3428_v42  ;;  %2813 = vst [vmem:[%s5071_s3 + $0xd8] sm:$0xff] %v2749_v3 }
 0x2b6   :  { %v2655_v21 = vmul.f32 0.6931472, %v3430_v61  ;;  %v2535_v38 = vpop.xlane.xlu0 %2534 }
 0x2b7   :  { %v2751_v32 = vsub.f32 %v4583_v45, %v2653_v44  ;;  %3437 = vlog2.f32 %v2535_v38 }
 0x2b8   :  { %v2752_v55 = vsub.f32 %v4591_v4, %v2655_v21  ;;  %v3432_v29 = vpop.eup %3431 }
 0x2b9   :  { %2815 = vst [vmem:[%s5071_s3 + $0xe8] sm:$0xff] %v2751_v32  ;;  %v2657_v54 = vmul.f32 0.6931472, %v3432_v29 }
 0x2ba   :  { %2816 = vst [vmem:[%s5071_s3 + $0xf0] sm:$0xff] %v2752_v55  ;;  %v2537_v46 = vpop.xlane.xlu1 %2536 }
 0x2bb   :  { %v2753_v60 = vsub.f32 %v4599_v59, %v2657_v54  ;;  %3439 = vlog2.f32 %v2537_v46 }
 0x2bc   :  { %v3434_v35 = vpop.eup %3433 }
 0x2bd   :  { %2817 = vst [vmem:[%s5071_s3 + $0xf8] sm:$0xff] %v2753_v60  ;;  %v2659_v45 = vmul.f32 0.6931472, %v3434_v35 }
 0x2be   :  { %v2539_v4 = vpop.xlane.xlu0 %2538 }
 0x2bf   :  { %v2754_v58 = vsub.f32 %v4607_v27, %v2659_v45  ;;  %3441 = vlog2.f32 %v2539_v4 }
 0x2c0   :  { %v3436_v20 = vpop.eup %3435 }
 0x2c1   :  { %2818 = vst [vmem:[%s5071_s3 + $0x100] sm:$0xff] %v2754_v58  ;;  %v2661_v12 = vmul.f32 0.6931472, %v3436_v20 }
 0x2c2   :  { %v2541_v48 = vpop.xlane.xlu1 %2540 }
 0x2c3   :  { %v2755_v59 = vsub.f32 %v4615_v0, %v2661_v12  ;;  %3443 = vlog2.f32 %v2541_v48 }
 0x2c4   :  { %v3438_v33 = vpop.eup %3437 }
 0x2c5   :  { %2819 = vst [vmem:[%s5071_s3 + $0x108] sm:$0xff] %v2755_v59  ;;  %v2663_v8 = vmul.f32 0.6931472, %v3438_v33 }
 0x2c6   :  { %v2543_v26 = vpop.xlane.xlu0 %2542 }
 0x2c7   :  { %v2756_v27 = vsub.f32 %v4623_v31, %v2663_v8  ;;  %3445 = vlog2.f32 %v2543_v26 }
 0x2c8   :  { %v3440_v43 = vpop.eup %3439 }
 0x2c9   :  { %2820 = vst [vmem:[%s5071_s3 + $0x110] sm:$0xff] %v2756_v27  ;;  %v2665_v40 = vmul.f32 0.6931472, %v3440_v43 }
 0x2ca   :  { %v2545_v50 = vpop.xlane.xlu1 %2544 }
 0x2cb   :  { %v2757_v0 = vsub.f32 %v4631_v57, %v2665_v40  ;;  %3447 = vlog2.f32 %v2545_v50 }
 0x2cc   :  { %v3442_v25 = vpop.eup %3441 }
 0x2cd   :  { %2821 = vst [vmem:[%s5071_s3 + $0x118] sm:$0xff] %v2757_v0  ;;  %v2667_v56 = vmul.f32 0.6931472, %v3442_v25 }
 0x2cf   :  { %v2758_v13 = vsub.f32 %v4637_v34, %v2667_v56  ;;  %v2547_v47 = vpop.xlane.xlu0 %2546 }
 0x2d0   :  { %v3444_v31 = vpop.eup %3443  ;;  %3449 = vlog2.f32 %v2547_v47 }
 0x2d1   :  { %2822 = vst [vmem:[%s5071_s3 + $0x120] sm:$0xff] %v2758_v13  ;;  %v2669_v10 = vmul.f32 0.6931472, %v3444_v31 }
 0x2d3   :  { %v2759_v51 = vsub.f32 %v4643_v5, %v2669_v10  ;;  %v2549_v42 = vpop.xlane.xlu1 %2548 }
 0x2d4   :  { %v3446_v57 = vpop.eup %3445  ;;  %3451 = vlog2.f32 %v2549_v42 }
 0x2d5   :  { %2823 = vst [vmem:[%s5071_s3 + $0x128] sm:$0xff] %v2759_v51  ;;  %v2671_v3 = vmul.f32 0.6931472, %v3446_v57 }
 0x2d7   :  { %v2760_v34 = vsub.f32 %v4649_v52, %v2671_v3  ;;  %v2551_v44 = vpop.xlane.xlu0 %2550 }
 0x2d8   :  { %v3448_v61 = vpop.eup %3447  ;;  %3453 = vlog2.f32 %v2551_v44 }
 0x2d9   :  { %2824 = vst [vmem:[%s5071_s3 + $0x130] sm:$0xff] %v2760_v34  ;;  %v2673_v21 = vmul.f32 0.6931472, %v3448_v61 }
 0x2db   :  { %v2761_v5 = vsub.f32 %v4655_v1, %v2673_v21  ;;  %v2553_v32 = vpop.xlane.xlu1 %2552 }
 0x2dc   :  { %3455 = vlog2.f32 %v2553_v32 }
 0x2dd   :  { %2825 = vst [vmem:[%s5071_s3 + $0x138] sm:$0xff] %v2761_v5  ;;  %v3450_v38 = vpop.eup %3449 }
 0x2de   :  { %v2675_v55 = vmul.f32 0.6931472, %v3450_v38 }
 0x2df   :  { %v2555_v29 = vpop.xlane.xlu0 %2554 }
 0x2e0   :  { %v2762_v52 = vsub.f32 %v4661_v49, %v2675_v55  ;;  %3457 = vlog2.f32 %v2555_v29 }
 0x2e1   :  { %v3452_v54 = vpop.eup %3451 }
 0x2e2   :  { %2826 = vst [vmem:[%s5071_s3 + $0x140] sm:$0xff] %v2762_v52  ;;  %v2677_v46 = vmul.f32 0.6931472, %v3452_v54 }
 0x2e3   :  { %v2557_v60 = vpop.xlane.xlu1 %2556 }
 0x2e4   :  { %v2763_v1 = vsub.f32 %v4667_v62, %v2677_v46  ;;  %3459 = vlog2.f32 %v2557_v60 }
 0x2e5   :  { %v3454_v35 = vpop.eup %3453 }
 0x2e6   :  { %2827 = vst [vmem:[%s5071_s3 + $0x148] sm:$0xff] %v2763_v1  ;;  %v2679_v45 = vmul.f32 0.6931472, %v3454_v35 }
 0x2e7   :  { %v2559_v4 = vpop.xlane.xlu0 %2558 }
 0x2e8   :  { %v2764_v49 = vsub.f32 %v4673_v17, %v2679_v45  ;;  %3461 = vlog2.f32 %v2559_v4 }
 0x2e9   :  { %v3456_v58 = vpop.eup %3455 }
 0x2ea   :  { %2828 = vst [vmem:[%s5071_s3 + $0x150] sm:$0xff] %v2764_v49  ;;  %v2681_v20 = vmul.f32 0.6931472, %v3456_v58 }
 0x2eb   :  { %v2561_v12 = vpop.xlane.xlu1 %2560 }
 0x2ec   :  { %v2765_v62 = vsub.f32 %v4680_v2, %v2681_v20  ;;  %3463 = vlog2.f32 %v2561_v12 }
 0x2ed   :  { %v3458_v48 = vpop.eup %3457 }
 0x2ee   :  { %2829 = vst [vmem:[%s5071_s3 + $0x158] sm:$0xff] %v2765_v62  ;;  %v2683_v59 = vmul.f32 0.6931472, %v3458_v48 }
 0x2ef   :  { %v2563_v33 = vpop.xlane.xlu0 %2562 }
 0x2f0   :  { %v2766_v17 = vsub.f32 %v4690_v22, %v2683_v59  ;;  %3465 = vlog2.f32 %v2563_v33 }
 0x2f1   :  { %v3460_v8 = vpop.eup %3459 }
 0x2f2   :  { %2830 = vst [vmem:[%s5071_s3 + $0x160] sm:$0xff] %v2766_v17  ;;  %v2685_v26 = vmul.f32 0.6931472, %v3460_v8 }
 0x2f3   :  { %v2565_v27 = vpop.xlane.xlu1 %2564 }
 0x2f4   :  { %v2767_v2 = vsub.f32 %v4699_v23, %v2685_v26  ;;  %3467 = vlog2.f32 %v2565_v27 }
 0x2f5   :  { %v3462_v43 = vpop.eup %3461 }
 0x2f6   :  { %2831 = vst [vmem:[%s5071_s3 + $0x168] sm:$0xff] %v2767_v2  ;;  %v2687_v40 = vmul.f32 0.6931472, %v3462_v43 }
 0x2f7   :  { %v2567_v50 = vpop.xlane.xlu0 %2566 }
 0x2f8   :  { %v2768_v22 = vsub.f32 %v4709_v6, %v2687_v40  ;;  %3469 = vlog2.f32 %v2567_v50 }
 0x2f9   :  { %v3464_v0 = vpop.eup %3463 }
 0x2fa   :  { %2832 = vst [vmem:[%s5071_s3 + $0x170] sm:$0xff] %v2768_v22  ;;  %v2689_v25 = vmul.f32 0.6931472, %v3464_v0 }
 0x2fb   :  { %v2569_v56 = vpop.xlane.xlu1 %2568 }
 0x2fc   :  { %v2769_v23 = vsub.f32 %v4719_v39, %v2689_v25  ;;  %3471 = vlog2.f32 %v2569_v56 }
 0x2fd   :  { %v3466_v13 = vpop.eup %3465 }
 0x2fe   :  { %2833 = vst [vmem:[%s5071_s3 + $0x178] sm:$0xff] %v2769_v23  ;;  %v2691_v31 = vmul.f32 0.6931472, %v3466_v13 }
 0x2ff   :  { %v2571_v47 = vpop.xlane.xlu0 %2570 }
 0x300   :  { %v2770_v6 = vsub.f32 %v4729_v63, %v2691_v31  ;;  %3473 = vlog2.f32 %v2571_v47 }
 0x301   :  { %v3468_v10 = vpop.eup %3467 }
 0x302   :  { %2834 = vst [vmem:[%s5071_s3 + $0x180] sm:$0xff] %v2770_v6  ;;  %v2693_v51 = vmul.f32 0.6931472, %v3468_v10 }
 0x303   :  { %v2573_v57 = vpop.xlane.xlu1 %2572 }
 0x304   :  { %v2771_v39 = vsub.f32 %v4739_v9, %v2693_v51  ;;  %3475 = vlog2.f32 %v2573_v57 }
 0x305   :  { %v3470_v42 = vpop.eup %3469 }
 0x306   :  { %2835 = vst [vmem:[%s5071_s3 + $0x188] sm:$0xff] %v2771_v39  ;;  %v2695_v3 = vmul.f32 0.6931472, %v3470_v42 }
 0x307   :  { %v2575_v34 = vpop.xlane.xlu0 %2574 }
 0x308   :  { %v2772_v63 = vsub.f32 %v4749_v19, %v2695_v3  ;;  %3477 = vlog2.f32 %v2575_v34 }
 0x309   :  { %v3472_v61 = vpop.eup %3471 }
 0x30a   :  { %2836 = vst [vmem:[%s5071_s3 + $0x190] sm:$0xff] %v2772_v63  ;;  %v2697_v44 = vmul.f32 0.6931472, %v3472_v61 }
 0x30b   :  { %v2577_v21 = vpop.xlane.xlu1 %2576 }
 0x30c   :  { %v2773_v9 = vsub.f32 %v4759_v28, %v2697_v44  ;;  %3479 = vlog2.f32 %v2577_v21 }
 0x30d   :  { %v3474_v5 = vpop.eup %3473 }
 0x30e   :  { %2837 = vst [vmem:[%s5071_s3 + $0x198] sm:$0xff] %v2773_v9  ;;  %v2699_v32 = vmul.f32 0.6931472, %v3474_v5 }
 0x30f   :  { %v2579_v38 = vpop.xlane.xlu0 %2578 }
 0x310   :  { %v2774_v19 = vsub.f32 %v4769_v37, %v2699_v32  ;;  %3481 = vlog2.f32 %v2579_v38 }
 0x311   :  { %v3476_v55 = vpop.eup %3475 }
 0x312   :  { %2838 = vst [vmem:[%s5071_s3 + $0x1a0] sm:$0xff] %v2774_v19  ;;  %v2701_v29 = vmul.f32 0.6931472, %v3476_v55 }
 0x313   :  { %v2581_v52 = vpop.xlane.xlu1 %2580 }
 0x314   :  { %v2775_v28 = vsub.f32 %v4779_v24, %v2701_v29  ;;  %3483 = vlog2.f32 %v2581_v52 }
 0x315   :  { %v3478_v54 = vpop.eup %3477 }
 0x316   :  { %v2583_v46 = vpop.xlane.xlu0 %2582  ;;  %2839 = vst [vmem:[%s5071_s3 + $0x1a8] sm:$0xff] %v2775_v28  ;;  %v2703_v60 = vmul.f32 0.6931472, %v3478_v54 }
 0x317   :  { %3485 = vlog2.f32 %v2583_v46 }
 0x318   :  { %v2776_v37 = vsub.f32 %v4789_v7, %v2703_v60 }
 0x319   :  { %v3480_v1 = vpop.eup %3479 }
 0x31a   :  { %v2585_v35 = vpop.xlane.xlu1 %2584  ;;  %2840 = vst [vmem:[%s5071_s3 + $0x1b0] sm:$0xff] %v2776_v37  ;;  %v2705_v45 = vmul.f32 0.6931472, %v3480_v1 }
 0x31b   :  { %3487 = vlog2.f32 %v2585_v35 }
 0x31c   :  { %v2777_v24 = vsub.f32 %v4799_v18, %v2705_v45 }
 0x31d   :  { %v3482_v4 = vpop.eup %3481 }
 0x31e   :  { %v2587_v49 = vpop.xlane.xlu0 %2586  ;;  %2841 = vst [vmem:[%s5071_s3 + $0x1b8] sm:$0xff] %v2777_v24  ;;  %v2707_v58 = vmul.f32 0.6931472, %v3482_v4 }
 0x31f   :  { %3489 = vlog2.f32 %v2587_v49 }
 0x320   :  { %v2778_v7 = vsub.f32 %v4809_v30, %v2707_v58 }
 0x321   :  { %v3484_v20 = vpop.eup %3483 }
 0x322   :  { %v2589_v12 = vpop.xlane.xlu1 %2588  ;;  %2842 = vst [vmem:[%s5071_s3 + $0x1c0] sm:$0xff] %v2778_v7  ;;  %v2709_v62 = vmul.f32 0.6931472, %v3484_v20 }
 0x323   :  { %3491 = vlog2.f32 %v2589_v12 }
 0x324   :  { %v3486_v48 = vpop.eup %3485  ;;  %v2779_v18 = vsub.f32 %v4819_v41, %v2709_v62 }
 0x325   :  { %v2711_v59 = vmul.f32 0.6931472, %v3486_v48 }
 0x326   :  { %v2591_v33 = vpop.xlane.xlu0 %2590  ;;  %2843 = vst [vmem:[%s5071_s3 + $0x1c8] sm:$0xff] %v2779_v18 }
 0x327   :  { %v2780_v17 = vsub.f32 %v4824_v14, %v2711_v59  ;;  %3493 = vlog2.f32 %v2591_v33 }
 0x328   :  { %v3488_v30 = vpop.eup %3487 }
 0x329   :  { %2844 = vst [vmem:[%s5071_s3 + $0x1d0] sm:$0xff] %v2780_v17  ;;  %v2713_v8 = vmul.f32 0.6931472, %v3488_v30 }
 0x32a   :  { %v2593_v26 = vpop.xlane.xlu1 %2592 }
 0x32b   :  { %v2781_v27 = vsub.f32 %v4834_v16, %v2713_v8  ;;  %3495 = vlog2.f32 %v2593_v26 }
 0x32c   :  { %v3490_v41 = vpop.eup %3489 }
 0x32d   :  { %2845 = vst [vmem:[%s5071_s3 + $0x1d8] sm:$0xff] %v2781_v27  ;;  %v2715_v2 = vmul.f32 0.6931472, %v3490_v41 }
 0x32f   :  { %v2782_v43 = vsub.f32 %v4844_v11, %v2715_v2 }
 0x330   :  { %v3492_v14 = vpop.eup %3491 }
 0x331   :  { %2846 = vst [vmem:[%s5071_s3 + $0x1e0] sm:$0xff] %v2782_v43  ;;  %v2717_v40 = vmul.f32 0.6931472, %v3492_v14 }
 0x333   :  { %v2783_v50 = vsub.f32 %v4854_v15, %v2717_v40 }
 0x334   :  { %v3494_v22 = vpop.eup %3493 }
 0x335   :  { %2847 = vst [vmem:[%s5071_s3 + $0x1e8] sm:$0xff] %v2783_v50  ;;  %v2719_v16 = vmul.f32 0.6931472, %v3494_v22 }
 0x337   :  { %v2784_v0 = vsub.f32 %v4863_v36, %v2719_v16 }
 0x338   :  { %v3496_v25 = vpop.eup %3495 }
 0x339   :  { %2848 = vst [vmem:[%s5071_s3 + $0x1f0] sm:$0xff] %v2784_v0  ;;  %v2721_v11 = vmul.f32 0.6931472, %v3496_v25 }
 0x33b   :  { %v2785_v56 = vsub.f32 %v4871_v53, %v2721_v11 }
 0x33d   :  { %2849 = vst [vmem:[%s5071_s3 + $0x1f8] sm:$0xff] %v2785_v56 }

// kernel: gcn_forward_pallas.4
= control target key start
LH: loop header
LB: loop body
LE: loop exit
PB: predicated region body
PF: predicated region fallthrough
CT: control target
= control target key end

     0   :  { %v4831_v0 = vmov 0   ;;  %vm28_vm0 = vcmask 261120   ;;  %s7032_s1 = inlined_call_operand.vmem [shape: bf16[512,32], index: 1, kind: input, shape index: {}]   ;;  %s7033_s0 = inlined_call_operand.vmem [shape: bf16[512,512], index: 0, kind: input, shape index: {}]   ;;  %s7034_s2 = inlined_call_operand.vmem [shape: f32[1,32], index: 2, kind: input, shape index: {}]   ;;  %s7035_s5 = inlined_call_operand.vmem [shape: bf16[32,128], index: 5, kind: input, shape index: {}]   ;;  %s7036_s3 = inlined_call_operand.vmem [shape: f32[1,32], index: 3, kind: input, shape index: {}]   ;;  %s7037_s4 = inlined_call_operand.vmem [shape: f32[1,32], index: 4, kind: input, shape index: {}]   ;;  %s7038_s6 = inlined_call_operand.vmem [shape: bf16[512,128], index: 6, kind: output, shape index: {}]  }
   0x1   :  { %4440 = vmatprep.subr.bf16.mxu1 %v4831_v0  ;;  %v4474_v1 = vld [vmem:[%s7032_s1 + $0x38] sm:$0xff]   ;;  %1181 = vmatprep.subr.bf16.mxu0 %v4831_v0  ;;  %v4475_v2 = vld [vmem:[%s7032_s1 + $0x30] sm:$0xff]   ;;  %v4476_v3 = vld [vmem:[%s7032_s1 + $0x28] sm:$0xff]  }
   0x2   :  { %4456 = vmatpush1.bf16.msra.mxu1 %v4474_v1  ;;  %1182 = vmatpush1.bf16.msra.mxu0 %v4474_v1  ;;  %v4477_v4 = vld [vmem:[%s7032_s1 + $0x20] sm:$0xff]   ;;  %v4478_v5 = vld [vmem:[%s7032_s1 + $0x18] sm:$0xff]   ;;  %v4479_v7 = vld [vmem:[%s7032_s1 + $0x10] sm:$0xff]  }
   0x3   :  { %4441 = vmatprep.subr.bf16.mxu1 %v4831_v0  ;;  %1183 = vmatprep.subr.bf16.mxu0 %v4831_v0  ;;  %v4492_v6 = vld [vmem:[%s7033_s0 + $0x304] ss:$16 sps:$4 sm:$0xff]   ;;  %v4480_v8 = vld [vmem:[%s7032_s1 + $0x8] sm:$0xff]   ;;  %v4482_v10 = vld [vmem:[%s7032_s1 + $0x78] sm:$0xff]  }
   0x4   :  { %1405 = vmatprep.mubr.bf16.mxu1 %v4492_v6  ;;  %v4481_v9 = vld [vmem:[%s7032_s1] sm:$0xff]   ;;  %v4483_v11 = vld [vmem:[%s7032_s1 + $0x70] sm:$0xff]   ;;  %v4484_v12 = vld [vmem:[%s7032_s1 + $0x68] sm:$0xff]  }
   0x5   :  { %v4485_v13 = vld [vmem:[%s7032_s1 + $0x60] sm:$0xff]   ;;  %v4486_v15 = vld [vmem:[%s7032_s1 + $0x58] sm:$0xff]   ;;  %v4487_v16 = vld [vmem:[%s7032_s1 + $0x50] sm:$0xff]  }
   0x6   :  { %4457 = vmatpush1.bf16.msra.mxu1 %v4475_v2  ;;  %1184 = vmatpush1.bf16.msra.mxu0 %v4475_v2  ;;  %v4532_v14 = vld [vmem:[%s7033_s0 + $0x4] ss:$16 sps:$4 sm:$0xff]   ;;  %v4488_v17 = vld [vmem:[%s7032_s1 + $0x48] sm:$0xff]   ;;  %v4490_v19 = vld [vmem:[%s7033_s0 + $0x300] ss:$16 sps:$4 sm:$0xff]  }
   0x7   :  { %4442 = vmatprep.subr.bf16.mxu1 %v4831_v0  ;;  %1185 = vmatprep.subr.bf16.mxu0 %v4831_v0  ;;  %v4489_v18 = vld [vmem:[%s7032_s1 + $0x40] sm:$0xff]   ;;  %v4493_v21 = vld [vmem:[%s7032_s1 + $0xb8] sm:$0xff]   ;;  %v4494_v24 = vld [vmem:[%s7032_s1 + $0xb0] sm:$0xff]  }
   0x8   :  { %1213 = vmatprep.mubr.bf16.mxu0 %v4532_v14  ;;  %v4530_v20 = vld [vmem:[%s7033_s0] ss:$16 sps:$4 sm:$0xff]   ;;  %v4495_v22 = vld [vmem:[%s7033_s0 + $0x324] ss:$16 sps:$4 sm:$0xff]   ;;  %v4498_v26 = vld [vmem:[%s7032_s1 + $0xa8] sm:$0xff]  }
   0x9   :  { %v4536_v23 = vld [vmem:[%s7033_s0 + $0x24] ss:$16 sps:$4 sm:$0xff]   ;;  %v4497_v25 = vld [vmem:[%s7033_s0 + $0x320] ss:$16 sps:$4 sm:$0xff]   ;;  %v4503_v33 = vld [vmem:[%s7032_s1 + $0x98] sm:$0xff]  }
   0xa   :  { %4458 = vmatpush1.bf16.msra.mxu1 %v4476_v3  ;;  %1186 = vmatpush1.bf16.msra.mxu0 %v4476_v3  ;;  %v4500_v27 = vld [vmem:[%s7033_s0 + $0x344] ss:$16 sps:$4 sm:$0xff]   ;;  %v4538_v28 = vld [vmem:[%s7033_s0 + $0x20] ss:$16 sps:$4 sm:$0xff]   ;;  %v4508_v39 = vld [vmem:[%s7032_s1 + $0x88] sm:$0xff]  }
   0xb   :  { %4443 = vmatprep.subr.bf16.mxu1 %v4831_v0  ;;  %1187 = vmatprep.subr.bf16.mxu0 %v4831_v0  ;;  %v4542_v29 = vld [vmem:[%s7033_s0 + $0x44] ss:$16 sps:$4 sm:$0xff]   ;;  %v4502_v31 = vld [vmem:[%s7033_s0 + $0x340] ss:$16 sps:$4 sm:$0xff]   ;;  %v4513_v45 = vld [vmem:[%s7032_s1 + $0xf8] sm:$0xff]  }
   0xc   :  { %v4499_v30 = vld [vmem:[%s7032_s1 + $0xa0] sm:$0xff]   ;;  %v4504_v36 = vld [vmem:[%s7032_s1 + $0x90] sm:$0xff]   ;;  %v4518_v51 = vld [vmem:[%s7032_s1 + $0xe8] sm:$0xff]  }
   0xd   :  { %v4544_v32 = vld [vmem:[%s7033_s0 + $0x40] ss:$16 sps:$4 sm:$0xff]   ;;  %v4505_v34 = vld [vmem:[%s7033_s0 + $0x364] ss:$16 sps:$4 sm:$0xff]   ;;  %v4523_v57 = vld [vmem:[%s7032_s1 + $0xd8] sm:$0xff]  }
   0xe   :  { %4459 = vmatpush1.bf16.msra.mxu1 %v4477_v4  ;;  %1188 = vmatpush1.bf16.msra.mxu0 %v4477_v4  ;;  %v4548_v35 = vld [vmem:[%s7033_s0 + $0x64] ss:$16 sps:$4 sm:$0xff]   ;;  %v4507_v37 = vld [vmem:[%s7033_s0 + $0x360] ss:$16 sps:$4 sm:$0xff]   ;;  %v4528_v63 = vld [vmem:[%s7032_s1 + $0xc8] sm:$0xff]  }
   0xf   :  { %4444 = vmatprep.subr.bf16.mxu1 %v4831_v0  ;;  %1189 = vmatprep.subr.bf16.mxu0 %v4831_v0  ;;  %v4550_v38 = vld [vmem:[%s7033_s0 + $0x60] ss:$16 sps:$4 sm:$0xff]   ;;  %v4510_v40 = vld [vmem:[%s7033_s0 + $0x384] ss:$16 sps:$4 sm:$0xff]   ;;  %v4535_v1 = vld [vmem:[%s7033_s0 + $0xc] ss:$16 sps:$4 sm:$0xff]  }
  0x10   :  { %v4554_v41 = vld [vmem:[%s7033_s0 + $0x84] ss:$16 sps:$4 sm:$0xff]   ;;  %v4512_v43 = vld [vmem:[%s7033_s0 + $0x380] ss:$16 sps:$4 sm:$0xff]   ;;  %v4533_v4 = vld [vmem:[%s7033_s0 + $0x8] ss:$16 sps:$4 sm:$0xff]  }
  0x11   :  { %v4509_v42 = vld [vmem:[%s7032_s1 + $0x80] sm:$0xff]   ;;  %v4514_v48 = vld [vmem:[%s7032_s1 + $0xf0] sm:$0xff]   ;;  %v4539_v6 = vld [vmem:[%s7033_s0 + $0x2c] ss:$16 sps:$4 sm:$0xff]  }
  0x12   :  { %4460 = vmatpush1.bf16.msra.mxu1 %v4478_v5  ;;  %1190 = vmatpush1.bf16.msra.mxu0 %v4478_v5  ;;  %v4556_v44 = vld [vmem:[%s7033_s0 + $0x80] ss:$16 sps:$4 sm:$0xff]   ;;  %v4515_v46 = vld [vmem:[%s7033_s0 + $0x3a4] ss:$16 sps:$4 sm:$0xff]  }
  0x13   :  { %4445 = vmatprep.subr.bf16.mxu1 %v4831_v0  ;;  %1191 = vmatprep.subr.bf16.mxu0 %v4831_v0  ;;  %v4560_v47 = vld [vmem:[%s7033_s0 + $0xa4] ss:$16 sps:$4 sm:$0xff]   ;;  %v4517_v49 = vld [vmem:[%s7033_s0 + $0x3a0] ss:$16 sps:$4 sm:$0xff]  }
  0x14   :  { %v4562_v50 = vld [vmem:[%s7033_s0 + $0xa0] ss:$16 sps:$4 sm:$0xff]   ;;  %v4520_v52 = vld [vmem:[%s7033_s0 + $0x3c4] ss:$16 sps:$4 sm:$0xff]  }
  0x15   :  { %v4566_v53 = vld [vmem:[%s7033_s0 + $0xc4] ss:$16 sps:$4 sm:$0xff]   ;;  %v4522_v55 = vld [vmem:[%s7033_s0 + $0x3c0] ss:$16 sps:$4 sm:$0xff]  }
  0x16   :  { %4461 = vmatpush1.bf16.msra.mxu1 %v4479_v7  ;;  %1192 = vmatpush1.bf16.msra.mxu0 %v4479_v7  ;;  %v4519_v54 = vld [vmem:[%s7032_s1 + $0xe0] sm:$0xff]   ;;  %v4524_v60 = vld [vmem:[%s7032_s1 + $0xd0] sm:$0xff]  }
  0x17   :  { %4446 = vmatprep.subr.bf16.mxu1 %v4831_v0  ;;  %1193 = vmatprep.subr.bf16.mxu0 %v4831_v0  ;;  %v4568_v56 = vld [vmem:[%s7033_s0 + $0xc0] ss:$16 sps:$4 sm:$0xff]   ;;  %v4525_v58 = vld [vmem:[%s7033_s0 + $0x3e4] ss:$16 sps:$4 sm:$0xff]  }
  0x18   :  { %v4572_v59 = vld [vmem:[%s7033_s0 + $0xe4] ss:$16 sps:$4 sm:$0xff]   ;;  %v4527_v61 = vld [vmem:[%s7033_s0 + $0x3e0] ss:$16 sps:$4 sm:$0xff]  }
  0x19   :  { %v4574_v62 = vld [vmem:[%s7033_s0 + $0xe0] ss:$16 sps:$4 sm:$0xff]   ;;  %v4578_v2 = vld [vmem:[%s7033_s0 + $0x104] ss:$16 sps:$4 sm:$0xff]  }
  0x1a   :  { %4462 = vmatpush1.bf16.msra.mxu1 %v4480_v8  ;;  %1194 = vmatpush1.bf16.msra.mxu0 %v4480_v8  ;;  %v4529_v3 = vld [vmem:[%s7032_s1 + $0xc0] sm:$0xff]  }
  0x1b   :  { %4447 = vmatprep.subr.bf16.mxu1 %v4831_v0  ;;  %1195 = vmatprep.subr.bf16.mxu0 %v4831_v0  ;;  %v4580_v5 = vld [vmem:[%s7033_s0 + $0x100] ss:$16 sps:$4 sm:$0xff]   ;;  %v4584_v7 = vld [vmem:[%s7033_s0 + $0x124] ss:$16 sps:$4 sm:$0xff]  }
  0x1c   :  { %v4586_v8 = vld [vmem:[%s7033_s0 + $0x120] ss:$16 sps:$4 sm:$0xff]   ;;  %v4596_v14 = vld [vmem:[%s7033_s0 + $0x164] ss:$16 sps:$4 sm:$0xff]  }
  0x1e   :  { %4463 = vmatpush1.bf16.msra.mxu1 %v4481_v9  ;;  %1196 = vmatpush1.bf16.msra.mxu0 %v4481_v9  ;;  %v4545_v9 = vld [vmem:[%s7033_s0 + $0x4c] ss:$16 sps:$4 sm:$0xff]  }
  0x1f   :  { %4448 = vmatprep.subr.bf16.mxu1 %v4831_v0  ;;  %1197 = vmatprep.subr.bf16.mxu0 %v4831_v0 }
  0x22   :  { %4464 = vmatpush2.bf16.msra.mxu1 %v4482_v10  ;;  %1198 = vmatpush2.bf16.msra.mxu0 %v4482_v10  ;;  %v4590_v10 = vld [vmem:[%s7033_s0 + $0x144] ss:$16 sps:$4 sm:$0xff]  }
  0x23   :  { %4449 = vmatprep.subr.bf16.mxu1 %v4831_v0  ;;  %1199 = vmatprep.subr.bf16.mxu0 %v4831_v0 }
  0x26   :  { %4465 = vmatpush2.bf16.msra.mxu1 %v4483_v11  ;;  %1200 = vmatpush2.bf16.msra.mxu0 %v4483_v11  ;;  %v4547_v11 = vld [vmem:[%s7033_s0 + $0x48] ss:$16 sps:$4 sm:$0xff]  }
  0x27   :  { %4450 = vmatprep.subr.bf16.mxu1 %v4831_v0  ;;  %1201 = vmatprep.subr.bf16.mxu0 %v4831_v0 }
  0x2a   :  { %4466 = vmatpush2.bf16.msra.mxu1 %v4484_v12  ;;  %1202 = vmatpush2.bf16.msra.mxu0 %v4484_v12  ;;  %v4592_v12 = vld [vmem:[%s7033_s0 + $0x140] ss:$16 sps:$4 sm:$0xff]  }
  0x2b   :  { %4451 = vmatprep.subr.bf16.mxu1 %v4831_v0  ;;  %1203 = vmatprep.subr.bf16.mxu0 %v4831_v0 }
  0x2e   :  { %4467 = vmatpush2.bf16.msra.mxu1 %v4485_v13  ;;  %1204 = vmatpush2.bf16.msra.mxu0 %v4485_v13  ;;  %v4551_v13 = vld [vmem:[%s7033_s0 + $0x6c] ss:$16 sps:$4 sm:$0xff]  }
  0x2f   :  { %4452 = vmatprep.subr.bf16.mxu1 %v4831_v0  ;;  %1205 = vmatprep.subr.bf16.mxu0 %v4831_v0 }
  0x32   :  { %4468 = vmatpush2.bf16.msra.mxu1 %v4486_v15  ;;  %1206 = vmatpush2.bf16.msra.mxu0 %v4486_v15  ;;  %v4553_v15 = vld [vmem:[%s7033_s0 + $0x68] ss:$16 sps:$4 sm:$0xff]  }
  0x33   :  { %4453 = vmatprep.subr.bf16.mxu1 %v4831_v0  ;;  %1207 = vmatprep.subr.bf16.mxu0 %v4831_v0 }
  0x36   :  { %4469 = vmatpush2.bf16.msra.mxu1 %v4487_v16  ;;  %1208 = vmatpush2.bf16.msra.mxu0 %v4487_v16  ;;  %v4598_v16 = vld [vmem:[%s7033_s0 + $0x160] ss:$16 sps:$4 sm:$0xff]  }
  0x37   :  { %4454 = vmatprep.subr.bf16.mxu1 %v4831_v0  ;;  %1209 = vmatprep.subr.bf16.mxu0 %v4831_v0 }
  0x3a   :  { %4470 = vmatpush2.bf16.msra.mxu1 %v4488_v17  ;;  %1210 = vmatpush2.bf16.msra.mxu0 %v4488_v17  ;;  %v4557_v17 = vld [vmem:[%s7033_s0 + $0x8c] ss:$16 sps:$4 sm:$0xff]  }
  0x3b   :  { %4455 = vmatprep.subr.bf16.mxu1 %v4831_v0  ;;  %1211 = vmatprep.subr.bf16.mxu0 %v4831_v0 }
  0x3e   :  { %4471 = vmatpush2.bf16.msra.mxu1 %v4489_v18  ;;  %1212 = vmatpush2.bf16.msra.mxu0 %v4489_v18  ;;  %v4602_v18 = vld [vmem:[%s7033_s0 + $0x184] ss:$16 sps:$4 sm:$0xff]  }
  0x3f   :  { %1470 = vmatprep.subr.bf16.mxu1 %v4831_v0 }
  0x41   :  { %1406 = vmatmul.mubr.bf16.vlgmr.msra.gmra.mxu1 %v4490_v19  ;;  %1214 = vmatmul.mubr.bf16.vlgmr.msra.gmra.mxu0 %v4530_v20  ;;  %v4559_v19 = vld [vmem:[%s7033_s0 + $0x88] ss:$16 sps:$4 sm:$0xff]   ;;  %v4604_v20 = vld [vmem:[%s7033_s0 + $0x180] ss:$16 sps:$4 sm:$0xff]  }
  0x42   :  { %1471 = vmatpush1.bf16.msra.mxu1 %v4493_v21  ;;  %1413 = vmatprep.mubr.bf16.mxu1 %v4495_v22  ;;  %v4563_v21 = vld [vmem:[%s7033_s0 + $0xac] ss:$16 sps:$4 sm:$0xff]   ;;  %v4608_v22 = vld [vmem:[%s7033_s0 + $0x1a4] ss:$16 sps:$4 sm:$0xff]  }
  0x43   :  { %1472 = vmatprep.subr.bf16.mxu1 %v4831_v0  ;;  %1221 = vmatprep.mubr.bf16.mxu0 %v4536_v23  ;;  %v4565_v23 = vld [vmem:[%s7033_s0 + $0xa8] ss:$16 sps:$4 sm:$0xff]  }
  0x46   :  { %1473 = vmatpush1.bf16.msra.mxu1 %v4494_v24  ;;  %v4610_v24 = vld [vmem:[%s7033_s0 + $0x1a0] ss:$16 sps:$4 sm:$0xff]  }
  0x47   :  { %1474 = vmatprep.subr.bf16.mxu1 %v4831_v0 }
  0x49   :  { %1414 = vmatmul.mubr.bf16.gmra.mxu1 %v4497_v25  ;;  %1222 = vmatmul.mubr.bf16.gmra.mxu0 %v4538_v28  ;;  %v4569_v25 = vld [vmem:[%s7033_s0 + $0xcc] ss:$16 sps:$4 sm:$0xff]   ;;  %v4616_v28 = vld [vmem:[%s7033_s0 + $0x1c0] ss:$16 sps:$4 sm:$0xff]  }
  0x4a   :  { %1475 = vmatpush1.bf16.msra.mxu1 %v4498_v26  ;;  %1421 = vmatprep.mubr.bf16.mxu1 %v4500_v27  ;;  %v4614_v26 = vld [vmem:[%s7033_s0 + $0x1c4] ss:$16 sps:$4 sm:$0xff]   ;;  %v4571_v27 = vld [vmem:[%s7033_s0 + $0xc8] ss:$16 sps:$4 sm:$0xff]  }
  0x4b   :  { %1476 = vmatprep.subr.bf16.mxu1 %v4831_v0  ;;  %1229 = vmatprep.mubr.bf16.mxu0 %v4542_v29  ;;  %v4575_v29 = vld [vmem:[%s7033_s0 + $0xec] ss:$16 sps:$4 sm:$0xff]  }
  0x4e   :  { %1477 = vmatpush1.bf16.msra.mxu1 %v4499_v30  ;;  %v4620_v30 = vld [vmem:[%s7033_s0 + $0x1e4] ss:$16 sps:$4 sm:$0xff]  }
  0x4f   :  { %1478 = vmatprep.subr.bf16.mxu1 %v4831_v0 }
  0x51   :  { %1422 = vmatmul.mubr.bf16.gmra.mxu1 %v4502_v31  ;;  %1230 = vmatmul.mubr.bf16.gmra.mxu0 %v4544_v32  ;;  %v4577_v31 = vld [vmem:[%s7033_s0 + $0xe8] ss:$16 sps:$4 sm:$0xff]   ;;  %v4622_v32 = vld [vmem:[%s7033_s0 + $0x1e0] ss:$16 sps:$4 sm:$0xff]  }
  0x52   :  { %1479 = vmatpush1.bf16.msra.mxu1 %v4503_v33  ;;  %1429 = vmatprep.mubr.bf16.mxu1 %v4505_v34  ;;  %v4581_v33 = vld [vmem:[%s7033_s0 + $0x10c] ss:$16 sps:$4 sm:$0xff]   ;;  %v4626_v34 = vld [vmem:[%s7033_s0 + $0x204] ss:$16 sps:$4 sm:$0xff]  }
  0x53   :  { %1480 = vmatprep.subr.bf16.mxu1 %v4831_v0  ;;  %1237 = vmatprep.mubr.bf16.mxu0 %v4548_v35  ;;  %v4832_v35 = vmov 0.0  }
  0x54   :  { %29 = vst.msk [vmem:[#allocation2] sm:$0xff] %vm28_vm0, %v4832_v35  ;;  %30 = vst.msk [vmem:[#allocation2 + $0x8] sm:$0xff] %vm28_vm0, %v4832_v35 }
  0x55   :  { %31 = vst.msk [vmem:[#allocation2 + $0x10] sm:$0xff] %vm28_vm0, %v4832_v35  ;;  %32 = vst.msk [vmem:[#allocation2 + $0x18] sm:$0xff] %vm28_vm0, %v4832_v35 }
  0x56   :  { %1481 = vmatpush1.bf16.msra.mxu1 %v4504_v36  ;;  %33 = vst.msk [vmem:[#allocation2 + $0x20] sm:$0xff] %vm28_vm0, %v4832_v35  ;;  %34 = vst.msk [vmem:[#allocation2 + $0x28] sm:$0xff] %vm28_vm0, %v4832_v35  ;;  %v4583_v36 = vld [vmem:[%s7033_s0 + $0x108] ss:$16 sps:$4 sm:$0xff]  }
  0x57   :  { %1482 = vmatprep.subr.bf16.mxu1 %v4831_v0  ;;  %35 = vst.msk [vmem:[#allocation2 + $0x30] sm:$0xff] %vm28_vm0, %v4832_v35  ;;  %36 = vst.msk [vmem:[#allocation2 + $0x38] sm:$0xff] %vm28_vm0, %v4832_v35 }
  0x58   :  { %37 = vst.msk [vmem:[#allocation2 + $0x40] sm:$0xff] %vm28_vm0, %v4832_v35  ;;  %38 = vst.msk [vmem:[#allocation2 + $0x48] sm:$0xff] %vm28_vm0, %v4832_v35 }
  0x59   :  { %1430 = vmatmul.mubr.bf16.gmra.mxu1 %v4507_v37  ;;  %1238 = vmatmul.mubr.bf16.gmra.mxu0 %v4550_v38  ;;  %39 = vst.msk [vmem:[#allocation2 + $0x50] sm:$0xff] %vm28_vm0, %v4832_v35  ;;  %40 = vst.msk [vmem:[#allocation2 + $0x58] sm:$0xff] %vm28_vm0, %v4832_v35  ;;  %v4628_v37 = vld [vmem:[%s7033_s0 + $0x200] ss:$16 sps:$4 sm:$0xff]   ;;  %v4587_v38 = vld [vmem:[%s7033_s0 + $0x12c] ss:$16 sps:$4 sm:$0xff]  }
  0x5a   :  { %1483 = vmatpush1.bf16.msra.mxu1 %v4508_v39  ;;  %1437 = vmatprep.mubr.bf16.mxu1 %v4510_v40  ;;  %41 = vst.msk [vmem:[#allocation2 + $0x60] sm:$0xff] %vm28_vm0, %v4832_v35  ;;  %42 = vst.msk [vmem:[#allocation2 + $0x68] sm:$0xff] %vm28_vm0, %v4832_v35  ;;  %v4632_v39 = vld [vmem:[%s7033_s0 + $0x224] ss:$16 sps:$4 sm:$0xff]   ;;  %v4589_v40 = vld [vmem:[%s7033_s0 + $0x128] ss:$16 sps:$4 sm:$0xff]  }
  0x5b   :  { %1484 = vmatprep.subr.bf16.mxu1 %v4831_v0  ;;  %1245 = vmatprep.mubr.bf16.mxu0 %v4554_v41  ;;  %43 = vst.msk [vmem:[#allocation2 + $0x70] sm:$0xff] %vm28_vm0, %v4832_v35  ;;  %44 = vst.msk [vmem:[#allocation2 + $0x78] sm:$0xff] %vm28_vm0, %v4832_v35  ;;  %v4634_v41 = vld [vmem:[%s7033_s0 + $0x220] ss:$16 sps:$4 sm:$0xff]  }
  0x5c   :  { %45 = vst.msk [vmem:[#allocation2 + $0x80] sm:$0xff] %vm28_vm0, %v4832_v35  ;;  %46 = vst.msk [vmem:[#allocation2 + $0x88] sm:$0xff] %vm28_vm0, %v4832_v35 }
  0x5d   :  { %47 = vst.msk [vmem:[#allocation2 + $0x90] sm:$0xff] %vm28_vm0, %v4832_v35  ;;  %48 = vst.msk [vmem:[#allocation2 + $0x98] sm:$0xff] %vm28_vm0, %v4832_v35 }
  0x5e   :  { %1485 = vmatpush1.bf16.msra.mxu1 %v4509_v42  ;;  %49 = vst.msk [vmem:[#allocation2 + $0xa0] sm:$0xff] %vm28_vm0, %v4832_v35  ;;  %50 = vst.msk [vmem:[#allocation2 + $0xa8] sm:$0xff] %vm28_vm0, %v4832_v35  ;;  %v4593_v42 = vld [vmem:[%s7033_s0 + $0x14c] ss:$16 sps:$4 sm:$0xff]  }
  0x5f   :  { %1486 = vmatprep.subr.bf16.mxu1 %v4831_v0  ;;  %51 = vst.msk [vmem:[#allocation2 + $0xb0] sm:$0xff] %vm28_vm0, %v4832_v35  ;;  %52 = vst.msk [vmem:[#allocation2 + $0xb8] sm:$0xff] %vm28_vm0, %v4832_v35 }
  0x60   :  { %53 = vst.msk [vmem:[#allocation2 + $0xc0] sm:$0xff] %vm28_vm0, %v4832_v35  ;;  %54 = vst.msk [vmem:[#allocation2 + $0xc8] sm:$0xff] %vm28_vm0, %v4832_v35 }
  0x61   :  { %1438 = vmatmul.mubr.bf16.gmra.mxu1 %v4512_v43  ;;  %1246 = vmatmul.mubr.bf16.gmra.mxu0 %v4556_v44  ;;  %55 = vst.msk [vmem:[#allocation2 + $0xd0] sm:$0xff] %vm28_vm0, %v4832_v35  ;;  %56 = vst.msk [vmem:[#allocation2 + $0xd8] sm:$0xff] %vm28_vm0, %v4832_v35  ;;  %v4638_v43 = vld [vmem:[%s7033_s0 + $0x244] ss:$16 sps:$4 sm:$0xff]   ;;  %v4595_v44 = vld [vmem:[%s7033_s0 + $0x148] ss:$16 sps:$4 sm:$0xff]  }
  0x62   :  { %1487 = vmatpush2.bf16.msra.mxu1 %v4513_v45  ;;  %1445 = vmatprep.mubr.bf16.mxu1 %v4515_v46  ;;  %57 = vst.msk [vmem:[#allocation2 + $0xe0] sm:$0xff] %vm28_vm0, %v4832_v35  ;;  %58 = vst.msk [vmem:[#allocation2 + $0xe8] sm:$0xff] %vm28_vm0, %v4832_v35  ;;  %v4640_v45 = vld [vmem:[%s7033_s0 + $0x240] ss:$16 sps:$4 sm:$0xff]   ;;  %v4599_v46 = vld [vmem:[%s7033_s0 + $0x16c] ss:$16 sps:$4 sm:$0xff]  }
  0x63   :  { %1488 = vmatprep.subr.bf16.mxu1 %v4831_v0  ;;  %1253 = vmatprep.mubr.bf16.mxu0 %v4560_v47  ;;  %59 = vst.msk [vmem:[#allocation2 + $0xf0] sm:$0xff] %vm28_vm0, %v4832_v35  ;;  %60 = vst.msk [vmem:[#allocation2 + $0xf8] sm:$0xff] %vm28_vm0, %v4832_v35  ;;  %v4644_v47 = vld [vmem:[%s7033_s0 + $0x264] ss:$16 sps:$4 sm:$0xff]  }
  0x64   :  { %61 = vst.msk [vmem:[#allocation2 + $0x100] sm:$0xff] %vm28_vm0, %v4832_v35  ;;  %62 = vst.msk [vmem:[#allocation2 + $0x108] sm:$0xff] %vm28_vm0, %v4832_v35 }
  0x65   :  { %63 = vst.msk [vmem:[#allocation2 + $0x110] sm:$0xff] %vm28_vm0, %v4832_v35  ;;  %64 = vst.msk [vmem:[#allocation2 + $0x118] sm:$0xff] %vm28_vm0, %v4832_v35 }
  0x66   :  { %1489 = vmatpush2.bf16.msra.mxu1 %v4514_v48  ;;  %65 = vst.msk [vmem:[#allocation2 + $0x120] sm:$0xff] %vm28_vm0, %v4832_v35  ;;  %66 = vst.msk [vmem:[#allocation2 + $0x128] sm:$0xff] %vm28_vm0, %v4832_v35  ;;  %v4601_v48 = vld [vmem:[%s7033_s0 + $0x168] ss:$16 sps:$4 sm:$0xff]  }
  0x67   :  { %1490 = vmatprep.subr.bf16.mxu1 %v4831_v0  ;;  %67 = vst.msk [vmem:[#allocation2 + $0x130] sm:$0xff] %vm28_vm0, %v4832_v35  ;;  %68 = vst.msk [vmem:[#allocation2 + $0x138] sm:$0xff] %vm28_vm0, %v4832_v35 }
  0x68   :  { %69 = vst.msk [vmem:[#allocation2 + $0x140] sm:$0xff] %vm28_vm0, %v4832_v35  ;;  %70 = vst.msk [vmem:[#allocation2 + $0x148] sm:$0xff] %vm28_vm0, %v4832_v35 }
  0x69   :  { %1446 = vmatmul.mubr.bf16.gmra.mxu1 %v4517_v49  ;;  %1254 = vmatmul.mubr.bf16.gmra.mxu0 %v4562_v50  ;;  %71 = vst.msk [vmem:[#allocation2 + $0x150] sm:$0xff] %vm28_vm0, %v4832_v35  ;;  %72 = vst.msk [vmem:[#allocation2 + $0x158] sm:$0xff] %vm28_vm0, %v4832_v35  ;;  %v4646_v49 = vld [vmem:[%s7033_s0 + $0x260] ss:$16 sps:$4 sm:$0xff]   ;;  %v4605_v50 = vld [vmem:[%s7033_s0 + $0x18c] ss:$16 sps:$4 sm:$0xff]  }
  0x6a   :  { %1491 = vmatpush2.bf16.msra.mxu1 %v4518_v51  ;;  %1453 = vmatprep.mubr.bf16.mxu1 %v4520_v52  ;;  %73 = vst.msk [vmem:[#allocation2 + $0x160] sm:$0xff] %vm28_vm0, %v4832_v35  ;;  %74 = vst.msk [vmem:[#allocation2 + $0x168] sm:$0xff] %vm28_vm0, %v4832_v35  ;;  %v4650_v51 = vld [vmem:[%s7033_s0 + $0x284] ss:$16 sps:$4 sm:$0xff]   ;;  %v4607_v52 = vld [vmem:[%s7033_s0 + $0x188] ss:$16 sps:$4 sm:$0xff]  }
  0x6b   :  { %1492 = vmatprep.subr.bf16.mxu1 %v4831_v0  ;;  %1261 = vmatprep.mubr.bf16.mxu0 %v4566_v53  ;;  %75 = vst.msk [vmem:[#allocation2 + $0x170] sm:$0xff] %vm28_vm0, %v4832_v35  ;;  %76 = vst.msk [vmem:[#allocation2 + $0x178] sm:$0xff] %vm28_vm0, %v4832_v35  ;;  %v4652_v53 = vld [vmem:[%s7033_s0 + $0x280] ss:$16 sps:$4 sm:$0xff]  }
  0x6c   :  { %77 = vst.msk [vmem:[#allocation2 + $0x180] sm:$0xff] %vm28_vm0, %v4832_v35  ;;  %78 = vst.msk [vmem:[#allocation2 + $0x188] sm:$0xff] %vm28_vm0, %v4832_v35 }
  0x6d   :  { %79 = vst.msk [vmem:[#allocation2 + $0x190] sm:$0xff] %vm28_vm0, %v4832_v35  ;;  %80 = vst.msk [vmem:[#allocation2 + $0x198] sm:$0xff] %vm28_vm0, %v4832_v35 }
  0x6e   :  { %1493 = vmatpush2.bf16.msra.mxu1 %v4519_v54  ;;  %81 = vst.msk [vmem:[#allocation2 + $0x1a0] sm:$0xff] %vm28_vm0, %v4832_v35  ;;  %82 = vst.msk [vmem:[#allocation2 + $0x1a8] sm:$0xff] %vm28_vm0, %v4832_v35  ;;  %v4611_v54 = vld [vmem:[%s7033_s0 + $0x1ac] ss:$16 sps:$4 sm:$0xff]  }
  0x6f   :  { %1494 = vmatprep.subr.bf16.mxu1 %v4831_v0  ;;  %83 = vst.msk [vmem:[#allocation2 + $0x1b0] sm:$0xff] %vm28_vm0, %v4832_v35  ;;  %84 = vst.msk [vmem:[#allocation2 + $0x1b8] sm:$0xff] %vm28_vm0, %v4832_v35 }
  0x70   :  { %85 = vst.msk [vmem:[#allocation2 + $0x1c0] sm:$0xff] %vm28_vm0, %v4832_v35  ;;  %86 = vst.msk [vmem:[#allocation2 + $0x1c8] sm:$0xff] %vm28_vm0, %v4832_v35 }
  0x71   :  { %1454 = vmatmul.mubr.bf16.gmra.mxu1 %v4522_v55  ;;  %1262 = vmatmul.mubr.bf16.gmra.mxu0 %v4568_v56  ;;  %87 = vst.msk [vmem:[#allocation2 + $0x1d0] sm:$0xff] %vm28_vm0, %v4832_v35  ;;  %88 = vst.msk [vmem:[#allocation2 + $0x1d8] sm:$0xff] %vm28_vm0, %v4832_v35  ;;  %v4656_v55 = vld [vmem:[%s7033_s0 + $0x2a4] ss:$16 sps:$4 sm:$0xff]   ;;  %v4613_v56 = vld [vmem:[%s7033_s0 + $0x1a8] ss:$16 sps:$4 sm:$0xff]  }
  0x72   :  { %1495 = vmatpush2.bf16.msra.mxu1 %v4523_v57  ;;  %1461 = vmatprep.mubr.bf16.mxu1 %v4525_v58  ;;  %89 = vst.msk [vmem:[#allocation2 + $0x1e0] sm:$0xff] %vm28_vm0, %v4832_v35  ;;  %90 = vst.msk [vmem:[#allocation2 + $0x1e8] sm:$0xff] %vm28_vm0, %v4832_v35  ;;  %v4658_v57 = vld [vmem:[%s7033_s0 + $0x2a0] ss:$16 sps:$4 sm:$0xff]   ;;  %v4617_v58 = vld [vmem:[%s7033_s0 + $0x1cc] ss:$16 sps:$4 sm:$0xff]  }
  0x73   :  { %1496 = vmatprep.subr.bf16.mxu1 %v4831_v0  ;;  %1269 = vmatprep.mubr.bf16.mxu0 %v4572_v59  ;;  %91 = vst.msk [vmem:[#allocation2 + $0x1f0] sm:$0xff] %vm28_vm0, %v4832_v35  ;;  %92 = vst.msk [vmem:[#allocation2 + $0x1f8] sm:$0xff] %vm28_vm0, %v4832_v35  ;;  %v4662_v59 = vld [vmem:[%s7033_s0 + $0x2c4] ss:$16 sps:$4 sm:$0xff]  }
  0x76   :  { %1497 = vmatpush2.bf16.msra.mxu1 %v4524_v60  ;;  %v4619_v60 = vld [vmem:[%s7033_s0 + $0x1c8] ss:$16 sps:$4 sm:$0xff]  }
  0x77   :  { %1498 = vmatprep.subr.bf16.mxu1 %v4831_v0 }
  0x79   :  { %1462 = vmatmul.mubr.bf16.gmra.mxu1 %v4527_v61  ;;  %1270 = vmatmul.mubr.bf16.gmra.mxu0 %v4574_v62  ;;  %v4664_v61 = vld [vmem:[%s7033_s0 + $0x2c0] ss:$16 sps:$4 sm:$0xff]   ;;  %v4623_v62 = vld [vmem:[%s7033_s0 + $0x1ec] ss:$16 sps:$4 sm:$0xff]  }
  0x7a   :  { %1499 = vmatpush2.bf16.msra.mxu1 %v4528_v63  ;;  %1502 = vmatprep.mubr.bf16.mxu1 %v4535_v1  ;;  %v4668_v63 = vld [vmem:[%s7033_s0 + $0x2e4] ss:$16 sps:$4 sm:$0xff]   ;;  %v4625_v1 = vld [vmem:[%s7033_s0 + $0x1e8] ss:$16 sps:$4 sm:$0xff]  }
  0x7b   :  { %1500 = vmatprep.subr.bf16.mxu1 %v4831_v0  ;;  %1277 = vmatprep.mubr.bf16.mxu0 %v4578_v2  ;;  %v4541_v0 = vld [vmem:[%s7033_s0 + $0x28] ss:$16 sps:$4 sm:$0xff]   ;;  %v4670_v2 = vld [vmem:[%s7033_s0 + $0x2e0] ss:$16 sps:$4 sm:$0xff]  }
  0x7e   :  { %1501 = vmatpush2.bf16.msra.mxu1 %v4529_v3  ;;  %v4629_v3 = vld [vmem:[%s7033_s0 + $0x20c] ss:$16 sps:$4 sm:$0xff]  }
  0x81   :  { %1503 = vmatmul.mubr.bf16.vlgmr.msra.gmra.mxu1 %v4533_v4  ;;  %1278 = vmatmul.mubr.bf16.gmra.mxu0 %v4580_v5  ;;  %v4631_v4 = vld [vmem:[%s7033_s0 + $0x208] ss:$16 sps:$4 sm:$0xff]   ;;  %v4635_v5 = vld [vmem:[%s7033_s0 + $0x22c] ss:$16 sps:$4 sm:$0xff]  }
  0x82   :  { %1510 = vmatprep.mubr.bf16.mxu1 %v4539_v6  ;;  %1285 = vmatprep.mubr.bf16.mxu0 %v4584_v7 }
  0x89   :  { %1511 = vmatmul.mubr.bf16.gmra.mxu1 %v4541_v0  ;;  %1286 = vmatmul.mubr.bf16.gmra.mxu0 %v4586_v8 }
  0x8a   :  { %1518 = vmatprep.mubr.bf16.mxu1 %v4545_v9  ;;  %1293 = vmatprep.mubr.bf16.mxu0 %v4590_v10  ;;  %v4637_v10 = vld [vmem:[%s7033_s0 + $0x228] ss:$16 sps:$4 sm:$0xff]  }
  0x91   :  { %1519 = vmatmul.mubr.bf16.gmra.mxu1 %v4547_v11  ;;  %1294 = vmatmul.mubr.bf16.gmra.mxu0 %v4592_v12  ;;  %v4641_v12 = vld [vmem:[%s7033_s0 + $0x24c] ss:$16 sps:$4 sm:$0xff]  }
  0x92   :  { %1526 = vmatprep.mubr.bf16.mxu1 %v4551_v13  ;;  %1301 = vmatprep.mubr.bf16.mxu0 %v4596_v14 }
  0x99   :  { %1527 = vmatmul.mubr.bf16.gmra.mxu1 %v4553_v15  ;;  %1302 = vmatmul.mubr.bf16.gmra.mxu0 %v4598_v16 }
  0x9a   :  { %1534 = vmatprep.mubr.bf16.mxu1 %v4557_v17  ;;  %1309 = vmatprep.mubr.bf16.mxu0 %v4602_v18 }
  0xa1   :  { %1535 = vmatmul.mubr.bf16.gmra.mxu1 %v4559_v19  ;;  %1310 = vmatmul.mubr.bf16.gmra.mxu0 %v4604_v20  ;;  %v4643_v20 = vld [vmem:[%s7033_s0 + $0x248] ss:$16 sps:$4 sm:$0xff]  }
  0xa2   :  { %1542 = vmatprep.mubr.bf16.mxu1 %v4563_v21  ;;  %1317 = vmatprep.mubr.bf16.mxu0 %v4608_v22  ;;  %v4647_v22 = vld [vmem:[%s7033_s0 + $0x26c] ss:$16 sps:$4 sm:$0xff]  }
  0xa9   :  { %1543 = vmatmul.mubr.bf16.gmra.mxu1 %v4565_v23  ;;  %1318 = vmatmul.mubr.bf16.gmra.mxu0 %v4610_v24 }
  0xaa   :  { %1550 = vmatprep.mubr.bf16.mxu1 %v4569_v25  ;;  %1325 = vmatprep.mubr.bf16.mxu0 %v4614_v26 }
  0xb1   :  { %1551 = vmatmul.mubr.bf16.gmra.mxu1 %v4571_v27  ;;  %1326 = vmatmul.mubr.bf16.gmra.mxu0 %v4616_v28 }
  0xb2   :  { %1558 = vmatprep.mubr.bf16.mxu1 %v4575_v29  ;;  %1333 = vmatprep.mubr.bf16.mxu0 %v4620_v30  ;;  %v4649_v30 = vld [vmem:[%s7033_s0 + $0x268] ss:$16 sps:$4 sm:$0xff]  }
  0xb9   :  { %1559 = vmatmul.mubr.bf16.gmra.mxu1 %v4577_v31  ;;  %1334 = vmatmul.mubr.bf16.gmra.mxu0 %v4622_v32  ;;  %v4655_v32 = vld [vmem:[%s7033_s0 + $0x28c] ss:$16 sps:$4 sm:$0xff]  }
  0xba   :  { %1566 = vmatprep.mubr.bf16.mxu1 %v4581_v33  ;;  %1341 = vmatprep.mubr.bf16.mxu0 %v4626_v34 }
  0xc1   :  { %1567 = vmatmul.mubr.bf16.gmra.mxu1 %v4583_v36  ;;  %1342 = vmatmul.mubr.bf16.gmra.mxu0 %v4628_v37 }
  0xc2   :  { %1574 = vmatprep.mubr.bf16.mxu1 %v4587_v38  ;;  %1349 = vmatprep.mubr.bf16.mxu0 %v4632_v39 }
  0xc9   :  { %1575 = vmatmul.mubr.bf16.gmra.mxu1 %v4589_v40  ;;  %1350 = vmatmul.mubr.bf16.gmra.mxu0 %v4634_v41  ;;  %v4653_v40 = vld [vmem:[%s7033_s0 + $0x288] ss:$16 sps:$4 sm:$0xff]  }
  0xca   :  { %1582 = vmatprep.mubr.bf16.mxu1 %v4593_v42  ;;  %1357 = vmatprep.mubr.bf16.mxu0 %v4638_v43  ;;  %v4661_v42 = vld [vmem:[%s7033_s0 + $0x2ac] ss:$16 sps:$4 sm:$0xff]  }
  0xd1   :  { %1583 = vmatmul.mubr.bf16.gmra.mxu1 %v4595_v44  ;;  %1358 = vmatmul.mubr.bf16.gmra.mxu0 %v4640_v45 }
  0xd2   :  { %1590 = vmatprep.mubr.bf16.mxu1 %v4599_v46  ;;  %1365 = vmatprep.mubr.bf16.mxu0 %v4644_v47 }
  0xd9   :  { %1591 = vmatmul.mubr.bf16.gmra.mxu1 %v4601_v48  ;;  %1366 = vmatmul.mubr.bf16.gmra.mxu0 %v4646_v49 }
  0xda   :  { %1598 = vmatprep.mubr.bf16.mxu1 %v4605_v50  ;;  %1373 = vmatprep.mubr.bf16.mxu0 %v4650_v51  ;;  %v4659_v50 = vld [vmem:[%s7033_s0 + $0x2a8] ss:$16 sps:$4 sm:$0xff]  }
  0xe1   :  { %1599 = vmatmul.mubr.bf16.gmra.mxu1 %v4607_v52  ;;  %1374 = vmatmul.mubr.bf16.gmra.mxu0 %v4652_v53  ;;  %v4667_v52 = vld [vmem:[%s7033_s0 + $0x2cc] ss:$16 sps:$4 sm:$0xff]  }
  0xe2   :  { %1606 = vmatprep.mubr.bf16.mxu1 %v4611_v54  ;;  %1381 = vmatprep.mubr.bf16.mxu0 %v4656_v55 }
  0xe9   :  { %1607 = vmatmul.mubr.bf16.gmra.mxu1 %v4613_v56  ;;  %1382 = vmatmul.mubr.bf16.gmra.mxu0 %v4658_v57 }
  0xea   :  { %1614 = vmatprep.mubr.bf16.mxu1 %v4617_v58  ;;  %1389 = vmatprep.mubr.bf16.mxu0 %v4662_v59 }
  0xf1   :  { %1615 = vmatmul.mubr.bf16.gmra.mxu1 %v4619_v60  ;;  %1390 = vmatmul.mubr.bf16.gmra.mxu0 %v4664_v61  ;;  %v4665_v60 = vld [vmem:[%s7033_s0 + $0x2c8] ss:$16 sps:$4 sm:$0xff]  }
  0xf2   :  { %1622 = vmatprep.mubr.bf16.mxu1 %v4623_v62  ;;  %1397 = vmatprep.mubr.bf16.mxu0 %v4668_v63  ;;  %v4673_v62 = vld [vmem:[%s7033_s0 + $0x2ec] ss:$16 sps:$4 sm:$0xff]  }
  0xf9   :  { %1623 = vmatmul.mubr.bf16.gmra.mxu1 %v4625_v1  ;;  %1398 = vmatmul.mubr.bf16.gmra.mxu0 %v4670_v2 }
  0xfa   :  { %1630 = vmatprep.mubr.bf16.mxu1 %v4629_v3 }
 0x101   :  { %v5437_v6 = vpop.f32.mrf.mxu1  ;;  %1631 = vmatmul.mubr.bf16.gmra.mxu1 %v4631_v4  ;;  %v5439_v7 = vpop.f32.mrf.mxu0 }
 0x102   :  { %1638 = vmatprep.mubr.bf16.mxu1 %v4635_v5 }
 0x103   :  { %v1409_v0 = vpop.f32.mrf.mxu1  ;;  %v1217_v8 = vpop.f32.mrf.mxu0 }
 0x104   :  { %v4671_v8 = vld [vmem:[%s7033_s0 + $0x2e8] ss:$16 sps:$4 sm:$0xff]  }
 0x105   :  { %v5441_v9 = vpop.f32.mrf.mxu1  ;;  %v5446_v11 = vpop.f32.mrf.mxu0 }
 0x107   :  { %v1412_v13 = vpop.f32.mrf.mxu1  ;;  %v1220_v14 = vpop.f32.mrf.mxu0 }
 0x109   :  { %v5451_v15 = vpop.f32.mrf.mxu1  ;;  %1639 = vmatmul.mubr.bf16.gmra.mxu1 %v4637_v10  ;;  %v5453_v16 = vpop.f32.mrf.mxu0 }
 0x10a   :  { %1646 = vmatprep.mubr.bf16.mxu1 %v4641_v12  ;;  %v4676_v12 = vld [vmem:[%s7033_s0 + $0x30c] ss:$16 sps:$4 sm:$0xff]  }
 0x10b   :  { %v1417_v17 = vpop.f32.mrf.mxu1  ;;  %v1225_v18 = vpop.f32.mrf.mxu0 }
 0x10d   :  { %v5455_v19 = vpop.f32.mrf.mxu1  ;;  %v5460_v21 = vpop.f32.mrf.mxu0 }
 0x10f   :  { %v1420_v23 = vpop.f32.mrf.mxu1  ;;  %v1228_v24 = vpop.f32.mrf.mxu0 }
 0x110   :  { %v4674_v24 = vld [vmem:[%s7033_s0 + $0x308] ss:$16 sps:$4 sm:$0xff]  }
 0x111   :  { %v5465_v25 = vpop.f32.mrf.mxu1  ;;  %1647 = vmatmul.mubr.bf16.gmra.mxu1 %v4643_v20  ;;  %v5467_v26 = vpop.f32.mrf.mxu0 }
 0x112   :  { %1654 = vmatprep.mubr.bf16.mxu1 %v4647_v22 }
 0x113   :  { %v1425_v27 = vpop.f32.mrf.mxu1  ;;  %v1233_v28 = vpop.f32.mrf.mxu0 }
 0x114   :  { %v4679_v28 = vld [vmem:[%s7033_s0 + $0x32c] ss:$16 sps:$4 sm:$0xff]  }
 0x115   :  { %v5469_v29 = vpop.f32.mrf.mxu1  ;;  %v5474_v31 = vpop.f32.mrf.mxu0 }
 0x117   :  { %v1428_v33 = vpop.f32.mrf.mxu1  ;;  %v1236_v34 = vpop.f32.mrf.mxu0 }
 0x118   :  { %v93_v33 = vld [vmem:[#allocation2] sm:$0xff] }
 0x119   :  { %v5479_v35 = vpop.f32.mrf.mxu1  ;;  %1655 = vmatmul.mubr.bf16.gmra.mxu1 %v4649_v30  ;;  %v5481_v36 = vpop.f32.mrf.mxu0 }
 0x11a   :  { %1662 = vmatprep.mubr.bf16.mxu1 %v4655_v32 }
 0x11b   :  { %v1433_v37 = vpop.f32.mrf.mxu1  ;;  %v1241_v38 = vpop.f32.mrf.mxu0 }
 0x11d   :  { %v5483_v39 = vpop.f32.mrf.mxu1  ;;  %v5488_v41 = vpop.f32.mrf.mxu0 }
 0x11f   :  { %v1436_v43 = vpop.f32.mrf.mxu1  ;;  %v1244_v44 = vpop.f32.mrf.mxu0 }
 0x120   :  { %v94_v44 = vld [vmem:[#allocation2 + $0x8] sm:$0xff] }
 0x121   :  { %v5493_v45 = vpop.f32.mrf.mxu1  ;;  %1663 = vmatmul.mubr.bf16.gmra.mxu1 %v4653_v40  ;;  %v5495_v46 = vpop.f32.mrf.mxu0 }
 0x122   :  { %1670 = vmatprep.mubr.bf16.mxu1 %v4661_v42 }
 0x123   :  { %v1441_v47 = vpop.f32.mrf.mxu1  ;;  %v1249_v48 = vpop.f32.mrf.mxu0 }
 0x124   :  { %v4677_v48 = vld [vmem:[%s7033_s0 + $0x328] ss:$16 sps:$4 sm:$0xff]  }
 0x125   :  { %v5497_v49 = vpop.f32.mrf.mxu1  ;;  %v5502_v51 = vpop.f32.mrf.mxu0 }
 0x127   :  { %v1444_v53 = vpop.f32.mrf.mxu1  ;;  %v1252_v54 = vpop.f32.mrf.mxu0 }
 0x129   :  { %v5507_v55 = vpop.f32.mrf.mxu1  ;;  %1671 = vmatmul.mubr.bf16.gmra.mxu1 %v4659_v50  ;;  %v5509_v56 = vpop.f32.mrf.mxu0 }
 0x12a   :  { %7132 = vst [vmem:[#allocation3_spill] sm:$0xff] %v5507_v55  ;;  %1678 = vmatprep.mubr.bf16.mxu1 %v4667_v52 }
 0x12b   :  { %v1449_v57 = vpop.f32.mrf.mxu1  ;;  %v1257_v58 = vpop.f32.mrf.mxu0 }
 0x12c   :  { %v95_v58 = vld [vmem:[#allocation2 + $0x10] sm:$0xff] }
 0x12d   :  { %v5511_v59 = vpop.f32.mrf.mxu1  ;;  %v5516_v61 = vpop.f32.mrf.mxu0 }
 0x12e   :  { %7133 = vst [vmem:[#allocation4_spill] sm:$0xff] %v5511_v59 }
 0x12f   :  { %v1452_v63 = vpop.f32.mrf.mxu1  ;;  %v1260_v1 = vpop.f32.mrf.mxu0 }
 0x131   :  { %v5521_v2 = vpop.f32.mrf.mxu1  ;;  %1679 = vmatmul.mubr.bf16.gmra.mxu1 %v4665_v60  ;;  %v5523_v3 = vpop.f32.mrf.mxu0 }
 0x132   :  { %7134 = vst [vmem:[#allocation5_spill] sm:$0xff] %v5521_v2  ;;  %1686 = vmatprep.mubr.bf16.mxu1 %v4673_v62 }
 0x133   :  { %v1457_v4 = vpop.f32.mrf.mxu1  ;;  %v1265_v5 = vpop.f32.mrf.mxu0 }
 0x135   :  { %v5525_v0 = vpop.f32.mrf.mxu1  ;;  %v5530_v10 = vpop.f32.mrf.mxu0 }
 0x136   :  { %7135 = vst [vmem:[#allocation6_spill] sm:$0xff] %v5525_v0 }
 0x137   :  { %v1460_v13 = vpop.f32.mrf.mxu1  ;;  %v1268_v14 = vpop.f32.mrf.mxu0 }
 0x138   :  { %v4680_v13 = vld [vmem:[%s7033_s0 + $0x348] ss:$16 sps:$4 sm:$0xff]  }
 0x139   :  { %v5535_v17 = vpop.f32.mrf.mxu1  ;;  %1687 = vmatmul.mubr.bf16.gmra.mxu1 %v4671_v8  ;;  %v5537_v18 = vpop.f32.mrf.mxu0  ;;  %v96_v8 = vld [vmem:[#allocation2 + $0x18] sm:$0xff] }
 0x13a   :  { %7136 = vst [vmem:[#allocation7_spill] sm:$0xff] %v5535_v17  ;;  %1694 = vmatprep.mubr.bf16.mxu1 %v4676_v12 }
 0x13b   :  { %v1465_v20 = vpop.f32.mrf.mxu1  ;;  %v1273_v22 = vpop.f32.mrf.mxu0 }
 0x13d   :  { %v5539_v23 = vpop.f32.mrf.mxu1  ;;  %v5544_v27 = vpop.f32.mrf.mxu0 }
 0x13e   :  { %7137 = vst [vmem:[#allocation8_spill] sm:$0xff] %v5539_v23 }
 0x13f   :  { %v1468_v30 = vpop.f32.mrf.mxu1  ;;  %v1276_v32 = vpop.f32.mrf.mxu0 }
 0x141   :  { %v1504_v34 = vpop.f32.mrf.mxu1  ;;  %1695 = vmatmul.mubr.bf16.gmra.mxu1 %v4674_v24  ;;  %v5549_v37 = vpop.f32.mrf.mxu0  ;;  %v4685_v24 = vld [vmem:[%s7033_s0 + $0x36c] ss:$16 sps:$4 sm:$0xff]  }
 0x142   :  { %v1505_v38 = vadd.f32 %v1504_v34, %v5439_v7  ;;  %1702 = vmatprep.mubr.bf16.mxu1 %v4679_v28  ;;  %v4682_v7 = vld [vmem:[%s7033_s0 + $0x34c] ss:$16 sps:$4 sm:$0xff]   ;;  %v97_v34 = vld [vmem:[#allocation2 + $0x20] sm:$0xff] }
 0x143   :  { %v1506_v40 = vpop.f32.mrf.mxu1  ;;  %v1281_v42 = vpop.f32.mrf.mxu0 }
 0x144   :  { %v1759_v43 = vadd.f32 %v1505_v38, %v93_v33 }
 0x145   :  { %v1507_v47 = vpop.f32.mrf.mxu1  ;;  %v5555_v50 = vpop.f32.mrf.mxu0 }
 0x146   :  { %1824 = vst.msk [vmem:[#allocation2] sm:$0xff] %vm28_vm0, %v1759_v43  ;;  %v1508_v52 = vadd.f32 %v1507_v47, %v5446_v11  ;;  %v5569_v11 = vld [vmem:[%s7034_s2] ss:$0 sm:$0xff] }
 0x147   :  { %v1509_v53 = vpop.f32.mrf.mxu1  ;;  %v1284_v54 = vpop.f32.mrf.mxu0 }
 0x148   :  { %v1760_v57 = vadd.f32 %v1508_v52, %v94_v44  ;;  %v98_v53 = vld [vmem:[#allocation2 + $0x28] sm:$0xff] }
 0x149   :  { %v1512_v60 = vpop.f32.mrf.mxu1  ;;  %1703 = vmatmul.mubr.bf16.gmra.mxu1 %v4677_v48  ;;  %v5562_v62 = vpop.f32.mrf.mxu0 }
 0x14a   :  { %1825 = vst.msk [vmem:[#allocation2 + $0x8] sm:$0xff] %vm28_vm0, %v1760_v57  ;;  %v1513_v63 = vadd.f32 %v1512_v60, %v5453_v16  ;;  %1710 = vmatprep.mubr.bf16.mxu1 %v4682_v7 }
 0x14b   :  { %v1514_v1 = vpop.f32.mrf.mxu1  ;;  %v1289_v4 = vpop.f32.mrf.mxu0 }
 0x14c   :  { %v1761_v5 = vadd.f32 %v1513_v63, %v95_v58  ;;  %v4688_v4 = vld [vmem:[%s7033_s0 + $0x38c] ss:$16 sps:$4 sm:$0xff]  }
 0x14d   :  { %v1515_v12 = vpop.f32.mrf.mxu1  ;;  %v1891_v14 = vld [vmem:[#allocation2] sm:$0xff]  ;;  %v5574_v20 = vpop.f32.mrf.mxu0 }
 0x14e   :  { %1826 = vst.msk [vmem:[#allocation2 + $0x10] sm:$0xff] %vm28_vm0, %v1761_v5  ;;  %v1516_v16 = vadd.f32 %v1515_v12, %v5460_v21  ;;  %v5579_v22 = vadd.f32 %v5569_v11, %v1891_v14  ;;  %v99_v14 = vld [vmem:[#allocation2 + $0x30] sm:$0xff] }
 0x14f   :  { %v1517_v28 = vpop.f32.mrf.mxu1  ;;  %v1292_v30 = vpop.f32.mrf.mxu0 }
 0x150   :  { %v1762_v32 = vadd.f32 %v1516_v16, %v96_v8  ;;  %v7051_v33 = vmax.f32 %v5579_v22, 0.0 }
 0x151   :  { %v1520_v38 = vpop.f32.mrf.mxu1  ;;  %1711 = vmatmul.mubr.bf16.gmra.mxu1 %v4680_v13  ;;  %v1892_v40 = vld [vmem:[#allocation2 + $0x8] sm:$0xff]  ;;  %v5585_v42 = vpop.f32.mrf.mxu0 }
 0x152   :  { %1827 = vst.msk [vmem:[#allocation2 + $0x18] sm:$0xff] %vm28_vm0, %v1762_v32  ;;  %v1521_v21 = vadd.f32 %v1520_v38, %v5467_v26  ;;  %v2092_v43 = vsel %vm28_vm0, %v7051_v33, 0.0  ;;  %v5593_v44 = vadd.f32 %v5569_v11, %v1892_v40  ;;  %1718 = vmatprep.mubr.bf16.mxu1 %v4685_v24  ;;  %v4683_v26 = vld [vmem:[%s7033_s0 + $0x368] ss:$16 sps:$4 sm:$0xff]  }
 0x153   :  { %v1522_v47 = vpop.f32.mrf.mxu1  ;;  %2093 = vadd.xlane.f32.xlu0 %v2092_v43  ;;  %v1297_v48 = vpop.f32.mrf.mxu0  ;;  %v100_v43 = vld [vmem:[#allocation2 + $0x38] sm:$0xff] }
 0x154   :  { %v1763_v52 = vadd.f32 %v1521_v21, %v97_v34  ;;  %v7049_v7 = vmax.f32 %v5593_v44, 0.0 }
 0x155   :  { %v1523_v54 = vpop.f32.mrf.mxu1  ;;  %v1893_v57 = vld [vmem:[#allocation2 + $0x10] sm:$0xff]  ;;  %v5599_v58 = vpop.f32.mrf.mxu0 }
 0x156   :  { %1828 = vst.msk [vmem:[#allocation2 + $0x20] sm:$0xff] %vm28_vm0, %v1763_v52  ;;  %v1524_v60 = vadd.f32 %v1523_v54, %v5474_v31  ;;  %v2095_v63 = vsel %vm28_vm0, %v7049_v7, 0.0  ;;  %v5607_v1 = vadd.f32 %v5569_v11, %v1893_v57  ;;  %v4691_v57 = vld [vmem:[%s7033_s0 + $0x3ac] ss:$16 sps:$4 sm:$0xff]  }
 0x157   :  { %v1525_v5 = vpop.f32.mrf.mxu1  ;;  %2096 = vadd.xlane.f32.xlu0 %v2095_v63  ;;  %v1300_v8 = vpop.f32.mrf.mxu0 }
 0x158   :  { %v1764_v12 = vadd.f32 %v1524_v60, %v98_v53  ;;  %v7047_v13 = vmax.f32 %v5607_v1, 0.0  ;;  %v101_v8 = vld [vmem:[#allocation2 + $0x40] sm:$0xff] }
 0x159   :  { %v1528_v16 = vpop.f32.mrf.mxu1  ;;  %1719 = vmatmul.mubr.bf16.gmra.mxu1 %v4683_v26  ;;  %v1894_v31 = vld [vmem:[#allocation2 + $0x18] sm:$0xff]  ;;  %v5613_v24 = vpop.f32.mrf.mxu0 }
 0x15a   :  { %1829 = vst.msk [vmem:[#allocation2 + $0x28] sm:$0xff] %vm28_vm0, %v1764_v12  ;;  %v1529_v28 = vadd.f32 %v1528_v16, %v5481_v36  ;;  %v2098_v30 = vsel %vm28_vm0, %v7047_v13, 0.0  ;;  %v5621_v32 = vadd.f32 %v5569_v11, %v1894_v31  ;;  %1726 = vmatprep.mubr.bf16.mxu1 %v4688_v4  ;;  %v4686_v36 = vld [vmem:[%s7033_s0 + $0x388] ss:$16 sps:$4 sm:$0xff]  }
 0x15b   :  { %v1530_v34 = vpop.f32.mrf.mxu1  ;;  %2099 = vadd.xlane.f32.xlu1 %v2098_v30  ;;  %v1305_v38 = vpop.f32.mrf.mxu0 }
 0x15c   :  { %v1765_v40 = vadd.f32 %v1529_v28, %v99_v14  ;;  %v7045_v21 = vmax.f32 %v5621_v32, 0.0 }
 0x15d   :  { %v1531_v47 = vpop.f32.mrf.mxu1  ;;  %v1895_v48 = vld [vmem:[#allocation2 + $0x20] sm:$0xff]  ;;  %v5627_v52 = vpop.f32.mrf.mxu0 }
 0x15e   :  { %1830 = vst.msk [vmem:[#allocation2 + $0x30] sm:$0xff] %vm28_vm0, %v1765_v40  ;;  %v1532_v53 = vadd.f32 %v1531_v47, %v5488_v41  ;;  %v2101_v54 = vsel %vm28_vm0, %v7045_v21, 0.0  ;;  %v5635_v26 = vadd.f32 %v5569_v11, %v1895_v48 }
 0x15f   :  { %v1533_v60 = vpop.f32.mrf.mxu1  ;;  %2102 = vadd.xlane.f32.xlu1 %v2101_v54  ;;  %v1308_v63 = vpop.f32.mrf.mxu0 }
 0x160   :  { %v1766_v4 = vadd.f32 %v1532_v53, %v100_v43  ;;  %v7043_v5 = vmax.f32 %v5635_v26, 0.0  ;;  %v102_v43 = vld [vmem:[#allocation2 + $0x48] sm:$0xff] }
 0x161   :  { %v1536_v12 = vpop.f32.mrf.mxu1  ;;  %1727 = vmatmul.mubr.bf16.gmra.mxu1 %v4686_v36  ;;  %v1896_v41 = vld [vmem:[#allocation2 + $0x28] sm:$0xff]  ;;  %v5641_v14 = vpop.f32.mrf.mxu0 }
 0x162   :  { %1831 = vst.msk [vmem:[#allocation2 + $0x38] sm:$0xff] %vm28_vm0, %v1766_v4  ;;  %v1537_v16 = vadd.f32 %v1536_v12, %v5495_v46  ;;  %v2104_v31 = vsel %vm28_vm0, %v7043_v5, 0.0  ;;  %v5649_v28 = vadd.f32 %v5569_v11, %v1896_v41  ;;  %1734 = vmatprep.mubr.bf16.mxu1 %v4691_v57  ;;  %v4689_v46 = vld [vmem:[%s7033_s0 + $0x3a8] ss:$16 sps:$4 sm:$0xff]   ;;  %v4694_v60 = vld [vmem:[%s7033_s0 + $0x3cc] ss:$16 sps:$4 sm:$0xff]  }
 0x163   :  { %v1538_v30 = vpop.f32.mrf.mxu1  ;;  %2105 = vadd.xlane.f32.xlu0 %v2104_v31  ;;  %v1313_v34 = vpop.f32.mrf.mxu0  ;;  %v103_v41 = vld [vmem:[#allocation2 + $0x50] sm:$0xff] }
 0x164   :  { %v1767_v38 = vadd.f32 %v1537_v16, %v101_v8  ;;  %v7042_v40 = vmax.f32 %v5649_v28, 0.0 }
 0x165   :  { %v1539_v47 = vpop.f32.mrf.mxu1  ;;  %v1897_v36 = vld [vmem:[#allocation2 + $0x30] sm:$0xff]  ;;  %v5655_v48 = vpop.f32.mrf.mxu0 }
 0x166   :  { %1832 = vst.msk [vmem:[#allocation2 + $0x40] sm:$0xff] %vm28_vm0, %v1767_v38  ;;  %v1540_v53 = vadd.f32 %v1539_v47, %v5502_v51  ;;  %v2107_v54 = vsel %vm28_vm0, %v7042_v40, 0.0  ;;  %v5663_v57 = vadd.f32 %v5569_v11, %v1897_v36 }
 0x167   :  { %v1541_v63 = vpop.f32.mrf.mxu1  ;;  %2108 = vadd.xlane.f32.xlu1 %v2107_v54  ;;  %v1316_v4 = vpop.f32.mrf.mxu0 }
 0x168   :  { %v1768_v8 = vadd.f32 %v1540_v53, %v102_v43  ;;  %v7040_v12 = vmax.f32 %v5663_v57, 0.0  ;;  %v104_v53 = vld [vmem:[#allocation2 + $0x58] sm:$0xff] }
 0x169   :  { %v1544_v16 = vpop.f32.mrf.mxu1  ;;  %1735 = vmatmul.mubr.bf16.gmra.mxu1 %v4689_v46  ;;  %v1898_v51 = vld [vmem:[#allocation2 + $0x38] sm:$0xff]  ;;  %v5669_v31 = vpop.f32.mrf.mxu0 }
 0x16a   :  { %1833 = vst.msk [vmem:[#allocation2 + $0x48] sm:$0xff] %vm28_vm0, %v1768_v8  ;;  %v1545_v30 = vadd.f32 %v1544_v16, %v5509_v56  ;;  %v2110_v34 = vsel %vm28_vm0, %v7040_v12, 0.0  ;;  %v5677_v38 = vadd.f32 %v5569_v11, %v1898_v51  ;;  %1742 = vmatprep.mubr.bf16.mxu1 %v4694_v60  ;;  %v4692_v56 = vld [vmem:[%s7033_s0 + $0x3c8] ss:$16 sps:$4 sm:$0xff]   ;;  %v4697_v16 = vld [vmem:[%s7033_s0 + $0x3ec] ss:$16 sps:$4 sm:$0xff]  }
 0x16b   :  { %v1546_v43 = vpop.f32.mrf.mxu1  ;;  %2111 = vadd.xlane.f32.xlu0 %v2110_v34  ;;  %v1321_v47 = vpop.f32.mrf.mxu0 }
 0x16c   :  { %v1769_v36 = vadd.f32 %v1545_v30, %v103_v41  ;;  %v7039_v46 = vmax.f32 %v5677_v38, 0.0  ;;  %v105_v47 = vld [vmem:[#allocation2 + $0x60] sm:$0xff] }
 0x16d   :  { %v1547_v54 = vpop.f32.mrf.mxu1  ;;  %v1899_v63 = vld [vmem:[#allocation2 + $0x40] sm:$0xff]  ;;  %v5683_v4 = vpop.f32.mrf.mxu0 }
 0x16e   :  { %1834 = vst.msk [vmem:[#allocation2 + $0x50] sm:$0xff] %vm28_vm0, %v1769_v36  ;;  %v1548_v8 = vadd.f32 %v1547_v54, %v5516_v61  ;;  %v2113_v60 = vsel %vm28_vm0, %v7039_v46, 0.0  ;;  %v5691_v41 = vadd.f32 %v5569_v11, %v1899_v63 }
 0x16f   :  { %v1549_v51 = vpop.f32.mrf.mxu1  ;;  %2114 = vadd.xlane.f32.xlu1 %v2113_v60  ;;  %v1324_v30 = vpop.f32.mrf.mxu0 }
 0x170   :  { %v1770_v34 = vadd.f32 %v1548_v8, %v104_v53  ;;  %v7041_v43 = vmax.f32 %v5691_v41, 0.0  ;;  %v106_v30 = vld [vmem:[#allocation2 + $0x68] sm:$0xff] }
 0x171   :  { %v1552_v36 = vpop.f32.mrf.mxu1  ;;  %1743 = vmatmul.mubr.bf16.gmra.mxu1 %v4692_v56  ;;  %v1900_v61 = vld [vmem:[#allocation2 + $0x48] sm:$0xff]  ;;  %v5697_v54 = vpop.f32.mrf.mxu0 }
 0x172   :  { %1835 = vst.msk [vmem:[#allocation2 + $0x58] sm:$0xff] %vm28_vm0, %v1770_v34  ;;  %v1553_v63 = vadd.f32 %v1552_v36, %v5523_v3  ;;  %v2116_v46 = vsel %vm28_vm0, %v7041_v43, 0.0  ;;  %v5705_v60 = vadd.f32 %v5569_v11, %v1900_v61  ;;  %1750 = vmatprep.mubr.bf16.mxu1 %v4697_v16  ;;  %v4695_v3 = vld [vmem:[%s7033_s0 + $0x3e8] ss:$16 sps:$4 sm:$0xff]   ;;  %v107_v43 = vld [vmem:[#allocation2 + $0x70] sm:$0xff] }
 0x173   :  { %v1554_v53 = vpop.f32.mrf.mxu1  ;;  %2117 = vadd.xlane.f32.xlu0 %v2116_v46  ;;  %v1329_v8 = vpop.f32.mrf.mxu0 }
 0x174   :  { %v1771_v51 = vadd.f32 %v1553_v63, %v105_v47  ;;  %v7044_v56 = vmax.f32 %v5705_v60, 0.0 }
 0x175   :  { %v1555_v12 = vpop.f32.mrf.mxu1  ;;  %v1901_v34 = vld [vmem:[#allocation2 + $0x50] sm:$0xff]  ;;  %v5711_v36 = vpop.f32.mrf.mxu0 }
 0x176   :  { %1836 = vst.msk [vmem:[#allocation2 + $0x60] sm:$0xff] %vm28_vm0, %v1771_v51  ;;  %v1556_v61 = vadd.f32 %v1555_v12, %v5530_v10  ;;  %v2119_v46 = vsel %vm28_vm0, %v7044_v56, 0.0  ;;  %v5719_v16 = vadd.f32 %v5569_v11, %v1901_v34 }
 0x177   :  { %v1557_v47 = vpop.f32.mrf.mxu1  ;;  %2120 = vadd.xlane.f32.xlu1 %v2119_v46  ;;  %v1332_v63 = vpop.f32.mrf.mxu0 }
 0x178   :  { %v1772_v53 = vadd.f32 %v1556_v61, %v106_v30  ;;  %v7046_v8 = vmax.f32 %v5719_v16, 0.0  ;;  %v108_v47 = vld [vmem:[#allocation2 + $0x78] sm:$0xff] }
 0x179   :  { %v1560_v40 = vpop.f32.mrf.mxu1  ;;  %1751 = vmatmul.mubr.bf16.gmra.mxu1 %v4695_v3  ;;  %v1902_v5 = vld [vmem:[#allocation2 + $0x58] sm:$0xff]  ;;  %v5722_v51 = vpop.f32.mrf.mxu0 }
 0x17a   :  { %1837 = vst.msk [vmem:[#allocation2 + $0x68] sm:$0xff] %vm28_vm0, %v1772_v53  ;;  %v1561_v10 = vadd.f32 %v1560_v40, %v5537_v18  ;;  %v2122_v12 = vsel %vm28_vm0, %v7046_v8, 0.0  ;;  %v5730_v34 = vadd.f32 %v5569_v11, %v1902_v5 }
 0x17b   :  { %v1562_v30 = vpop.f32.mrf.mxu1  ;;  %2123 = vadd.xlane.f32.xlu0 %v2122_v12  ;;  %v1337_v61 = vpop.f32.mrf.mxu0 }
 0x17c   :  { %v1773_v46 = vadd.f32 %v1561_v10, %v107_v43  ;;  %v7048_v3 = vmax.f32 %v5730_v34, 0.0  ;;  %v109_v30 = vld [vmem:[#allocation2 + $0x80] sm:$0xff] }
 0x17d   :  { %v1563_v63 = vpop.f32.mrf.mxu1  ;;  %v1903_v56 = vld [vmem:[#allocation2 + $0x60] sm:$0xff]  ;;  %v5733_v21 = vpop.f32.mrf.mxu0 }
 0x17e   :  { %1838 = vst.msk [vmem:[#allocation2 + $0x70] sm:$0xff] %vm28_vm0, %v1773_v46  ;;  %v1564_v18 = vadd.f32 %v1563_v63, %v5544_v27  ;;  %v2125_v5 = vsel %vm28_vm0, %v7048_v3, 0.0  ;;  %v5741_v40 = vadd.f32 %v5569_v11, %v1903_v56 }
 0x17f   :  { %v1565_v53 = vpop.f32.mrf.mxu1  ;;  %2126 = vadd.xlane.f32.xlu1 %v2125_v5  ;;  %v1340_v43 = vpop.f32.mrf.mxu0 }
 0x180   :  { %v1774_v10 = vadd.f32 %v1564_v18, %v108_v47  ;;  %v7050_v12 = vmax.f32 %v5741_v40, 0.0  ;;  %v110_v53 = vld [vmem:[#allocation2 + $0x88] sm:$0xff] }
 0x181   :  { %v1568_v61 = vpop.f32.mrf.mxu1  ;;  %v1904_v8 = vld [vmem:[#allocation2 + $0x68] sm:$0xff]  ;;  %v5744_v13 = vpop.f32.mrf.mxu0 }
 0x182   :  { %1839 = vst.msk [vmem:[#allocation2 + $0x78] sm:$0xff] %vm28_vm0, %v1774_v10  ;;  %v1569_v27 = vadd.f32 %v1568_v61, %v5549_v37  ;;  %v2128_v56 = vsel %vm28_vm0, %v7050_v12, 0.0  ;;  %v5752_v46 = vadd.f32 %v5569_v11, %v1904_v8 }
 0x183   :  { %v1570_v63 = vpop.f32.mrf.mxu1  ;;  %2129 = vadd.xlane.f32.xlu0 %v2128_v56  ;;  %v1345_v47 = vpop.f32.mrf.mxu0 }
 0x184   :  { %v1775_v18 = vadd.f32 %v1569_v27, %v109_v30  ;;  %v7052_v5 = vmax.f32 %v5752_v46, 0.0  ;;  %v111_v63 = vld [vmem:[#allocation2 + $0x90] sm:$0xff] }
 0x185   :  { %v1571_v43 = vpop.f32.mrf.mxu1  ;;  %v1905_v3 = vld [vmem:[#allocation2 + $0x70] sm:$0xff]  ;;  %v5755_v7 = vpop.f32.mrf.mxu0 }
 0x186   :  { %1840 = vst.msk [vmem:[#allocation2 + $0x80] sm:$0xff] %vm28_vm0, %v1775_v18  ;;  %v1572_v37 = vadd.f32 %v1571_v43, %v5555_v50  ;;  %v2131_v8 = vsel %vm28_vm0, %v7052_v5, 0.0  ;;  %v5763_v10 = vadd.f32 %v5569_v11, %v1905_v3 }
 0x187   :  { %v1573_v61 = vpop.f32.mrf.mxu1  ;;  %2132 = vadd.xlane.f32.xlu1 %v2131_v8  ;;  %v1348_v30 = vpop.f32.mrf.mxu0 }
 0x188   :  { %v1776_v27 = vadd.f32 %v1572_v37, %v110_v53  ;;  %v7053_v56 = vmax.f32 %v5763_v10, 0.0  ;;  %v112_v61 = vld [vmem:[#allocation2 + $0x98] sm:$0xff] }
 0x189   :  { %v1576_v47 = vpop.f32.mrf.mxu1  ;;  %v1906_v12 = vld [vmem:[#allocation2 + $0x78] sm:$0xff]  ;;  %v5766_v33 = vpop.f32.mrf.mxu0 }
 0x18a   :  { %1841 = vst.msk [vmem:[#allocation2 + $0x88] sm:$0xff] %vm28_vm0, %v1776_v27  ;;  %v1577_v50 = vadd.f32 %v1576_v47, %v5562_v62  ;;  %v2134_v3 = vsel %vm28_vm0, %v7053_v56, 0.0  ;;  %v5774_v18 = vadd.f32 %v5569_v11, %v1906_v12 }
 0x18b   :  { %v1578_v43 = vpop.f32.mrf.mxu1  ;;  %2135 = vadd.xlane.f32.xlu0 %v2134_v3  ;;  %v1353_v53 = vpop.f32.mrf.mxu0 }
 0x18c   :  { %v1777_v37 = vadd.f32 %v1577_v50, %v111_v63  ;;  %v7054_v8 = vmax.f32 %v5774_v18, 0.0  ;;  %v113_v43 = vld [vmem:[#allocation2 + $0xa0] sm:$0xff] }
 0x18d   :  { %v1579_v30 = vpop.f32.mrf.mxu1  ;;  %v1907_v5 = vld [vmem:[#allocation2 + $0x80] sm:$0xff]  ;;  %v5777_v23 = vpop.f32.mrf.mxu0 }
 0x18e   :  { %1842 = vst.msk [vmem:[#allocation2 + $0x90] sm:$0xff] %vm28_vm0, %v1777_v37  ;;  %v1580_v62 = vadd.f32 %v1579_v30, %v5574_v20  ;;  %v2137_v12 = vsel %vm28_vm0, %v7054_v8, 0.0  ;;  %v5785_v27 = vadd.f32 %v5569_v11, %v1907_v5 }
 0x18f   :  { %v1581_v47 = vpop.f32.mrf.mxu1  ;;  %2138 = vadd.xlane.f32.xlu1 %v2137_v12  ;;  %v1356_v63 = vpop.f32.mrf.mxu0 }
 0x190   :  { %v1778_v50 = vadd.f32 %v1580_v62, %v112_v61  ;;  %v7055_v3 = vmax.f32 %v5785_v27, 0.0  ;;  %v114_v47 = vld [vmem:[#allocation2 + $0xa8] sm:$0xff] }
 0x191   :  { %v1584_v53 = vpop.f32.mrf.mxu1  ;;  %v1908_v56 = vld [vmem:[#allocation2 + $0x88] sm:$0xff]  ;;  %v5788_v17 = vpop.f32.mrf.mxu0 }
 0x192   :  { %1843 = vst.msk [vmem:[#allocation2 + $0x98] sm:$0xff] %vm28_vm0, %v1778_v50  ;;  %v1585_v20 = vadd.f32 %v1584_v53, %v5585_v42  ;;  %v2140_v5 = vsel %vm28_vm0, %v7055_v3, 0.0  ;;  %v5796_v37 = vadd.f32 %v5569_v11, %v1908_v56 }
 0x193   :  { %v1586_v30 = vpop.f32.mrf.mxu1  ;;  %2141 = vadd.xlane.f32.xlu0 %v2140_v5  ;;  %v1361_v61 = vpop.f32.mrf.mxu0 }
 0x194   :  { %v1779_v62 = vadd.f32 %v1585_v20, %v113_v43  ;;  %v7056_v12 = vmax.f32 %v5796_v37, 0.0  ;;  %v115_v30 = vld [vmem:[#allocation2 + $0xb0] sm:$0xff] }
 0x195   :  { %v1587_v63 = vpop.f32.mrf.mxu1  ;;  %v1909_v8 = vld [vmem:[#allocation2 + $0x90] sm:$0xff]  ;;  %v5799_v0 = vpop.f32.mrf.mxu0 }
 0x196   :  { %1844 = vst.msk [vmem:[#allocation2 + $0xa0] sm:$0xff] %vm28_vm0, %v1779_v62  ;;  %v1588_v42 = vadd.f32 %v1587_v63, %v5599_v58  ;;  %v2143_v56 = vsel %vm28_vm0, %v7056_v12, 0.0  ;;  %v5807_v50 = vadd.f32 %v5569_v11, %v1909_v8 }
 0x197   :  { %v1589_v53 = vpop.f32.mrf.mxu1  ;;  %2144 = vadd.xlane.f32.xlu1 %v2143_v56  ;;  %v1364_v43 = vpop.f32.mrf.mxu0 }
 0x198   :  { %v1780_v20 = vadd.f32 %v1588_v42, %v114_v47  ;;  %v7057_v5 = vmax.f32 %v5807_v50, 0.0  ;;  %v116_v53 = vld [vmem:[#allocation2 + $0xb8] sm:$0xff] }
 0x199   :  { %v1592_v61 = vpop.f32.mrf.mxu1  ;;  %v1910_v3 = vld [vmem:[#allocation2 + $0x98] sm:$0xff]  ;;  %v5810_v2 = vpop.f32.mrf.mxu0 }
 0x19a   :  { %1845 = vst.msk [vmem:[#allocation2 + $0xa8] sm:$0xff] %vm28_vm0, %v1780_v20  ;;  %v1593_v58 = vadd.f32 %v1592_v61, %v5613_v24  ;;  %v2146_v8 = vsel %vm28_vm0, %v7057_v5, 0.0  ;;  %v5818_v62 = vadd.f32 %v5569_v11, %v1910_v3 }
 0x19b   :  { %v1594_v63 = vpop.f32.mrf.mxu1  ;;  %2147 = vadd.xlane.f32.xlu0 %v2146_v8  ;;  %v1369_v47 = vpop.f32.mrf.mxu0 }
 0x19c   :  { %7138 = vst [vmem:[#allocation9_spill] sm:$0xff] %v5818_v62  ;;  %v1781_v42 = vadd.f32 %v1593_v58, %v115_v30  ;;  %v7058_v56 = vmax.f32 %v5818_v62, 0.0  ;;  %v117_v63 = vld [vmem:[#allocation2 + $0xc0] sm:$0xff] }
 0x19d   :  { %v1595_v43 = vpop.f32.mrf.mxu1  ;;  %v1911_v12 = vld [vmem:[#allocation2 + $0xa0] sm:$0xff]  ;;  %v5821_v59 = vpop.f32.mrf.mxu0 }
 0x19e   :  { %1846 = vst.msk [vmem:[#allocation2 + $0xb0] sm:$0xff] %vm28_vm0, %v1781_v42  ;;  %v1596_v24 = vadd.f32 %v1595_v43, %v5627_v52  ;;  %v2149_v3 = vsel %vm28_vm0, %v7058_v56, 0.0  ;;  %v5829_v20 = vadd.f32 %v5569_v11, %v1911_v12 }
 0x19f   :  { %v1597_v61 = vpop.f32.mrf.mxu1  ;;  %2150 = vadd.xlane.f32.xlu1 %v2149_v3  ;;  %v1372_v30 = vpop.f32.mrf.mxu0 }
 0x1a0   :  { %7139 = vst [vmem:[#allocation10_spill] sm:$0xff] %v5829_v20  ;;  %v1782_v58 = vadd.f32 %v1596_v24, %v116_v53  ;;  %v7060_v8 = vmax.f32 %v5829_v20, 0.0  ;;  %v118_v61 = vld [vmem:[#allocation2 + $0xc8] sm:$0xff] }
 0x1a1   :  { %v1600_v47 = vpop.f32.mrf.mxu1  ;;  %v1912_v5 = vld [vmem:[#allocation2 + $0xa8] sm:$0xff]  ;;  %v5832_v55 = vpop.f32.mrf.mxu0 }
 0x1a2   :  { %1847 = vst.msk [vmem:[#allocation2 + $0xb8] sm:$0xff] %vm28_vm0, %v1782_v58  ;;  %v1601_v52 = vadd.f32 %v1600_v47, %v5641_v14  ;;  %v2152_v12 = vsel %vm28_vm0, %v7060_v8, 0.0  ;;  %v5840_v42 = vadd.f32 %v5569_v11, %v1912_v5 }
 0x1a3   :  { %v1602_v43 = vpop.f32.mrf.mxu1  ;;  %2153 = vadd.xlane.f32.xlu0 %v2152_v12  ;;  %v1377_v53 = vpop.f32.mrf.mxu0 }
 0x1a4   :  { %7140 = vst [vmem:[#allocation11_spill] sm:$0xff] %v5840_v42  ;;  %v1783_v24 = vadd.f32 %v1601_v52, %v117_v63  ;;  %v7062_v3 = vmax.f32 %v5840_v42, 0.0  ;;  %v119_v43 = vld [vmem:[#allocation2 + $0xd0] sm:$0xff] }
 0x1a5   :  { %v1603_v30 = vpop.f32.mrf.mxu1  ;;  %v1913_v56 = vld [vmem:[#allocation2 + $0xb0] sm:$0xff]  ;;  %v5843_v62 = vpop.f32.mrf.mxu0 }
 0x1a6   :  { %1848 = vst.msk [vmem:[#allocation2 + $0xc0] sm:$0xff] %vm28_vm0, %v1783_v24  ;;  %v1604_v14 = vadd.f32 %v1603_v30, %v5655_v48  ;;  %v2155_v5 = vsel %vm28_vm0, %v7062_v3, 0.0  ;;  %v5851_v58 = vadd.f32 %v5569_v11, %v1913_v56 }
 0x1a7   :  { %v1605_v47 = vpop.f32.mrf.mxu1  ;;  %2156 = vadd.xlane.f32.xlu1 %v2155_v5  ;;  %v1380_v63 = vpop.f32.mrf.mxu0 }
 0x1a8   :  { %7141 = vst [vmem:[#allocation12_spill] sm:$0xff] %v5851_v58  ;;  %v1784_v52 = vadd.f32 %v1604_v14, %v118_v61  ;;  %v7064_v12 = vmax.f32 %v5851_v58, 0.0  ;;  %v120_v47 = vld [vmem:[#allocation2 + $0xd8] sm:$0xff] }
 0x1a9   :  { %v1608_v53 = vpop.f32.mrf.mxu1  ;;  %v1914_v8 = vld [vmem:[#allocation2 + $0xb8] sm:$0xff]  ;;  %v5854_v20 = vpop.f32.mrf.mxu0 }
 0x1aa   :  { %1849 = vst.msk [vmem:[#allocation2 + $0xc8] sm:$0xff] %vm28_vm0, %v1784_v52  ;;  %v1609_v48 = vadd.f32 %v1608_v53, %v5669_v31  ;;  %v2158_v56 = vsel %vm28_vm0, %v7064_v12, 0.0  ;;  %v5862_v24 = vadd.f32 %v5569_v11, %v1914_v8 }
 0x1ab   :  { %v1610_v30 = vpop.f32.mrf.mxu1  ;;  %2159 = vadd.xlane.f32.xlu0 %v2158_v56  ;;  %v1385_v61 = vpop.f32.mrf.mxu0 }
 0x1ac   :  { %7142 = vst [vmem:[#allocation13_spill] sm:$0xff] %v5862_v24  ;;  %v1785_v14 = vadd.f32 %v1609_v48, %v119_v43  ;;  %v7066_v5 = vmax.f32 %v5862_v24, 0.0  ;;  %v121_v30 = vld [vmem:[#allocation2 + $0xe0] sm:$0xff] }
 0x1ad   :  { %v1611_v63 = vpop.f32.mrf.mxu1  ;;  %v1915_v3 = vld [vmem:[#allocation2 + $0xc0] sm:$0xff]  ;;  %v5865_v42 = vpop.f32.mrf.mxu0 }
 0x1ae   :  { %1850 = vst.msk [vmem:[#allocation2 + $0xd0] sm:$0xff] %vm28_vm0, %v1785_v14  ;;  %v1612_v31 = vadd.f32 %v1611_v63, %v5683_v4  ;;  %v2161_v8 = vsel %vm28_vm0, %v7066_v5, 0.0  ;;  %v5873_v52 = vadd.f32 %v5569_v11, %v1915_v3 }
 0x1af   :  { %v1613_v53 = vpop.f32.mrf.mxu1  ;;  %2162 = vadd.xlane.f32.xlu1 %v2161_v8  ;;  %v1388_v43 = vpop.f32.mrf.mxu0 }
 0x1b0   :  { %7143 = vst [vmem:[#allocation14_spill] sm:$0xff] %v5873_v52  ;;  %v1786_v48 = vadd.f32 %v1612_v31, %v120_v47  ;;  %v7068_v56 = vmax.f32 %v5873_v52, 0.0  ;;  %v122_v53 = vld [vmem:[#allocation2 + $0xe8] sm:$0xff] }
 0x1b1   :  { %v1616_v61 = vpop.f32.mrf.mxu1  ;;  %v1916_v12 = vld [vmem:[#allocation2 + $0xc8] sm:$0xff]  ;;  %v5876_v58 = vpop.f32.mrf.mxu0 }
 0x1b2   :  { %1851 = vst.msk [vmem:[#allocation2 + $0xd8] sm:$0xff] %vm28_vm0, %v1786_v48  ;;  %v1617_v4 = vadd.f32 %v1616_v61, %v5697_v54  ;;  %v2164_v3 = vsel %vm28_vm0, %v7068_v56, 0.0  ;;  %v5884_v14 = vadd.f32 %v5569_v11, %v1916_v12 }
 0x1b3   :  { %v1618_v63 = vpop.f32.mrf.mxu1  ;;  %2165 = vadd.xlane.f32.xlu0 %v2164_v3  ;;  %v1393_v47 = vpop.f32.mrf.mxu0 }
 0x1b4   :  { %7144 = vst [vmem:[#allocation15_spill] sm:$0xff] %v5884_v14  ;;  %v1787_v31 = vadd.f32 %v1617_v4, %v121_v30  ;;  %v7070_v8 = vmax.f32 %v5884_v14, 0.0  ;;  %v123_v63 = vld [vmem:[#allocation2 + $0xf0] sm:$0xff] }
 0x1b5   :  { %v1619_v43 = vpop.f32.mrf.mxu1  ;;  %v1917_v5 = vld [vmem:[#allocation2 + $0xd0] sm:$0xff]  ;;  %v5887_v24 = vpop.f32.mrf.mxu0 }
 0x1b6   :  { %1852 = vst.msk [vmem:[#allocation2 + $0xe0] sm:$0xff] %vm28_vm0, %v1787_v31  ;;  %v1620_v54 = vadd.f32 %v1619_v43, %v5711_v36  ;;  %v2167_v12 = vsel %vm28_vm0, %v7070_v8, 0.0  ;;  %v5895_v48 = vadd.f32 %v5569_v11, %v1917_v5 }
 0x1b7   :  { %v1621_v61 = vpop.f32.mrf.mxu1  ;;  %2168 = vadd.xlane.f32.xlu1 %v2167_v12  ;;  %v1396_v30 = vpop.f32.mrf.mxu0 }
 0x1b8   :  { %v1788_v4 = vadd.f32 %v1620_v54, %v122_v53  ;;  %v7072_v3 = vmax.f32 %v5895_v48, 0.0  ;;  %v124_v61 = vld [vmem:[#allocation2 + $0xf8] sm:$0xff] }
 0x1b9   :  { %v1624_v47 = vpop.f32.mrf.mxu1  ;;  %v1918_v56 = vld [vmem:[#allocation2 + $0xd8] sm:$0xff]  ;;  %v5898_v52 = vpop.f32.mrf.mxu0 }
 0x1ba   :  { %1853 = vst.msk [vmem:[#allocation2 + $0xe8] sm:$0xff] %vm28_vm0, %v1788_v4  ;;  %v1625_v36 = vadd.f32 %v1624_v47, %v5722_v51  ;;  %v2170_v5 = vsel %vm28_vm0, %v7072_v3, 0.0  ;;  %v5906_v31 = vadd.f32 %v5569_v11, %v1918_v56 }
 0x1bb   :  { %v1626_v43 = vpop.f32.mrf.mxu1  ;;  %2171 = vadd.xlane.f32.xlu0 %v2170_v5  ;;  %v1401_v53 = vpop.f32.mrf.mxu0 }
 0x1bc   :  { %v1789_v54 = vadd.f32 %v1625_v36, %v123_v63  ;;  %v7076_v12 = vmax.f32 %v5906_v31, 0.0  ;;  %v125_v43 = vld [vmem:[#allocation2 + $0x100] sm:$0xff] }
 0x1bd   :  { %v1627_v30 = vpop.f32.mrf.mxu1  ;;  %v1919_v8 = vld [vmem:[#allocation2 + $0xe0] sm:$0xff]  ;;  %v5909_v14 = vpop.f32.mrf.mxu0 }
 0x1be   :  { %1854 = vst.msk [vmem:[#allocation2 + $0xf0] sm:$0xff] %vm28_vm0, %v1789_v54  ;;  %v1628_v51 = vadd.f32 %v1627_v30, %v5733_v21  ;;  %v2173_v56 = vsel %vm28_vm0, %v7076_v12, 0.0  ;;  %v5917_v4 = vadd.f32 %v5569_v11, %v1919_v8 }
 0x1bf   :  { %v1629_v47 = vpop.f32.mrf.mxu1  ;;  %2174 = vadd.xlane.f32.xlu1 %v2173_v56  ;;  %v1404_v63 = vpop.f32.mrf.mxu0 }
 0x1c0   :  { %v1790_v36 = vadd.f32 %v1628_v51, %v124_v61  ;;  %v7073_v5 = vmax.f32 %v5917_v4, 0.0  ;;  %v126_v51 = vld [vmem:[#allocation2 + $0x108] sm:$0xff] }
 0x1c1   :  { %v1632_v53 = vpop.f32.mrf.mxu1  ;;  %v1920_v3 = vld [vmem:[#allocation2 + $0xe8] sm:$0xff] }
 0x1c2   :  { %1855 = vst.msk [vmem:[#allocation2 + $0xf8] sm:$0xff] %vm28_vm0, %v1790_v36  ;;  %v1633_v21 = vadd.f32 %v1632_v53, %v5744_v13  ;;  %v2176_v54 = vsel %vm28_vm0, %v7073_v5, 0.0  ;;  %v5926_v8 = vadd.f32 %v5569_v11, %v1920_v3 }
 0x1c3   :  { %v1634_v30 = vpop.f32.mrf.mxu1  ;;  %2177 = vadd.xlane.f32.xlu0 %v2176_v54 }
 0x1c4   :  { %v1791_v56 = vadd.f32 %v1633_v21, %v125_v43  ;;  %v7074_v61 = vmax.f32 %v5926_v8, 0.0  ;;  %v127_v21 = vld [vmem:[#allocation2 + $0x110] sm:$0xff] }
 0x1c5   :  { %v1635_v47 = vpop.f32.mrf.mxu1  ;;  %v1921_v63 = vld [vmem:[#allocation2 + $0xf0] sm:$0xff] }
 0x1c6   :  { %1856 = vst.msk [vmem:[#allocation2 + $0x100] sm:$0xff] %vm28_vm0, %v1791_v56  ;;  %v1636_v36 = vadd.f32 %v1635_v47, %v5755_v7  ;;  %v2179_v13 = vsel %vm28_vm0, %v7074_v61, 0.0  ;;  %v5935_v53 = vadd.f32 %v5569_v11, %v1921_v63 }
 0x1c7   :  { %v1637_v3 = vpop.f32.mrf.mxu1  ;;  %2180 = vadd.xlane.f32.xlu1 %v2179_v13  ;;  %v128_v13 = vld [vmem:[#allocation2 + $0x118] sm:$0xff] }
 0x1c8   :  { %v1792_v54 = vadd.f32 %v1636_v36, %v126_v51  ;;  %v7075_v43 = vmax.f32 %v5935_v53, 0.0  ;;  %v4698_v3 = vld [vmem:[%s7035_s5 + $0x8] sm:$0xff]  }
 0x1c9   :  { %v1640_v30 = vpop.f32.mrf.mxu1  ;;  %v1922_v5 = vld [vmem:[#allocation2 + $0xf8] sm:$0xff]  ;;  %4372 = vmatprep.subr.bf16.mxu0 %v4698_v3 }
 0x1ca   :  { %1857 = vst.msk [vmem:[#allocation2 + $0x108] sm:$0xff] %vm28_vm0, %v1792_v54  ;;  %v1641_v56 = vadd.f32 %v1640_v30, %v5766_v33  ;;  %v2182_v7 = vsel %vm28_vm0, %v7075_v43, 0.0  ;;  %v5944_v47 = vadd.f32 %v5569_v11, %v1922_v5  ;;  %4373 = vmatpush3.bf16.msra.mxu0 %v4698_v3 }
 0x1cb   :  { %v1642_v63 = vpop.f32.mrf.mxu1  ;;  %2183 = vadd.xlane.f32.xlu0 %v2182_v7 }
 0x1cc   :  { %v1793_v51 = vadd.f32 %v1641_v56, %v127_v21  ;;  %v7079_v36 = vmax.f32 %v5944_v47, 0.0  ;;  %v129_v63 = vld [vmem:[#allocation2 + $0x120] sm:$0xff] }
 0x1cd   :  { %v1643_v54 = vpop.f32.mrf.mxu1  ;;  %v1923_v61 = vld [vmem:[#allocation2 + $0x100] sm:$0xff] }
 0x1ce   :  { %1858 = vst.msk [vmem:[#allocation2 + $0x110] sm:$0xff] %vm28_vm0, %v1793_v51  ;;  %v1644_v33 = vadd.f32 %v1643_v54, %v5777_v23  ;;  %v2185_v5 = vsel %vm28_vm0, %v7079_v36, 0.0  ;;  %v5956_v30 = vadd.f32 %v5569_v11, %v1923_v61 }
 0x1cf   :  { %v1645_v21 = vpop.f32.mrf.mxu1  ;;  %2186 = vadd.xlane.f32.xlu1 %v2185_v5 }
 0x1d0   :  { %v1794_v56 = vadd.f32 %v1644_v33, %v128_v13  ;;  %v7077_v7 = vmax.f32 %v5956_v30, 0.0  ;;  %v130_v33 = vld [vmem:[#allocation2 + $0x128] sm:$0xff] }
 0x1d1   :  { %v1648_v43 = vpop.f32.mrf.mxu1  ;;  %v1924_v12 = vld [vmem:[#allocation2 + $0x108] sm:$0xff] }
 0x1d2   :  { %1859 = vst.msk [vmem:[#allocation2 + $0x118] sm:$0xff] %vm28_vm0, %v1794_v56  ;;  %v1649_v23 = vadd.f32 %v1648_v43, %v5788_v17  ;;  %v2188_v51 = vsel %vm28_vm0, %v7077_v7, 0.0  ;;  %v5965_v61 = vadd.f32 %v5569_v11, %v1924_v12 }
 0x1d3   :  { %v1650_v54 = vpop.f32.mrf.mxu1  ;;  %2189 = vadd.xlane.f32.xlu0 %v2188_v51 }
 0x1d4   :  { %7145 = vst [vmem:[#allocation16_spill] sm:$0xff] %v5965_v61  ;;  %v1795_v3 = vadd.f32 %v1649_v23, %v129_v63  ;;  %v7078_v13 = vmax.f32 %v5965_v61, 0.0  ;;  %v131_v23 = vld [vmem:[#allocation2 + $0x130] sm:$0xff] }
 0x1d5   :  { %v1651_v5 = vpop.f32.mrf.mxu1  ;;  %v1925_v21 = vld [vmem:[#allocation2 + $0x110] sm:$0xff] }
 0x1d6   :  { %1860 = vst.msk [vmem:[#allocation2 + $0x120] sm:$0xff] %vm28_vm0, %v1795_v3  ;;  %v1652_v56 = vadd.f32 %v1651_v5, %v5799_v0  ;;  %v2191_v17 = vsel %vm28_vm0, %v7078_v13, 0.0  ;;  %v5974_v43 = vadd.f32 %v5569_v11, %v1925_v21  ;;  %v132_v13 = vld [vmem:[#allocation2 + $0x138] sm:$0xff] }
 0x1d7   :  { %v1653_v12 = vpop.f32.mrf.mxu1  ;;  %2192 = vadd.xlane.f32.xlu1 %v2191_v17 }
 0x1d8   :  { %v1796_v51 = vadd.f32 %v1652_v56, %v130_v33  ;;  %v7081_v63 = vmax.f32 %v5974_v43, 0.0 }
 0x1d9   :  { %v1656_v54 = vpop.f32.mrf.mxu1  ;;  %v1926_v7 = vld [vmem:[#allocation2 + $0x118] sm:$0xff] }
 0x1da   :  { %1861 = vst.msk [vmem:[#allocation2 + $0x128] sm:$0xff] %vm28_vm0, %v1796_v51  ;;  %v1657_v3 = vadd.f32 %v1656_v54, %v5810_v2  ;;  %v2194_v0 = vsel %vm28_vm0, %v7081_v63, 0.0  ;;  %v5983_v5 = vadd.f32 %v5569_v11, %v1926_v7  ;;  %v133_v63 = vld [vmem:[#allocation2 + $0x140] sm:$0xff] }
 0x1db   :  { %v1658_v21 = vpop.f32.mrf.mxu1  ;;  %2195 = vadd.xlane.f32.xlu0 %v2194_v0 }
 0x1dc   :  { %v1797_v17 = vadd.f32 %v1657_v3, %v131_v23  ;;  %v2094_v33 = vpop.xlane.xlu0 %2093  ;;  %v7082_v56 = vmax.f32 %v5983_v5, 0.0  ;;  %v7147_v23 = vmax.f32 %v5579_v22, 0.0 }
 0x1dd   :  { %v2285_v12 = vmul.f32 0.03125, %v2094_v33  ;;  %v1659_v36 = vpop.f32.mrf.mxu1  ;;  %v1927_v61 = vld [vmem:[#allocation2 + $0x120] sm:$0xff] }
 0x1de   :  { %1862 = vst.msk [vmem:[#allocation2 + $0x130] sm:$0xff] %vm28_vm0, %v1797_v17  ;;  %v1660_v2 = vadd.f32 %v1659_v36, %v5821_v59  ;;  %v2197_v51 = vsel %vm28_vm0, %v7082_v56, 0.0  ;;  %v5992_v7 = vadd.f32 %v5569_v11, %v1927_v61 }
 0x1df   :  { %v5996_v54 = vsub.f32 %v7147_v23, %v2285_v12  ;;  %v1661_v3 = vpop.f32.mrf.mxu1  ;;  %2198 = vadd.xlane.f32.xlu1 %v2197_v51  ;;  %v7149_v12 = vmax.f32 %v5593_v44, 0.0 }
 0x1e0   :  { %7146 = vst [vmem:[#allocation17_spill] sm:$0xff] %v5992_v7  ;;  %v1798_v0 = vadd.f32 %v1660_v2, %v132_v13  ;;  %v2097_v21 = vpop.xlane.xlu0 %2096  ;;  %v7086_v33 = vmax.f32 %v5992_v7, 0.0 }
 0x1e1   :  { %7148 = vst [vmem:[#allocation18_spill] sm:$0xff] %v5996_v54  ;;  %v2286_v17 = vmul.f32 0.03125, %v2097_v21  ;;  %v1664_v59 = vpop.f32.mrf.mxu1  ;;  %v2413_v36 = vmul.f32 %v5996_v54, %v5996_v54  ;;  %v1928_v56 = vld [vmem:[#allocation2 + $0x128] sm:$0xff] }
 0x1e2   :  { %1863 = vst.msk [vmem:[#allocation2 + $0x138] sm:$0xff] %vm28_vm0, %v1798_v0  ;;  %v1665_v61 = vadd.f32 %v1664_v59, %v5832_v55  ;;  %v2200_v22 = vsel %vm28_vm0, %v7086_v33, 0.0  ;;  %v6007_v13 = vadd.f32 %v5569_v11, %v1928_v56  ;;  %v134_v54 = vld [vmem:[#allocation2 + $0x148] sm:$0xff]  ;;  %v6025_v56 = vld [vmem:[%s7034_s2] ss:$0 sm:$0xff] }
 0x1e3   :  { %v6011_v2 = vsub.f32 %v7149_v12, %v2286_v17  ;;  %v1666_v51 = vpop.f32.mrf.mxu1  ;;  %2201 = vadd.xlane.f32.xlu0 %v2200_v22  ;;  %v2477_v59 = vsel %vm28_vm0, %v2413_v36, 0.0  ;;  %v7150_v36 = vmax.f32 %v5607_v1, 0.0 }
 0x1e4   :  { %v1799_v23 = vadd.f32 %v1665_v61, %v133_v63  ;;  %v2100_v3 = vpop.xlane.xlu1 %2099  ;;  %v7085_v21 = vmax.f32 %v6007_v13, 0.0 }
 0x1e5   :  { %v2287_v0 = vmul.f32 0.03125, %v2100_v3  ;;  %v1667_v55 = vpop.f32.mrf.mxu1  ;;  %v1929_v7 = vld [vmem:[#allocation2 + $0x130] sm:$0xff]  ;;  %v2414_v63 = vmul.f32 %v6011_v2, %v6011_v2 }
 0x1e6   :  { %1864 = vst.msk [vmem:[#allocation2 + $0x140] sm:$0xff] %vm28_vm0, %v1799_v23  ;;  %v1668_v11 = vadd.f32 %v1667_v55, %v5843_v62  ;;  %v2203_v44 = vsel %vm28_vm0, %v7085_v21, 0.0  ;;  %v6028_v17 = vadd.f32 %v6025_v56, %v1929_v7  ;;  %v135_v3 = vld [vmem:[#allocation2 + $0x150] sm:$0xff] }
 0x1e7   :  { %v6032_v61 = vsub.f32 %v7150_v36, %v2287_v0  ;;  %v1669_v62 = vpop.f32.mrf.mxu1  ;;  %2478 = vadd.xlane.f32.xlu0 %v2477_v59  ;;  %2204 = vadd.xlane.f32.xlu1 %v2203_v44  ;;  %v2480_v7 = vsel %vm28_vm0, %v2414_v63, 0.0  ;;  %v7151_v59 = vmax.f32 %v5621_v32, 0.0  ;;  %v136_v63 = vld [vmem:[#allocation2 + $0x158] sm:$0xff] }
 0x1e8   :  { %v1800_v22 = vadd.f32 %v1668_v11, %v134_v54  ;;  %v2103_v12 = vpop.xlane.xlu1 %2102  ;;  %v7087_v51 = vmax.f32 %v6028_v17, 0.0 }
 0x1e9   :  { %v2288_v23 = vmul.f32 0.03125, %v2103_v12  ;;  %v1672_v55 = vpop.f32.mrf.mxu1  ;;  %v2415_v21 = vmul.f32 %v6032_v61, %v6032_v61  ;;  %v1930_v33 = vld [vmem:[#allocation2 + $0x138] sm:$0xff] }
 0x1ea   :  { %1865 = vst.msk [vmem:[#allocation2 + $0x148] sm:$0xff] %vm28_vm0, %v1800_v22  ;;  %v1673_v1 = vadd.f32 %v1672_v55, %v5854_v20  ;;  %v2206_v54 = vsel %vm28_vm0, %v7087_v51, 0.0  ;;  %v6044_v0 = vadd.f32 %v6025_v56, %v1930_v33 }
 0x1eb   :  { %v6048_v11 = vsub.f32 %v7151_v59, %v2288_v23  ;;  %v1674_v44 = vpop.f32.mrf.mxu1  ;;  %2481 = vadd.xlane.f32.xlu1 %v2480_v7  ;;  %2207 = vadd.xlane.f32.xlu0 %v2206_v54  ;;  %v2483_v55 = vsel %vm28_vm0, %v2415_v21, 0.0 }
 0x1ec   :  { %v1801_v36 = vadd.f32 %v1673_v1, %v135_v3  ;;  %v2106_v62 = vpop.xlane.xlu0 %2105  ;;  %v7088_v20 = vmax.f32 %v6044_v0, 0.0  ;;  %v7152_v1 = vmax.f32 %v5635_v26, 0.0 }
 0x1ed   :  { %v2289_v22 = vmul.f32 0.03125, %v2106_v62  ;;  %v1675_v12 = vpop.f32.mrf.mxu1  ;;  %v1931_v51 = vld [vmem:[#allocation2 + $0x140] sm:$0xff]  ;;  %v2416_v23 = vmul.f32 %v6048_v11, %v6048_v11 }
 0x1ee   :  { %1866 = vst.msk [vmem:[#allocation2 + $0x150] sm:$0xff] %vm28_vm0, %v1801_v36  ;;  %v1676_v33 = vadd.f32 %v1675_v12, %v5865_v42  ;;  %v2209_v32 = vsel %vm28_vm0, %v7088_v20, 0.0  ;;  %v6060_v3 = vadd.f32 %v6025_v56, %v1931_v51  ;;  %v137_v36 = vld [vmem:[#allocation2 + $0x160] sm:$0xff] }
 0x1ef   :  { %v6064_v7 = vsub.f32 %v7152_v1, %v2289_v22  ;;  %v1677_v21 = vpop.f32.mrf.mxu1  ;;  %2484 = vadd.xlane.f32.xlu0 %v2483_v55  ;;  %2210 = vadd.xlane.f32.xlu1 %v2209_v32  ;;  %v2486_v51 = vsel %vm28_vm0, %v2416_v23, 0.0  ;;  %v7153_v55 = vmax.f32 %v5649_v28, 0.0  ;;  %v138_v23 = vld [vmem:[#allocation2 + $0x168] sm:$0xff] }
 0x1f0   :  { %v1802_v54 = vadd.f32 %v1676_v33, %v136_v63  ;;  %v2109_v59 = vpop.xlane.xlu1 %2108  ;;  %v7089_v42 = vmax.f32 %v6060_v3, 0.0 }
 0x1f1   :  { %v2290_v44 = vmul.f32 0.03125, %v2109_v59  ;;  %v1680_v62 = vpop.f32.mrf.mxu1  ;;  %v2417_v12 = vmul.f32 %v6064_v7, %v6064_v7  ;;  %v1932_v20 = vld [vmem:[#allocation2 + $0x148] sm:$0xff] }
 0x1f2   :  { %1867 = vst.msk [vmem:[#allocation2 + $0x158] sm:$0xff] %vm28_vm0, %v1802_v54  ;;  %v1681_v26 = vadd.f32 %v1680_v62, %v5876_v58  ;;  %v2212_v22 = vsel %vm28_vm0, %v7089_v42, 0.0  ;;  %v6076_v63 = vadd.f32 %v6025_v56, %v1932_v20 }
 0x1f3   :  { %v6080_v33 = vsub.f32 %v7153_v55, %v2290_v44  ;;  %v1682_v32 = vpop.f32.mrf.mxu1  ;;  %2487 = vadd.xlane.f32.xlu1 %v2486_v51  ;;  %2213 = vadd.xlane.f32.xlu0 %v2212_v22  ;;  %v2489_v62 = vsel %vm28_vm0, %v2417_v12, 0.0 }
 0x1f4   :  { %v1803_v1 = vadd.f32 %v1681_v26, %v137_v36  ;;  %v2112_v21 = vpop.xlane.xlu0 %2111  ;;  %v7090_v58 = vmax.f32 %v6076_v63, 0.0  ;;  %v7154_v26 = vmax.f32 %v5663_v57, 0.0 }
 0x1f5   :  { %v2291_v54 = vmul.f32 0.03125, %v2112_v21  ;;  %v1683_v59 = vpop.f32.mrf.mxu1  ;;  %v1933_v42 = vld [vmem:[#allocation2 + $0x150] sm:$0xff]  ;;  %v2418_v44 = vmul.f32 %v6080_v33, %v6080_v33 }
 0x1f6   :  { %1868 = vst.msk [vmem:[#allocation2 + $0x160] sm:$0xff] %vm28_vm0, %v1803_v1  ;;  %v1684_v20 = vadd.f32 %v1683_v59, %v5887_v24  ;;  %v2215_v28 = vsel %vm28_vm0, %v7090_v58, 0.0  ;;  %v6092_v36 = vadd.f32 %v6025_v56, %v1933_v42  ;;  %v139_v1 = vld [vmem:[#allocation2 + $0x170] sm:$0xff] }
 0x1f7   :  { %v6096_v51 = vsub.f32 %v7154_v26, %v2291_v54  ;;  %v1685_v12 = vpop.f32.mrf.mxu1  ;;  %2490 = vadd.xlane.f32.xlu0 %v2489_v62  ;;  %2216 = vadd.xlane.f32.xlu1 %v2215_v28  ;;  %v2492_v42 = vsel %vm28_vm0, %v2418_v44, 0.0  ;;  %v7155_v62 = vmax.f32 %v5677_v38, 0.0  ;;  %v140_v44 = vld [vmem:[#allocation2 + $0x178] sm:$0xff] }
 0x1f8   :  { %v1804_v22 = vadd.f32 %v1684_v20, %v138_v23  ;;  %v2115_v55 = vpop.xlane.xlu1 %2114  ;;  %v7091_v24 = vmax.f32 %v6092_v36, 0.0 }
 0x1f9   :  { %v2292_v32 = vmul.f32 0.03125, %v2115_v55  ;;  %v1688_v21 = vpop.f32.mrf.mxu1  ;;  %v2419_v59 = vmul.f32 %v6096_v51, %v6096_v51  ;;  %v1934_v58 = vld [vmem:[#allocation2 + $0x158] sm:$0xff] }
 0x1fa   :  { %1869 = vst.msk [vmem:[#allocation2 + $0x168] sm:$0xff] %vm28_vm0, %v1804_v22  ;;  %v1689_v57 = vadd.f32 %v1688_v21, %v5898_v52  ;;  %v2218_v54 = vsel %vm28_vm0, %v7091_v24, 0.0  ;;  %v6108_v23 = vadd.f32 %v6025_v56, %v1934_v58 }
 0x1fb   :  { %v6112_v20 = vsub.f32 %v7155_v62, %v2292_v32  ;;  %v1690_v28 = vpop.f32.mrf.mxu1  ;;  %2493 = vadd.xlane.f32.xlu1 %v2492_v42  ;;  %2219 = vadd.xlane.f32.xlu0 %v2218_v54  ;;  %v2495_v21 = vsel %vm28_vm0, %v2419_v59, 0.0 }
 0x1fc   :  { %v1805_v26 = vadd.f32 %v1689_v57, %v139_v1  ;;  %v2118_v12 = vpop.xlane.xlu0 %2117  ;;  %v7092_v52 = vmax.f32 %v6108_v23, 0.0  ;;  %v7156_v57 = vmax.f32 %v5691_v41, 0.0 }
 0x1fd   :  { %v2293_v22 = vmul.f32 0.03125, %v2118_v12  ;;  %v1691_v55 = vpop.f32.mrf.mxu1  ;;  %v1935_v24 = vld [vmem:[#allocation2 + $0x160] sm:$0xff]  ;;  %v2420_v32 = vmul.f32 %v6112_v20, %v6112_v20 }
 0x1fe   :  { %1870 = vst.msk [vmem:[#allocation2 + $0x170] sm:$0xff] %vm28_vm0, %v1805_v26  ;;  %v1692_v58 = vadd.f32 %v1691_v55, %v5909_v14  ;;  %v2221_v38 = vsel %vm28_vm0, %v7092_v52, 0.0  ;;  %v6124_v1 = vadd.f32 %v6025_v56, %v1935_v24  ;;  %v141_v26 = vld [vmem:[#allocation2 + $0x180] sm:$0xff] }
 0x1ff   :  { %v6128_v42 = vsub.f32 %v7156_v57, %v2293_v22  ;;  %v1693_v59 = vpop.f32.mrf.mxu1  ;;  %2496 = vadd.xlane.f32.xlu0 %v2495_v21  ;;  %2222 = vadd.xlane.f32.xlu1 %v2221_v38  ;;  %v2498_v24 = vsel %vm28_vm0, %v2420_v32, 0.0  ;;  %v7157_v21 = vmax.f32 %v5705_v60, 0.0  ;;  %v142_v32 = vld [vmem:[#allocation2 + $0x188] sm:$0xff] }
 0x200   :  { %v1806_v54 = vadd.f32 %v1692_v58, %v140_v44  ;;  %v2121_v62 = vpop.xlane.xlu1 %2120  ;;  %v7093_v14 = vmax.f32 %v6124_v1, 0.0 }
 0x201   :  { %v2294_v28 = vmul.f32 0.03125, %v2121_v62  ;;  %v1696_v12 = vpop.f32.mrf.mxu1  ;;  %v2421_v55 = vmul.f32 %v6128_v42, %v6128_v42  ;;  %v1936_v52 = vld [vmem:[#allocation2 + $0x168] sm:$0xff] }
 0x202   :  { %1871 = vst.msk [vmem:[#allocation2 + $0x178] sm:$0xff] %vm28_vm0, %v1806_v54  ;;  %v1697_v41 = vadd.f32 %v1696_v12, %v5437_v6  ;;  %v2224_v22 = vsel %vm28_vm0, %v7093_v14, 0.0  ;;  %v6140_v44 = vadd.f32 %v6025_v56, %v1936_v52 }
 0x203   :  { %v6144_v58 = vsub.f32 %v7157_v21, %v2294_v28  ;;  %v1698_v38 = vpop.f32.mrf.mxu1  ;;  %2499 = vadd.xlane.f32.xlu1 %v2498_v24  ;;  %2225 = vadd.xlane.f32.xlu0 %v2224_v22  ;;  %v2501_v12 = vsel %vm28_vm0, %v2421_v55, 0.0 }
 0x204   :  { %v1807_v57 = vadd.f32 %v1697_v41, %v141_v26  ;;  %v2124_v59 = vpop.xlane.xlu0 %2123  ;;  %v7094_v6 = vmax.f32 %v6140_v44, 0.0  ;;  %v7158_v41 = vmax.f32 %v5719_v16, 0.0 }
 0x205   :  { %v2295_v54 = vmul.f32 0.03125, %v2124_v59  ;;  %v1699_v62 = vpop.f32.mrf.mxu1  ;;  %v1937_v14 = vld [vmem:[#allocation2 + $0x170] sm:$0xff]  ;;  %v2422_v28 = vmul.f32 %v6144_v58, %v6144_v58 }
 0x206   :  { %1872 = vst.msk [vmem:[#allocation2 + $0x180] sm:$0xff] %vm28_vm0, %v1807_v57  ;;  %v1700_v52 = vadd.f32 %v1699_v62, %v5441_v9  ;;  %v2227_v60 = vsel %vm28_vm0, %v7094_v6, 0.0  ;;  %v6156_v26 = vadd.f32 %v6025_v56, %v1937_v14  ;;  %v143_v57 = vld [vmem:[#allocation2 + $0x190] sm:$0xff] }
 0x207   :  { %v6160_v24 = vsub.f32 %v7158_v41, %v2295_v54  ;;  %v1701_v55 = vpop.f32.mrf.mxu1  ;;  %2502 = vadd.xlane.f32.xlu0 %v2501_v12  ;;  %2228 = vadd.xlane.f32.xlu1 %v2227_v60  ;;  %v2504_v14 = vsel %vm28_vm0, %v2422_v28, 0.0  ;;  %v7159_v12 = vmax.f32 %v5730_v34, 0.0  ;;  %v144_v28 = vld [vmem:[#allocation2 + $0x198] sm:$0xff] }
 0x208   :  { %v1808_v22 = vadd.f32 %v1700_v52, %v142_v32  ;;  %v2127_v21 = vpop.xlane.xlu1 %2126  ;;  %v7095_v9 = vmax.f32 %v6156_v26, 0.0 }
 0x209   :  { %v2296_v38 = vmul.f32 0.03125, %v2127_v21  ;;  %v1704_v59 = vpop.f32.mrf.mxu1  ;;  %v2423_v62 = vmul.f32 %v6160_v24, %v6160_v24  ;;  %v1938_v6 = vld [vmem:[#allocation2 + $0x178] sm:$0xff] }
 0x20a   :  { %1873 = vst.msk [vmem:[#allocation2 + $0x188] sm:$0xff] %vm28_vm0, %v1808_v22  ;;  %v1705_v16 = vadd.f32 %v1704_v59, %v5451_v15  ;;  %v2230_v54 = vsel %vm28_vm0, %v7095_v9, 0.0  ;;  %v6172_v32 = vadd.f32 %v6025_v56, %v1938_v6 }
 0x20b   :  { %v6176_v52 = vsub.f32 %v7159_v12, %v2296_v38  ;;  %v1706_v60 = vpop.f32.mrf.mxu1  ;;  %2505 = vadd.xlane.f32.xlu1 %v2504_v14  ;;  %2231 = vadd.xlane.f32.xlu0 %v2230_v54  ;;  %v2507_v59 = vsel %vm28_vm0, %v2423_v62, 0.0 }
 0x20c   :  { %v1809_v41 = vadd.f32 %v1705_v16, %v143_v57  ;;  %v2130_v55 = vpop.xlane.xlu0 %2129  ;;  %v7097_v15 = vmax.f32 %v6172_v32, 0.0  ;;  %v7160_v16 = vmax.f32 %v5741_v40, 0.0 }
 0x20d   :  { %v2297_v22 = vmul.f32 0.03125, %v2130_v55  ;;  %v1707_v21 = vpop.f32.mrf.mxu1  ;;  %v1939_v9 = vld [vmem:[#allocation2 + $0x180] sm:$0xff]  ;;  %v2424_v57 = vmul.f32 %v6176_v52, %v6176_v52 }
 0x20e   :  { %1874 = vst.msk [vmem:[#allocation2 + $0x190] sm:$0xff] %vm28_vm0, %v1809_v41  ;;  %v1708_v6 = vadd.f32 %v1707_v21, %v5455_v19  ;;  %v2233_v34 = vsel %vm28_vm0, %v7097_v15, 0.0  ;;  %v6186_v38 = vadd.f32 %v6025_v56, %v1939_v9  ;;  %v145_v41 = vld [vmem:[#allocation2 + $0x1a0] sm:$0xff] }
 0x20f   :  { %v6192_v14 = vsub.f32 %v7160_v16, %v2297_v22  ;;  %v1709_v62 = vpop.f32.mrf.mxu1  ;;  %2508 = vadd.xlane.f32.xlu0 %v2507_v59  ;;  %2234 = vadd.xlane.f32.xlu1 %v2233_v34  ;;  %v7161_v34 = vmax.f32 %v5752_v46, 0.0 }
 0x210   :  { %v1810_v54 = vadd.f32 %v1708_v6, %v144_v28  ;;  %v2133_v12 = vpop.xlane.xlu1 %2132  ;;  %v7096_v19 = vmax.f32 %v6186_v38, 0.0  ;;  %v2510_v28 = vsel %vm28_vm0, %v2424_v57, 0.0  ;;  %v4699_v6 = vld [vmem:[%s7035_s5] sm:$0xff]  }
 0x211   :  { %v2298_v60 = vmul.f32 0.03125, %v2133_v12  ;;  %v1712_v55 = vpop.f32.mrf.mxu1  ;;  %v2425_v9 = vmul.f32 %v6192_v14, %v6192_v14  ;;  %v1940_v21 = vld [vmem:[#allocation2 + $0x188] sm:$0xff]  ;;  %4374 = vmatprep.subr.bf16.mxu0 %v4699_v6 }
 0x212   :  { %1875 = vst.msk [vmem:[#allocation2 + $0x198] sm:$0xff] %vm28_vm0, %v1810_v54  ;;  %v1713_v40 = vadd.f32 %v1712_v55, %v5465_v25  ;;  %v2236_v22 = vsel %vm28_vm0, %v7096_v19, 0.0  ;;  %v6204_v59 = vadd.f32 %v6025_v56, %v1940_v21  ;;  %v146_v55 = vld [vmem:[#allocation2 + $0x1a8] sm:$0xff]  ;;  %4375 = vmatpush3.bf16.msra.mxu0 %v4699_v6 }
 0x213   :  { %v6211_v16 = vsub.f32 %v7161_v34, %v2298_v60  ;;  %v1714_v62 = vpop.f32.mrf.mxu1  ;;  %2237 = vadd.xlane.f32.xlu0 %v2236_v22  ;;  %2511 = vadd.xlane.f32.xlu1 %v2510_v28  ;;  %v2513_v19 = vsel %vm28_vm0, %v2425_v9, 0.0  ;;  %v7162_v22 = vmax.f32 %v5763_v10, 0.0 }
 0x214   :  { %v1811_v25 = vadd.f32 %v1713_v40, %v145_v41  ;;  %v2136_v54 = vpop.xlane.xlu0 %2135  ;;  %v7098_v12 = vmax.f32 %v6204_v59, 0.0 }
 0x215   :  { %v2299_v57 = vmul.f32 0.03125, %v2136_v54  ;;  %v1715_v21 = vpop.f32.mrf.mxu1  ;;  %v1941_v15 = vld [vmem:[#allocation2 + $0x190] sm:$0xff]  ;;  %v2426_v40 = vmul.f32 %v6211_v16, %v6211_v16 }
 0x216   :  { %1876 = vst.msk [vmem:[#allocation2 + $0x1a0] sm:$0xff] %vm28_vm0, %v1811_v25  ;;  %v1716_v46 = vadd.f32 %v1715_v21, %v5469_v29  ;;  %v2239_v60 = vsel %vm28_vm0, %v7098_v12, 0.0  ;;  %v6221_v41 = vadd.f32 %v6025_v56, %v1941_v15  ;;  %v147_v25 = vld [vmem:[#allocation2 + $0x1b0] sm:$0xff] }
 0x217   :  { %v6227_v28 = vsub.f32 %v7162_v22, %v2299_v57  ;;  %v1717_v9 = vpop.f32.mrf.mxu1  ;;  %2514 = vadd.xlane.f32.xlu0 %v2513_v19  ;;  %2240 = vadd.xlane.f32.xlu1 %v2239_v60  ;;  %v2516_v57 = vsel %vm28_vm0, %v2426_v40, 0.0 }
 0x218   :  { %v1812_v6 = vadd.f32 %v1716_v46, %v146_v55  ;;  %v2139_v34 = vpop.xlane.xlu1 %2138  ;;  %v7099_v29 = vmax.f32 %v6221_v41, 0.0  ;;  %v7163_v46 = vmax.f32 %v5774_v18, 0.0 }
 0x219   :  { %v2300_v62 = vmul.f32 0.03125, %v2139_v34  ;;  %v1720_v54 = vpop.f32.mrf.mxu1  ;;  %v2427_v15 = vmul.f32 %v6227_v28, %v6227_v28  ;;  %v1942_v21 = vld [vmem:[#allocation2 + $0x198] sm:$0xff] }
 0x21a   :  { %1877 = vst.msk [vmem:[#allocation2 + $0x1a8] sm:$0xff] %vm28_vm0, %v1812_v6  ;;  %v1721_v10 = vadd.f32 %v1720_v54, %v5479_v35  ;;  %v2242_v19 = vsel %vm28_vm0, %v7099_v29, 0.0  ;;  %v6239_v55 = vadd.f32 %v6025_v56, %v1942_v21  ;;  %v148_v54 = vld [vmem:[#allocation2 + $0x1b8] sm:$0xff] }
 0x21b   :  { %v6243_v60 = vsub.f32 %v7163_v46, %v2300_v62  ;;  %v1722_v22 = vpop.f32.mrf.mxu1  ;;  %2243 = vadd.xlane.f32.xlu0 %v2242_v19  ;;  %2517 = vadd.xlane.f32.xlu1 %v2516_v57  ;;  %v2519_v29 = vsel %vm28_vm0, %v2427_v15, 0.0 }
 0x21c   :  { %v1813_v9 = vadd.f32 %v1721_v10, %v147_v25  ;;  %v2142_v6 = vpop.xlane.xlu0 %2141  ;;  %v7100_v35 = vmax.f32 %v6239_v55, 0.0  ;;  %v7165_v10 = vmax.f32 %v5785_v27, 0.0  ;;  %v149_v22 = vld [vmem:[#allocation2 + $0x1c0] sm:$0xff] }
 0x21d   :  { %7164 = vst [vmem:[#allocation19_spill] sm:$0xff] %v6243_v60  ;;  %v2301_v34 = vmul.f32 0.03125, %v2142_v6  ;;  %v1723_v12 = vpop.f32.mrf.mxu1  ;;  %v1943_v40 = vld [vmem:[#allocation2 + $0x1a0] sm:$0xff]  ;;  %v2428_v25 = vmul.f32 %v6243_v60, %v6243_v60 }
 0x21e   :  { %1878 = vst.msk [vmem:[#allocation2 + $0x1b0] sm:$0xff] %vm28_vm0, %v1813_v9  ;;  %v1724_v21 = vadd.f32 %v1723_v12, %v5483_v39  ;;  %v2245_v18 = vsel %vm28_vm0, %v7100_v35, 0.0  ;;  %v6253_v62 = vadd.f32 %v6025_v56, %v1943_v40 }
 0x21f   :  { %v6259_v19 = vsub.f32 %v7165_v10, %v2301_v34  ;;  %v1725_v15 = vpop.f32.mrf.mxu1  ;;  %2520 = vadd.xlane.f32.xlu0 %v2519_v29  ;;  %2246 = vadd.xlane.f32.xlu1 %v2245_v18  ;;  %v2522_v34 = vsel %vm28_vm0, %v2428_v25, 0.0 }
 0x220   :  { %v1814_v57 = vadd.f32 %v1724_v21, %v148_v54  ;;  %v2145_v46 = vpop.xlane.xlu1 %2144  ;;  %v7101_v39 = vmax.f32 %v6253_v62, 0.0  ;;  %v7167_v21 = vmax.f32 %v5796_v37, 0.0 }
 0x221   :  { %7166 = vst [vmem:[#allocation20_spill] sm:$0xff] %v6259_v19  ;;  %v2302_v12 = vmul.f32 0.03125, %v2145_v46  ;;  %v1728_v9 = vpop.f32.mrf.mxu1  ;;  %v2429_v6 = vmul.f32 %v6259_v19, %v6259_v19  ;;  %v1944_v40 = vld [vmem:[#allocation2 + $0x1a8] sm:$0xff] }
 0x222   :  { %1879 = vst.msk [vmem:[#allocation2 + $0x1b8] sm:$0xff] %vm28_vm0, %v1814_v57  ;;  %v1729_v27 = vadd.f32 %v1728_v9, %v5493_v45  ;;  %v2248_v29 = vsel %vm28_vm0, %v7101_v39, 0.0  ;;  %v6271_v54 = vadd.f32 %v6025_v56, %v1944_v40  ;;  %v150_v9 = vld [vmem:[#allocation2 + $0x1c8] sm:$0xff] }
 0x223   :  { %v6275_v18 = vsub.f32 %v7167_v21, %v2302_v12  ;;  %v1730_v10 = vpop.f32.mrf.mxu1  ;;  %2249 = vadd.xlane.f32.xlu0 %v2248_v29  ;;  %2523 = vadd.xlane.f32.xlu1 %v2522_v34  ;;  %v2525_v39 = vsel %vm28_vm0, %v2429_v6, 0.0 }
 0x224   :  { %v1815_v15 = vadd.f32 %v1729_v27, %v149_v22  ;;  %v2148_v57 = vpop.xlane.xlu0 %2147  ;;  %v7102_v45 = vmax.f32 %v6271_v54, 0.0  ;;  %v7169_v27 = vmax.f32 %v5807_v50, 0.0  ;;  %v151_v10 = vld [vmem:[#allocation2 + $0x1d0] sm:$0xff] }
 0x225   :  { %7168 = vst [vmem:[#allocation21_spill] sm:$0xff] %v6275_v18  ;;  %v2303_v46 = vmul.f32 0.03125, %v2148_v57  ;;  %v1731_v35 = vpop.f32.mrf.mxu1  ;;  %v1945_v25 = vld [vmem:[#allocation2 + $0x1b0] sm:$0xff]  ;;  %v2430_v22 = vmul.f32 %v6275_v18, %v6275_v18 }
 0x226   :  { %1880 = vst.msk [vmem:[#allocation2 + $0x1c0] sm:$0xff] %vm28_vm0, %v1815_v15  ;;  %v1732_v40 = vadd.f32 %v1731_v35, %v5497_v49  ;;  %v2251_v37 = vsel %vm28_vm0, %v7102_v45, 0.0  ;;  %v6285_v12 = vadd.f32 %v6025_v56, %v1945_v25  ;;  %v7171_v45 = vld [vmem:[#allocation3_spill] sm:$0xff] }
 0x227   :  { %v6291_v29 = vsub.f32 %v7169_v27, %v2303_v46  ;;  %v1733_v6 = vpop.f32.mrf.mxu1  ;;  %2526 = vadd.xlane.f32.xlu0 %v2525_v39  ;;  %2252 = vadd.xlane.f32.xlu1 %v2251_v37  ;;  %v2528_v46 = vsel %vm28_vm0, %v2430_v22, 0.0 }
 0x228   :  { %v1816_v34 = vadd.f32 %v1732_v40, %v150_v9  ;;  %v2151_v21 = vpop.xlane.xlu1 %2150  ;;  %v7105_v49 = vmax.f32 %v6285_v12, 0.0  ;;  %v7172_v40 = vld [vmem:[#allocation9_spill] sm:$0xff] }
 0x229   :  { %7170 = vst [vmem:[#allocation22_spill] sm:$0xff] %v6291_v29  ;;  %v2304_v35 = vmul.f32 0.03125, %v2151_v21  ;;  %v1736_v15 = vpop.f32.mrf.mxu1  ;;  %v2431_v57 = vmul.f32 %v6291_v29, %v6291_v29  ;;  %v1946_v25 = vld [vmem:[#allocation2 + $0x1b8] sm:$0xff]  ;;  %v7173_v37 = vmax.f32 %v7172_v40, 0.0 }
 0x22a   :  { %1881 = vst.msk [vmem:[#allocation2 + $0x1c8] sm:$0xff] %vm28_vm0, %v1816_v34  ;;  %v1737_v50 = vadd.f32 %v1736_v15, %v7171_v45  ;;  %v2254_v39 = vsel %vm28_vm0, %v7105_v49, 0.0  ;;  %v6303_v9 = vadd.f32 %v6025_v56, %v1946_v25  ;;  %v152_v29 = vld [vmem:[#allocation2 + $0x1d8] sm:$0xff]  ;;  %v7175_v25 = vld [vmem:[#allocation4_spill] sm:$0xff] }
 0x22b   :  { %v6307_v27 = vsub.f32 %v7173_v37, %v2304_v35  ;;  %v1738_v6 = vpop.f32.mrf.mxu1  ;;  %2255 = vadd.xlane.f32.xlu0 %v2254_v39  ;;  %2529 = vadd.xlane.f32.xlu1 %v2528_v46  ;;  %v2531_v49 = vsel %vm28_vm0, %v2431_v57, 0.0 }
 0x22c   :  { %v1817_v21 = vadd.f32 %v1737_v50, %v151_v10  ;;  %v2154_v34 = vpop.xlane.xlu0 %2153  ;;  %v7107_v45 = vmax.f32 %v6303_v9, 0.0  ;;  %v7177_v50 = vld [vmem:[#allocation10_spill] sm:$0xff] }
 0x22d   :  { %7174 = vst [vmem:[#allocation3_spill] sm:$0xff] %v6307_v27  ;;  %v2305_v15 = vmul.f32 0.03125, %v2154_v34  ;;  %v1739_v18 = vpop.f32.mrf.mxu1  ;;  %v1947_v22 = vld [vmem:[#allocation2 + $0x1c0] sm:$0xff]  ;;  %v2432_v10 = vmul.f32 %v6307_v27, %v6307_v27  ;;  %v7178_v46 = vmax.f32 %v7177_v50, 0.0  ;;  %v7180_v27 = vld [vmem:[#allocation5_spill] sm:$0xff] }
 0x22e   :  { %1882 = vst.msk [vmem:[#allocation2 + $0x1d0] sm:$0xff] %vm28_vm0, %v1817_v21  ;;  %v1740_v19 = vadd.f32 %v1739_v18, %v7175_v25  ;;  %v2257_v35 = vsel %vm28_vm0, %v7107_v45, 0.0  ;;  %v6317_v39 = vadd.f32 %v6025_v56, %v1947_v22  ;;  %v153_v34 = vld [vmem:[#allocation2 + $0x1e0] sm:$0xff] }
 0x22f   :  { %v6323_v40 = vsub.f32 %v7178_v46, %v2305_v15  ;;  %v1741_v57 = vpop.f32.mrf.mxu1  ;;  %2532 = vadd.xlane.f32.xlu0 %v2531_v49  ;;  %2258 = vadd.xlane.f32.xlu1 %v2257_v35  ;;  %v7181_v15 = vld [vmem:[#allocation11_spill] sm:$0xff] }
 0x230   :  { %7176 = vst [vmem:[#allocation9_spill] sm:$0xff] %v6317_v39  ;;  %v1818_v37 = vadd.f32 %v1740_v19, %v152_v29  ;;  %v2157_v6 = vpop.xlane.xlu1 %2156  ;;  %v7111_v18 = vmax.f32 %v6317_v39, 0.0  ;;  %v2534_v19 = vsel %vm28_vm0, %v2432_v10, 0.0  ;;  %v7182_v35 = vmax.f32 %v7181_v15, 0.0 }
 0x231   :  { %7179 = vst [vmem:[#allocation4_spill] sm:$0xff] %v6323_v40  ;;  %v2306_v21 = vmul.f32 0.03125, %v2157_v6  ;;  %v1744_v25 = vpop.f32.mrf.mxu1  ;;  %v2433_v22 = vmul.f32 %v6323_v40, %v6323_v40  ;;  %v1948_v45 = vld [vmem:[#allocation2 + $0x1c8] sm:$0xff] }
 0x232   :  { %1883 = vst.msk [vmem:[#allocation2 + $0x1d8] sm:$0xff] %vm28_vm0, %v1818_v37  ;;  %v1745_v50 = vadd.f32 %v1744_v25, %v7180_v27  ;;  %v2260_v49 = vsel %vm28_vm0, %v7111_v18, 0.0  ;;  %v6335_v29 = vadd.f32 %v6025_v56, %v1948_v45  ;;  %v154_v40 = vld [vmem:[#allocation2 + $0x1e8] sm:$0xff]  ;;  %v7184_v45 = vld [vmem:[#allocation6_spill] sm:$0xff] }
 0x233   :  { %v6339_v46 = vsub.f32 %v7182_v35, %v2306_v21  ;;  %v1746_v57 = vpop.f32.mrf.mxu1  ;;  %2261 = vadd.xlane.f32.xlu0 %v2260_v49  ;;  %2535 = vadd.xlane.f32.xlu1 %v2534_v19  ;;  %v2537_v18 = vsel %vm28_vm0, %v2433_v22, 0.0 }
 0x234   :  { %v1819_v6 = vadd.f32 %v1745_v50, %v153_v34  ;;  %v2160_v37 = vpop.xlane.xlu0 %2159  ;;  %v7113_v27 = vmax.f32 %v6335_v29, 0.0  ;;  %v7186_v50 = vld [vmem:[#allocation12_spill] sm:$0xff] }
 0x235   :  { %7183 = vst [vmem:[#allocation10_spill] sm:$0xff] %v6339_v46  ;;  %v2307_v25 = vmul.f32 0.03125, %v2160_v37  ;;  %v1747_v60 = vpop.f32.mrf.mxu1  ;;  %v1949_v10 = vld [vmem:[#allocation2 + $0x1d0] sm:$0xff]  ;;  %v2434_v34 = vmul.f32 %v6339_v46, %v6339_v46  ;;  %v7187_v19 = vmax.f32 %v7186_v50, 0.0  ;;  %v7189_v46 = vld [vmem:[#allocation7_spill] sm:$0xff] }
 0x236   :  { %1884 = vst.msk [vmem:[#allocation2 + $0x1e0] sm:$0xff] %vm28_vm0, %v1819_v6  ;;  %v1748_v39 = vadd.f32 %v1747_v60, %v7184_v45  ;;  %v2263_v21 = vsel %vm28_vm0, %v7113_v27, 0.0  ;;  %v6349_v49 = vadd.f32 %v6025_v56, %v1949_v10  ;;  %v155_v37 = vld [vmem:[#allocation2 + $0x1f0] sm:$0xff] }
 0x237   :  { %v6355_v15 = vsub.f32 %v7187_v19, %v2307_v25  ;;  %v1749_v22 = vpop.f32.mrf.mxu1  ;;  %2538 = vadd.xlane.f32.xlu0 %v2537_v18  ;;  %2264 = vadd.xlane.f32.xlu1 %v2263_v21  ;;  %v7190_v25 = vld [vmem:[#allocation13_spill] sm:$0xff] }
 0x238   :  { %7185 = vst [vmem:[#allocation5_spill] sm:$0xff] %v6349_v49  ;;  %v1820_v35 = vadd.f32 %v1748_v39, %v154_v40  ;;  %v2163_v57 = vpop.xlane.xlu1 %2162  ;;  %v7116_v60 = vmax.f32 %v6349_v49, 0.0  ;;  %v2540_v39 = vsel %vm28_vm0, %v2434_v34, 0.0  ;;  %v7191_v21 = vmax.f32 %v7190_v25, 0.0 }
 0x239   :  { %7188 = vst [vmem:[#allocation11_spill] sm:$0xff] %v6355_v15  ;;  %v2308_v6 = vmul.f32 0.03125, %v2163_v57  ;;  %v1752_v45 = vpop.f32.mrf.mxu1  ;;  %v2435_v10 = vmul.f32 %v6355_v15, %v6355_v15  ;;  %v1950_v27 = vld [vmem:[#allocation2 + $0x1d8] sm:$0xff] }
 0x23a   :  { %1885 = vst.msk [vmem:[#allocation2 + $0x1e8] sm:$0xff] %vm28_vm0, %v1820_v35  ;;  %v1753_v50 = vadd.f32 %v1752_v45, %v7189_v46  ;;  %v2266_v18 = vsel %vm28_vm0, %v7116_v60, 0.0  ;;  %v6367_v40 = vadd.f32 %v6025_v56, %v1950_v27  ;;  %v156_v46 = vld [vmem:[#allocation2 + $0x1f8] sm:$0xff]  ;;  %v7193_v27 = vld [vmem:[#allocation8_spill] sm:$0xff] }
 0x23b   :  { %v6371_v19 = vsub.f32 %v7191_v21, %v2308_v6  ;;  %v1754_v22 = vpop.f32.mrf.mxu1  ;;  %2267 = vadd.xlane.f32.xlu0 %v2266_v18  ;;  %2541 = vadd.xlane.f32.xlu1 %v2540_v39  ;;  %v2543_v15 = vsel %vm28_vm0, %v2435_v10, 0.0 }
 0x23c   :  { %v1821_v57 = vadd.f32 %v1753_v50, %v155_v37  ;;  %v7119_v35 = vmax.f32 %v6367_v40, 0.0  ;;  %v2166_v34 = vpop.xlane.xlu0 %2165 }
 0x23d   :  { %7192 = vst [vmem:[#allocation6_spill] sm:$0xff] %v6371_v19  ;;  %v1755_v45 = vpop.f32.mrf.mxu1  ;;  %v1951_v60 = vld [vmem:[#allocation2 + $0x1e0] sm:$0xff]  ;;  %v2436_v37 = vmul.f32 %v6371_v19, %v6371_v19  ;;  %v2309_v25 = vmul.f32 0.03125, %v2166_v34 }
 0x23e   :  { %1886 = vst.msk [vmem:[#allocation2 + $0x1f0] sm:$0xff] %vm28_vm0, %v1821_v57  ;;  %v1756_v49 = vadd.f32 %v1755_v45, %v7193_v27  ;;  %v2269_v6 = vsel %vm28_vm0, %v7119_v35, 0.0  ;;  %v6381_v18 = vadd.f32 %v6025_v56, %v1951_v60 }
 0x23f   :  { %v1757_v50 = vpop.f32.mrf.mxu1  ;;  %2544 = vadd.xlane.f32.xlu0 %v2543_v15  ;;  %2270 = vadd.xlane.f32.xlu1 %v2269_v6  ;;  %v2546_v60 = vsel %vm28_vm0, %v2436_v37, 0.0 }
 0x240   :  { %v1822_v10 = vadd.f32 %v1756_v49, %v156_v46  ;;  %v7118_v39 = vmax.f32 %v6381_v18, 0.0  ;;  %v2169_v22 = vpop.xlane.xlu1 %2168  ;;  %v7194_v46 = vld [vmem:[#allocation14_spill] sm:$0xff] }
 0x241   :  { %v1952_v21 = vld [vmem:[#allocation2 + $0x1e8] sm:$0xff]  ;;  %v7195_v34 = vmax.f32 %v7194_v46, 0.0  ;;  %v2310_v6 = vmul.f32 0.03125, %v2169_v22 }
 0x242   :  { %1887 = vst.msk [vmem:[#allocation2 + $0x1f8] sm:$0xff] %vm28_vm0, %v1822_v10  ;;  %v2272_v57 = vsel %vm28_vm0, %v7118_v39, 0.0  ;;  %v6392_v45 = vadd.f32 %v6025_v56, %v1952_v21 }
 0x243   :  { %2273 = vadd.xlane.f32.xlu0 %v2272_v57  ;;  %2547 = vadd.xlane.f32.xlu1 %v2546_v60  ;;  %v6397_v27 = vsub.f32 %v7195_v34, %v2309_v25  ;;  %v7197_v60 = vld [vmem:[#allocation15_spill] sm:$0xff] }
 0x244   :  { %v2172_v15 = vpop.xlane.xlu0 %2171  ;;  %v7121_v49 = vmax.f32 %v6392_v45, 0.0  ;;  %v7198_v35 = vmax.f32 %v7197_v60, 0.0 }
 0x245   :  { %7196 = vst [vmem:[#allocation12_spill] sm:$0xff] %v6397_v27  ;;  %v1953_v50 = vld [vmem:[#allocation2 + $0x1f0] sm:$0xff]  ;;  %v2311_v10 = vmul.f32 0.03125, %v2172_v15  ;;  %v2437_v25 = vmul.f32 %v6397_v27, %v6397_v27  ;;  %v7199_v15 = vmax.f32 %v5895_v48, 0.0  ;;  %v7200_v27 = vmax.f32 %v5906_v31, 0.0 }
 0x246   :  { %v2275_v39 = vsel %vm28_vm0, %v7121_v49, 0.0  ;;  %v6403_v37 = vadd.f32 %v6025_v56, %v1953_v50  ;;  %v6408_v19 = vsub.f32 %v7198_v35, %v2310_v6 }
 0x247   :  { %2276 = vadd.xlane.f32.xlu1 %v2275_v39  ;;  %v6414_v46 = vsub.f32 %v7199_v15, %v2311_v10  ;;  %v2549_v49 = vsel %vm28_vm0, %v2437_v25, 0.0 }
 0x248   :  { %v2175_v21 = vpop.xlane.xlu1 %2174  ;;  %v7124_v57 = vmax.f32 %v6403_v37, 0.0 }
 0x249   :  { %v1954_v22 = vld [vmem:[#allocation2 + $0x1f8] sm:$0xff]  ;;  %v2312_v34 = vmul.f32 0.03125, %v2175_v21  ;;  %v2439_v21 = vmul.f32 %v6414_v46, %v6414_v46 }
 0x24a   :  { %v2278_v39 = vsel %vm28_vm0, %v7124_v57, 0.0  ;;  %v6420_v50 = vadd.f32 %v6025_v56, %v1954_v22  ;;  %v2438_v56 = vmul.f32 %v6408_v19, %v6408_v19  ;;  %v7201_v22 = vmax.f32 %v5917_v4, 0.0 }
 0x24b   :  { %2279 = vadd.xlane.f32.xlu0 %v2278_v39  ;;  %v6426_v48 = vsub.f32 %v7200_v27, %v2312_v34  ;;  %v2555_v27 = vsel %vm28_vm0, %v2439_v21, 0.0 }
 0x24c   :  { %v2178_v60 = vpop.xlane.xlu0 %2177  ;;  %v7123_v35 = vmax.f32 %v6420_v50, 0.0  ;;  %v2552_v34 = vsel %vm28_vm0, %v2438_v56, 0.0  ;;  %v7203_v56 = vmax.f32 %v5935_v53, 0.0 }
 0x24d   :  { %v2313_v6 = vmul.f32 0.03125, %v2178_v60  ;;  %v2440_v60 = vmul.f32 %v6426_v48, %v6426_v48 }
 0x24e   :  { %v2281_v10 = vsel %vm28_vm0, %v7123_v35, 0.0  ;;  %v7202_v35 = vmax.f32 %v5926_v8, 0.0 }
 0x24f   :  { %v6437_v15 = vsub.f32 %v7201_v22, %v2313_v6  ;;  %2550 = vadd.xlane.f32.xlu0 %v2549_v49  ;;  %2282 = vadd.xlane.f32.xlu1 %v2281_v10  ;;  %v2558_v10 = vsel %vm28_vm0, %v2440_v60, 0.0 }
 0x250   :  { %v2181_v25 = vpop.xlane.xlu1 %2180 }
 0x251   :  { %v2314_v31 = vmul.f32 0.03125, %v2181_v25  ;;  %v2441_v39 = vmul.f32 %v6437_v15, %v6437_v15 }
 0x253   :  { %v6447_v57 = vsub.f32 %v7202_v35, %v2314_v31  ;;  %2556 = vadd.xlane.f32.xlu0 %v2555_v27  ;;  %2553 = vadd.xlane.f32.xlu1 %v2552_v34  ;;  %v2561_v6 = vsel %vm28_vm0, %v2441_v39, 0.0  ;;  %v7204_v27 = vmax.f32 %v5944_v47, 0.0 }
 0x254   :  { %v2184_v4 = vpop.xlane.xlu0 %2183 }
 0x255   :  { %v2315_v49 = vmul.f32 0.03125, %v2184_v4  ;;  %v2442_v21 = vmul.f32 %v6447_v57, %v6447_v57 }
 0x257   :  { %v6455_v22 = vsub.f32 %v7203_v56, %v2315_v49  ;;  %2562 = vadd.xlane.f32.xlu0 %v2561_v6  ;;  %2559 = vadd.xlane.f32.xlu1 %v2558_v10  ;;  %v2564_v31 = vsel %vm28_vm0, %v2442_v21, 0.0  ;;  %v7205_v49 = vmax.f32 %v5956_v30, 0.0 }
 0x258   :  { %v2187_v8 = vpop.xlane.xlu1 %2186 }
 0x259   :  { %v2316_v35 = vmul.f32 0.03125, %v2187_v8  ;;  %v2443_v25 = vmul.f32 %v6455_v22, %v6455_v22  ;;  %v7206_v8 = vld [vmem:[#allocation16_spill] sm:$0xff] }
 0x25b   :  { %v6462_v34 = vsub.f32 %v7204_v27, %v2316_v35  ;;  %2565 = vadd.xlane.f32.xlu1 %v2564_v31  ;;  %v2567_v39 = vsel %vm28_vm0, %v2443_v25, 0.0  ;;  %v7207_v35 = vmax.f32 %v7206_v8, 0.0 }
 0x25c   :  { %v2190_v60 = vpop.xlane.xlu0 %2189  ;;  %2568 = vadd.xlane.f32.xlu0 %v2567_v39 }
 0x25d   :  { %v2317_v53 = vmul.f32 0.03125, %v2190_v60  ;;  %v2444_v4 = vmul.f32 %v6462_v34, %v6462_v34  ;;  %v7208_v60 = vmax.f32 %v5974_v43, 0.0 }
 0x25f   :  { %v6469_v6 = vsub.f32 %v7205_v49, %v2317_v53  ;;  %v2570_v10 = vsel %vm28_vm0, %v2444_v4, 0.0 }
 0x260   :  { %v2193_v21 = vpop.xlane.xlu1 %2192  ;;  %2571 = vadd.xlane.f32.xlu1 %v2570_v10 }
 0x261   :  { %v2318_v47 = vmul.f32 0.03125, %v2193_v21  ;;  %v2445_v56 = vmul.f32 %v6469_v6, %v6469_v6 }
 0x263   :  { %v6476_v25 = vsub.f32 %v7207_v35, %v2318_v47  ;;  %v2573_v31 = vsel %vm28_vm0, %v2445_v56, 0.0  ;;  %v7209_v47 = vmax.f32 %v5983_v5, 0.0 }
 0x264   :  { %v2196_v27 = vpop.xlane.xlu0 %2195  ;;  %2574 = vadd.xlane.f32.xlu0 %v2573_v31 }
 0x265   :  { %v2319_v39 = vmul.f32 0.03125, %v2196_v27  ;;  %v2446_v30 = vmul.f32 %v6476_v25, %v6476_v25  ;;  %v7211_v27 = vld [vmem:[#allocation17_spill] sm:$0xff] }
 0x267   :  { %v6483_v53 = vsub.f32 %v7208_v60, %v2319_v39  ;;  %v2576_v4 = vsel %vm28_vm0, %v2446_v30, 0.0  ;;  %v7212_v39 = vmax.f32 %v7211_v27, 0.0 }
 0x268   :  { %v2199_v49 = vpop.xlane.xlu1 %2198  ;;  %2577 = vadd.xlane.f32.xlu1 %v2576_v4 }
 0x269   :  { %v2320_v10 = vmul.f32 0.03125, %v2199_v49  ;;  %v2447_v21 = vmul.f32 %v6483_v53, %v6483_v53 }
 0x26b   :  { %v6490_v56 = vsub.f32 %v7209_v47, %v2320_v10  ;;  %v2579_v8 = vsel %vm28_vm0, %v2447_v21, 0.0 }
 0x26c   :  { %v2202_v35 = vpop.xlane.xlu0 %2201  ;;  %2580 = vadd.xlane.f32.xlu0 %v2579_v8  ;;  %v7214_v8 = vmax.f32 %v6007_v13, 0.0 }
 0x26d   :  { %7210 = vst [vmem:[#allocation7_spill] sm:$0xff] %v6490_v56  ;;  %v2321_v31 = vmul.f32 0.03125, %v2202_v35  ;;  %v2448_v43 = vmul.f32 %v6490_v56, %v6490_v56 }
 0x26f   :  { %v6497_v30 = vsub.f32 %v7212_v39, %v2321_v31  ;;  %v2582_v60 = vsel %vm28_vm0, %v2448_v43, 0.0 }
 0x270   :  { %v2479_v4 = vpop.xlane.xlu0 %2478  ;;  %v2205_v49 = vpop.xlane.xlu1 %2204  ;;  %2583 = vadd.xlane.f32.xlu1 %v2582_v60 }
 0x271   :  { %7213 = vst [vmem:[#allocation13_spill] sm:$0xff] %v6497_v30  ;;  %v2669_v5 = vmul.f32 0.03125, %v2479_v4  ;;  %v2322_v10 = vmul.f32 0.03125, %v2205_v49  ;;  %v2449_v21 = vmul.f32 %v6497_v30, %v6497_v30  ;;  %v7215_v49 = vmax.f32 %v6028_v17, 0.0 }
 0x273   :  { %v2733_v47 = vadd.f32 1e-05, %v2669_v5  ;;  %v6504_v35 = vsub.f32 %v7214_v8, %v2322_v10  ;;  %v2585_v56 = vsel %vm28_vm0, %v2449_v21, 0.0 }
 0x274   :  { %v2482_v27 = vpop.xlane.xlu1 %2481  ;;  %v2208_v31 = vpop.xlane.xlu0 %2207  ;;  %2586 = vadd.xlane.f32.xlu0 %v2585_v56 }
 0x275   :  { %4700 = vrsqrt.f32 %v2733_v47  ;;  %v2670_v43 = vmul.f32 0.03125, %v2482_v27  ;;  %v2323_v39 = vmul.f32 0.03125, %v2208_v31  ;;  %v2450_v60 = vmul.f32 %v6504_v35, %v6504_v35 }
 0x276   :  { %v7217_v27 = vmax.f32 %v6044_v0, 0.0 }
 0x277   :  { %v2734_v4 = vadd.f32 1e-05, %v2670_v43  ;;  %v6511_v30 = vsub.f32 %v7215_v49, %v2323_v39  ;;  %v2588_v13 = vsel %vm28_vm0, %v2450_v60, 0.0 }
 0x278   :  { %v2485_v5 = vpop.xlane.xlu0 %2484  ;;  %v2211_v10 = vpop.xlane.xlu1 %2210  ;;  %2589 = vadd.xlane.f32.xlu1 %v2588_v13 }
 0x279   :  { %7216 = vst [vmem:[#allocation8_spill] sm:$0xff] %v6511_v30  ;;  %4702 = vrsqrt.f32 %v2734_v4  ;;  %v2671_v21 = vmul.f32 0.03125, %v2485_v5  ;;  %v2324_v8 = vmul.f32 0.03125, %v2211_v10  ;;  %v2451_v56 = vmul.f32 %v6511_v30, %v6511_v30 }
 0x27a   :  { %v7219_v5 = vmax.f32 %v6060_v3, 0.0 }
 0x27b   :  { %v2735_v47 = vadd.f32 1e-05, %v2671_v21  ;;  %v6518_v31 = vsub.f32 %v7217_v27, %v2324_v8  ;;  %v2591_v17 = vsel %vm28_vm0, %v2451_v56, 0.0 }
 0x27c   :  { %v2488_v43 = vpop.xlane.xlu1 %2487  ;;  %v2214_v39 = vpop.xlane.xlu0 %2213  ;;  %2592 = vadd.xlane.f32.xlu0 %v2591_v17 }
 0x27d   :  { %7218 = vst [vmem:[#allocation14_spill] sm:$0xff] %v6518_v31  ;;  %4704 = vrsqrt.f32 %v2735_v47  ;;  %v2672_v60 = vmul.f32 0.03125, %v2488_v43  ;;  %v2325_v49 = vmul.f32 0.03125, %v2214_v39  ;;  %v2452_v4 = vmul.f32 %v6518_v31, %v6518_v31 }
 0x27e   :  { %v7221_v39 = vmax.f32 %v6076_v63, 0.0 }
 0x27f   :  { %v2736_v13 = vadd.f32 1e-05, %v2672_v60  ;;  %v6525_v10 = vsub.f32 %v7219_v5, %v2325_v49  ;;  %v2594_v0 = vsel %vm28_vm0, %v2452_v4, 0.0  ;;  %v7223_v4 = vld [vmem:[#allocation18_spill] sm:$0xff] }
 0x280   :  { %v2491_v21 = vpop.xlane.xlu0 %2490  ;;  %v2217_v8 = vpop.xlane.xlu1 %2216  ;;  %2595 = vadd.xlane.f32.xlu1 %v2594_v0 }
 0x281   :  { %7220 = vst [vmem:[#allocation15_spill] sm:$0xff] %v6525_v10  ;;  %4706 = vrsqrt.f32 %v2736_v13  ;;  %v2673_v56 = vmul.f32 0.03125, %v2491_v21  ;;  %v2326_v27 = vmul.f32 0.03125, %v2217_v8  ;;  %v2453_v47 = vmul.f32 %v6525_v10, %v6525_v10  ;;  %v6539_v13 = vld [vmem:[%s7036_s3] ss:$0 sm:$0xff] }
 0x282   :  { %v4701_v17 = vpop.eup %4700 }
 0x283   :  { %v2737_v43 = vadd.f32 1e-05, %v2673_v56  ;;  %v6532_v60 = vsub.f32 %v7221_v39, %v2326_v27  ;;  %v2597_v3 = vsel %vm28_vm0, %v2453_v47, 0.0  ;;  %v2861_v31 = vmul.f32 %v4701_v17, %v7223_v4 }
 0x284   :  { %v2494_v49 = vpop.xlane.xlu1 %2493  ;;  %v2220_v5 = vpop.xlane.xlu0 %2219  ;;  %2598 = vadd.xlane.f32.xlu0 %v2597_v3  ;;  %v7224_v27 = vmax.f32 %v6092_v36, 0.0  ;;  %v6555_v36 = vld [vmem:[%s7037_s4] ss:$0 sm:$0xff] }
 0x285   :  { %7222 = vst [vmem:[#allocation16_spill] sm:$0xff] %v6532_v60  ;;  %4708 = vrsqrt.f32 %v2737_v43  ;;  %v2674_v0 = vmul.f32 0.03125, %v2494_v49  ;;  %v2327_v21 = vmul.f32 0.03125, %v2220_v5  ;;  %v2454_v63 = vmul.f32 %v6532_v60, %v6532_v60 }
 0x286   :  { %v4703_v8 = vpop.eup %4702  ;;  %v2931_v43 = vmul.f32 %v6539_v13, %v2861_v31 }
 0x287   :  { %v2738_v56 = vadd.f32 1e-05, %v2674_v0  ;;  %v6545_v47 = vsub.f32 %v7224_v27, %v2327_v21  ;;  %v2600_v39 = vsel %vm28_vm0, %v2454_v63, 0.0  ;;  %v2862_v17 = vmul.f32 %v4703_v8, %v6011_v2 }
 0x288   :  { %v2497_v3 = vpop.xlane.xlu0 %2496  ;;  %v2223_v4 = vpop.xlane.xlu1 %2222  ;;  %2601 = vadd.xlane.f32.xlu1 %v2600_v39  ;;  %v7226_v8 = vmax.f32 %v6108_v23, 0.0 }
 0x289   :  { %7225 = vst [vmem:[#allocation17_spill] sm:$0xff] %v6545_v47  ;;  %4710 = vrsqrt.f32 %v2738_v56  ;;  %v2675_v49 = vmul.f32 0.03125, %v2497_v3  ;;  %v2328_v5 = vmul.f32 0.03125, %v2223_v4  ;;  %v2455_v60 = vmul.f32 %v6545_v47, %v6545_v47 }
 0x28a   :  { %v4705_v0 = vpop.eup %4704  ;;  %v2932_v21 = vmul.f32 %v6539_v13, %v2862_v17  ;;  %v3001_v3 = vadd.f32 %v6555_v36, %v2931_v43 }
 0x28b   :  { %v2863_v2 = vmul.f32 %v4705_v0, %v6032_v61  ;;  %v2739_v63 = vadd.f32 1e-05, %v2675_v49  ;;  %v6561_v31 = vsub.f32 %v7226_v8, %v2328_v5  ;;  %v2603_v56 = vsel %vm28_vm0, %v2455_v60, 0.0 }
 0x28c   :  { %v2500_v27 = vpop.xlane.xlu1 %2499  ;;  %v2226_v39 = vpop.xlane.xlu0 %2225  ;;  %2604 = vadd.xlane.f32.xlu0 %v2603_v56  ;;  %v3002_v4 = vadd.f32 %v6555_v36, %v2932_v21  ;;  %v7227_v5 = vmax.f32 %v6124_v1, 0.0  ;;  %v7228_v1 = vmax.f32 %v6140_v44, 0.0 }
 0x28d   :  { %4712 = vrsqrt.f32 %v2739_v63  ;;  %v2676_v47 = vmul.f32 0.03125, %v2500_v27  ;;  %v2329_v10 = vmul.f32 0.03125, %v2226_v39  ;;  %v2456_v61 = vmul.f32 %v6561_v31, %v6561_v31 }
 0x28e   :  { %v4707_v17 = vpop.eup %4706  ;;  %v3065_v30 = vpack.c.bf16 %v3002_v4, %v3001_v3  ;;  %v2933_v23 = vmul.f32 %v6539_v13, %v2863_v2 }
 0x28f   :  { %v2864_v49 = vmul.f32 %v4707_v17, %v6048_v11  ;;  %v2740_v60 = vadd.f32 1e-05, %v2676_v47  ;;  %v6572_v0 = vsub.f32 %v7227_v5, %v2329_v10  ;;  %v2606_v63 = vsel %vm28_vm0, %v2456_v61, 0.0 }
 0x290   :  { %4376 = vmatprep.mubr.msk.bf16.mxu0 %vm28_vm0, %v3065_v30  ;;  %v2503_v43 = vpop.xlane.xlu0 %2502  ;;  %v2229_v21 = vpop.xlane.xlu1 %2228  ;;  %2607 = vadd.xlane.f32.xlu1 %v2606_v63  ;;  %v3003_v30 = vadd.f32 %v6555_v36, %v2933_v23  ;;  %v7229_v23 = vmax.f32 %v6156_v26, 0.0 }
 0x291   :  { %v2934_v8 = vmul.f32 %v6539_v13, %v2864_v49  ;;  %4714 = vrsqrt.f32 %v2740_v60  ;;  %v2677_v56 = vmul.f32 0.03125, %v2503_v43  ;;  %v2330_v27 = vmul.f32 0.03125, %v2229_v21 }
 0x292   :  { %v4709_v2 = vpop.eup %4708  ;;  %v2457_v11 = vmul.f32 %v6572_v0, %v6572_v0 }
 0x293   :  { %v2741_v47 = vadd.f32 1e-05, %v2677_v56  ;;  %v6581_v10 = vsub.f32 %v7228_v1, %v2330_v27  ;;  %v3004_v39 = vadd.f32 %v6555_v36, %v2934_v8  ;;  %v2865_v61 = vmul.f32 %v4709_v2, %v6064_v7 }
 0x294   :  { %v2506_v3 = vpop.xlane.xlu1 %2505  ;;  %v2609_v4 = vsel %vm28_vm0, %v2457_v11, 0.0  ;;  %v2232_v17 = vpop.xlane.xlu0 %2231 }
 0x295   :  { %4716 = vrsqrt.f32 %v2741_v47  ;;  %v2678_v49 = vmul.f32 0.03125, %v2506_v3  ;;  %2610 = vadd.xlane.f32.xlu0 %v2609_v4  ;;  %v2331_v60 = vmul.f32 0.03125, %v2232_v17  ;;  %v3066_v5 = vpack.c.bf16 %v3004_v39, %v3003_v30 }
 0x296   :  { %v4711_v43 = vpop.eup %4710  ;;  %v2458_v44 = vmul.f32 %v6581_v10, %v6581_v10  ;;  %v2935_v2 = vmul.f32 %v6539_v13, %v2865_v61  ;;  %v7230_v3 = vmax.f32 %v6172_v32, 0.0 }
 0x297   :  { %v2742_v21 = vadd.f32 1e-05, %v2678_v49  ;;  %v6591_v63 = vsub.f32 %v7229_v23, %v2331_v60  ;;  %4377 = vmatmul.mubr.msk.bf16.vlgmr.msra.gmra.mxu0 %vm28_vm0, %v3066_v5  ;;  %v2866_v8 = vmul.f32 %v4711_v43, %v6080_v33 }
 0x298   :  { %v2509_v56 = vpop.xlane.xlu0 %2508  ;;  %v2612_v7 = vsel %vm28_vm0, %v2458_v44, 0.0  ;;  %v2235_v27 = vpop.xlane.xlu1 %2234  ;;  %v3005_v49 = vadd.f32 %v6555_v36, %v2935_v2 }
 0x299   :  { %4718 = vrsqrt.f32 %v2742_v21  ;;  %v2679_v11 = vmul.f32 0.03125, %v2509_v56  ;;  %2613 = vadd.xlane.f32.xlu1 %v2612_v7  ;;  %v2332_v47 = vmul.f32 0.03125, %v2235_v27  ;;  %v2459_v1 = vmul.f32 %v6591_v63, %v6591_v63 }
 0x29a   :  { %v4713_v26 = vpop.eup %4712  ;;  %v2936_v30 = vmul.f32 %v6539_v13, %v2866_v8  ;;  %v7231_v8 = vmax.f32 %v6186_v38, 0.0 }
 0x29b   :  { %v2743_v39 = vadd.f32 1e-05, %v2679_v11  ;;  %v6602_v33 = vsub.f32 %v7230_v3, %v2332_v47  ;;  %v2615_v4 = vsel %vm28_vm0, %v2459_v1, 0.0  ;;  %v2867_v5 = vmul.f32 %v4713_v26, %v6096_v51 }
 0x29c   :  { %2616 = vadd.xlane.f32.xlu0 %v2615_v4  ;;  %v2238_v17 = vpop.xlane.xlu0 %2237  ;;  %v2512_v61 = vpop.xlane.xlu1 %2511  ;;  %v3006_v60 = vadd.f32 %v6555_v36, %v2936_v30  ;;  %v7232_v4 = vmax.f32 %v6204_v59, 0.0 }
 0x29d   :  { %4720 = vrsqrt.f32 %v2743_v39  ;;  %v2333_v43 = vmul.f32 0.03125, %v2238_v17  ;;  %v2680_v44 = vmul.f32 0.03125, %v2512_v61  ;;  %v2460_v21 = vmul.f32 %v6602_v33, %v6602_v33 }
 0x29e   :  { %v4715_v32 = vpop.eup %4714  ;;  %v3067_v23 = vpack.c.bf16 %v3006_v60, %v3005_v49  ;;  %v2937_v47 = vmul.f32 %v6539_v13, %v2867_v5 }
 0x29f   :  { %v6612_v56 = vsub.f32 %v7231_v8, %v2333_v43  ;;  %v2744_v7 = vadd.f32 1e-05, %v2680_v44  ;;  %v2618_v27 = vsel %vm28_vm0, %v2460_v21, 0.0  ;;  %v2868_v2 = vmul.f32 %v4715_v32, %v6112_v20 }
 0x2a0   :  { %4380 = vmatprep.mubr.msk.bf16.mxu0 %vm28_vm0, %v3067_v23  ;;  %v2515_v51 = vpop.xlane.xlu0 %2514  ;;  %2619 = vadd.xlane.f32.xlu1 %v2618_v27  ;;  %v2241_v11 = vpop.xlane.xlu1 %2240  ;;  %v3007_v60 = vadd.f32 %v6555_v36, %v2937_v47  ;;  %v7233_v8 = vmax.f32 %v6221_v41, 0.0 }
 0x2a1   :  { %4722 = vrsqrt.f32 %v2744_v7  ;;  %v2681_v1 = vmul.f32 0.03125, %v2515_v51  ;;  %v2334_v26 = vmul.f32 0.03125, %v2241_v11  ;;  %v2461_v38 = vmul.f32 %v6612_v56, %v6612_v56 }
 0x2a2   :  { %v4717_v30 = vpop.eup %4716  ;;  %v2938_v39 = vmul.f32 %v6539_v13, %v2868_v2 }
 0x2a3   :  { %v2745_v3 = vadd.f32 1e-05, %v2681_v1  ;;  %v6623_v20 = vsub.f32 %v7232_v4, %v2334_v26  ;;  %v2621_v17 = vsel %vm28_vm0, %v2461_v38, 0.0  ;;  %v2869_v43 = vmul.f32 %v4717_v30, %v6128_v42 }
 0x2a4   :  { %2622 = vadd.xlane.f32.xlu0 %v2621_v17  ;;  %v2244_v61 = vpop.xlane.xlu0 %2243  ;;  %v2518_v49 = vpop.xlane.xlu1 %2517  ;;  %v3008_v5 = vadd.f32 %v6555_v36, %v2938_v39 }
 0x2a5   :  { %4724 = vrsqrt.f32 %v2745_v3  ;;  %v2335_v44 = vmul.f32 0.03125, %v2244_v61  ;;  %v2682_v21 = vmul.f32 0.03125, %v2518_v49  ;;  %v2462_v32 = vmul.f32 %v6623_v20, %v6623_v20 }
 0x2a6   :  { %v4719_v59 = vpop.eup %4718  ;;  %v3068_v23 = vpack.c.bf16 %v3008_v5, %v3007_v60  ;;  %v2939_v47 = vmul.f32 %v6539_v13, %v2869_v43  ;;  %v7234_v3 = vmax.f32 %v6239_v55, 0.0 }
 0x2a7   :  { %v6633_v7 = vsub.f32 %v7233_v8, %v2335_v44  ;;  %v2746_v27 = vadd.f32 1e-05, %v2682_v21  ;;  %v2624_v2 = vsel %vm28_vm0, %v2462_v32, 0.0  ;;  %v2870_v51 = vmul.f32 %v4719_v59, %v6144_v58 }
 0x2a8   :  { %4381 = vmatmul.mubr.msk.bf16.gmra.mxu0 %vm28_vm0, %v3068_v23  ;;  %v2521_v42 = vpop.xlane.xlu0 %2520  ;;  %2625 = vadd.xlane.f32.xlu1 %v2624_v2  ;;  %v2247_v11 = vpop.xlane.xlu1 %2246  ;;  %v3009_v49 = vadd.f32 %v6555_v36, %v2939_v47  ;;  %v7235_v59 = vmax.f32 %v6253_v62, 0.0 }
 0x2a9   :  { %4726 = vrsqrt.f32 %v2746_v27  ;;  %v2683_v1 = vmul.f32 0.03125, %v2521_v42  ;;  %v2336_v26 = vmul.f32 0.03125, %v2247_v11  ;;  %v2463_v41 = vmul.f32 %v6633_v7, %v6633_v7 }
 0x2aa   :  { %v4721_v38 = vpop.eup %4720  ;;  %v2940_v30 = vmul.f32 %v6539_v13, %v2870_v51 }
 0x2ab   :  { %v2747_v39 = vadd.f32 1e-05, %v2683_v1  ;;  %v6644_v58 = vsub.f32 %v7234_v3, %v2336_v26  ;;  %v2627_v4 = vsel %vm28_vm0, %v2463_v41, 0.0  ;;  %v2871_v5 = vmul.f32 %v4721_v38, %v6160_v24 }
 0x2ac   :  { %2628 = vadd.xlane.f32.xlu0 %v2627_v4  ;;  %v2250_v17 = vpop.xlane.xlu0 %2249  ;;  %v2524_v61 = vpop.xlane.xlu1 %2523  ;;  %v3010_v60 = vadd.f32 %v6555_v36, %v2940_v30  ;;  %v7236_v38 = vmax.f32 %v6271_v54, 0.0 }
 0x2ad   :  { %4728 = vrsqrt.f32 %v2747_v39  ;;  %v2337_v43 = vmul.f32 0.03125, %v2250_v17  ;;  %v2684_v44 = vmul.f32 0.03125, %v2524_v61  ;;  %v2464_v21 = vmul.f32 %v6644_v58, %v6644_v58 }
 0x2ae   :  { %v4723_v55 = vpop.eup %4722  ;;  %v3069_v32 = vpack.c.bf16 %v3010_v60, %v3009_v49  ;;  %v2941_v42 = vmul.f32 %v6539_v13, %v2871_v5 }
 0x2af   :  { %v6654_v23 = vsub.f32 %v7235_v59, %v2337_v43  ;;  %v2748_v8 = vadd.f32 1e-05, %v2684_v44  ;;  %v2630_v27 = vsel %vm28_vm0, %v2464_v21, 0.0  ;;  %v2872_v2 = vmul.f32 %v4723_v55, %v6176_v52 }
 0x2b0   :  { %4384 = vmatprep.mubr.msk.bf16.mxu0 %vm28_vm0, %v3069_v32  ;;  %v2527_v24 = vpop.xlane.xlu0 %2526  ;;  %2631 = vadd.xlane.f32.xlu1 %v2630_v27  ;;  %v2253_v51 = vpop.xlane.xlu1 %2252  ;;  %v3011_v4 = vadd.f32 %v6555_v36, %v2941_v42  ;;  %v7237_v44 = vmax.f32 %v6285_v12, 0.0 }
 0x2b1   :  { %4730 = vrsqrt.f32 %v2748_v8  ;;  %v2685_v11 = vmul.f32 0.03125, %v2527_v24  ;;  %v2338_v47 = vmul.f32 0.03125, %v2253_v51  ;;  %v2465_v62 = vmul.f32 %v6654_v23, %v6654_v23 }
 0x2b2   :  { %v4725_v1 = vpop.eup %4724  ;;  %v2942_v26 = vmul.f32 %v6539_v13, %v2872_v2 }
 0x2b3   :  { %v2749_v41 = vadd.f32 1e-05, %v2685_v11  ;;  %v6665_v52 = vsub.f32 %v7236_v38, %v2338_v47  ;;  %v2633_v30 = vsel %vm28_vm0, %v2465_v62, 0.0  ;;  %v2873_v61 = vmul.f32 %v4725_v1, %v6192_v14 }
 0x2b4   :  { %2634 = vadd.xlane.f32.xlu0 %v2633_v30  ;;  %v2256_v39 = vpop.xlane.xlu0 %2255  ;;  %v2530_v3 = vpop.xlane.xlu1 %2529  ;;  %v3012_v17 = vadd.f32 %v6555_v36, %v2942_v26  ;;  %v7238_v47 = vmax.f32 %v6303_v9, 0.0 }
 0x2b5   :  { %4732 = vrsqrt.f32 %v2749_v41  ;;  %v2339_v49 = vmul.f32 0.03125, %v2256_v39  ;;  %v2686_v60 = vmul.f32 0.03125, %v2530_v3  ;;  %v2466_v5 = vmul.f32 %v6665_v52, %v6665_v52 }
 0x2b6   :  { %v4727_v54 = vpop.eup %4726  ;;  %v3070_v43 = vpack.c.bf16 %v3012_v17, %v3011_v4  ;;  %v2943_v27 = vmul.f32 %v6539_v13, %v2873_v61  ;;  %v7239_v61 = vld [vmem:[#allocation9_spill] sm:$0xff] }
 0x2b7   :  { %v6675_v21 = vsub.f32 %v7237_v44, %v2339_v49  ;;  %v2750_v55 = vadd.f32 1e-05, %v2686_v60  ;;  %v2636_v32 = vsel %vm28_vm0, %v2466_v5, 0.0  ;;  %v2874_v59 = vmul.f32 %v4727_v54, %v6211_v16 }
 0x2b8   :  { %4385 = vmatmul.mubr.msk.bf16.gmra.mxu0 %vm28_vm0, %v3070_v43  ;;  %v2533_v14 = vpop.xlane.xlu0 %2532  ;;  %2637 = vadd.xlane.f32.xlu1 %v2636_v32  ;;  %v2259_v8 = vpop.xlane.xlu1 %2258  ;;  %v3013_v41 = vadd.f32 %v6555_v36, %v2943_v27  ;;  %v7240_v49 = vmax.f32 %v7239_v61, 0.0  ;;  %v7241_v43 = vld [vmem:[#allocation19_spill] sm:$0xff] }
 0x2b9   :  { %4734 = vrsqrt.f32 %v2750_v55  ;;  %v2687_v2 = vmul.f32 0.03125, %v2533_v14  ;;  %v2340_v24 = vmul.f32 0.03125, %v2259_v8  ;;  %v2467_v12 = vmul.f32 %v6675_v21, %v6675_v21 }
 0x2ba   :  { %v4729_v51 = vpop.eup %4728  ;;  %v2944_v42 = vmul.f32 %v6539_v13, %v2874_v59 }
 0x2bb   :  { %v2751_v11 = vadd.f32 1e-05, %v2687_v2  ;;  %v6686_v16 = vsub.f32 %v7238_v47, %v2340_v24  ;;  %v2639_v62 = vsel %vm28_vm0, %v2467_v12, 0.0  ;;  %v2875_v30 = vmul.f32 %v4729_v51, %v6227_v28 }
 0x2bc   :  { %2640 = vadd.xlane.f32.xlu0 %v2639_v62  ;;  %v2262_v1 = vpop.xlane.xlu0 %2261  ;;  %v2536_v26 = vpop.xlane.xlu1 %2535  ;;  %v3014_v38 = vadd.f32 %v6555_v36, %v2944_v42  ;;  %v7242_v12 = vmax.f32 %v6335_v29, 0.0 }
 0x2bd   :  { %4736 = vrsqrt.f32 %v2751_v11  ;;  %v2341_v39 = vmul.f32 0.03125, %v2262_v1  ;;  %v2688_v3 = vmul.f32 0.03125, %v2536_v26  ;;  %v2468_v4 = vmul.f32 %v6686_v16, %v6686_v16  ;;  %v7243_v26 = vld [vmem:[#allocation20_spill] sm:$0xff] }
 0x2be   :  { %v4731_v9 = vpop.eup %4730  ;;  %v3071_v17 = vpack.c.bf16 %v3014_v38, %v3013_v41  ;;  %v2945_v32 = vmul.f32 %v6539_v13, %v2875_v30 }
 0x2bf   :  { %v6696_v60 = vsub.f32 %v7240_v49, %v2341_v39  ;;  %v2752_v5 = vadd.f32 1e-05, %v2688_v3  ;;  %v2642_v54 = vsel %vm28_vm0, %v2468_v4, 0.0  ;;  %v2876_v44 = vmul.f32 %v4731_v9, %v7241_v43  ;;  %v7244_v4 = vld [vmem:[#allocation5_spill] sm:$0xff] }
 0x2c0   :  { %4388 = vmatprep.mubr.msk.bf16.mxu0 %vm28_vm0, %v3071_v17  ;;  %v2539_v28 = vpop.xlane.xlu0 %2538  ;;  %2643 = vadd.xlane.f32.xlu1 %v2642_v54  ;;  %v2265_v55 = vpop.xlane.xlu1 %2264  ;;  %v3015_v62 = vadd.f32 %v6555_v36, %v2945_v32  ;;  %v7245_v9 = vmax.f32 %v7244_v4, 0.0 }
 0x2c1   :  { %4738 = vrsqrt.f32 %v2752_v5  ;;  %v2689_v59 = vmul.f32 0.03125, %v2539_v28  ;;  %v2342_v14 = vmul.f32 0.03125, %v2265_v55  ;;  %v2469_v8 = vmul.f32 %v6696_v60, %v6696_v60  ;;  %v7246_v5 = vld [vmem:[#allocation21_spill] sm:$0xff] }
 0x2c2   :  { %v4733_v27 = vpop.eup %4732  ;;  %v2946_v2 = vmul.f32 %v6539_v13, %v2876_v44 }
 0x2c3   :  { %v2753_v24 = vadd.f32 1e-05, %v2689_v59  ;;  %v6707_v51 = vsub.f32 %v7242_v12, %v2342_v14  ;;  %v2645_v42 = vsel %vm28_vm0, %v2469_v8, 0.0  ;;  %v2877_v41 = vmul.f32 %v4733_v27, %v7243_v26  ;;  %v7247_v27 = vld [vmem:[#allocation22_spill] sm:$0xff] }
 0x2c4   :  { %2646 = vadd.xlane.f32.xlu0 %v2645_v42  ;;  %v2268_v11 = vpop.xlane.xlu0 %2267  ;;  %v2542_v47 = vpop.xlane.xlu1 %2541  ;;  %v3016_v1 = vadd.f32 %v6555_v36, %v2946_v2  ;;  %v7248_v12 = vmax.f32 %v6367_v40, 0.0 }
 0x2c5   :  { %4740 = vrsqrt.f32 %v2753_v24  ;;  %v2343_v38 = vmul.f32 0.03125, %v2268_v11  ;;  %v2690_v30 = vmul.f32 0.03125, %v2542_v47  ;;  %v2470_v39 = vmul.f32 %v6707_v51, %v6707_v51 }
 0x2c6   :  { %v4735_v29 = vpop.eup %4734  ;;  %v3072_v3 = vpack.c.bf16 %v3016_v1, %v3015_v62  ;;  %v2947_v28 = vmul.f32 %v6539_v13, %v2877_v41 }
 0x2c7   :  { %v6717_v17 = vsub.f32 %v7245_v9, %v2343_v38  ;;  %v2754_v61 = vadd.f32 1e-05, %v2690_v30  ;;  %v2648_v49 = vsel %vm28_vm0, %v2470_v39, 0.0  ;;  %v2878_v54 = vmul.f32 %v4735_v29, %v7246_v5 }
 0x2c8   :  { %4389 = vmatmul.mubr.msk.bf16.gmra.mxu0 %vm28_vm0, %v3072_v3  ;;  %v2545_v43 = vpop.xlane.xlu0 %2544  ;;  %2649 = vadd.xlane.f32.xlu1 %v2648_v49  ;;  %v2271_v44 = vpop.xlane.xlu1 %2270  ;;  %v3017_v1 = vadd.f32 %v6555_v36, %v2947_v28  ;;  %v7249_v3 = vld [vmem:[#allocation3_spill] sm:$0xff]  ;;  %v7250_v9 = vmax.f32 %v6381_v18, 0.0 }
 0x2c9   :  { %4742 = vrsqrt.f32 %v2754_v61  ;;  %v2691_v55 = vmul.f32 0.03125, %v2545_v43  ;;  %v2344_v32 = vmul.f32 0.03125, %v2271_v44  ;;  %v2471_v59 = vmul.f32 %v6717_v17, %v6717_v17 }
 0x2ca   :  { %v4737_v14 = vpop.eup %4736  ;;  %v2948_v8 = vmul.f32 %v6539_v13, %v2878_v54 }
 0x2cb   :  { %v2879_v2 = vmul.f32 %v4737_v14, %v7247_v27  ;;  %v2755_v24 = vadd.f32 1e-05, %v2691_v55  ;;  %v6729_v42 = vsub.f32 %v7248_v12, %v2344_v32  ;;  %v2651_v11 = vsel %vm28_vm0, %v2471_v59, 0.0 }
 0x2cc   :  { %2652 = vadd.xlane.f32.xlu0 %v2651_v11  ;;  %v2274_v47 = vpop.xlane.xlu0 %2273  ;;  %v2548_v62 = vpop.xlane.xlu1 %2547  ;;  %v3018_v26 = vadd.f32 %v6555_v36, %v2948_v8  ;;  %v7251_v32 = vmax.f32 %v6392_v45, 0.0  ;;  %v7253_v45 = vmax.f32 %v6403_v37, 0.0 }
 0x2cd   :  { %4744 = vrsqrt.f32 %v2755_v24  ;;  %v2345_v41 = vmul.f32 0.03125, %v2274_v47  ;;  %v2692_v38 = vmul.f32 0.03125, %v2548_v62  ;;  %v2472_v30 = vmul.f32 %v6729_v42, %v6729_v42 }
 0x2ce   :  { %v4739_v39 = vpop.eup %4738  ;;  %v3073_v29 = vpack.c.bf16 %v3018_v26, %v3017_v1  ;;  %v2949_v40 = vmul.f32 %v6539_v13, %v2879_v2  ;;  %v7252_v2 = vld [vmem:[#allocation4_spill] sm:$0xff] }
 0x2cf   :  { %v2880_v4 = vmul.f32 %v4739_v39, %v7249_v3  ;;  %v6740_v61 = vsub.f32 %v7250_v9, %v2345_v41  ;;  %v2756_v49 = vadd.f32 1e-05, %v2692_v38  ;;  %v2654_v5 = vsel %vm28_vm0, %v2472_v30, 0.0  ;;  %v7254_v41 = vld [vmem:[#allocation10_spill] sm:$0xff] }
 0x2d0   :  { %4392 = vmatprep.mubr.msk.bf16.mxu0 %vm28_vm0, %v3073_v29  ;;  %2655 = vadd.xlane.f32.xlu1 %v2654_v5  ;;  %v2277_v54 = vpop.xlane.xlu1 %2276  ;;  %v3019_v14 = vadd.f32 %v6555_v36, %v2949_v40 }
 0x2d1   :  { %4746 = vrsqrt.f32 %v2756_v49  ;;  %v2346_v43 = vmul.f32 0.03125, %v2277_v54  ;;  %v2473_v44 = vmul.f32 %v6740_v61, %v6740_v61  ;;  %v2950_v28 = vmul.f32 %v6539_v13, %v2880_v4  ;;  %v7255_v49 = vld [vmem:[#allocation11_spill] sm:$0xff] }
 0x2d2   :  { %v4741_v55 = vpop.eup %4740 }
 0x2d3   :  { %v6749_v18 = vsub.f32 %v7251_v32, %v2346_v43  ;;  %v2657_v59 = vsel %vm28_vm0, %v2473_v44, 0.0  ;;  %v3020_v8 = vadd.f32 %v6555_v36, %v2950_v28  ;;  %v2881_v24 = vmul.f32 %v4741_v55, %v7252_v2 }
 0x2d4   :  { %2658 = vadd.xlane.f32.xlu0 %v2657_v59  ;;  %v2280_v27 = vpop.xlane.xlu0 %2279  ;;  %v7256_v43 = vmax.f32 %v6420_v50, 0.0 }
 0x2d5   :  { %v2347_v12 = vmul.f32 0.03125, %v2280_v27  ;;  %v3074_v11 = vpack.c.bf16 %v3020_v8, %v3019_v14  ;;  %v2474_v47 = vmul.f32 %v6749_v18, %v6749_v18  ;;  %v2951_v29 = vmul.f32 %v6539_v13, %v2881_v24 }
 0x2d6   :  { %v4743_v62 = vpop.eup %4742 }
 0x2d7   :  { %v6759_v1 = vsub.f32 %v7253_v45, %v2347_v12  ;;  %4393 = vmatmul.mubr.msk.bf16.gmra.mxu0 %vm28_vm0, %v3074_v11  ;;  %v2660_v26 = vsel %vm28_vm0, %v2474_v47, 0.0  ;;  %v2882_v38 = vmul.f32 %v4743_v62, %v7254_v41  ;;  %v3021_v59 = vadd.f32 %v6555_v36, %v2951_v29  ;;  %v7257_v11 = vld [vmem:[#allocation6_spill] sm:$0xff] }
 0x2d8   :  { %v2551_v30 = vpop.xlane.xlu0 %2550  ;;  %2661 = vadd.xlane.f32.xlu1 %v2660_v26  ;;  %v2283_v39 = vpop.xlane.xlu1 %2282 }
 0x2d9   :  { %v2693_v40 = vmul.f32 0.03125, %v2551_v30  ;;  %v2348_v3 = vmul.f32 0.03125, %v2283_v39  ;;  %v2475_v4 = vmul.f32 %v6759_v1, %v6759_v1  ;;  %v2952_v37 = vmul.f32 %v6539_v13, %v2882_v38 }
 0x2da   :  { %v4745_v9 = vpop.eup %4744 }
 0x2db   :  { %v2883_v5 = vmul.f32 %v4745_v9, %v7255_v49  ;;  %v2757_v54 = vadd.f32 1e-05, %v2693_v40  ;;  %v6771_v44 = vsub.f32 %v7256_v43, %v2348_v3  ;;  %v2663_v28 = vsel %vm28_vm0, %v2475_v4, 0.0 }
 0x2dc   :  { %2664 = vadd.xlane.f32.xlu0 %v2663_v28  ;;  %v2557_v55 = vpop.xlane.xlu0 %2556  ;;  %v2554_v32 = vpop.xlane.xlu1 %2553  ;;  %v3022_v14 = vadd.f32 %v6555_v36, %v2952_v37 }
 0x2dd   :  { %4748 = vrsqrt.f32 %v2757_v54  ;;  %v2695_v8 = vmul.f32 0.03125, %v2557_v55  ;;  %v2694_v27 = vmul.f32 0.03125, %v2554_v32  ;;  %v2476_v2 = vmul.f32 %v6771_v44, %v6771_v44 }
 0x2de   :  { %v4747_v24 = vpop.eup %4746  ;;  %v3075_v12 = vpack.c.bf16 %v3022_v14, %v3021_v59  ;;  %v2953_v50 = vmul.f32 %v6539_v13, %v2883_v5 }
 0x2df   :  { %v2884_v47 = vmul.f32 %v4747_v24, %v7257_v11  ;;  %v2759_v62 = vadd.f32 1e-05, %v2695_v8  ;;  %v2758_v45 = vadd.f32 1e-05, %v2694_v27  ;;  %v2666_v26 = vsel %vm28_vm0, %v2476_v2, 0.0  ;;  %v7258_v8 = vld [vmem:[#allocation12_spill] sm:$0xff] }
 0x2e0   :  { %4396 = vmatprep.mubr.msk.bf16.mxu0 %vm28_vm0, %v3075_v12  ;;  %v2563_v41 = vpop.xlane.xlu0 %2562  ;;  %2667 = vadd.xlane.f32.xlu1 %v2666_v26  ;;  %v2560_v38 = vpop.xlane.xlu1 %2559  ;;  %v3023_v4 = vadd.f32 %v6555_v36, %v2953_v50 }
 0x2e1   :  { %4750 = vrsqrt.f32 %v2759_v62  ;;  %v2697_v30 = vmul.f32 0.03125, %v2563_v41  ;;  %v2696_v39 = vmul.f32 0.03125, %v2560_v38  ;;  %v2954_v29 = vmul.f32 %v6539_v13, %v2884_v47 }
 0x2e2   :  { %4752 = vrsqrt.f32 %v2758_v45 }
 0x2e3   :  { %v2761_v40 = vadd.f32 1e-05, %v2697_v30  ;;  %v2760_v3 = vadd.f32 1e-05, %v2696_v39  ;;  %v3024_v37 = vadd.f32 %v6555_v36, %v2954_v29 }
 0x2e4   :  { %v2566_v9 = vpop.xlane.xlu1 %2565 }
 0x2e5   :  { %4754 = vrsqrt.f32 %v2761_v40  ;;  %v2698_v49 = vmul.f32 0.03125, %v2566_v9  ;;  %v2569_v5 = vpop.xlane.xlu0 %2568  ;;  %v3076_v54 = vpack.c.bf16 %v3024_v37, %v3023_v4 }
 0x2e6   :  { %4756 = vrsqrt.f32 %v2760_v3  ;;  %v2699_v43 = vmul.f32 0.03125, %v2569_v5 }
 0x2e7   :  { %v2762_v28 = vadd.f32 1e-05, %v2698_v49  ;;  %4397 = vmatmul.mubr.msk.bf16.gmra.mxu0 %vm28_vm0, %v3076_v54 }
 0x2e8   :  { %v2763_v55 = vadd.f32 1e-05, %v2699_v43 }
 0x2e9   :  { %4758 = vrsqrt.f32 %v2762_v28  ;;  %v2572_v32 = vpop.xlane.xlu1 %2571 }
 0x2ea   :  { %v4749_v59 = vpop.eup %4748  ;;  %4760 = vrsqrt.f32 %v2763_v55  ;;  %v2700_v14 = vmul.f32 0.03125, %v2572_v32 }
 0x2eb   :  { %v2885_v27 = vmul.f32 %v4749_v59, %v7258_v8 }
 0x2ec   :  { %v2764_v2 = vadd.f32 1e-05, %v2700_v14 }
 0x2ed   :  { %v2575_v24 = vpop.xlane.xlu0 %2574  ;;  %v2955_v47 = vmul.f32 %v6539_v13, %v2885_v27 }
 0x2ee   :  { %v4751_v12 = vpop.eup %4750  ;;  %4762 = vrsqrt.f32 %v2764_v2  ;;  %v2701_v50 = vmul.f32 0.03125, %v2575_v24 }
 0x2ef   :  { %v4753_v11 = vpop.eup %4752  ;;  %v2887_v62 = vmul.f32 %v4751_v12, %v6414_v46  ;;  %v3025_v40 = vadd.f32 %v6555_v36, %v2955_v47 }
 0x2f0   :  { %v2765_v45 = vadd.f32 1e-05, %v2701_v50  ;;  %v2886_v26 = vmul.f32 %v4753_v11, %v6408_v19 }
 0x2f1   :  { %v2578_v41 = vpop.xlane.xlu1 %2577  ;;  %v2957_v46 = vmul.f32 %v6539_v13, %v2887_v62 }
 0x2f2   :  { %v4755_v38 = vpop.eup %4754  ;;  %4764 = vrsqrt.f32 %v2765_v45  ;;  %v2702_v30 = vmul.f32 0.03125, %v2578_v41  ;;  %v2956_v39 = vmul.f32 %v6539_v13, %v2886_v26 }
 0x2f3   :  { %v4757_v29 = vpop.eup %4756  ;;  %v2889_v3 = vmul.f32 %v4755_v38, %v6437_v15  ;;  %v3027_v59 = vadd.f32 %v6555_v36, %v2957_v46 }
 0x2f4   :  { %v2888_v4 = vmul.f32 %v4757_v29, %v6426_v48  ;;  %v2766_v37 = vadd.f32 1e-05, %v2702_v30  ;;  %v3026_v9 = vadd.f32 %v6555_v36, %v2956_v39 }
 0x2f5   :  { %v2581_v49 = vpop.xlane.xlu0 %2580  ;;  %v2959_v32 = vmul.f32 %v6539_v13, %v2889_v3 }
 0x2f6   :  { %v4759_v19 = vpop.eup %4758  ;;  %4766 = vrsqrt.f32 %v2766_v37  ;;  %v2703_v5 = vmul.f32 0.03125, %v2581_v49  ;;  %v3077_v54 = vpack.c.bf16 %v3026_v9, %v3025_v40  ;;  %v2958_v43 = vmul.f32 %v6539_v13, %v2888_v4 }
 0x2f7   :  { %v4761_v28 = vpop.eup %4760  ;;  %v2890_v55 = vmul.f32 %v4759_v19, %v6447_v57  ;;  %v3029_v57 = vadd.f32 %v6555_v36, %v2959_v32 }
 0x2f8   :  { %v2891_v15 = vmul.f32 %v4761_v28, %v6455_v22  ;;  %v2767_v48 = vadd.f32 1e-05, %v2703_v5  ;;  %4400 = vmatprep.mubr.msk.bf16.mxu0 %vm28_vm0, %v3077_v54  ;;  %v3028_v14 = vadd.f32 %v6555_v36, %v2958_v43 }
 0x2f9   :  { %v2584_v8 = vpop.xlane.xlu1 %2583  ;;  %v2960_v27 = vmul.f32 %v6539_v13, %v2890_v55 }
 0x2fa   :  { %4768 = vrsqrt.f32 %v2767_v48  ;;  %v2704_v2 = vmul.f32 0.03125, %v2584_v8  ;;  %v3078_v24 = vpack.c.bf16 %v3028_v14, %v3027_v59  ;;  %v2961_v47 = vmul.f32 %v6539_v13, %v2891_v15  ;;  %v7259_v14 = vld [vmem:[#allocation7_spill] sm:$0xff] }
 0x2fb   :  { %v4763_v12 = vpop.eup %4762  ;;  %v3030_v50 = vadd.f32 %v6555_v36, %v2960_v27 }
 0x2fc   :  { %v2892_v22 = vmul.f32 %v4763_v12, %v6462_v34  ;;  %v2768_v11 = vadd.f32 1e-05, %v2704_v2  ;;  %4401 = vmatmul.mubr.msk.bf16.gmra.mxu0 %vm28_vm0, %v3078_v24  ;;  %v3031_v39 = vadd.f32 %v6555_v36, %v2961_v47  ;;  %v7260_v47 = vld [vmem:[#allocation13_spill] sm:$0xff] }
 0x2fd   :  { %v2587_v62 = vpop.xlane.xlu0 %2586  ;;  %v3079_v45 = vpack.c.bf16 %v3030_v50, %v3029_v57 }
 0x2fe   :  { %4770 = vrsqrt.f32 %v2768_v11  ;;  %v2705_v26 = vmul.f32 0.03125, %v2587_v62  ;;  %v2962_v41 = vmul.f32 %v6539_v13, %v2892_v22 }
 0x2ff   :  { %v4765_v38 = vpop.eup %4764  ;;  %4404 = vmatprep.mubr.msk.bf16.mxu0 %vm28_vm0, %v3079_v45 }
 0x300   :  { %v2769_v30 = vadd.f32 1e-05, %v2705_v26  ;;  %v3032_v29 = vadd.f32 %v6555_v36, %v2962_v41  ;;  %v2893_v34 = vmul.f32 %v4765_v38, %v6469_v6 }
 0x301   :  { %v2590_v40 = vpop.xlane.xlu1 %2589 }
 0x302   :  { %4772 = vrsqrt.f32 %v2769_v30  ;;  %v2706_v3 = vmul.f32 0.03125, %v2590_v40  ;;  %v3080_v4 = vpack.c.bf16 %v3032_v29, %v3031_v39  ;;  %v2963_v49 = vmul.f32 %v6539_v13, %v2893_v34 }
 0x303   :  { %v4767_v37 = vpop.eup %4766 }
 0x304   :  { %v2770_v9 = vadd.f32 1e-05, %v2706_v3  ;;  %4405 = vmatmul.mubr.msk.bf16.gmra.mxu0 %vm28_vm0, %v3080_v4  ;;  %v2894_v46 = vmul.f32 %v4767_v37, %v6476_v25  ;;  %v3033_v55 = vadd.f32 %v6555_v36, %v2963_v49  ;;  %v7261_v37 = vld [vmem:[#allocation8_spill] sm:$0xff] }
 0x305   :  { %v2593_v19 = vpop.xlane.xlu0 %2592 }
 0x306   :  { %4774 = vrsqrt.f32 %v2770_v9  ;;  %v2707_v5 = vmul.f32 0.03125, %v2593_v19  ;;  %v2964_v54 = vmul.f32 %v6539_v13, %v2894_v46 }
 0x307   :  { %v4769_v43 = vpop.eup %4768 }
 0x308   :  { %v2895_v6 = vmul.f32 %v4769_v43, %v6483_v53  ;;  %v2771_v28 = vadd.f32 1e-05, %v2707_v5  ;;  %v3034_v32 = vadd.f32 %v6555_v36, %v2964_v54 }
 0x309   :  { %v2596_v15 = vpop.xlane.xlu1 %2595 }
 0x30a   :  { %4776 = vrsqrt.f32 %v2771_v28  ;;  %v2708_v48 = vmul.f32 0.03125, %v2596_v15  ;;  %v3081_v59 = vpack.c.bf16 %v3034_v32, %v3033_v55  ;;  %v2965_v2 = vmul.f32 %v6539_v13, %v2895_v6  ;;  %v7262_v6 = vld [vmem:[#allocation14_spill] sm:$0xff] }
 0x30b   :  { %v4771_v25 = vpop.eup %4770 }
 0x30c   :  { %v2896_v8 = vmul.f32 %v4771_v25, %v7259_v14  ;;  %v2772_v27 = vadd.f32 1e-05, %v2708_v48  ;;  %4408 = vmatprep.mubr.msk.bf16.mxu0 %vm28_vm0, %v3081_v59  ;;  %v3035_v22 = vadd.f32 %v6555_v36, %v2965_v2 }
 0x30d   :  { %v2599_v24 = vpop.xlane.xlu0 %2598 }
 0x30e   :  { %4778 = vrsqrt.f32 %v2772_v27  ;;  %v2709_v53 = vmul.f32 0.03125, %v2599_v24  ;;  %v2966_v12 = vmul.f32 %v6539_v13, %v2896_v8  ;;  %v7263_v27 = vld [vmem:[#allocation15_spill] sm:$0xff] }
 0x30f   :  { %v4773_v57 = vpop.eup %4772 }
 0x310   :  { %v2773_v50 = vadd.f32 1e-05, %v2709_v53  ;;  %v3036_v11 = vadd.f32 %v6555_v36, %v2966_v12  ;;  %v2897_v62 = vmul.f32 %v4773_v57, %v7260_v47 }
 0x311   :  { %v2602_v45 = vpop.xlane.xlu1 %2601 }
 0x312   :  { %4780 = vrsqrt.f32 %v2773_v50  ;;  %v2710_v26 = vmul.f32 0.03125, %v2602_v45  ;;  %v3082_v41 = vpack.c.bf16 %v3036_v11, %v3035_v22  ;;  %v2967_v29 = vmul.f32 %v6539_v13, %v2897_v62  ;;  %v7264_v22 = vld [vmem:[#allocation16_spill] sm:$0xff] }
 0x313   :  { %v4775_v38 = vpop.eup %4774 }
 0x314   :  { %v2774_v30 = vadd.f32 1e-05, %v2710_v26  ;;  %4409 = vmatmul.mubr.msk.bf16.gmra.mxu0 %vm28_vm0, %v3082_v41  ;;  %v2898_v39 = vmul.f32 %v4775_v38, %v6504_v35  ;;  %v3037_v49 = vadd.f32 %v6555_v36, %v2967_v29 }
 0x315   :  { %v2605_v34 = vpop.xlane.xlu0 %2604 }
 0x316   :  { %4782 = vrsqrt.f32 %v2774_v30  ;;  %v2711_v40 = vmul.f32 0.03125, %v2605_v34  ;;  %v2968_v3 = vmul.f32 %v6539_v13, %v2898_v39  ;;  %v7265_v34 = vld [vmem:[#allocation17_spill] sm:$0xff] }
 0x317   :  { %v4777_v4 = vpop.eup %4776 }
 0x318   :  { %v2899_v9 = vmul.f32 %v4777_v4, %v7261_v37  ;;  %v2775_v46 = vadd.f32 1e-05, %v2711_v40  ;;  %v3038_v19 = vadd.f32 %v6555_v36, %v2968_v3 }
 0x319   :  { %v2608_v5 = vpop.xlane.xlu1 %2607 }
 0x31a   :  { %4784 = vrsqrt.f32 %v2775_v46  ;;  %v3083_v54 = vpack.c.bf16 %v3038_v19, %v3037_v49  ;;  %v2712_v35 = vmul.f32 0.03125, %v2608_v5  ;;  %v2969_v55 = vmul.f32 %v6539_v13, %v2899_v9  ;;  %v6854_v19 = vld [vmem:[%s7036_s3] ss:$0 sm:$0xff] }
 0x31b   :  { %v4779_v43 = vpop.eup %4778 }
 0x31c   :  { %v2900_v28 = vmul.f32 %v4779_v43, %v7262_v6  ;;  %4412 = vmatprep.mubr.msk.bf16.mxu0 %vm28_vm0, %v3083_v54  ;;  %v2776_v32 = vadd.f32 1e-05, %v2712_v35  ;;  %v3039_v14 = vadd.f32 %v6555_v36, %v2969_v55 }
 0x31e   :  { %v2611_v15 = vpop.xlane.xlu0 %2610  ;;  %v2970_v48 = vmul.f32 %v6539_v13, %v2900_v28  ;;  %4786 = vrsqrt.f32 %v2776_v32 }
 0x31f   :  { %v4781_v59 = vpop.eup %4780  ;;  %v2713_v25 = vmul.f32 0.03125, %v2611_v15 }
 0x320   :  { %v3040_v8 = vadd.f32 %v6555_v36, %v2970_v48  ;;  %v2901_v2 = vmul.f32 %v4781_v59, %v7263_v27 }
 0x321   :  { %v2777_v24 = vadd.f32 1e-05, %v2713_v25 }
 0x322   :  { %v2614_v53 = vpop.xlane.xlu1 %2613  ;;  %v3084_v12 = vpack.c.bf16 %v3040_v8, %v3039_v14  ;;  %v2971_v47 = vmul.f32 %v6539_v13, %v2901_v2 }
 0x323   :  { %v4783_v57 = vpop.eup %4782  ;;  %4788 = vrsqrt.f32 %v2777_v24  ;;  %v2714_v50 = vmul.f32 0.03125, %v2614_v53 }
 0x324   :  { %4413 = vmatmul.mubr.msk.bf16.gmra.mxu0 %vm28_vm0, %v3084_v12  ;;  %v2902_v11 = vmul.f32 %v4783_v57, %v7264_v22  ;;  %v3041_v39 = vadd.f32 %v6555_v36, %v2971_v47  ;;  %v6869_v57 = vld [vmem:[%s7037_s4] ss:$0 sm:$0xff] }
 0x325   :  { %v2778_v62 = vadd.f32 1e-05, %v2714_v50  ;;  %v2617_v45 = vpop.xlane.xlu0 %2616 }
 0x326   :  { %v2715_v26 = vmul.f32 0.03125, %v2617_v45  ;;  %v2972_v41 = vmul.f32 %v6539_v13, %v2902_v11 }
 0x327   :  { %v4785_v38 = vpop.eup %4784  ;;  %4790 = vrsqrt.f32 %v2778_v62 }
 0x328   :  { %v2779_v30 = vadd.f32 1e-05, %v2715_v26  ;;  %v3042_v29 = vadd.f32 %v6555_v36, %v2972_v41  ;;  %v2903_v40 = vmul.f32 %v4785_v38, %v7265_v34 }
 0x329   :  { %v2620_v3 = vpop.xlane.xlu1 %2619 }
 0x32a   :  { %4792 = vrsqrt.f32 %v2779_v30  ;;  %v2716_v4 = vmul.f32 0.03125, %v2620_v3  ;;  %v3085_v37 = vpack.c.bf16 %v3042_v29, %v3041_v39  ;;  %v2973_v5 = vmul.f32 %v6854_v19, %v2903_v40 }
 0x32b   :  { %v4787_v9 = vpop.eup %4786 }
 0x32c   :  { %v2780_v46 = vadd.f32 1e-05, %v2716_v4  ;;  %4416 = vmatprep.mubr.msk.bf16.mxu0 %vm28_vm0, %v3085_v37  ;;  %v2904_v49 = vmul.f32 %v4787_v9, %v6561_v31  ;;  %v3043_v55 = vadd.f32 %v6555_v36, %v2973_v5 }
 0x32d   :  { %v2623_v13 = vpop.xlane.xlu0 %2622 }
 0x32e   :  { %4794 = vrsqrt.f32 %v2780_v46  ;;  %v2717_v54 = vmul.f32 0.03125, %v2623_v13  ;;  %v2974_v43 = vmul.f32 %v6854_v19, %v2904_v49 }
 0x330   :  { %v4789_v35 = vpop.eup %4788  ;;  %v2781_v6 = vadd.f32 1e-05, %v2717_v54  ;;  %v3044_v32 = vadd.f32 %v6555_v36, %v2974_v43 }
 0x331   :  { %v2626_v28 = vpop.xlane.xlu1 %2625  ;;  %v2905_v31 = vmul.f32 %v4789_v35, %v6572_v0 }
 0x332   :  { %4796 = vrsqrt.f32 %v2781_v6  ;;  %v2718_v15 = vmul.f32 0.03125, %v2626_v28  ;;  %v3086_v48 = vpack.c.bf16 %v3044_v32, %v3043_v55 }
 0x333   :  { %v2975_v27 = vmul.f32 %v6854_v19, %v2905_v31 }
 0x334   :  { %v4791_v59 = vpop.eup %4790  ;;  %v2782_v25 = vadd.f32 1e-05, %v2718_v15  ;;  %4417 = vmatmul.mubr.msk.bf16.gmra.mxu0 %vm28_vm0, %v3086_v48 }
 0x335   :  { %v2629_v14 = vpop.xlane.xlu0 %2628  ;;  %v2906_v8 = vmul.f32 %v4791_v59, %v6581_v10  ;;  %v3045_v50 = vadd.f32 %v6869_v57, %v2975_v27 }
 0x336   :  { %4798 = vrsqrt.f32 %v2782_v25  ;;  %v2719_v2 = vmul.f32 0.03125, %v2629_v14 }
 0x337   :  { %v4793_v24 = vpop.eup %4792  ;;  %v2976_v53 = vmul.f32 %v6854_v19, %v2906_v8 }
 0x338   :  { %v2907_v36 = vmul.f32 %v4793_v24, %v6591_v63  ;;  %v2783_v0 = vadd.f32 1e-05, %v2719_v2 }
 0x339   :  { %v2632_v12 = vpop.xlane.xlu1 %2631  ;;  %v3046_v10 = vadd.f32 %v6869_v57, %v2976_v53 }
 0x33a   :  { %4800 = vrsqrt.f32 %v2783_v0  ;;  %v2720_v22 = vmul.f32 0.03125, %v2632_v12  ;;  %v2977_v63 = vmul.f32 %v6854_v19, %v2907_v36 }
 0x33b   :  { %v4795_v11 = vpop.eup %4794  ;;  %v3087_v47 = vpack.c.bf16 %v3046_v10, %v3045_v50 }
 0x33c   :  { %v2908_v62 = vmul.f32 %v4795_v11, %v6602_v33  ;;  %v2784_v45 = vadd.f32 1e-05, %v2720_v22  ;;  %v3047_v29 = vadd.f32 %v6869_v57, %v2977_v63 }
 0x33d   :  { %4420 = vmatprep.mubr.msk.bf16.mxu0 %vm28_vm0, %v3087_v47  ;;  %v2635_v26 = vpop.xlane.xlu0 %2634 }
 0x33e   :  { %4802 = vrsqrt.f32 %v2784_v45  ;;  %v2721_v41 = vmul.f32 0.03125, %v2635_v26  ;;  %v2978_v38 = vmul.f32 %v6854_v19, %v2908_v62 }
 0x33f   :  { %v4797_v30 = vpop.eup %4796 }
 0x340   :  { %v2785_v39 = vadd.f32 1e-05, %v2721_v41  ;;  %v3048_v34 = vadd.f32 %v6869_v57, %v2978_v38  ;;  %v2909_v40 = vmul.f32 %v4797_v30, %v6612_v56 }
 0x341   :  { %v2638_v3 = vpop.xlane.xlu1 %2637 }
 0x342   :  { %4804 = vrsqrt.f32 %v2785_v39  ;;  %v2722_v33 = vmul.f32 0.03125, %v2638_v3  ;;  %v3088_v4 = vpack.c.bf16 %v3048_v34, %v3047_v29  ;;  %v2979_v49 = vmul.f32 %v6854_v19, %v2909_v40 }
 0x343   :  { %v4799_v37 = vpop.eup %4798 }
 0x344   :  { %v2786_v9 = vadd.f32 1e-05, %v2722_v33  ;;  %4421 = vmatmul.mubr.msk.bf16.gmra.mxu0 %vm28_vm0, %v3088_v4  ;;  %v2910_v46 = vmul.f32 %v4799_v37, %v6623_v20  ;;  %v3049_v6 = vadd.f32 %v6869_v57, %v2979_v49 }
 0x345   :  { %v2641_v13 = vpop.xlane.xlu0 %2640 }
 0x346   :  { %4806 = vrsqrt.f32 %v2786_v9  ;;  %v2723_v5 = vmul.f32 0.03125, %v2641_v13  ;;  %v2980_v54 = vmul.f32 %v6854_v19, %v2910_v46 }
 0x347   :  { %v4801_v43 = vpop.eup %4800 }
 0x348   :  { %v2911_v56 = vmul.f32 %v4801_v43, %v6633_v7  ;;  %v2787_v35 = vadd.f32 1e-05, %v2723_v5  ;;  %v3050_v28 = vadd.f32 %v6869_v57, %v2980_v54 }
 0x349   :  { %v2644_v55 = vpop.xlane.xlu1 %2643 }
 0x34a   :  { %4808 = vrsqrt.f32 %v2787_v35  ;;  %v2724_v32 = vmul.f32 0.03125, %v2644_v55  ;;  %v3089_v31 = vpack.c.bf16 %v3050_v28, %v3049_v6  ;;  %v2981_v59 = vmul.f32 %v6854_v19, %v2911_v56 }
 0x34b   :  { %v4803_v20 = vpop.eup %4802 }
 0x34c   :  { %v2912_v15 = vmul.f32 %v4803_v20, %v6644_v58  ;;  %v2788_v48 = vadd.f32 1e-05, %v2724_v32  ;;  %4424 = vmatprep.mubr.msk.bf16.mxu0 %vm28_vm0, %v3089_v31  ;;  %v3051_v2 = vadd.f32 %v6869_v57, %v2981_v59 }
 0x34d   :  { %v2647_v25 = vpop.xlane.xlu0 %2646 }
 0x34e   :  { %4810 = vrsqrt.f32 %v2788_v48  ;;  %v2725_v7 = vmul.f32 0.03125, %v2647_v25  ;;  %v2982_v14 = vmul.f32 %v6854_v19, %v2912_v15 }
 0x34f   :  { %v4805_v8 = vpop.eup %4804 }
 0x350   :  { %v2789_v27 = vadd.f32 1e-05, %v2725_v7  ;;  %v3052_v24 = vadd.f32 %v6869_v57, %v2982_v14  ;;  %v2913_v53 = vmul.f32 %v4805_v8, %v6654_v23 }
 0x351   :  { %v2650_v36 = vpop.xlane.xlu1 %2649 }
 0x352   :  { %4812 = vrsqrt.f32 %v2789_v27  ;;  %v2726_v58 = vmul.f32 0.03125, %v2650_v36  ;;  %v3090_v0 = vpack.c.bf16 %v3052_v24, %v3051_v2  ;;  %v2983_v22 = vmul.f32 %v6854_v19, %v2913_v53 }
 0x353   :  { %v4807_v12 = vpop.eup %4806 }
 0x354   :  { %v2790_v50 = vadd.f32 1e-05, %v2726_v58  ;;  %4425 = vmatmul.mubr.msk.bf16.gmra.mxu0 %vm28_vm0, %v3090_v0  ;;  %v2914_v10 = vmul.f32 %v4807_v12, %v6665_v52  ;;  %v3053_v41 = vadd.f32 %v6869_v57, %v2983_v22 }
 0x355   :  { %v2653_v11 = vpop.xlane.xlu0 %2652 }
 0x356   :  { %4814 = vrsqrt.f32 %v2790_v50  ;;  %v2727_v47 = vmul.f32 0.03125, %v2653_v11  ;;  %v2984_v62 = vmul.f32 %v6854_v19, %v2914_v10 }
 0x357   :  { %v4809_v45 = vpop.eup %4808  ;;  %v4378_v63 = vpop.f32.mrf.mxu0 }
 0x358   :  { %v2915_v23 = vmul.f32 %v4809_v45, %v6675_v21  ;;  %v2791_v26 = vadd.f32 1e-05, %v2727_v47  ;;  %v3054_v38 = vadd.f32 %v6869_v57, %v2984_v62 }
 0x359   :  { %v2656_v30 = vpop.xlane.xlu1 %2655  ;;  %v3243_v39 = vpop.f32.mrf.mxu0 }
 0x35a   :  { %4816 = vrsqrt.f32 %v2791_v26  ;;  %v2728_v52 = vmul.f32 0.03125, %v2656_v30  ;;  %v3091_v29 = vpack.c.bf16 %v3054_v38, %v3053_v41  ;;  %v2985_v21 = vmul.f32 %v6854_v19, %v2915_v23 }
 0x35b   :  { %v4811_v34 = vpop.eup %4810  ;;  %v4379_v40 = vpop.f32.mrf.mxu0 }
 0x35c   :  { %v2916_v3 = vmul.f32 %v4811_v34, %v6686_v16  ;;  %v2792_v33 = vadd.f32 1e-05, %v2728_v52  ;;  %v4155_v4 = vpack.c.bf16 %v4379_v40, %v4378_v63  ;;  %4428 = vmatprep.mubr.msk.bf16.mxu0 %vm28_vm0, %v3091_v29  ;;  %v3055_v16 = vadd.f32 %v6869_v57, %v2985_v21 }
 0x35d   :  { %v2659_v37 = vpop.xlane.xlu0 %2658  ;;  %v3246_v9 = vpop.f32.mrf.mxu0 }
 0x35e   :  { %4818 = vrsqrt.f32 %v2792_v33  ;;  %4307 = vst [vmem:[%s7038_s6 + $0x8] sm:$0xff] %v4155_v4   ;;  %v2729_v46 = vmul.f32 0.03125, %v2659_v37  ;;  %v4150_v49 = vpack.c.bf16 %v3246_v9, %v3243_v39  ;;  %v2986_v13 = vmul.f32 %v6854_v19, %v2916_v3 }
 0x35f   :  { %v4813_v5 = vpop.eup %4812 }
 0x360   :  { %v2793_v54 = vadd.f32 1e-05, %v2729_v46  ;;  %4151 = vst [vmem:[%s7038_s6] sm:$0xff] %v4150_v49   ;;  %v3056_v43 = vadd.f32 %v6869_v57, %v2986_v13  ;;  %v2917_v56 = vmul.f32 %v4813_v5, %v6696_v60 }
 0x361   :  { %v2662_v35 = vpop.xlane.xlu1 %2661 }
 0x362   :  { %4820 = vrsqrt.f32 %v2793_v54  ;;  %v2730_v6 = vmul.f32 0.03125, %v2662_v35  ;;  %v3092_v28 = vpack.c.bf16 %v3056_v43, %v3055_v16  ;;  %v2987_v20 = vmul.f32 %v6854_v19, %v2917_v56 }
 0x363   :  { %v4815_v55 = vpop.eup %4814 }
 0x364   :  { %v2794_v32 = vadd.f32 1e-05, %v2730_v6  ;;  %4429 = vmatmul.mubr.msk.bf16.gmra.mxu0 %vm28_vm0, %v3092_v28  ;;  %v2918_v31 = vmul.f32 %v4815_v55, %v6707_v51  ;;  %v3057_v8 = vadd.f32 %v6869_v57, %v2987_v20 }
 0x365   :  { %v2665_v15 = vpop.xlane.xlu0 %2664 }
 0x366   :  { %4822 = vrsqrt.f32 %v2794_v32  ;;  %v2731_v48 = vmul.f32 0.03125, %v2665_v15  ;;  %v2988_v59 = vmul.f32 %v6854_v19, %v2918_v31 }
 0x367   :  { %v4817_v25 = vpop.eup %4816 }
 0x368   :  { %v2919_v60 = vmul.f32 %v4817_v25, %v6717_v17  ;;  %v2795_v7 = vadd.f32 1e-05, %v2731_v48  ;;  %v4382_v14 = vpop.f32.mrf.mxu0  ;;  %v3058_v27 = vadd.f32 %v6869_v57, %v2988_v59 }
 0x369   :  { %v2668_v2 = vpop.xlane.xlu1 %2667 }
 0x36a   :  { %4824 = vrsqrt.f32 %v2795_v7  ;;  %v2732_v24 = vmul.f32 0.03125, %v2668_v2  ;;  %v3259_v51 = vpop.f32.mrf.mxu0  ;;  %v3093_v53 = vpack.c.bf16 %v3058_v27, %v3057_v8  ;;  %v2989_v17 = vmul.f32 %v6854_v19, %v2919_v60 }
 0x36b   :  { %v4819_v36 = vpop.eup %4818 }
 0x36c   :  { %v2920_v58 = vmul.f32 %v4819_v36, %v6729_v42  ;;  %v2796_v0 = vadd.f32 1e-05, %v2732_v24  ;;  %v4383_v12 = vpop.f32.mrf.mxu0  ;;  %4432 = vmatprep.mubr.msk.bf16.mxu0 %vm28_vm0, %v3093_v53  ;;  %v3059_v62 = vadd.f32 %v6869_v57, %v2989_v17 }
 0x36d   :  { %v4165_v50 = vpack.c.bf16 %v4383_v12, %v4382_v14 }
 0x36e   :  { %4826 = vrsqrt.f32 %v2796_v0  ;;  %v3262_v10 = vpop.f32.mrf.mxu0  ;;  %v2990_v22 = vmul.f32 %v6854_v19, %v2920_v58 }
 0x36f   :  { %v4821_v11 = vpop.eup %4820  ;;  %4309 = vst [vmem:[%s7038_s6 + $0x18] sm:$0xff] %v4165_v50   ;;  %v4160_v47 = vpack.c.bf16 %v3262_v10, %v3259_v51 }
 0x370   :  { %v3060_v42 = vadd.f32 %v6869_v57, %v2990_v22  ;;  %v2921_v45 = vmul.f32 %v4821_v11, %v6740_v61 }
 0x371   :  { %4308 = vst [vmem:[%s7038_s6 + $0x10] sm:$0xff] %v4160_v47  }
 0x372   :  { %v3094_v63 = vpack.c.bf16 %v3060_v42, %v3059_v62  ;;  %v2991_v41 = vmul.f32 %v6854_v19, %v2921_v45 }
 0x373   :  { %v4823_v23 = vpop.eup %4822 }
 0x374   :  { %4433 = vmatmul.mubr.msk.bf16.gmra.mxu0 %vm28_vm0, %v3094_v63  ;;  %v2922_v26 = vmul.f32 %v4823_v23, %v6749_v18  ;;  %v3061_v61 = vadd.f32 %v6869_v57, %v2991_v41 }
 0x376   :  { %v2992_v38 = vmul.f32 %v6854_v19, %v2922_v26 }
 0x377   :  { %v4825_v30 = vpop.eup %4824 }
 0x378   :  { %v2923_v39 = vmul.f32 %v4825_v30, %v6759_v1  ;;  %v4386_v52 = vpop.f32.mrf.mxu0  ;;  %v3062_v29 = vadd.f32 %v6869_v57, %v2992_v38 }
 0x37a   :  { %v3275_v34 = vpop.f32.mrf.mxu0  ;;  %v3095_v40 = vpack.c.bf16 %v3062_v29, %v3061_v61  ;;  %v2993_v18 = vmul.f32 %v6854_v19, %v2923_v39 }
 0x37b   :  { %v4827_v3 = vpop.eup %4826 }
 0x37c   :  { %v2924_v33 = vmul.f32 %v4827_v3, %v6771_v44  ;;  %v4387_v4 = vpop.f32.mrf.mxu0  ;;  %4436 = vmatprep.mubr.msk.bf16.mxu0 %vm28_vm0, %v3095_v40  ;;  %v3063_v46 = vadd.f32 %v6869_v57, %v2993_v18 }
 0x37d   :  { %v4175_v21 = vpack.c.bf16 %v4387_v4, %v4386_v52 }
 0x37e   :  { %v3278_v37 = vpop.f32.mrf.mxu0  ;;  %v2994_v9 = vmul.f32 %v6854_v19, %v2924_v33 }
 0x37f   :  { %4311 = vst [vmem:[%s7038_s6 + $0x28] sm:$0xff] %v4175_v21   ;;  %v4170_v1 = vpack.c.bf16 %v3278_v37, %v3275_v34 }
 0x380   :  { %v3064_v49 = vadd.f32 %v6869_v57, %v2994_v9 }
 0x381   :  { %4310 = vst [vmem:[%s7038_s6 + $0x20] sm:$0xff] %v4170_v1  }
 0x382   :  { %v3096_v44 = vpack.c.bf16 %v3064_v49, %v3063_v46 }
 0x384   :  { %4437 = vmatmul.mubr.msk.bf16.gmra.mxu0 %vm28_vm0, %v3096_v44 }
 0x388   :  { %v4390_v13 = vpop.f32.mrf.mxu0 }
 0x38a   :  { %v3291_v5 = vpop.f32.mrf.mxu0 }
 0x38c   :  { %v4391_v54 = vpop.f32.mrf.mxu0 }
 0x38d   :  { %v4185_v19 = vpack.c.bf16 %v4391_v54, %v4390_v13 }
 0x38e   :  { %v3294_v16 = vpop.f32.mrf.mxu0 }
 0x38f   :  { %4313 = vst [vmem:[%s7038_s6 + $0x38] sm:$0xff] %v4185_v19   ;;  %v4180_v43 = vpack.c.bf16 %v3294_v16, %v3291_v5 }
 0x391   :  { %4312 = vst [vmem:[%s7038_s6 + $0x30] sm:$0xff] %v4180_v43  }
 0x397   :  { %v4394_v57 = vpop.f32.mrf.mxu0 }
 0x399   :  { %v3307_v56 = vpop.f32.mrf.mxu0 }
 0x39b   :  { %v4395_v35 = vpop.f32.mrf.mxu0 }
 0x39c   :  { %v4195_v6 = vpack.c.bf16 %v4395_v35, %v4394_v57 }
 0x39d   :  { %v3310_v28 = vpop.f32.mrf.mxu0 }
 0x39e   :  { %4315 = vst [vmem:[%s7038_s6 + $0x48] sm:$0xff] %v4195_v6   ;;  %v4190_v55 = vpack.c.bf16 %v3310_v28, %v3307_v56 }
 0x3a0   :  { %4314 = vst [vmem:[%s7038_s6 + $0x40] sm:$0xff] %v4190_v55  }
 0x3a7   :  { %v4398_v32 = vpop.f32.mrf.mxu0 }
 0x3a9   :  { %v3323_v31 = vpop.f32.mrf.mxu0 }
 0x3ab   :  { %v4399_v20 = vpop.f32.mrf.mxu0 }
 0x3ac   :  { %v4205_v15 = vpack.c.bf16 %v4399_v20, %v4398_v32 }
 0x3ad   :  { %v3326_v48 = vpop.f32.mrf.mxu0 }
 0x3ae   :  { %4317 = vst [vmem:[%s7038_s6 + $0x58] sm:$0xff] %v4205_v15   ;;  %v4200_v59 = vpack.c.bf16 %v3326_v48, %v3323_v31 }
 0x3b0   :  { %4316 = vst [vmem:[%s7038_s6 + $0x50] sm:$0xff] %v4200_v59  }
 0x3bc   :  { %v4402_v25 = vpop.f32.mrf.mxu0 }
 0x3be   :  { %v3339_v60 = vpop.f32.mrf.mxu0 }
 0x3c0   :  { %v4403_v7 = vpop.f32.mrf.mxu0 }
 0x3c1   :  { %v4215_v14 = vpack.c.bf16 %v4403_v7, %v4402_v25 }
 0x3c2   :  { %v3342_v8 = vpop.f32.mrf.mxu0 }
 0x3c3   :  { %4319 = vst [vmem:[%s7038_s6 + $0x68] sm:$0xff] %v4215_v14   ;;  %v4210_v27 = vpack.c.bf16 %v3342_v8, %v3339_v60 }
 0x3c4   :  { %v4406_v2 = vpop.f32.mrf.mxu0 }
 0x3c5   :  { %4318 = vst [vmem:[%s7038_s6 + $0x60] sm:$0xff] %v4210_v27  }
 0x3c6   :  { %v3355_v24 = vpop.f32.mrf.mxu0 }
 0x3c8   :  { %v4407_v51 = vpop.f32.mrf.mxu0 }
 0x3c9   :  { %v4225_v53 = vpack.c.bf16 %v4407_v51, %v4406_v2 }
 0x3ca   :  { %v3358_v36 = vpop.f32.mrf.mxu0 }
 0x3cb   :  { %4321 = vst [vmem:[%s7038_s6 + $0x78] sm:$0xff] %v4225_v53   ;;  %v4220_v58 = vpack.c.bf16 %v3358_v36, %v3355_v24 }
 0x3cd   :  { %4320 = vst [vmem:[%s7038_s6 + $0x70] sm:$0xff] %v4220_v58  }
 0x3d4   :  { %v4410_v0 = vpop.f32.mrf.mxu0 }
 0x3d6   :  { %v3371_v12 = vpop.f32.mrf.mxu0 }
 0x3d8   :  { %v4411_v17 = vpop.f32.mrf.mxu0 }
 0x3d9   :  { %v4235_v50 = vpack.c.bf16 %v4411_v17, %v4410_v0 }
 0x3da   :  { %v3374_v10 = vpop.f32.mrf.mxu0 }
 0x3db   :  { %4323 = vst [vmem:[%s7038_s6 + $0x88] sm:$0xff] %v4235_v50   ;;  %v4230_v22 = vpack.c.bf16 %v3374_v10, %v3371_v12 }
 0x3dd   :  { %4322 = vst [vmem:[%s7038_s6 + $0x80] sm:$0xff] %v4230_v22  }
 0x3e4   :  { %v4414_v11 = vpop.f32.mrf.mxu0 }
 0x3e6   :  { %v3387_v47 = vpop.f32.mrf.mxu0 }
 0x3e8   :  { %v4415_v62 = vpop.f32.mrf.mxu0 }
 0x3e9   :  { %v4245_v42 = vpack.c.bf16 %v4415_v62, %v4414_v11 }
 0x3ea   :  { %v3390_v45 = vpop.f32.mrf.mxu0 }
 0x3eb   :  { %4325 = vst [vmem:[%s7038_s6 + $0x98] sm:$0xff] %v4245_v42   ;;  %v4240_v63 = vpack.c.bf16 %v3390_v45, %v3387_v47 }
 0x3ed   :  { %4324 = vst [vmem:[%s7038_s6 + $0x90] sm:$0xff] %v4240_v63  }
 0x3f4   :  { %v4418_v23 = vpop.f32.mrf.mxu0 }
 0x3f6   :  { %v3403_v26 = vpop.f32.mrf.mxu0 }
 0x3f8   :  { %v4419_v41 = vpop.f32.mrf.mxu0 }
 0x3f9   :  { %v4255_v38 = vpack.c.bf16 %v4419_v41, %v4418_v23 }
 0x3fa   :  { %v3406_v30 = vpop.f32.mrf.mxu0 }
 0x3fb   :  { %4327 = vst [vmem:[%s7038_s6 + $0xa8] sm:$0xff] %v4255_v38   ;;  %v4250_v39 = vpack.c.bf16 %v3406_v30, %v3403_v26 }
 0x3fd   :  { %4326 = vst [vmem:[%s7038_s6 + $0xa0] sm:$0xff] %v4250_v39  }
 0x404   :  { %v4422_v52 = vpop.f32.mrf.mxu0 }
 0x406   :  { %v3419_v61 = vpop.f32.mrf.mxu0 }
 0x408   :  { %v4423_v29 = vpop.f32.mrf.mxu0 }
 0x409   :  { %v4265_v34 = vpack.c.bf16 %v4423_v29, %v4422_v52 }
 0x40a   :  { %v3422_v40 = vpop.f32.mrf.mxu0 }
 0x40b   :  { %4329 = vst [vmem:[%s7038_s6 + $0xb8] sm:$0xff] %v4265_v34   ;;  %v4260_v3 = vpack.c.bf16 %v3422_v40, %v3419_v61 }
 0x40d   :  { %4328 = vst [vmem:[%s7038_s6 + $0xb0] sm:$0xff] %v4260_v3  }
 0x414   :  { %v4426_v33 = vpop.f32.mrf.mxu0 }
 0x416   :  { %v3435_v4 = vpop.f32.mrf.mxu0 }
 0x418   :  { %v4427_v18 = vpop.f32.mrf.mxu0 }
 0x419   :  { %v4275_v21 = vpack.c.bf16 %v4427_v18, %v4426_v33 }
 0x41a   :  { %v3438_v37 = vpop.f32.mrf.mxu0 }
 0x41b   :  { %4331 = vst [vmem:[%s7038_s6 + $0xc8] sm:$0xff] %v4275_v21   ;;  %v4270_v9 = vpack.c.bf16 %v3438_v37, %v3435_v4 }
 0x41d   :  { %4330 = vst [vmem:[%s7038_s6 + $0xc0] sm:$0xff] %v4270_v9  }
 0x424   :  { %v4430_v1 = vpop.f32.mrf.mxu0 }
 0x426   :  { %v3451_v46 = vpop.f32.mrf.mxu0 }
 0x428   :  { %v4431_v49 = vpop.f32.mrf.mxu0 }
 0x429   :  { %v4285_v44 = vpack.c.bf16 %v4431_v49, %v4430_v1 }
 0x42a   :  { %v3454_v13 = vpop.f32.mrf.mxu0 }
 0x42b   :  { %4333 = vst [vmem:[%s7038_s6 + $0xd8] sm:$0xff] %v4285_v44   ;;  %v4280_v5 = vpack.c.bf16 %v3454_v13, %v3451_v46 }
 0x42d   :  { %4332 = vst [vmem:[%s7038_s6 + $0xd0] sm:$0xff] %v4280_v5  }
 0x434   :  { %v4434_v54 = vpop.f32.mrf.mxu0 }
 0x436   :  { %v3467_v19 = vpop.f32.mrf.mxu0 }
 0x438   :  { %v4435_v16 = vpop.f32.mrf.mxu0 }
 0x439   :  { %v4295_v43 = vpack.c.bf16 %v4435_v16, %v4434_v54 }
 0x43a   :  { %v3470_v57 = vpop.f32.mrf.mxu0 }
 0x43b   :  { %4335 = vst [vmem:[%s7038_s6 + $0xe8] sm:$0xff] %v4295_v43   ;;  %v4290_v56 = vpack.c.bf16 %v3470_v57, %v3467_v19 }
 0x43d   :  { %4334 = vst [vmem:[%s7038_s6 + $0xe0] sm:$0xff] %v4290_v56  }
 0x444   :  { %v4438_v35 = vpop.f32.mrf.mxu0 }
 0x446   :  { %v3483_v6 = vpop.f32.mrf.mxu0 }
 0x448   :  { %v4439_v28 = vpop.f32.mrf.mxu0 }
 0x449   :  { %v4305_v55 = vpack.c.bf16 %v4439_v28, %v4438_v35 }
 0x44a   :  { %v3486_v32 = vpop.f32.mrf.mxu0 }
 0x44b   :  { %4337 = vst [vmem:[%s7038_s6 + $0xf8] sm:$0xff] %v4305_v55   ;;  %v4300_v31 = vpack.c.bf16 %v3486_v32, %v3483_v6 }
 0x44d   :  { %4336 = vst [vmem:[%s7038_s6 + $0xf0] sm:$0xff] %v4300_v31  }

</bundles_post_ra>
